<compile_context>
chip_gen: v7x
topology: tpu7x:2x2x1
jax: 0.10.0
libtpu: 0.0.40
codegen_flags: <defaults>
</compile_context>

<pallas_src>
import math
import functools

import jax
import jax.numpy as jnp
from jax.experimental import pallas as pl
from jax.experimental.pallas import tpu as pltpu

SQRT_2_OVER_PI = math.sqrt(2.0 / math.pi)
PENALTY = 1e13  # matches torch.ones_like(...) * 10000000000000.0


# ----------------------------------------------------------------------------
# Fused Pallas kernel: encoder stack + decoder stack + classifier
# ----------------------------------------------------------------------------
def _botnet_kernel(B, L, heads, key_size, out_size, nb_en, nb_de,
                   x_ref, m_ref, ame_ref, amd_ref,
                   e_wqkv_ref, e_bqkv_ref, e_wo_ref, e_bo_ref, e_g_ref, e_b_ref,
                   e_w1_ref, e_b1_ref, e_w2_ref, e_b2_ref,
                   d_wqkv_ref, d_bqkv_ref, d_wo_ref, d_bo_ref, d_g_ref, d_b_ref,
                   d_w1_ref, d_b1_ref, d_w2_ref, d_b2_ref,
                   wcls_ref, bcls_ref, out_ref):
    HK = heads * key_size
    HO = heads * out_size
    scale = 1.0 / math.sqrt(float(key_size))

    x = x_ref[...]          # [B*L, D]
    m = m_ref[...]          # [B*L, 1]  (qkv padding mask column, f32)
    am_e = ame_ref[...]     # [B, L, L] additive penalty mask (encoder)
    am_d = amd_ref[...]     # [B, L, L] additive penalty mask (decoder)

    def gelu_new(v):
        return 0.5 * v * (1.0 + jnp.tanh(SQRT_2_OVER_PI *
                                         (v + 0.044715 * v * v * v)))

    def layer_norm(v, g, be):
        mu = jnp.mean(v, axis=-1, keepdims=True)
        var = jnp.mean((v - mu) * (v - mu), axis=-1, keepdims=True)
        return (v - mu) * jax.lax.rsqrt(var + 1e-5) * g + be

    def mha(qw, kw, vw, amask, wo, bo):
        """qw/kw: [B*L, HK], vw: [B*L, HO].  Per-head contributions are
        accumulated straight into the output projection (no concat)."""
        rows = []
        for b in range(B):                      # static unroll (tiny B)
            am = amask[b]                       # [L, L]
            acc = None
            for h in range(heads):              # static unroll (tiny H)
                qh = qw[b * L:(b + 1) * L, h * key_size:(h + 1) * key_size]
                kh = kw[b * L:(b + 1) * L, h * key_size:(h + 1) * key_size]
                vh = vw[b * L:(b + 1) * L, h * out_size:(h + 1) * out_size]
                s = jax.lax.dot_general(qh, kh, (((1,), (1,)), ((), ())),
                                        preferred_element_type=jnp.float32)
                s = s * scale - am
                s = s - jnp.max(s, axis=-1, keepdims=True)
                p = jnp.exp(s)
                p = p * pl.reciprocal(jnp.sum(p, axis=-1, keepdims=True),
                                      approx=True)
                pv = jnp.dot(p, vh, preferred_element_type=jnp.float32)  # [L,O]
                contrib = jnp.dot(pv, wo[h * out_size:(h + 1) * out_size, :],
                                  preferred_element_type=jnp.float32)    # [L,HO]
                acc = contrib if acc is None else acc + contrib
            rows.append(acc)
        o = rows[0] if B == 1 else jnp.concatenate(rows, axis=0)   # [B*L, HO]
        return (o + bo) * m

    def ffn(q_in, o, g, be, w1, b1, w2, b2):
        # dropout is identity in eval mode
        o = layer_norm(o + q_in, g, be)
        res = o
        h1 = gelu_new(jnp.dot(o, w1, preferred_element_type=jnp.float32) + b1)
        o2 = jnp.dot(h1, w2, preferred_element_type=jnp.float32) + b2
        return layer_norm(o2 + res, g, be)

    # ------------------------------ encoder ---------------------------------
    e_wqkv = e_wqkv_ref[...]; e_bqkv = e_bqkv_ref[...]
    e_wo = e_wo_ref[...];     e_bo = e_bo_ref[...]
    e_g = e_g_ref[...];       e_b = e_b_ref[...]
    e_w1 = e_w1_ref[...];     e_b1 = e_b1_ref[...]
    e_w2 = e_w2_ref[...];     e_b2 = e_b2_ref[...]

    enc = x
    for _ in range(nb_en):  # same block weights every layer (matches PyTorch)
        proj = (jnp.dot(enc, e_wqkv, preferred_element_type=jnp.float32)
                + e_bqkv) * m                       # fused Q|K|V projection
        qw = proj[:, :HK]
        kw = proj[:, HK:2 * HK]
        vw = proj[:, 2 * HK:]
        o = mha(qw, kw, vw, am_e, e_wo, e_bo)
        enc = ffn(enc, o, e_g, e_b, e_w1, e_b1, e_w2, e_b2)

    # ------------------------------ decoder ---------------------------------
    d_wqkv = d_wqkv_ref[...]; d_bqkv = d_bqkv_ref[...]
    d_wo = d_wo_ref[...];     d_bo = d_bo_ref[...]
    d_g = d_g_ref[...];       d_b = d_b_ref[...]
    d_w1 = d_w1_ref[...];     d_b1 = d_b1_ref[...]
    d_w2 = d_w2_ref[...];     d_b2 = d_b2_ref[...]

    # K/V come from the (fixed) encoder output with layer-invariant weights:
    # compute them once, outside the decoder layer loop.
    kv_proj = (jnp.dot(enc, d_wqkv[:, HK:], preferred_element_type=jnp.float32)
               + d_bqkv[:, HK:]) * m
    kw_d = kv_proj[:, :HK]
    vw_d = kv_proj[:, HK:]

    dec = x
    for _ in range(nb_de):
        qw = (jnp.dot(dec, d_wqkv[:, :HK], preferred_element_type=jnp.float32)
              + d_bqkv[:, :HK]) * m
        o = mha(qw, kw_d, vw_d, am_d, d_wo, d_bo)
        dec = ffn(dec, o, d_g, d_b, d_w1, d_b1, d_w2, d_b2)

    # --------------------------- classifier ---------------------------------
    # w_cls is zero-padded to a 128-lane multiple in the wrapper -> lane-dense
    # store of the only kernel output.
    out_ref[...] = (jnp.dot(dec, wcls_ref[...],
                            preferred_element_type=jnp.float32)
                    + bcls_ref[...]).astype(out_ref.dtype)


def _block_args(blk):
    """Fuse per-block projection weights into one Q|K|V weight/bias pair."""
    wqkv = jnp.concatenate([blk["wq"], blk["wk"], blk["wv"]], axis=1)
    bqkv = jnp.concatenate([blk["bq"], blk["bk"], blk["bv"]], axis=1)
    return (wqkv, bqkv, blk["wo"], blk["bo"], blk["ln_g"], blk["ln_b"],
            blk["w1"], blk["b1"], blk["w2"], blk["b2"])


def botnet_core(x, qkv_mask, a_mask_enc, a_mask_dec, enc_blk, dec_blk,
                w_cls, b_cls, cfg):
    """Single fused pallas_call for encoder + decoder + classifier."""
    B, L, D = x.shape
    heads, K, O = cfg["heads"], cfg["key_size"], cfg["out_size"]
    V = w_cls.shape[1]
    Vpad = ((V + 127) // 128) * 128

    x2 = x.reshape(B * L, D)
    m_col = qkv_mask.reshape(B * L, 1)
    w_cls_p = jnp.pad(w_cls, ((0, 0), (0, Vpad - V)))
    b_cls_p = jnp.pad(b_cls, ((0, 0), (0, Vpad - V)))

    kernel = functools.partial(_botnet_kernel, B, L, heads, K, O,
                               cfg["nb_tf_en"], cfg["nb_tf_de"])

    y = pl.pallas_call(
        kernel,
        out_shape=jax.ShapeDtypeStruct((B * L, Vpad), jnp.float32),
    )(x2, m_col, a_mask_enc, a_mask_dec,
      *_block_args(enc_blk), *_block_args(dec_blk), w_cls_p, b_cls_p)

    return y[:, :V].reshape(B, L, V)


# ----------------------------------------------------------------------------
# Mask construction (matches construct_qkv_mask / construct_a_mask)
# ----------------------------------------------------------------------------
def make_qkv_mask(cls_idx, max_len):
    k = jnp.arange(max_len)[None, :]
    length = (cls_idx + 1)[:, None]
    return (k < length).astype(jnp.float32)                     # [B, L]


def make_a_mask(sep_idx, cls_idx, max_len):
    q = jnp.arange(max_len)[None, :, None]
    k = jnp.arange(max_len)[None, None, :]
    length = (cls_idx + 1)[:, None, None]
    sep1 = (sep_idx + 1)[:, None, None]
    in_up = (q < length) & (k < length)
    lm = (k >= sep1) & (k > q)                                   # non-degenerate
    degenerate = ((sep_idx + 1) == cls_idx)[:, None, None]
    left_up = jnp.where(degenerate, False, lm)
    mask = jnp.where(in_up, left_up, True)
    return mask.astype(jnp.float32) * PENALTY                    # [B, L, L]


# ----------------------------------------------------------------------------
# Embedding layer (plain-JAX glue) and full Botnet forward
# ----------------------------------------------------------------------------
def embedding_forward(params, inputs_ids, target_ids, nlu_ids, course_ids, cfg):
    word_emb = params["word_emb"]
    word_size, _ = word_emb.shape
    D = cfg["tf_emb_size"]
    max_len = cfg["max_len"]
    B = inputs_ids.shape[0]

    # TODO(synk): the original `kl` comes from an nn.LSTM driven by schedule_hpu
    # through an `encode()` helper that is not defined in the source module;
    # replaced here with a deterministic mean-pool + linear projection.
    nlu_vecs = word_emb[nlu_ids]                                 # [B, n_nlu, emb]
    kl = jnp.tanh(nlu_vecs.mean(axis=1) @ params["w_kl"] + params["b_kl"])

    # word2sig_batch: relu(id - (word_size - 1)) -> one-hot over sig_class
    label = jnp.maximum(inputs_ids - (word_size - 1), 0)
    sig = jax.nn.one_hot(label, cfg["sig_class"], dtype=jnp.float32)
    inputs_sig = sig @ params["w_sig"] + params["b_sig"]         # [B, L-1, D]

    x = word_emb[inputs_ids] @ params["w_emb"] + params["b_emb"]
    x = x + inputs_sig

    # course one-hot (sized to course_nb so that course_fc dims are consistent)
    c_onehot = jax.nn.one_hot(course_ids, cfg["course_nb"], dtype=jnp.float32)
    c_emb = jnp.broadcast_to(c_onehot[:, None, :], (B, max_len, cfg["course_nb"]))

    # prepend kl, add sinusoidal positional embedding
    x = jnp.concatenate([kl[:, None, :], x], axis=1)             # [B, max_len, D]
    pos = jnp.arange(max_len, dtype=jnp.float32)
    inv_freq = 1.0 / (10000.0 ** (jnp.arange(0, D, 2, dtype=jnp.float32) / D))
    sinu = pos[:, None] * inv_freq[None, :]
    p_emb = jnp.concatenate([jnp.sin(sinu), jnp.cos(sinu)], axis=-1)
    x = x + p_emb[None, :, :]

    x = jnp.concatenate([x, c_emb], axis=-1) @ params["w_course"] + params["b_course"]
    return x, target_ids


def botnet_forward(params, inputs_ids, target_ids, nlu_ids, course_ids,
                   cls_idx, sep_idx_enc, sep_idx_dec, cfg):
    x, label = embedding_forward(params, inputs_ids, target_ids, nlu_ids,
                                 course_ids, cfg)

    L = cfg["max_len"]
    qkv_mask = make_qkv_mask(cls_idx, L)                         # [B, L]
    a_mask_enc = make_a_mask(sep_idx_enc, cls_idx, L)            # [B, L, L]
    a_mask_dec = make_a_mask(sep_idx_dec, cls_idx, L)            # [B, L, L]

    y = botnet_core(x, qkv_mask, a_mask_enc, a_mask_dec,
                    params["enc_block"], params["dec_block"],
                    params["w_cls"], params["b_cls"], cfg)
    return y, label


# ----------------------------------------------------------------------------
# Deterministic parameter init
# ----------------------------------------------------------------------------
def _dense(key, fan_in, fan_out, scale=0.02):
    return scale * jax.random.normal(key, (fan_in, fan_out), dtype=jnp.float32)


def _bias(key, dim, scale=0.02):
    return scale * jax.random.normal(key, (1, dim), dtype=jnp.float32)


def init_block(key, D, hS, heads, key_size, out_size):
    HK = heads * key_size
    HO = heads * out_size
    ks = jax.random.split(key, 12)
    return dict(
        wq=_dense(ks[0], D, HK), bq=_bias(ks[1], HK),
        wk=_dense(ks[2], D, HK), bk=_bias(ks[3], HK),
        wv=_dense(ks[4], D, HO), bv=_bias(ks[5], HO),
        wo=_dense(ks[6], HO, HO), bo=_bias(ks[7], HO),
        ln_g=jnp.ones((1, HO), jnp.float32), ln_b=jnp.zeros((1, HO), jnp.float32),
        w1=_dense(ks[8], HO, hS), b1=_bias(ks[9], hS),
        w2=_dense(ks[10], hS, HO), b2=_bias(ks[11], HO),
    )


def init_params(key, cfg):
    D = cfg["tf_emb_size"]
    ks = jax.random.split(key, 16)
    return dict(
        word_emb=0.1 * jax.random.normal(
            ks[0], (cfg["word_size"], cfg["emb_size"]), jnp.float32),
        w_kl=_dense(ks[1], cfg["emb_size"], D), b_kl=_bias(ks[2], D)[0],
        w_sig=_dense(ks[3], cfg["sig_class"], D), b_sig=_bias(ks[4], D)[0],
        w_emb=_dense(ks[5], cfg["emb_size"], D), b_emb=_bias(ks[6], D)[0],
        w_course=_dense(ks[7], D + cfg["course_nb"], D),
        b_course=_bias(ks[8], D)[0],
        enc_block=init_block(ks[9], D, cfg["hidden_tf_en"], cfg["heads"],
                             cfg["key_size"], cfg["out_size"]),
        dec_block=init_block(ks[10], D, cfg["hidden_tf_de"], cfg["heads"],
                             cfg["key_size"], cfg["out_size"]),
        w_cls=_dense(ks[11], D, cfg["word_size"]),
        b_cls=_bias(ks[12], cfg["word_size"]),
    )


# ----------------------------------------------------------------------------
if __name__ == "__main__":
    cfg = dict(
        max_len=16,          # sequence length after prepending kl
        tf_emb_size=32,
        heads=4,
        key_size=8,
        out_size=8,
        hidden_tf_en=64,
        hidden_tf_de=64,
        nb_tf_en=2,
        nb_tf_de=2,
        word_size=24,
        emb_size=16,
        sig_class=5,
        course_nb=4,
    )

    root = jax.random.PRNGKey(0)
    kp, k1, k2, k3, k4 = jax.random.split(root, 5)
    params = init_params(kp, cfg)

    B = 2
    n_nlu = 6
    Lm1 = cfg["max_len"] - 1
    inputs_ids = jax.random.randint(k1, (B, Lm1), 0, cfg["word_size"])
    target_ids = jax.random.randint(k2, (B, Lm1), 0, cfg["word_size"])
    nlu_ids = jax.random.randint(k3, (B, n_nlu), 0, cfg["word_size"])
    course_ids = jax.random.randint(k4, (B,), 0, cfg["course_nb"])
    cls_idx = jnp.array([12, 10], dtype=jnp.int32)
    sep_idx_encoder = jnp.array([5, 4], dtype=jnp.int32)
    sep_idx_decoder = jnp.array([6, 5], dtype=jnp.int32)

    fwd = jax.jit(functools.partial(botnet_forward, cfg=cfg))
    y, label = fwd(params, inputs_ids, target_ids, nlu_ids, course_ids,
                   cls_idx, sep_idx_encoder, sep_idx_decoder)
    jax.block_until_ready(y)
    jax.block_until_ready(label)

    assert y.shape == (B, cfg["max_len"], cfg["word_size"])
    assert label.shape == (B, Lm1)
    assert bool(jnp.all(jnp.isfinite(y)))
    print("KERNEL_OK")
</pallas_src>

<mosaic_0001>
module attributes {stable_mosaic.version = 11 : i64} {
  func.func @_botnet_kernel(%arg0: memref<32x32xf32, #tpu.memory_space<vmem>>, %arg1: memref<32x1xf32, #tpu.memory_space<vmem>>, %arg2: memref<2x16x16xf32, #tpu.memory_space<vmem>>, %arg3: memref<2x16x16xf32, #tpu.memory_space<vmem>>, %arg4: memref<32x96xf32, #tpu.memory_space<vmem>>, %arg5: memref<1x96xf32, #tpu.memory_space<vmem>>, %arg6: memref<32x32xf32, #tpu.memory_space<vmem>>, %arg7: memref<1x32xf32, #tpu.memory_space<vmem>>, %arg8: memref<1x32xf32, #tpu.memory_space<vmem>>, %arg9: memref<1x32xf32, #tpu.memory_space<vmem>>, %arg10: memref<32x64xf32, #tpu.memory_space<vmem>>, %arg11: memref<1x64xf32, #tpu.memory_space<vmem>>, %arg12: memref<64x32xf32, #tpu.memory_space<vmem>>, %arg13: memref<1x32xf32, #tpu.memory_space<vmem>>, %arg14: memref<32x96xf32, #tpu.memory_space<vmem>>, %arg15: memref<1x96xf32, #tpu.memory_space<vmem>>, %arg16: memref<32x32xf32, #tpu.memory_space<vmem>>, %arg17: memref<1x32xf32, #tpu.memory_space<vmem>>, %arg18: memref<1x32xf32, #tpu.memory_space<vmem>>, %arg19: memref<1x32xf32, #tpu.memory_space<vmem>>, %arg20: memref<32x64xf32, #tpu.memory_space<vmem>>, %arg21: memref<1x64xf32, #tpu.memory_space<vmem>>, %arg22: memref<64x32xf32, #tpu.memory_space<vmem>>, %arg23: memref<1x32xf32, #tpu.memory_space<vmem>>, %arg24: memref<32x128xf32, #tpu.memory_space<vmem>>, %arg25: memref<1x128xf32, #tpu.memory_space<vmem>>, %arg26: memref<32x128xf32, #tpu.memory_space<vmem>>) attributes {dimension_semantics = [], scalar_prefetch = 0 : i64, scratch_operands = 0 : i64, tpu.core_type = #tpu.core_type<tc>} {
    %c0 = arith.constant 0 : index
    %c0_0 = arith.constant 0 : index
    %0 = vector.load %arg0[%c0, %c0_0] : memref<32x32xf32, #tpu.memory_space<vmem>>, vector<32x32xf32>
    %c0_1 = arith.constant 0 : index
    %c0_2 = arith.constant 0 : index
    %1 = vector.load %arg1[%c0_1, %c0_2] : memref<32x1xf32, #tpu.memory_space<vmem>>, vector<32x1xf32>
    %c0_3 = arith.constant 0 : index
    %c0_4 = arith.constant 0 : index
    %c0_5 = arith.constant 0 : index
    %2 = vector.load %arg2[%c0_3, %c0_4, %c0_5] : memref<2x16x16xf32, #tpu.memory_space<vmem>>, vector<2x16x16xf32>
    %c0_6 = arith.constant 0 : index
    %c0_7 = arith.constant 0 : index
    %c0_8 = arith.constant 0 : index
    %3 = vector.load %arg3[%c0_6, %c0_7, %c0_8] : memref<2x16x16xf32, #tpu.memory_space<vmem>>, vector<2x16x16xf32>
    %c0_9 = arith.constant 0 : index
    %c0_10 = arith.constant 0 : index
    %4 = vector.load %arg4[%c0_9, %c0_10] : memref<32x96xf32, #tpu.memory_space<vmem>>, vector<32x96xf32>
    %c0_11 = arith.constant 0 : index
    %c0_12 = arith.constant 0 : index
    %5 = vector.load %arg5[%c0_11, %c0_12] : memref<1x96xf32, #tpu.memory_space<vmem>>, vector<1x96xf32>
    %c0_13 = arith.constant 0 : index
    %c0_14 = arith.constant 0 : index
    %6 = vector.load %arg6[%c0_13, %c0_14] : memref<32x32xf32, #tpu.memory_space<vmem>>, vector<32x32xf32>
    %c0_15 = arith.constant 0 : index
    %c0_16 = arith.constant 0 : index
    %7 = vector.load %arg7[%c0_15, %c0_16] : memref<1x32xf32, #tpu.memory_space<vmem>>, vector<1x32xf32>
    %c0_17 = arith.constant 0 : index
    %c0_18 = arith.constant 0 : index
    %8 = vector.load %arg8[%c0_17, %c0_18] : memref<1x32xf32, #tpu.memory_space<vmem>>, vector<1x32xf32>
    %c0_19 = arith.constant 0 : index
    %c0_20 = arith.constant 0 : index
    %9 = vector.load %arg9[%c0_19, %c0_20] : memref<1x32xf32, #tpu.memory_space<vmem>>, vector<1x32xf32>
    %c0_21 = arith.constant 0 : index
    %c0_22 = arith.constant 0 : index
    %10 = vector.load %arg10[%c0_21, %c0_22] : memref<32x64xf32, #tpu.memory_space<vmem>>, vector<32x64xf32>
    %c0_23 = arith.constant 0 : index
    %c0_24 = arith.constant 0 : index
    %11 = vector.load %arg11[%c0_23, %c0_24] : memref<1x64xf32, #tpu.memory_space<vmem>>, vector<1x64xf32>
    %c0_25 = arith.constant 0 : index
    %c0_26 = arith.constant 0 : index
    %12 = vector.load %arg12[%c0_25, %c0_26] : memref<64x32xf32, #tpu.memory_space<vmem>>, vector<64x32xf32>
    %c0_27 = arith.constant 0 : index
    %c0_28 = arith.constant 0 : index
    %13 = vector.load %arg13[%c0_27, %c0_28] : memref<1x32xf32, #tpu.memory_space<vmem>>, vector<1x32xf32>
    %cst = arith.constant dense<0.000000e+00> : vector<32x96xf32>
    %14 = tpu.matmul %0, %4, %cst {dimension_numbers = #tpu.dot_dimension_numbers<[1], [0], [0], [1], [0, 0, 1, 1], [], []>} : vector<32x32xf32>, vector<32x96xf32>, vector<32x96xf32> -> vector<32x96xf32>
    %15 = vector.broadcast %5 : vector<1x96xf32> to vector<32x96xf32>
    %16 = arith.addf %14, %15 : vector<32x96xf32>
    %17 = vector.broadcast %1 : vector<32x1xf32> to vector<32x96xf32>
    %18 = arith.mulf %16, %17 : vector<32x96xf32>
    %19 = vector.extract_strided_slice %18 {offsets = [0, 0], sizes = [32, 32], strides = [1, 1]} : vector<32x96xf32> to vector<32x32xf32>
    %20 = vector.extract_strided_slice %18 {offsets = [0, 32], sizes = [32, 32], strides = [1, 1]} : vector<32x96xf32> to vector<32x32xf32>
    %21 = vector.extract_strided_slice %18 {offsets = [0, 64], sizes = [32, 32], strides = [1, 1]} : vector<32x96xf32> to vector<32x32xf32>
    %22 = vector.extract_strided_slice %2 {offsets = [0, 0, 0], sizes = [1, 16, 16], strides = [1, 1, 1]} : vector<2x16x16xf32> to vector<1x16x16xf32>
    %23 = vector.shape_cast %22 : vector<1x16x16xf32> to vector<16x16xf32>
    %24 = vector.extract_strided_slice %19 {offsets = [0, 0], sizes = [16, 8], strides = [1, 1]} : vector<32x32xf32> to vector<16x8xf32>
    %25 = vector.extract_strided_slice %20 {offsets = [0, 0], sizes = [16, 8], strides = [1, 1]} : vector<32x32xf32> to vector<16x8xf32>
    %26 = vector.extract_strided_slice %21 {offsets = [0, 0], sizes = [16, 8], strides = [1, 1]} : vector<32x32xf32> to vector<16x8xf32>
    %cst_29 = arith.constant dense<0.000000e+00> : vector<16x16xf32>
    %27 = tpu.matmul %24, %25, %cst_29 {dimension_numbers = #tpu.dot_dimension_numbers<[1], [1], [0], [0], [0, 0, 1, 0], [], []>} : vector<16x8xf32>, vector<16x8xf32>, vector<16x16xf32> -> vector<16x16xf32>
    %cst_30 = arith.constant 0.353553385 : f32
    %28 = vector.broadcast %cst_30 : f32 to vector<16x16xf32>
    %29 = arith.mulf %27, %28 : vector<16x16xf32>
    %30 = arith.subf %29, %23 : vector<16x16xf32>
    %cst_31 = arith.constant dense<0xFF800000> : vector<16xf32>
    %31 = vector.multi_reduction <maximumf>, %30, %cst_31 [1] : vector<16x16xf32> to vector<16xf32>
    %32 = vector.shape_cast %31 : vector<16xf32> to vector<16x1xf32>
    %33 = vector.broadcast %32 : vector<16x1xf32> to vector<16x16xf32>
    %34 = arith.subf %30, %33 : vector<16x16xf32>
    %35 = math.exp %34 : vector<16x16xf32>
    %cst_32 = arith.constant dense<0.000000e+00> : vector<16xf32>
    %36 = vector.multi_reduction <add>, %35, %cst_32 [1] : vector<16x16xf32> to vector<16xf32>
    %37 = vector.shape_cast %36 : vector<16xf32> to vector<16x1xf32>
    %38 = tpu.reciprocal %37 {approx = true} : vector<16x1xf32> -> vector<16x1xf32>
    %39 = vector.broadcast %38 : vector<16x1xf32> to vector<16x16xf32>
    %40 = arith.mulf %35, %39 : vector<16x16xf32>
    %cst_33 = arith.constant dense<0.000000e+00> : vector<16x8xf32>
    %41 = tpu.matmul %40, %26, %cst_33 {dimension_numbers = #tpu.dot_dimension_numbers<[1], [0], [0], [1], [0, 0, 1, 1], [], []>} : vector<16x16xf32>, vector<16x8xf32>, vector<16x8xf32> -> vector<16x8xf32>
    %42 = vector.extract_strided_slice %6 {offsets = [0, 0], sizes = [8, 32], strides = [1, 1]} : vector<32x32xf32> to vector<8x32xf32>
    %cst_34 = arith.constant dense<0.000000e+00> : vector<16x32xf32>
    %43 = tpu.matmul %41, %42, %cst_34 {dimension_numbers = #tpu.dot_dimension_numbers<[1], [0], [0], [1], [0, 0, 1, 1], [], []>} : vector<16x8xf32>, vector<8x32xf32>, vector<16x32xf32> -> vector<16x32xf32>
    %44 = vector.extract_strided_slice %19 {offsets = [0, 8], sizes = [16, 8], strides = [1, 1]} : vector<32x32xf32> to vector<16x8xf32>
    %45 = vector.extract_strided_slice %20 {offsets = [0, 8], sizes = [16, 8], strides = [1, 1]} : vector<32x32xf32> to vector<16x8xf32>
    %46 = vector.extract_strided_slice %21 {offsets = [0, 8], sizes = [16, 8], strides = [1, 1]} : vector<32x32xf32> to vector<16x8xf32>
    %cst_35 = arith.constant dense<0.000000e+00> : vector<16x16xf32>
    %47 = tpu.matmul %44, %45, %cst_35 {dimension_numbers = #tpu.dot_dimension_numbers<[1], [1], [0], [0], [0, 0, 1, 0], [], []>} : vector<16x8xf32>, vector<16x8xf32>, vector<16x16xf32> -> vector<16x16xf32>
    %cst_36 = arith.constant 0.353553385 : f32
    %48 = vector.broadcast %cst_36 : f32 to vector<16x16xf32>
    %49 = arith.mulf %47, %48 : vector<16x16xf32>
    %50 = arith.subf %49, %23 : vector<16x16xf32>
    %cst_37 = arith.constant dense<0xFF800000> : vector<16xf32>
    %51 = vector.multi_reduction <maximumf>, %50, %cst_37 [1] : vector<16x16xf32> to vector<16xf32>
    %52 = vector.shape_cast %51 : vector<16xf32> to vector<16x1xf32>
    %53 = vector.broadcast %52 : vector<16x1xf32> to vector<16x16xf32>
    %54 = arith.subf %50, %53 : vector<16x16xf32>
    %55 = math.exp %54 : vector<16x16xf32>
    %cst_38 = arith.constant dense<0.000000e+00> : vector<16xf32>
    %56 = vector.multi_reduction <add>, %55, %cst_38 [1] : vector<16x16xf32> to vector<16xf32>
    %57 = vector.shape_cast %56 : vector<16xf32> to vector<16x1xf32>
    %58 = tpu.reciprocal %57 {approx = true} : vector<16x1xf32> -> vector<16x1xf32>
    %59 = vector.broadcast %58 : vector<16x1xf32> to vector<16x16xf32>
    %60 = arith.mulf %55, %59 : vector<16x16xf32>
    %cst_39 = arith.constant dense<0.000000e+00> : vector<16x8xf32>
    %61 = tpu.matmul %60, %46, %cst_39 {dimension_numbers = #tpu.dot_dimension_numbers<[1], [0], [0], [1], [0, 0, 1, 1], [], []>} : vector<16x16xf32>, vector<16x8xf32>, vector<16x8xf32> -> vector<16x8xf32>
    %62 = vector.extract_strided_slice %6 {offsets = [8, 0], sizes = [8, 32], strides = [1, 1]} : vector<32x32xf32> to vector<8x32xf32>
    %cst_40 = arith.constant dense<0.000000e+00> : vector<16x32xf32>
    %63 = tpu.matmul %61, %62, %cst_40 {dimension_numbers = #tpu.dot_dimension_numbers<[1], [0], [0], [1], [0, 0, 1, 1], [], []>} : vector<16x8xf32>, vector<8x32xf32>, vector<16x32xf32> -> vector<16x32xf32>
    %64 = arith.addf %43, %63 : vector<16x32xf32>
    %65 = vector.extract_strided_slice %19 {offsets = [0, 16], sizes = [16, 8], strides = [1, 1]} : vector<32x32xf32> to vector<16x8xf32>
    %66 = vector.extract_strided_slice %20 {offsets = [0, 16], sizes = [16, 8], strides = [1, 1]} : vector<32x32xf32> to vector<16x8xf32>
    %67 = vector.extract_strided_slice %21 {offsets = [0, 16], sizes = [16, 8], strides = [1, 1]} : vector<32x32xf32> to vector<16x8xf32>
    %cst_41 = arith.constant dense<0.000000e+00> : vector<16x16xf32>
    %68 = tpu.matmul %65, %66, %cst_41 {dimension_numbers = #tpu.dot_dimension_numbers<[1], [1], [0], [0], [0, 0, 1, 0], [], []>} : vector<16x8xf32>, vector<16x8xf32>, vector<16x16xf32> -> vector<16x16xf32>
    %cst_42 = arith.constant 0.353553385 : f32
    %69 = vector.broadcast %cst_42 : f32 to vector<16x16xf32>
    %70 = arith.mulf %68, %69 : vector<16x16xf32>
    %71 = arith.subf %70, %23 : vector<16x16xf32>
    %cst_43 = arith.constant dense<0xFF800000> : vector<16xf32>
    %72 = vector.multi_reduction <maximumf>, %71, %cst_43 [1] : vector<16x16xf32> to vector<16xf32>
    %73 = vector.shape_cast %72 : vector<16xf32> to vector<16x1xf32>
    %74 = vector.broadcast %73 : vector<16x1xf32> to vector<16x16xf32>
    %75 = arith.subf %71, %74 : vector<16x16xf32>
    %76 = math.exp %75 : vector<16x16xf32>
    %cst_44 = arith.constant dense<0.000000e+00> : vector<16xf32>
    %77 = vector.multi_reduction <add>, %76, %cst_44 [1] : vector<16x16xf32> to vector<16xf32>
    %78 = vector.shape_cast %77 : vector<16xf32> to vector<16x1xf32>
    %79 = tpu.reciprocal %78 {approx = true} : vector<16x1xf32> -> vector<16x1xf32>
    %80 = vector.broadcast %79 : vector<16x1xf32> to vector<16x16xf32>
    %81 = arith.mulf %76, %80 : vector<16x16xf32>
    %cst_45 = arith.constant dense<0.000000e+00> : vector<16x8xf32>
    %82 = tpu.matmul %81, %67, %cst_45 {dimension_numbers = #tpu.dot_dimension_numbers<[1], [0], [0], [1], [0, 0, 1, 1], [], []>} : vector<16x16xf32>, vector<16x8xf32>, vector<16x8xf32> -> vector<16x8xf32>
    %83 = vector.extract_strided_slice %6 {offsets = [16, 0], sizes = [8, 32], strides = [1, 1]} : vector<32x32xf32> to vector<8x32xf32>
    %cst_46 = arith.constant dense<0.000000e+00> : vector<16x32xf32>
    %84 = tpu.matmul %82, %83, %cst_46 {dimension_numbers = #tpu.dot_dimension_numbers<[1], [0], [0], [1], [0, 0, 1, 1], [], []>} : vector<16x8xf32>, vector<8x32xf32>, vector<16x32xf32> -> vector<16x32xf32>
    %85 = arith.addf %64, %84 : vector<16x32xf32>
    %86 = vector.extract_strided_slice %19 {offsets = [0, 24], sizes = [16, 8], strides = [1, 1]} : vector<32x32xf32> to vector<16x8xf32>
    %87 = vector.extract_strided_slice %20 {offsets = [0, 24], sizes = [16, 8], strides = [1, 1]} : vector<32x32xf32> to vector<16x8xf32>
    %88 = vector.extract_strided_slice %21 {offsets = [0, 24], sizes = [16, 8], strides = [1, 1]} : vector<32x32xf32> to vector<16x8xf32>
    %cst_47 = arith.constant dense<0.000000e+00> : vector<16x16xf32>
    %89 = tpu.matmul %86, %87, %cst_47 {dimension_numbers = #tpu.dot_dimension_numbers<[1], [1], [0], [0], [0, 0, 1, 0], [], []>} : vector<16x8xf32>, vector<16x8xf32>, vector<16x16xf32> -> vector<16x16xf32>
    %cst_48 = arith.constant 0.353553385 : f32
    %90 = vector.broadcast %cst_48 : f32 to vector<16x16xf32>
    %91 = arith.mulf %89, %90 : vector<16x16xf32>
    %92 = arith.subf %91, %23 : vector<16x16xf32>
    %cst_49 = arith.constant dense<0xFF800000> : vector<16xf32>
    %93 = vector.multi_reduction <maximumf>, %92, %cst_49 [1] : vector<16x16xf32> to vector<16xf32>
    %94 = vector.shape_cast %93 : vector<16xf32> to vector<16x1xf32>
    %95 = vector.broadcast %94 : vector<16x1xf32> to vector<16x16xf32>
    %96 = arith.subf %92, %95 : vector<16x16xf32>
    %97 = math.exp %96 : vector<16x16xf32>
    %cst_50 = arith.constant dense<0.000000e+00> : vector<16xf32>
    %98 = vector.multi_reduction <add>, %97, %cst_50 [1] : vector<16x16xf32> to vector<16xf32>
    %99 = vector.shape_cast %98 : vector<16xf32> to vector<16x1xf32>
    %100 = tpu.reciprocal %99 {approx = true} : vector<16x1xf32> -> vector<16x1xf32>
    %101 = vector.broadcast %100 : vector<16x1xf32> to vector<16x16xf32>
    %102 = arith.mulf %97, %101 : vector<16x16xf32>
    %cst_51 = arith.constant dense<0.000000e+00> : vector<16x8xf32>
    %103 = tpu.matmul %102, %88, %cst_51 {dimension_numbers = #tpu.dot_dimension_numbers<[1], [0], [0], [1], [0, 0, 1, 1], [], []>} : vector<16x16xf32>, vector<16x8xf32>, vector<16x8xf32> -> vector<16x8xf32>
    %104 = vector.extract_strided_slice %6 {offsets = [24, 0], sizes = [8, 32], strides = [1, 1]} : vector<32x32xf32> to vector<8x32xf32>
    %cst_52 = arith.constant dense<0.000000e+00> : vector<16x32xf32>
    %105 = tpu.matmul %103, %104, %cst_52 {dimension_numbers = #tpu.dot_dimension_numbers<[1], [0], [0], [1], [0, 0, 1, 1], [], []>} : vector<16x8xf32>, vector<8x32xf32>, vector<16x32xf32> -> vector<16x32xf32>
    %106 = arith.addf %85, %105 : vector<16x32xf32>
    %107 = vector.extract_strided_slice %2 {offsets = [1, 0, 0], sizes = [1, 16, 16], strides = [1, 1, 1]} : vector<2x16x16xf32> to vector<1x16x16xf32>
    %108 = vector.shape_cast %107 : vector<1x16x16xf32> to vector<16x16xf32>
    %109 = vector.extract_strided_slice %19 {offsets = [16, 0], sizes = [16, 8], strides = [1, 1]} : vector<32x32xf32> to vector<16x8xf32>
    %110 = vector.extract_strided_slice %20 {offsets = [16, 0], sizes = [16, 8], strides = [1, 1]} : vector<32x32xf32> to vector<16x8xf32>
    %111 = vector.extract_strided_slice %21 {offsets = [16, 0], sizes = [16, 8], strides = [1, 1]} : vector<32x32xf32> to vector<16x8xf32>
    %cst_53 = arith.constant dense<0.000000e+00> : vector<16x16xf32>
    %112 = tpu.matmul %109, %110, %cst_53 {dimension_numbers = #tpu.dot_dimension_numbers<[1], [1], [0], [0], [0, 0, 1, 0], [], []>} : vector<16x8xf32>, vector<16x8xf32>, vector<16x16xf32> -> vector<16x16xf32>
    %cst_54 = arith.constant 0.353553385 : f32
    %113 = vector.broadcast %cst_54 : f32 to vector<16x16xf32>
    %114 = arith.mulf %112, %113 : vector<16x16xf32>
    %115 = arith.subf %114, %108 : vector<16x16xf32>
    %cst_55 = arith.constant dense<0xFF800000> : vector<16xf32>
    %116 = vector.multi_reduction <maximumf>, %115, %cst_55 [1] : vector<16x16xf32> to vector<16xf32>
    %117 = vector.shape_cast %116 : vector<16xf32> to vector<16x1xf32>
    %118 = vector.broadcast %117 : vector<16x1xf32> to vector<16x16xf32>
    %119 = arith.subf %115, %118 : vector<16x16xf32>
    %120 = math.exp %119 : vector<16x16xf32>
    %cst_56 = arith.constant dense<0.000000e+00> : vector<16xf32>
    %121 = vector.multi_reduction <add>, %120, %cst_56 [1] : vector<16x16xf32> to vector<16xf32>
    %122 = vector.shape_cast %121 : vector<16xf32> to vector<16x1xf32>
    %123 = tpu.reciprocal %122 {approx = true} : vector<16x1xf32> -> vector<16x1xf32>
    %124 = vector.broadcast %123 : vector<16x1xf32> to vector<16x16xf32>
    %125 = arith.mulf %120, %124 : vector<16x16xf32>
    %cst_57 = arith.constant dense<0.000000e+00> : vector<16x8xf32>
    %126 = tpu.matmul %125, %111, %cst_57 {dimension_numbers = #tpu.dot_dimension_numbers<[1], [0], [0], [1], [0, 0, 1, 1], [], []>} : vector<16x16xf32>, vector<16x8xf32>, vector<16x8xf32> -> vector<16x8xf32>
    %127 = vector.extract_strided_slice %6 {offsets = [0, 0], sizes = [8, 32], strides = [1, 1]} : vector<32x32xf32> to vector<8x32xf32>
    %cst_58 = arith.constant dense<0.000000e+00> : vector<16x32xf32>
    %128 = tpu.matmul %126, %127, %cst_58 {dimension_numbers = #tpu.dot_dimension_numbers<[1], [0], [0], [1], [0, 0, 1, 1], [], []>} : vector<16x8xf32>, vector<8x32xf32>, vector<16x32xf32> -> vector<16x32xf32>
    %129 = vector.extract_strided_slice %19 {offsets = [16, 8], sizes = [16, 8], strides = [1, 1]} : vector<32x32xf32> to vector<16x8xf32>
    %130 = vector.extract_strided_slice %20 {offsets = [16, 8], sizes = [16, 8], strides = [1, 1]} : vector<32x32xf32> to vector<16x8xf32>
    %131 = vector.extract_strided_slice %21 {offsets = [16, 8], sizes = [16, 8], strides = [1, 1]} : vector<32x32xf32> to vector<16x8xf32>
    %cst_59 = arith.constant dense<0.000000e+00> : vector<16x16xf32>
    %132 = tpu.matmul %129, %130, %cst_59 {dimension_numbers = #tpu.dot_dimension_numbers<[1], [1], [0], [0], [0, 0, 1, 0], [], []>} : vector<16x8xf32>, vector<16x8xf32>, vector<16x16xf32> -> vector<16x16xf32>
    %cst_60 = arith.constant 0.353553385 : f32
    %133 = vector.broadcast %cst_60 : f32 to vector<16x16xf32>
    %134 = arith.mulf %132, %133 : vector<16x16xf32>
    %135 = arith.subf %134, %108 : vector<16x16xf32>
    %cst_61 = arith.constant dense<0xFF800000> : vector<16xf32>
    %136 = vector.multi_reduction <maximumf>, %135, %cst_61 [1] : vector<16x16xf32> to vector<16xf32>
    %137 = vector.shape_cast %136 : vector<16xf32> to vector<16x1xf32>
    %138 = vector.broadcast %137 : vector<16x1xf32> to vector<16x16xf32>
    %139 = arith.subf %135, %138 : vector<16x16xf32>
    %140 = math.exp %139 : vector<16x16xf32>
    %cst_62 = arith.constant dense<0.000000e+00> : vector<16xf32>
    %141 = vector.multi_reduction <add>, %140, %cst_62 [1] : vector<16x16xf32> to vector<16xf32>
    %142 = vector.shape_cast %141 : vector<16xf32> to vector<16x1xf32>
    %143 = tpu.reciprocal %142 {approx = true} : vector<16x1xf32> -> vector<16x1xf32>
    %144 = vector.broadcast %143 : vector<16x1xf32> to vector<16x16xf32>
    %145 = arith.mulf %140, %144 : vector<16x16xf32>
    %cst_63 = arith.constant dense<0.000000e+00> : vector<16x8xf32>
    %146 = tpu.matmul %145, %131, %cst_63 {dimension_numbers = #tpu.dot_dimension_numbers<[1], [0], [0], [1], [0, 0, 1, 1], [], []>} : vector<16x16xf32>, vector<16x8xf32>, vector<16x8xf32> -> vector<16x8xf32>
    %147 = vector.extract_strided_slice %6 {offsets = [8, 0], sizes = [8, 32], strides = [1, 1]} : vector<32x32xf32> to vector<8x32xf32>
    %cst_64 = arith.constant dense<0.000000e+00> : vector<16x32xf32>
    %148 = tpu.matmul %146, %147, %cst_64 {dimension_numbers = #tpu.dot_dimension_numbers<[1], [0], [0], [1], [0, 0, 1, 1], [], []>} : vector<16x8xf32>, vector<8x32xf32>, vector<16x32xf32> -> vector<16x32xf32>
    %149 = arith.addf %128, %148 : vector<16x32xf32>
    %150 = vector.extract_strided_slice %19 {offsets = [16, 16], sizes = [16, 8], strides = [1, 1]} : vector<32x32xf32> to vector<16x8xf32>
    %151 = vector.extract_strided_slice %20 {offsets = [16, 16], sizes = [16, 8], strides = [1, 1]} : vector<32x32xf32> to vector<16x8xf32>
    %152 = vector.extract_strided_slice %21 {offsets = [16, 16], sizes = [16, 8], strides = [1, 1]} : vector<32x32xf32> to vector<16x8xf32>
    %cst_65 = arith.constant dense<0.000000e+00> : vector<16x16xf32>
    %153 = tpu.matmul %150, %151, %cst_65 {dimension_numbers = #tpu.dot_dimension_numbers<[1], [1], [0], [0], [0, 0, 1, 0], [], []>} : vector<16x8xf32>, vector<16x8xf32>, vector<16x16xf32> -> vector<16x16xf32>
    %cst_66 = arith.constant 0.353553385 : f32
    %154 = vector.broadcast %cst_66 : f32 to vector<16x16xf32>
    %155 = arith.mulf %153, %154 : vector<16x16xf32>
    %156 = arith.subf %155, %108 : vector<16x16xf32>
    %cst_67 = arith.constant dense<0xFF800000> : vector<16xf32>
    %157 = vector.multi_reduction <maximumf>, %156, %cst_67 [1] : vector<16x16xf32> to vector<16xf32>
    %158 = vector.shape_cast %157 : vector<16xf32> to vector<16x1xf32>
    %159 = vector.broadcast %158 : vector<16x1xf32> to vector<16x16xf32>
    %160 = arith.subf %156, %159 : vector<16x16xf32>
    %161 = math.exp %160 : vector<16x16xf32>
    %cst_68 = arith.constant dense<0.000000e+00> : vector<16xf32>
    %162 = vector.multi_reduction <add>, %161, %cst_68 [1] : vector<16x16xf32> to vector<16xf32>
    %163 = vector.shape_cast %162 : vector<16xf32> to vector<16x1xf32>
    %164 = tpu.reciprocal %163 {approx = true} : vector<16x1xf32> -> vector<16x1xf32>
    %165 = vector.broadcast %164 : vector<16x1xf32> to vector<16x16xf32>
    %166 = arith.mulf %161, %165 : vector<16x16xf32>
    %cst_69 = arith.constant dense<0.000000e+00> : vector<16x8xf32>
    %167 = tpu.matmul %166, %152, %cst_69 {dimension_numbers = #tpu.dot_dimension_numbers<[1], [0], [0], [1], [0, 0, 1, 1], [], []>} : vector<16x16xf32>, vector<16x8xf32>, vector<16x8xf32> -> vector<16x8xf32>
    %168 = vector.extract_strided_slice %6 {offsets = [16, 0], sizes = [8, 32], strides = [1, 1]} : vector<32x32xf32> to vector<8x32xf32>
    %cst_70 = arith.constant dense<0.000000e+00> : vector<16x32xf32>
    %169 = tpu.matmul %167, %168, %cst_70 {dimension_numbers = #tpu.dot_dimension_numbers<[1], [0], [0], [1], [0, 0, 1, 1], [], []>} : vector<16x8xf32>, vector<8x32xf32>, vector<16x32xf32> -> vector<16x32xf32>
    %170 = arith.addf %149, %169 : vector<16x32xf32>
    %171 = vector.extract_strided_slice %19 {offsets = [16, 24], sizes = [16, 8], strides = [1, 1]} : vector<32x32xf32> to vector<16x8xf32>
    %172 = vector.extract_strided_slice %20 {offsets = [16, 24], sizes = [16, 8], strides = [1, 1]} : vector<32x32xf32> to vector<16x8xf32>
    %173 = vector.extract_strided_slice %21 {offsets = [16, 24], sizes = [16, 8], strides = [1, 1]} : vector<32x32xf32> to vector<16x8xf32>
    %cst_71 = arith.constant dense<0.000000e+00> : vector<16x16xf32>
    %174 = tpu.matmul %171, %172, %cst_71 {dimension_numbers = #tpu.dot_dimension_numbers<[1], [1], [0], [0], [0, 0, 1, 0], [], []>} : vector<16x8xf32>, vector<16x8xf32>, vector<16x16xf32> -> vector<16x16xf32>
    %cst_72 = arith.constant 0.353553385 : f32
    %175 = vector.broadcast %cst_72 : f32 to vector<16x16xf32>
    %176 = arith.mulf %174, %175 : vector<16x16xf32>
    %177 = arith.subf %176, %108 : vector<16x16xf32>
    %cst_73 = arith.constant dense<0xFF800000> : vector<16xf32>
    %178 = vector.multi_reduction <maximumf>, %177, %cst_73 [1] : vector<16x16xf32> to vector<16xf32>
    %179 = vector.shape_cast %178 : vector<16xf32> to vector<16x1xf32>
    %180 = vector.broadcast %179 : vector<16x1xf32> to vector<16x16xf32>
    %181 = arith.subf %177, %180 : vector<16x16xf32>
    %182 = math.exp %181 : vector<16x16xf32>
    %cst_74 = arith.constant dense<0.000000e+00> : vector<16xf32>
    %183 = vector.multi_reduction <add>, %182, %cst_74 [1] : vector<16x16xf32> to vector<16xf32>
    %184 = vector.shape_cast %183 : vector<16xf32> to vector<16x1xf32>
    %185 = tpu.reciprocal %184 {approx = true} : vector<16x1xf32> -> vector<16x1xf32>
    %186 = vector.broadcast %185 : vector<16x1xf32> to vector<16x16xf32>
    %187 = arith.mulf %182, %186 : vector<16x16xf32>
    %cst_75 = arith.constant dense<0.000000e+00> : vector<16x8xf32>
    %188 = tpu.matmul %187, %173, %cst_75 {dimension_numbers = #tpu.dot_dimension_numbers<[1], [0], [0], [1], [0, 0, 1, 1], [], []>} : vector<16x16xf32>, vector<16x8xf32>, vector<16x8xf32> -> vector<16x8xf32>
    %189 = vector.extract_strided_slice %6 {offsets = [24, 0], sizes = [8, 32], strides = [1, 1]} : vector<32x32xf32> to vector<8x32xf32>
    %cst_76 = arith.constant dense<0.000000e+00> : vector<16x32xf32>
    %190 = tpu.matmul %188, %189, %cst_76 {dimension_numbers = #tpu.dot_dimension_numbers<[1], [0], [0], [1], [0, 0, 1, 1], [], []>} : vector<16x8xf32>, vector<8x32xf32>, vector<16x32xf32> -> vector<16x32xf32>
    %191 = arith.addf %170, %190 : vector<16x32xf32>
    %192 = tpu.concatenate %106, %191 in 0 : vector<16x32xf32>, vector<16x32xf32> -> vector<32x32xf32>
    %193 = vector.broadcast %7 : vector<1x32xf32> to vector<32x32xf32>
    %194 = arith.addf %192, %193 : vector<32x32xf32>
    %195 = vector.broadcast %1 : vector<32x1xf32> to vector<32x32xf32>
    %196 = arith.mulf %194, %195 : vector<32x32xf32>
    %197 = arith.addf %196, %0 : vector<32x32xf32>
    %cst_77 = arith.constant dense<0.000000e+00> : vector<32xf32>
    %198 = vector.multi_reduction <add>, %197, %cst_77 [1] : vector<32x32xf32> to vector<32xf32>
    %199 = vector.shape_cast %198 : vector<32xf32> to vector<32x1xf32>
    %cst_78 = arith.constant 3.200000e+01 : f32
    %200 = vector.broadcast %cst_78 : f32 to vector<32x1xf32>
    %201 = arith.divf %199, %200 : vector<32x1xf32>
    %202 = vector.broadcast %201 : vector<32x1xf32> to vector<32x32xf32>
    %203 = arith.subf %197, %202 : vector<32x32xf32>
    %204 = vector.broadcast %201 : vector<32x1xf32> to vector<32x32xf32>
    %205 = arith.subf %197, %204 : vector<32x32xf32>
    %206 = arith.mulf %203, %205 : vector<32x32xf32>
    %cst_79 = arith.constant dense<0.000000e+00> : vector<32xf32>
    %207 = vector.multi_reduction <add>, %206, %cst_79 [1] : vector<32x32xf32> to vector<32xf32>
    %208 = vector.shape_cast %207 : vector<32xf32> to vector<32x1xf32>
    %cst_80 = arith.constant 3.200000e+01 : f32
    %209 = vector.broadcast %cst_80 : f32 to vector<32x1xf32>
    %210 = arith.divf %208, %209 : vector<32x1xf32>
    %211 = vector.broadcast %201 : vector<32x1xf32> to vector<32x32xf32>
    %212 = arith.subf %197, %211 : vector<32x32xf32>
    %cst_81 = arith.constant 9.99999974E-6 : f32
    %213 = vector.broadcast %cst_81 : f32 to vector<32x1xf32>
    %214 = arith.addf %210, %213 : vector<32x1xf32>
    %215 = math.rsqrt %214 : vector<32x1xf32>
    %216 = vector.broadcast %215 : vector<32x1xf32> to vector<32x32xf32>
    %217 = arith.mulf %212, %216 : vector<32x32xf32>
    %218 = vector.broadcast %8 : vector<1x32xf32> to vector<32x32xf32>
    %219 = arith.mulf %217, %218 : vector<32x32xf32>
    %220 = vector.broadcast %9 : vector<1x32xf32> to vector<32x32xf32>
    %221 = arith.addf %219, %220 : vector<32x32xf32>
    %cst_82 = arith.constant dense<0.000000e+00> : vector<32x64xf32>
    %222 = tpu.matmul %221, %10, %cst_82 {dimension_numbers = #tpu.dot_dimension_numbers<[1], [0], [0], [1], [0, 0, 1, 1], [], []>} : vector<32x32xf32>, vector<32x64xf32>, vector<32x64xf32> -> vector<32x64xf32>
    %223 = vector.broadcast %11 : vector<1x64xf32> to vector<32x64xf32>
    %224 = arith.addf %222, %223 : vector<32x64xf32>
    %cst_83 = arith.constant 5.000000e-01 : f32
    %225 = vector.broadcast %cst_83 : f32 to vector<32x64xf32>
    %226 = arith.mulf %225, %224 : vector<32x64xf32>
    %cst_84 = arith.constant 4.471500e-02 : f32
    %227 = vector.broadcast %cst_84 : f32 to vector<32x64xf32>
    %228 = arith.mulf %227, %224 : vector<32x64xf32>
    %229 = arith.mulf %228, %224 : vector<32x64xf32>
    %230 = arith.mulf %229, %224 : vector<32x64xf32>
    %231 = arith.addf %224, %230 : vector<32x64xf32>
    %cst_85 = arith.constant 0.797884583 : f32
    %232 = vector.broadcast %cst_85 : f32 to vector<32x64xf32>
    %233 = arith.mulf %232, %231 : vector<32x64xf32>
    %234 = math.tanh %233 : vector<32x64xf32>
    %cst_86 = arith.constant 1.000000e+00 : f32
    %235 = vector.broadcast %cst_86 : f32 to vector<32x64xf32>
    %236 = arith.addf %235, %234 : vector<32x64xf32>
    %237 = arith.mulf %226, %236 : vector<32x64xf32>
    %cst_87 = arith.constant dense<0.000000e+00> : vector<32x32xf32>
    %238 = tpu.matmul %237, %12, %cst_87 {dimension_numbers = #tpu.dot_dimension_numbers<[1], [0], [0], [1], [0, 0, 1, 1], [], []>} : vector<32x64xf32>, vector<64x32xf32>, vector<32x32xf32> -> vector<32x32xf32>
    %239 = vector.broadcast %13 : vector<1x32xf32> to vector<32x32xf32>
    %240 = arith.addf %238, %239 : vector<32x32xf32>
    %241 = arith.addf %240, %221 : vector<32x32xf32>
    %cst_88 = arith.constant dense<0.000000e+00> : vector<32xf32>
    %242 = vector.multi_reduction <add>, %241, %cst_88 [1] : vector<32x32xf32> to vector<32xf32>
    %243 = vector.shape_cast %242 : vector<32xf32> to vector<32x1xf32>
    %cst_89 = arith.constant 3.200000e+01 : f32
    %244 = vector.broadcast %cst_89 : f32 to vector<32x1xf32>
    %245 = arith.divf %243, %244 : vector<32x1xf32>
    %246 = vector.broadcast %245 : vector<32x1xf32> to vector<32x32xf32>
    %247 = arith.subf %241, %246 : vector<32x32xf32>
    %248 = vector.broadcast %245 : vector<32x1xf32> to vector<32x32xf32>
    %249 = arith.subf %241, %248 : vector<32x32xf32>
    %250 = arith.mulf %247, %249 : vector<32x32xf32>
    %cst_90 = arith.constant dense<0.000000e+00> : vector<32xf32>
    %251 = vector.multi_reduction <add>, %250, %cst_90 [1] : vector<32x32xf32> to vector<32xf32>
    %252 = vector.shape_cast %251 : vector<32xf32> to vector<32x1xf32>
    %cst_91 = arith.constant 3.200000e+01 : f32
    %253 = vector.broadcast %cst_91 : f32 to vector<32x1xf32>
    %254 = arith.divf %252, %253 : vector<32x1xf32>
    %255 = vector.broadcast %245 : vector<32x1xf32> to vector<32x32xf32>
    %256 = arith.subf %241, %255 : vector<32x32xf32>
    %cst_92 = arith.constant 9.99999974E-6 : f32
    %257 = vector.broadcast %cst_92 : f32 to vector<32x1xf32>
    %258 = arith.addf %254, %257 : vector<32x1xf32>
    %259 = math.rsqrt %258 : vector<32x1xf32>
    %260 = vector.broadcast %259 : vector<32x1xf32> to vector<32x32xf32>
    %261 = arith.mulf %256, %260 : vector<32x32xf32>
    %262 = vector.broadcast %8 : vector<1x32xf32> to vector<32x32xf32>
    %263 = arith.mulf %261, %262 : vector<32x32xf32>
    %264 = vector.broadcast %9 : vector<1x32xf32> to vector<32x32xf32>
    %265 = arith.addf %263, %264 : vector<32x32xf32>
    %cst_93 = arith.constant dense<0.000000e+00> : vector<32x96xf32>
    %266 = tpu.matmul %265, %4, %cst_93 {dimension_numbers = #tpu.dot_dimension_numbers<[1], [0], [0], [1], [0, 0, 1, 1], [], []>} : vector<32x32xf32>, vector<32x96xf32>, vector<32x96xf32> -> vector<32x96xf32>
    %267 = vector.broadcast %5 : vector<1x96xf32> to vector<32x96xf32>
    %268 = arith.addf %266, %267 : vector<32x96xf32>
    %269 = vector.broadcast %1 : vector<32x1xf32> to vector<32x96xf32>
    %270 = arith.mulf %268, %269 : vector<32x96xf32>
    %271 = vector.extract_strided_slice %270 {offsets = [0, 0], sizes = [32, 32], strides = [1, 1]} : vector<32x96xf32> to vector<32x32xf32>
    %272 = vector.extract_strided_slice %270 {offsets = [0, 32], sizes = [32, 32], strides = [1, 1]} : vector<32x96xf32> to vector<32x32xf32>
    %273 = vector.extract_strided_slice %270 {offsets = [0, 64], sizes = [32, 32], strides = [1, 1]} : vector<32x96xf32> to vector<32x32xf32>
    %274 = vector.extract_strided_slice %2 {offsets = [0, 0, 0], sizes = [1, 16, 16], strides = [1, 1, 1]} : vector<2x16x16xf32> to vector<1x16x16xf32>
    %275 = vector.shape_cast %274 : vector<1x16x16xf32> to vector<16x16xf32>
    %276 = vector.extract_strided_slice %271 {offsets = [0, 0], sizes = [16, 8], strides = [1, 1]} : vector<32x32xf32> to vector<16x8xf32>
    %277 = vector.extract_strided_slice %272 {offsets = [0, 0], sizes = [16, 8], strides = [1, 1]} : vector<32x32xf32> to vector<16x8xf32>
    %278 = vector.extract_strided_slice %273 {offsets = [0, 0], sizes = [16, 8], strides = [1, 1]} : vector<32x32xf32> to vector<16x8xf32>
    %cst_94 = arith.constant dense<0.000000e+00> : vector<16x16xf32>
    %279 = tpu.matmul %276, %277, %cst_94 {dimension_numbers = #tpu.dot_dimension_numbers<[1], [1], [0], [0], [0, 0, 1, 0], [], []>} : vector<16x8xf32>, vector<16x8xf32>, vector<16x16xf32> -> vector<16x16xf32>
    %cst_95 = arith.constant 0.353553385 : f32
    %280 = vector.broadcast %cst_95 : f32 to vector<16x16xf32>
    %281 = arith.mulf %279, %280 : vector<16x16xf32>
    %282 = arith.subf %281, %275 : vector<16x16xf32>
    %cst_96 = arith.constant dense<0xFF800000> : vector<16xf32>
    %283 = vector.multi_reduction <maximumf>, %282, %cst_96 [1] : vector<16x16xf32> to vector<16xf32>
    %284 = vector.shape_cast %283 : vector<16xf32> to vector<16x1xf32>
    %285 = vector.broadcast %284 : vector<16x1xf32> to vector<16x16xf32>
    %286 = arith.subf %282, %285 : vector<16x16xf32>
    %287 = math.exp %286 : vector<16x16xf32>
    %cst_97 = arith.constant dense<0.000000e+00> : vector<16xf32>
    %288 = vector.multi_reduction <add>, %287, %cst_97 [1] : vector<16x16xf32> to vector<16xf32>
    %289 = vector.shape_cast %288 : vector<16xf32> to vector<16x1xf32>
    %290 = tpu.reciprocal %289 {approx = true} : vector<16x1xf32> -> vector<16x1xf32>
    %291 = vector.broadcast %290 : vector<16x1xf32> to vector<16x16xf32>
    %292 = arith.mulf %287, %291 : vector<16x16xf32>
    %cst_98 = arith.constant dense<0.000000e+00> : vector<16x8xf32>
    %293 = tpu.matmul %292, %278, %cst_98 {dimension_numbers = #tpu.dot_dimension_numbers<[1], [0], [0], [1], [0, 0, 1, 1], [], []>} : vector<16x16xf32>, vector<16x8xf32>, vector<16x8xf32> -> vector<16x8xf32>
    %294 = vector.extract_strided_slice %6 {offsets = [0, 0], sizes = [8, 32], strides = [1, 1]} : vector<32x32xf32> to vector<8x32xf32>
    %cst_99 = arith.constant dense<0.000000e+00> : vector<16x32xf32>
    %295 = tpu.matmul %293, %294, %cst_99 {dimension_numbers = #tpu.dot_dimension_numbers<[1], [0], [0], [1], [0, 0, 1, 1], [], []>} : vector<16x8xf32>, vector<8x32xf32>, vector<16x32xf32> -> vector<16x32xf32>
    %296 = vector.extract_strided_slice %271 {offsets = [0, 8], sizes = [16, 8], strides = [1, 1]} : vector<32x32xf32> to vector<16x8xf32>
    %297 = vector.extract_strided_slice %272 {offsets = [0, 8], sizes = [16, 8], strides = [1, 1]} : vector<32x32xf32> to vector<16x8xf32>
    %298 = vector.extract_strided_slice %273 {offsets = [0, 8], sizes = [16, 8], strides = [1, 1]} : vector<32x32xf32> to vector<16x8xf32>
    %cst_100 = arith.constant dense<0.000000e+00> : vector<16x16xf32>
    %299 = tpu.matmul %296, %297, %cst_100 {dimension_numbers = #tpu.dot_dimension_numbers<[1], [1], [0], [0], [0, 0, 1, 0], [], []>} : vector<16x8xf32>, vector<16x8xf32>, vector<16x16xf32> -> vector<16x16xf32>
    %cst_101 = arith.constant 0.353553385 : f32
    %300 = vector.broadcast %cst_101 : f32 to vector<16x16xf32>
    %301 = arith.mulf %299, %300 : vector<16x16xf32>
    %302 = arith.subf %301, %275 : vector<16x16xf32>
    %cst_102 = arith.constant dense<0xFF800000> : vector<16xf32>
    %303 = vector.multi_reduction <maximumf>, %302, %cst_102 [1] : vector<16x16xf32> to vector<16xf32>
    %304 = vector.shape_cast %303 : vector<16xf32> to vector<16x1xf32>
    %305 = vector.broadcast %304 : vector<16x1xf32> to vector<16x16xf32>
    %306 = arith.subf %302, %305 : vector<16x16xf32>
    %307 = math.exp %306 : vector<16x16xf32>
    %cst_103 = arith.constant dense<0.000000e+00> : vector<16xf32>
    %308 = vector.multi_reduction <add>, %307, %cst_103 [1] : vector<16x16xf32> to vector<16xf32>
    %309 = vector.shape_cast %308 : vector<16xf32> to vector<16x1xf32>
    %310 = tpu.reciprocal %309 {approx = true} : vector<16x1xf32> -> vector<16x1xf32>
    %311 = vector.broadcast %310 : vector<16x1xf32> to vector<16x16xf32>
    %312 = arith.mulf %307, %311 : vector<16x16xf32>
    %cst_104 = arith.constant dense<0.000000e+00> : vector<16x8xf32>
    %313 = tpu.matmul %312, %298, %cst_104 {dimension_numbers = #tpu.dot_dimension_numbers<[1], [0], [0], [1], [0, 0, 1, 1], [], []>} : vector<16x16xf32>, vector<16x8xf32>, vector<16x8xf32> -> vector<16x8xf32>
    %314 = vector.extract_strided_slice %6 {offsets = [8, 0], sizes = [8, 32], strides = [1, 1]} : vector<32x32xf32> to vector<8x32xf32>
    %cst_105 = arith.constant dense<0.000000e+00> : vector<16x32xf32>
    %315 = tpu.matmul %313, %314, %cst_105 {dimension_numbers = #tpu.dot_dimension_numbers<[1], [0], [0], [1], [0, 0, 1, 1], [], []>} : vector<16x8xf32>, vector<8x32xf32>, vector<16x32xf32> -> vector<16x32xf32>
    %316 = arith.addf %295, %315 : vector<16x32xf32>
    %317 = vector.extract_strided_slice %271 {offsets = [0, 16], sizes = [16, 8], strides = [1, 1]} : vector<32x32xf32> to vector<16x8xf32>
    %318 = vector.extract_strided_slice %272 {offsets = [0, 16], sizes = [16, 8], strides = [1, 1]} : vector<32x32xf32> to vector<16x8xf32>
    %319 = vector.extract_strided_slice %273 {offsets = [0, 16], sizes = [16, 8], strides = [1, 1]} : vector<32x32xf32> to vector<16x8xf32>
    %cst_106 = arith.constant dense<0.000000e+00> : vector<16x16xf32>
    %320 = tpu.matmul %317, %318, %cst_106 {dimension_numbers = #tpu.dot_dimension_numbers<[1], [1], [0], [0], [0, 0, 1, 0], [], []>} : vector<16x8xf32>, vector<16x8xf32>, vector<16x16xf32> -> vector<16x16xf32>
    %cst_107 = arith.constant 0.353553385 : f32
    %321 = vector.broadcast %cst_107 : f32 to vector<16x16xf32>
    %322 = arith.mulf %320, %321 : vector<16x16xf32>
    %323 = arith.subf %322, %275 : vector<16x16xf32>
    %cst_108 = arith.constant dense<0xFF800000> : vector<16xf32>
    %324 = vector.multi_reduction <maximumf>, %323, %cst_108 [1] : vector<16x16xf32> to vector<16xf32>
    %325 = vector.shape_cast %324 : vector<16xf32> to vector<16x1xf32>
    %326 = vector.broadcast %325 : vector<16x1xf32> to vector<16x16xf32>
    %327 = arith.subf %323, %326 : vector<16x16xf32>
    %328 = math.exp %327 : vector<16x16xf32>
    %cst_109 = arith.constant dense<0.000000e+00> : vector<16xf32>
    %329 = vector.multi_reduction <add>, %328, %cst_109 [1] : vector<16x16xf32> to vector<16xf32>
    %330 = vector.shape_cast %329 : vector<16xf32> to vector<16x1xf32>
    %331 = tpu.reciprocal %330 {approx = true} : vector<16x1xf32> -> vector<16x1xf32>
    %332 = vector.broadcast %331 : vector<16x1xf32> to vector<16x16xf32>
    %333 = arith.mulf %328, %332 : vector<16x16xf32>
    %cst_110 = arith.constant dense<0.000000e+00> : vector<16x8xf32>
    %334 = tpu.matmul %333, %319, %cst_110 {dimension_numbers = #tpu.dot_dimension_numbers<[1], [0], [0], [1], [0, 0, 1, 1], [], []>} : vector<16x16xf32>, vector<16x8xf32>, vector<16x8xf32> -> vector<16x8xf32>
    %335 = vector.extract_strided_slice %6 {offsets = [16, 0], sizes = [8, 32], strides = [1, 1]} : vector<32x32xf32> to vector<8x32xf32>
    %cst_111 = arith.constant dense<0.000000e+00> : vector<16x32xf32>
    %336 = tpu.matmul %334, %335, %cst_111 {dimension_numbers = #tpu.dot_dimension_numbers<[1], [0], [0], [1], [0, 0, 1, 1], [], []>} : vector<16x8xf32>, vector<8x32xf32>, vector<16x32xf32> -> vector<16x32xf32>
    %337 = arith.addf %316, %336 : vector<16x32xf32>
    %338 = vector.extract_strided_slice %271 {offsets = [0, 24], sizes = [16, 8], strides = [1, 1]} : vector<32x32xf32> to vector<16x8xf32>
    %339 = vector.extract_strided_slice %272 {offsets = [0, 24], sizes = [16, 8], strides = [1, 1]} : vector<32x32xf32> to vector<16x8xf32>
    %340 = vector.extract_strided_slice %273 {offsets = [0, 24], sizes = [16, 8], strides = [1, 1]} : vector<32x32xf32> to vector<16x8xf32>
    %cst_112 = arith.constant dense<0.000000e+00> : vector<16x16xf32>
    %341 = tpu.matmul %338, %339, %cst_112 {dimension_numbers = #tpu.dot_dimension_numbers<[1], [1], [0], [0], [0, 0, 1, 0], [], []>} : vector<16x8xf32>, vector<16x8xf32>, vector<16x16xf32> -> vector<16x16xf32>
    %cst_113 = arith.constant 0.353553385 : f32
    %342 = vector.broadcast %cst_113 : f32 to vector<16x16xf32>
    %343 = arith.mulf %341, %342 : vector<16x16xf32>
    %344 = arith.subf %343, %275 : vector<16x16xf32>
    %cst_114 = arith.constant dense<0xFF800000> : vector<16xf32>
    %345 = vector.multi_reduction <maximumf>, %344, %cst_114 [1] : vector<16x16xf32> to vector<16xf32>
    %346 = vector.shape_cast %345 : vector<16xf32> to vector<16x1xf32>
    %347 = vector.broadcast %346 : vector<16x1xf32> to vector<16x16xf32>
    %348 = arith.subf %344, %347 : vector<16x16xf32>
    %349 = math.exp %348 : vector<16x16xf32>
    %cst_115 = arith.constant dense<0.000000e+00> : vector<16xf32>
    %350 = vector.multi_reduction <add>, %349, %cst_115 [1] : vector<16x16xf32> to vector<16xf32>
    %351 = vector.shape_cast %350 : vector<16xf32> to vector<16x1xf32>
    %352 = tpu.reciprocal %351 {approx = true} : vector<16x1xf32> -> vector<16x1xf32>
    %353 = vector.broadcast %352 : vector<16x1xf32> to vector<16x16xf32>
    %354 = arith.mulf %349, %353 : vector<16x16xf32>
    %cst_116 = arith.constant dense<0.000000e+00> : vector<16x8xf32>
    %355 = tpu.matmul %354, %340, %cst_116 {dimension_numbers = #tpu.dot_dimension_numbers<[1], [0], [0], [1], [0, 0, 1, 1], [], []>} : vector<16x16xf32>, vector<16x8xf32>, vector<16x8xf32> -> vector<16x8xf32>
    %356 = vector.extract_strided_slice %6 {offsets = [24, 0], sizes = [8, 32], strides = [1, 1]} : vector<32x32xf32> to vector<8x32xf32>
    %cst_117 = arith.constant dense<0.000000e+00> : vector<16x32xf32>
    %357 = tpu.matmul %355, %356, %cst_117 {dimension_numbers = #tpu.dot_dimension_numbers<[1], [0], [0], [1], [0, 0, 1, 1], [], []>} : vector<16x8xf32>, vector<8x32xf32>, vector<16x32xf32> -> vector<16x32xf32>
    %358 = arith.addf %337, %357 : vector<16x32xf32>
    %359 = vector.extract_strided_slice %2 {offsets = [1, 0, 0], sizes = [1, 16, 16], strides = [1, 1, 1]} : vector<2x16x16xf32> to vector<1x16x16xf32>
    %360 = vector.shape_cast %359 : vector<1x16x16xf32> to vector<16x16xf32>
    %361 = vector.extract_strided_slice %271 {offsets = [16, 0], sizes = [16, 8], strides = [1, 1]} : vector<32x32xf32> to vector<16x8xf32>
    %362 = vector.extract_strided_slice %272 {offsets = [16, 0], sizes = [16, 8], strides = [1, 1]} : vector<32x32xf32> to vector<16x8xf32>
    %363 = vector.extract_strided_slice %273 {offsets = [16, 0], sizes = [16, 8], strides = [1, 1]} : vector<32x32xf32> to vector<16x8xf32>
    %cst_118 = arith.constant dense<0.000000e+00> : vector<16x16xf32>
    %364 = tpu.matmul %361, %362, %cst_118 {dimension_numbers = #tpu.dot_dimension_numbers<[1], [1], [0], [0], [0, 0, 1, 0], [], []>} : vector<16x8xf32>, vector<16x8xf32>, vector<16x16xf32> -> vector<16x16xf32>
    %cst_119 = arith.constant 0.353553385 : f32
    %365 = vector.broadcast %cst_119 : f32 to vector<16x16xf32>
    %366 = arith.mulf %364, %365 : vector<16x16xf32>
    %367 = arith.subf %366, %360 : vector<16x16xf32>
    %cst_120 = arith.constant dense<0xFF800000> : vector<16xf32>
    %368 = vector.multi_reduction <maximumf>, %367, %cst_120 [1] : vector<16x16xf32> to vector<16xf32>
    %369 = vector.shape_cast %368 : vector<16xf32> to vector<16x1xf32>
    %370 = vector.broadcast %369 : vector<16x1xf32> to vector<16x16xf32>
    %371 = arith.subf %367, %370 : vector<16x16xf32>
    %372 = math.exp %371 : vector<16x16xf32>
    %cst_121 = arith.constant dense<0.000000e+00> : vector<16xf32>
    %373 = vector.multi_reduction <add>, %372, %cst_121 [1] : vector<16x16xf32> to vector<16xf32>
    %374 = vector.shape_cast %373 : vector<16xf32> to vector<16x1xf32>
    %375 = tpu.reciprocal %374 {approx = true} : vector<16x1xf32> -> vector<16x1xf32>
    %376 = vector.broadcast %375 : vector<16x1xf32> to vector<16x16xf32>
    %377 = arith.mulf %372, %376 : vector<16x16xf32>
    %cst_122 = arith.constant dense<0.000000e+00> : vector<16x8xf32>
    %378 = tpu.matmul %377, %363, %cst_122 {dimension_numbers = #tpu.dot_dimension_numbers<[1], [0], [0], [1], [0, 0, 1, 1], [], []>} : vector<16x16xf32>, vector<16x8xf32>, vector<16x8xf32> -> vector<16x8xf32>
    %379 = vector.extract_strided_slice %6 {offsets = [0, 0], sizes = [8, 32], strides = [1, 1]} : vector<32x32xf32> to vector<8x32xf32>
    %cst_123 = arith.constant dense<0.000000e+00> : vector<16x32xf32>
    %380 = tpu.matmul %378, %379, %cst_123 {dimension_numbers = #tpu.dot_dimension_numbers<[1], [0], [0], [1], [0, 0, 1, 1], [], []>} : vector<16x8xf32>, vector<8x32xf32>, vector<16x32xf32> -> vector<16x32xf32>
    %381 = vector.extract_strided_slice %271 {offsets = [16, 8], sizes = [16, 8], strides = [1, 1]} : vector<32x32xf32> to vector<16x8xf32>
    %382 = vector.extract_strided_slice %272 {offsets = [16, 8], sizes = [16, 8], strides = [1, 1]} : vector<32x32xf32> to vector<16x8xf32>
    %383 = vector.extract_strided_slice %273 {offsets = [16, 8], sizes = [16, 8], strides = [1, 1]} : vector<32x32xf32> to vector<16x8xf32>
    %cst_124 = arith.constant dense<0.000000e+00> : vector<16x16xf32>
    %384 = tpu.matmul %381, %382, %cst_124 {dimension_numbers = #tpu.dot_dimension_numbers<[1], [1], [0], [0], [0, 0, 1, 0], [], []>} : vector<16x8xf32>, vector<16x8xf32>, vector<16x16xf32> -> vector<16x16xf32>
    %cst_125 = arith.constant 0.353553385 : f32
    %385 = vector.broadcast %cst_125 : f32 to vector<16x16xf32>
    %386 = arith.mulf %384, %385 : vector<16x16xf32>
    %387 = arith.subf %386, %360 : vector<16x16xf32>
    %cst_126 = arith.constant dense<0xFF800000> : vector<16xf32>
    %388 = vector.multi_reduction <maximumf>, %387, %cst_126 [1] : vector<16x16xf32> to vector<16xf32>
    %389 = vector.shape_cast %388 : vector<16xf32> to vector<16x1xf32>
    %390 = vector.broadcast %389 : vector<16x1xf32> to vector<16x16xf32>
    %391 = arith.subf %387, %390 : vector<16x16xf32>
    %392 = math.exp %391 : vector<16x16xf32>
    %cst_127 = arith.constant dense<0.000000e+00> : vector<16xf32>
    %393 = vector.multi_reduction <add>, %392, %cst_127 [1] : vector<16x16xf32> to vector<16xf32>
    %394 = vector.shape_cast %393 : vector<16xf32> to vector<16x1xf32>
    %395 = tpu.reciprocal %394 {approx = true} : vector<16x1xf32> -> vector<16x1xf32>
    %396 = vector.broadcast %395 : vector<16x1xf32> to vector<16x16xf32>
    %397 = arith.mulf %392, %396 : vector<16x16xf32>
    %cst_128 = arith.constant dense<0.000000e+00> : vector<16x8xf32>
    %398 = tpu.matmul %397, %383, %cst_128 {dimension_numbers = #tpu.dot_dimension_numbers<[1], [0], [0], [1], [0, 0, 1, 1], [], []>} : vector<16x16xf32>, vector<16x8xf32>, vector<16x8xf32> -> vector<16x8xf32>
    %399 = vector.extract_strided_slice %6 {offsets = [8, 0], sizes = [8, 32], strides = [1, 1]} : vector<32x32xf32> to vector<8x32xf32>
    %cst_129 = arith.constant dense<0.000000e+00> : vector<16x32xf32>
    %400 = tpu.matmul %398, %399, %cst_129 {dimension_numbers = #tpu.dot_dimension_numbers<[1], [0], [0], [1], [0, 0, 1, 1], [], []>} : vector<16x8xf32>, vector<8x32xf32>, vector<16x32xf32> -> vector<16x32xf32>
    %401 = arith.addf %380, %400 : vector<16x32xf32>
    %402 = vector.extract_strided_slice %271 {offsets = [16, 16], sizes = [16, 8], strides = [1, 1]} : vector<32x32xf32> to vector<16x8xf32>
    %403 = vector.extract_strided_slice %272 {offsets = [16, 16], sizes = [16, 8], strides = [1, 1]} : vector<32x32xf32> to vector<16x8xf32>
    %404 = vector.extract_strided_slice %273 {offsets = [16, 16], sizes = [16, 8], strides = [1, 1]} : vector<32x32xf32> to vector<16x8xf32>
    %cst_130 = arith.constant dense<0.000000e+00> : vector<16x16xf32>
    %405 = tpu.matmul %402, %403, %cst_130 {dimension_numbers = #tpu.dot_dimension_numbers<[1], [1], [0], [0], [0, 0, 1, 0], [], []>} : vector<16x8xf32>, vector<16x8xf32>, vector<16x16xf32> -> vector<16x16xf32>
    %cst_131 = arith.constant 0.353553385 : f32
    %406 = vector.broadcast %cst_131 : f32 to vector<16x16xf32>
    %407 = arith.mulf %405, %406 : vector<16x16xf32>
    %408 = arith.subf %407, %360 : vector<16x16xf32>
    %cst_132 = arith.constant dense<0xFF800000> : vector<16xf32>
    %409 = vector.multi_reduction <maximumf>, %408, %cst_132 [1] : vector<16x16xf32> to vector<16xf32>
    %410 = vector.shape_cast %409 : vector<16xf32> to vector<16x1xf32>
    %411 = vector.broadcast %410 : vector<16x1xf32> to vector<16x16xf32>
    %412 = arith.subf %408, %411 : vector<16x16xf32>
    %413 = math.exp %412 : vector<16x16xf32>
    %cst_133 = arith.constant dense<0.000000e+00> : vector<16xf32>
    %414 = vector.multi_reduction <add>, %413, %cst_133 [1] : vector<16x16xf32> to vector<16xf32>
    %415 = vector.shape_cast %414 : vector<16xf32> to vector<16x1xf32>
    %416 = tpu.reciprocal %415 {approx = true} : vector<16x1xf32> -> vector<16x1xf32>
    %417 = vector.broadcast %416 : vector<16x1xf32> to vector<16x16xf32>
    %418 = arith.mulf %413, %417 : vector<16x16xf32>
    %cst_134 = arith.constant dense<0.000000e+00> : vector<16x8xf32>
    %419 = tpu.matmul %418, %404, %cst_134 {dimension_numbers = #tpu.dot_dimension_numbers<[1], [0], [0], [1], [0, 0, 1, 1], [], []>} : vector<16x16xf32>, vector<16x8xf32>, vector<16x8xf32> -> vector<16x8xf32>
    %420 = vector.extract_strided_slice %6 {offsets = [16, 0], sizes = [8, 32], strides = [1, 1]} : vector<32x32xf32> to vector<8x32xf32>
    %cst_135 = arith.constant dense<0.000000e+00> : vector<16x32xf32>
    %421 = tpu.matmul %419, %420, %cst_135 {dimension_numbers = #tpu.dot_dimension_numbers<[1], [0], [0], [1], [0, 0, 1, 1], [], []>} : vector<16x8xf32>, vector<8x32xf32>, vector<16x32xf32> -> vector<16x32xf32>
    %422 = arith.addf %401, %421 : vector<16x32xf32>
    %423 = vector.extract_strided_slice %271 {offsets = [16, 24], sizes = [16, 8], strides = [1, 1]} : vector<32x32xf32> to vector<16x8xf32>
    %424 = vector.extract_strided_slice %272 {offsets = [16, 24], sizes = [16, 8], strides = [1, 1]} : vector<32x32xf32> to vector<16x8xf32>
    %425 = vector.extract_strided_slice %273 {offsets = [16, 24], sizes = [16, 8], strides = [1, 1]} : vector<32x32xf32> to vector<16x8xf32>
    %cst_136 = arith.constant dense<0.000000e+00> : vector<16x16xf32>
    %426 = tpu.matmul %423, %424, %cst_136 {dimension_numbers = #tpu.dot_dimension_numbers<[1], [1], [0], [0], [0, 0, 1, 0], [], []>} : vector<16x8xf32>, vector<16x8xf32>, vector<16x16xf32> -> vector<16x16xf32>
    %cst_137 = arith.constant 0.353553385 : f32
    %427 = vector.broadcast %cst_137 : f32 to vector<16x16xf32>
    %428 = arith.mulf %426, %427 : vector<16x16xf32>
    %429 = arith.subf %428, %360 : vector<16x16xf32>
    %cst_138 = arith.constant dense<0xFF800000> : vector<16xf32>
    %430 = vector.multi_reduction <maximumf>, %429, %cst_138 [1] : vector<16x16xf32> to vector<16xf32>
    %431 = vector.shape_cast %430 : vector<16xf32> to vector<16x1xf32>
    %432 = vector.broadcast %431 : vector<16x1xf32> to vector<16x16xf32>
    %433 = arith.subf %429, %432 : vector<16x16xf32>
    %434 = math.exp %433 : vector<16x16xf32>
    %cst_139 = arith.constant dense<0.000000e+00> : vector<16xf32>
    %435 = vector.multi_reduction <add>, %434, %cst_139 [1] : vector<16x16xf32> to vector<16xf32>
    %436 = vector.shape_cast %435 : vector<16xf32> to vector<16x1xf32>
    %437 = tpu.reciprocal %436 {approx = true} : vector<16x1xf32> -> vector<16x1xf32>
    %438 = vector.broadcast %437 : vector<16x1xf32> to vector<16x16xf32>
    %439 = arith.mulf %434, %438 : vector<16x16xf32>
    %cst_140 = arith.constant dense<0.000000e+00> : vector<16x8xf32>
    %440 = tpu.matmul %439, %425, %cst_140 {dimension_numbers = #tpu.dot_dimension_numbers<[1], [0], [0], [1], [0, 0, 1, 1], [], []>} : vector<16x16xf32>, vector<16x8xf32>, vector<16x8xf32> -> vector<16x8xf32>
    %441 = vector.extract_strided_slice %6 {offsets = [24, 0], sizes = [8, 32], strides = [1, 1]} : vector<32x32xf32> to vector<8x32xf32>
    %cst_141 = arith.constant dense<0.000000e+00> : vector<16x32xf32>
    %442 = tpu.matmul %440, %441, %cst_141 {dimension_numbers = #tpu.dot_dimension_numbers<[1], [0], [0], [1], [0, 0, 1, 1], [], []>} : vector<16x8xf32>, vector<8x32xf32>, vector<16x32xf32> -> vector<16x32xf32>
    %443 = arith.addf %422, %442 : vector<16x32xf32>
    %444 = tpu.concatenate %358, %443 in 0 : vector<16x32xf32>, vector<16x32xf32> -> vector<32x32xf32>
    %445 = vector.broadcast %7 : vector<1x32xf32> to vector<32x32xf32>
    %446 = arith.addf %444, %445 : vector<32x32xf32>
    %447 = vector.broadcast %1 : vector<32x1xf32> to vector<32x32xf32>
    %448 = arith.mulf %446, %447 : vector<32x32xf32>
    %449 = arith.addf %448, %265 : vector<32x32xf32>
    %cst_142 = arith.constant dense<0.000000e+00> : vector<32xf32>
    %450 = vector.multi_reduction <add>, %449, %cst_142 [1] : vector<32x32xf32> to vector<32xf32>
    %451 = vector.shape_cast %450 : vector<32xf32> to vector<32x1xf32>
    %cst_143 = arith.constant 3.200000e+01 : f32
    %452 = vector.broadcast %cst_143 : f32 to vector<32x1xf32>
    %453 = arith.divf %451, %452 : vector<32x1xf32>
    %454 = vector.broadcast %453 : vector<32x1xf32> to vector<32x32xf32>
    %455 = arith.subf %449, %454 : vector<32x32xf32>
    %456 = vector.broadcast %453 : vector<32x1xf32> to vector<32x32xf32>
    %457 = arith.subf %449, %456 : vector<32x32xf32>
    %458 = arith.mulf %455, %457 : vector<32x32xf32>
    %cst_144 = arith.constant dense<0.000000e+00> : vector<32xf32>
    %459 = vector.multi_reduction <add>, %458, %cst_144 [1] : vector<32x32xf32> to vector<32xf32>
    %460 = vector.shape_cast %459 : vector<32xf32> to vector<32x1xf32>
    %cst_145 = arith.constant 3.200000e+01 : f32
    %461 = vector.broadcast %cst_145 : f32 to vector<32x1xf32>
    %462 = arith.divf %460, %461 : vector<32x1xf32>
    %463 = vector.broadcast %453 : vector<32x1xf32> to vector<32x32xf32>
    %464 = arith.subf %449, %463 : vector<32x32xf32>
    %cst_146 = arith.constant 9.99999974E-6 : f32
    %465 = vector.broadcast %cst_146 : f32 to vector<32x1xf32>
    %466 = arith.addf %462, %465 : vector<32x1xf32>
    %467 = math.rsqrt %466 : vector<32x1xf32>
    %468 = vector.broadcast %467 : vector<32x1xf32> to vector<32x32xf32>
    %469 = arith.mulf %464, %468 : vector<32x32xf32>
    %470 = vector.broadcast %8 : vector<1x32xf32> to vector<32x32xf32>
    %471 = arith.mulf %469, %470 : vector<32x32xf32>
    %472 = vector.broadcast %9 : vector<1x32xf32> to vector<32x32xf32>
    %473 = arith.addf %471, %472 : vector<32x32xf32>
    %cst_147 = arith.constant dense<0.000000e+00> : vector<32x64xf32>
    %474 = tpu.matmul %473, %10, %cst_147 {dimension_numbers = #tpu.dot_dimension_numbers<[1], [0], [0], [1], [0, 0, 1, 1], [], []>} : vector<32x32xf32>, vector<32x64xf32>, vector<32x64xf32> -> vector<32x64xf32>
    %475 = vector.broadcast %11 : vector<1x64xf32> to vector<32x64xf32>
    %476 = arith.addf %474, %475 : vector<32x64xf32>
    %cst_148 = arith.constant 5.000000e-01 : f32
    %477 = vector.broadcast %cst_148 : f32 to vector<32x64xf32>
    %478 = arith.mulf %477, %476 : vector<32x64xf32>
    %cst_149 = arith.constant 4.471500e-02 : f32
    %479 = vector.broadcast %cst_149 : f32 to vector<32x64xf32>
    %480 = arith.mulf %479, %476 : vector<32x64xf32>
    %481 = arith.mulf %480, %476 : vector<32x64xf32>
    %482 = arith.mulf %481, %476 : vector<32x64xf32>
    %483 = arith.addf %476, %482 : vector<32x64xf32>
    %cst_150 = arith.constant 0.797884583 : f32
    %484 = vector.broadcast %cst_150 : f32 to vector<32x64xf32>
    %485 = arith.mulf %484, %483 : vector<32x64xf32>
    %486 = math.tanh %485 : vector<32x64xf32>
    %cst_151 = arith.constant 1.000000e+00 : f32
    %487 = vector.broadcast %cst_151 : f32 to vector<32x64xf32>
    %488 = arith.addf %487, %486 : vector<32x64xf32>
    %489 = arith.mulf %478, %488 : vector<32x64xf32>
    %cst_152 = arith.constant dense<0.000000e+00> : vector<32x32xf32>
    %490 = tpu.matmul %489, %12, %cst_152 {dimension_numbers = #tpu.dot_dimension_numbers<[1], [0], [0], [1], [0, 0, 1, 1], [], []>} : vector<32x64xf32>, vector<64x32xf32>, vector<32x32xf32> -> vector<32x32xf32>
    %491 = vector.broadcast %13 : vector<1x32xf32> to vector<32x32xf32>
    %492 = arith.addf %490, %491 : vector<32x32xf32>
    %493 = arith.addf %492, %473 : vector<32x32xf32>
    %cst_153 = arith.constant dense<0.000000e+00> : vector<32xf32>
    %494 = vector.multi_reduction <add>, %493, %cst_153 [1] : vector<32x32xf32> to vector<32xf32>
    %495 = vector.shape_cast %494 : vector<32xf32> to vector<32x1xf32>
    %cst_154 = arith.constant 3.200000e+01 : f32
    %496 = vector.broadcast %cst_154 : f32 to vector<32x1xf32>
    %497 = arith.divf %495, %496 : vector<32x1xf32>
    %498 = vector.broadcast %497 : vector<32x1xf32> to vector<32x32xf32>
    %499 = arith.subf %493, %498 : vector<32x32xf32>
    %500 = vector.broadcast %497 : vector<32x1xf32> to vector<32x32xf32>
    %501 = arith.subf %493, %500 : vector<32x32xf32>
    %502 = arith.mulf %499, %501 : vector<32x32xf32>
    %cst_155 = arith.constant dense<0.000000e+00> : vector<32xf32>
    %503 = vector.multi_reduction <add>, %502, %cst_155 [1] : vector<32x32xf32> to vector<32xf32>
    %504 = vector.shape_cast %503 : vector<32xf32> to vector<32x1xf32>
    %cst_156 = arith.constant 3.200000e+01 : f32
    %505 = vector.broadcast %cst_156 : f32 to vector<32x1xf32>
    %506 = arith.divf %504, %505 : vector<32x1xf32>
    %507 = vector.broadcast %497 : vector<32x1xf32> to vector<32x32xf32>
    %508 = arith.subf %493, %507 : vector<32x32xf32>
    %cst_157 = arith.constant 9.99999974E-6 : f32
    %509 = vector.broadcast %cst_157 : f32 to vector<32x1xf32>
    %510 = arith.addf %506, %509 : vector<32x1xf32>
    %511 = math.rsqrt %510 : vector<32x1xf32>
    %512 = vector.broadcast %511 : vector<32x1xf32> to vector<32x32xf32>
    %513 = arith.mulf %508, %512 : vector<32x32xf32>
    %514 = vector.broadcast %8 : vector<1x32xf32> to vector<32x32xf32>
    %515 = arith.mulf %513, %514 : vector<32x32xf32>
    %516 = vector.broadcast %9 : vector<1x32xf32> to vector<32x32xf32>
    %517 = arith.addf %515, %516 : vector<32x32xf32>
    %c0_158 = arith.constant 0 : index
    %c0_159 = arith.constant 0 : index
    %518 = vector.load %arg14[%c0_158, %c0_159] : memref<32x96xf32, #tpu.memory_space<vmem>>, vector<32x96xf32>
    %c0_160 = arith.constant 0 : index
    %c0_161 = arith.constant 0 : index
    %519 = vector.load %arg15[%c0_160, %c0_161] : memref<1x96xf32, #tpu.memory_space<vmem>>, vector<1x96xf32>
    %c0_162 = arith.constant 0 : index
    %c0_163 = arith.constant 0 : index
    %520 = vector.load %arg16[%c0_162, %c0_163] : memref<32x32xf32, #tpu.memory_space<vmem>>, vector<32x32xf32>
    %c0_164 = arith.constant 0 : index
    %c0_165 = arith.constant 0 : index
    %521 = vector.load %arg17[%c0_164, %c0_165] : memref<1x32xf32, #tpu.memory_space<vmem>>, vector<1x32xf32>
    %c0_166 = arith.constant 0 : index
    %c0_167 = arith.constant 0 : index
    %522 = vector.load %arg18[%c0_166, %c0_167] : memref<1x32xf32, #tpu.memory_space<vmem>>, vector<1x32xf32>
    %c0_168 = arith.constant 0 : index
    %c0_169 = arith.constant 0 : index
    %523 = vector.load %arg19[%c0_168, %c0_169] : memref<1x32xf32, #tpu.memory_space<vmem>>, vector<1x32xf32>
    %c0_170 = arith.constant 0 : index
    %c0_171 = arith.constant 0 : index
    %524 = vector.load %arg20[%c0_170, %c0_171] : memref<32x64xf32, #tpu.memory_space<vmem>>, vector<32x64xf32>
    %c0_172 = arith.constant 0 : index
    %c0_173 = arith.constant 0 : index
    %525 = vector.load %arg21[%c0_172, %c0_173] : memref<1x64xf32, #tpu.memory_space<vmem>>, vector<1x64xf32>
    %c0_174 = arith.constant 0 : index
    %c0_175 = arith.constant 0 : index
    %526 = vector.load %arg22[%c0_174, %c0_175] : memref<64x32xf32, #tpu.memory_space<vmem>>, vector<64x32xf32>
    %c0_176 = arith.constant 0 : index
    %c0_177 = arith.constant 0 : index
    %527 = vector.load %arg23[%c0_176, %c0_177] : memref<1x32xf32, #tpu.memory_space<vmem>>, vector<1x32xf32>
    %528 = vector.extract_strided_slice %518 {offsets = [0, 32], sizes = [32, 64], strides = [1, 1]} : vector<32x96xf32> to vector<32x64xf32>
    %cst_178 = arith.constant dense<0.000000e+00> : vector<32x64xf32>
    %529 = tpu.matmul %517, %528, %cst_178 {dimension_numbers = #tpu.dot_dimension_numbers<[1], [0], [0], [1], [0, 0, 1, 1], [], []>} : vector<32x32xf32>, vector<32x64xf32>, vector<32x64xf32> -> vector<32x64xf32>
    %530 = vector.extract_strided_slice %519 {offsets = [0, 32], sizes = [1, 64], strides = [1, 1]} : vector<1x96xf32> to vector<1x64xf32>
    %531 = vector.broadcast %530 : vector<1x64xf32> to vector<32x64xf32>
    %532 = arith.addf %529, %531 : vector<32x64xf32>
    %533 = vector.broadcast %1 : vector<32x1xf32> to vector<32x64xf32>
    %534 = arith.mulf %532, %533 : vector<32x64xf32>
    %535 = vector.extract_strided_slice %534 {offsets = [0, 0], sizes = [32, 32], strides = [1, 1]} : vector<32x64xf32> to vector<32x32xf32>
    %536 = vector.extract_strided_slice %534 {offsets = [0, 32], sizes = [32, 32], strides = [1, 1]} : vector<32x64xf32> to vector<32x32xf32>
    %537 = vector.extract_strided_slice %518 {offsets = [0, 0], sizes = [32, 32], strides = [1, 1]} : vector<32x96xf32> to vector<32x32xf32>
    %cst_179 = arith.constant dense<0.000000e+00> : vector<32x32xf32>
    %538 = tpu.matmul %0, %537, %cst_179 {dimension_numbers = #tpu.dot_dimension_numbers<[1], [0], [0], [1], [0, 0, 1, 1], [], []>} : vector<32x32xf32>, vector<32x32xf32>, vector<32x32xf32> -> vector<32x32xf32>
    %539 = vector.extract_strided_slice %519 {offsets = [0, 0], sizes = [1, 32], strides = [1, 1]} : vector<1x96xf32> to vector<1x32xf32>
    %540 = vector.broadcast %539 : vector<1x32xf32> to vector<32x32xf32>
    %541 = arith.addf %538, %540 : vector<32x32xf32>
    %542 = vector.broadcast %1 : vector<32x1xf32> to vector<32x32xf32>
    %543 = arith.mulf %541, %542 : vector<32x32xf32>
    %544 = vector.extract_strided_slice %3 {offsets = [0, 0, 0], sizes = [1, 16, 16], strides = [1, 1, 1]} : vector<2x16x16xf32> to vector<1x16x16xf32>
    %545 = vector.shape_cast %544 : vector<1x16x16xf32> to vector<16x16xf32>
    %546 = vector.extract_strided_slice %543 {offsets = [0, 0], sizes = [16, 8], strides = [1, 1]} : vector<32x32xf32> to vector<16x8xf32>
    %547 = vector.extract_strided_slice %535 {offsets = [0, 0], sizes = [16, 8], strides = [1, 1]} : vector<32x32xf32> to vector<16x8xf32>
    %548 = vector.extract_strided_slice %536 {offsets = [0, 0], sizes = [16, 8], strides = [1, 1]} : vector<32x32xf32> to vector<16x8xf32>
    %cst_180 = arith.constant dense<0.000000e+00> : vector<16x16xf32>
    %549 = tpu.matmul %546, %547, %cst_180 {dimension_numbers = #tpu.dot_dimension_numbers<[1], [1], [0], [0], [0, 0, 1, 0], [], []>} : vector<16x8xf32>, vector<16x8xf32>, vector<16x16xf32> -> vector<16x16xf32>
    %cst_181 = arith.constant 0.353553385 : f32
    %550 = vector.broadcast %cst_181 : f32 to vector<16x16xf32>
    %551 = arith.mulf %549, %550 : vector<16x16xf32>
    %552 = arith.subf %551, %545 : vector<16x16xf32>
    %cst_182 = arith.constant dense<0xFF800000> : vector<16xf32>
    %553 = vector.multi_reduction <maximumf>, %552, %cst_182 [1] : vector<16x16xf32> to vector<16xf32>
    %554 = vector.shape_cast %553 : vector<16xf32> to vector<16x1xf32>
    %555 = vector.broadcast %554 : vector<16x1xf32> to vector<16x16xf32>
    %556 = arith.subf %552, %555 : vector<16x16xf32>
    %557 = math.exp %556 : vector<16x16xf32>
    %cst_183 = arith.constant dense<0.000000e+00> : vector<16xf32>
    %558 = vector.multi_reduction <add>, %557, %cst_183 [1] : vector<16x16xf32> to vector<16xf32>
    %559 = vector.shape_cast %558 : vector<16xf32> to vector<16x1xf32>
    %560 = tpu.reciprocal %559 {approx = true} : vector<16x1xf32> -> vector<16x1xf32>
    %561 = vector.broadcast %560 : vector<16x1xf32> to vector<16x16xf32>
    %562 = arith.mulf %557, %561 : vector<16x16xf32>
    %cst_184 = arith.constant dense<0.000000e+00> : vector<16x8xf32>
    %563 = tpu.matmul %562, %548, %cst_184 {dimension_numbers = #tpu.dot_dimension_numbers<[1], [0], [0], [1], [0, 0, 1, 1], [], []>} : vector<16x16xf32>, vector<16x8xf32>, vector<16x8xf32> -> vector<16x8xf32>
    %564 = vector.extract_strided_slice %520 {offsets = [0, 0], sizes = [8, 32], strides = [1, 1]} : vector<32x32xf32> to vector<8x32xf32>
    %cst_185 = arith.constant dense<0.000000e+00> : vector<16x32xf32>
    %565 = tpu.matmul %563, %564, %cst_185 {dimension_numbers = #tpu.dot_dimension_numbers<[1], [0], [0], [1], [0, 0, 1, 1], [], []>} : vector<16x8xf32>, vector<8x32xf32>, vector<16x32xf32> -> vector<16x32xf32>
    %566 = vector.extract_strided_slice %543 {offsets = [0, 8], sizes = [16, 8], strides = [1, 1]} : vector<32x32xf32> to vector<16x8xf32>
    %567 = vector.extract_strided_slice %535 {offsets = [0, 8], sizes = [16, 8], strides = [1, 1]} : vector<32x32xf32> to vector<16x8xf32>
    %568 = vector.extract_strided_slice %536 {offsets = [0, 8], sizes = [16, 8], strides = [1, 1]} : vector<32x32xf32> to vector<16x8xf32>
    %cst_186 = arith.constant dense<0.000000e+00> : vector<16x16xf32>
    %569 = tpu.matmul %566, %567, %cst_186 {dimension_numbers = #tpu.dot_dimension_numbers<[1], [1], [0], [0], [0, 0, 1, 0], [], []>} : vector<16x8xf32>, vector<16x8xf32>, vector<16x16xf32> -> vector<16x16xf32>
    %cst_187 = arith.constant 0.353553385 : f32
    %570 = vector.broadcast %cst_187 : f32 to vector<16x16xf32>
    %571 = arith.mulf %569, %570 : vector<16x16xf32>
    %572 = arith.subf %571, %545 : vector<16x16xf32>
    %cst_188 = arith.constant dense<0xFF800000> : vector<16xf32>
    %573 = vector.multi_reduction <maximumf>, %572, %cst_188 [1] : vector<16x16xf32> to vector<16xf32>
    %574 = vector.shape_cast %573 : vector<16xf32> to vector<16x1xf32>
    %575 = vector.broadcast %574 : vector<16x1xf32> to vector<16x16xf32>
    %576 = arith.subf %572, %575 : vector<16x16xf32>
    %577 = math.exp %576 : vector<16x16xf32>
    %cst_189 = arith.constant dense<0.000000e+00> : vector<16xf32>
    %578 = vector.multi_reduction <add>, %577, %cst_189 [1] : vector<16x16xf32> to vector<16xf32>
    %579 = vector.shape_cast %578 : vector<16xf32> to vector<16x1xf32>
    %580 = tpu.reciprocal %579 {approx = true} : vector<16x1xf32> -> vector<16x1xf32>
    %581 = vector.broadcast %580 : vector<16x1xf32> to vector<16x16xf32>
    %582 = arith.mulf %577, %581 : vector<16x16xf32>
    %cst_190 = arith.constant dense<0.000000e+00> : vector<16x8xf32>
    %583 = tpu.matmul %582, %568, %cst_190 {dimension_numbers = #tpu.dot_dimension_numbers<[1], [0], [0], [1], [0, 0, 1, 1], [], []>} : vector<16x16xf32>, vector<16x8xf32>, vector<16x8xf32> -> vector<16x8xf32>
    %584 = vector.extract_strided_slice %520 {offsets = [8, 0], sizes = [8, 32], strides = [1, 1]} : vector<32x32xf32> to vector<8x32xf32>
    %cst_191 = arith.constant dense<0.000000e+00> : vector<16x32xf32>
    %585 = tpu.matmul %583, %584, %cst_191 {dimension_numbers = #tpu.dot_dimension_numbers<[1], [0], [0], [1], [0, 0, 1, 1], [], []>} : vector<16x8xf32>, vector<8x32xf32>, vector<16x32xf32> -> vector<16x32xf32>
    %586 = arith.addf %565, %585 : vector<16x32xf32>
    %587 = vector.extract_strided_slice %543 {offsets = [0, 16], sizes = [16, 8], strides = [1, 1]} : vector<32x32xf32> to vector<16x8xf32>
    %588 = vector.extract_strided_slice %535 {offsets = [0, 16], sizes = [16, 8], strides = [1, 1]} : vector<32x32xf32> to vector<16x8xf32>
    %589 = vector.extract_strided_slice %536 {offsets = [0, 16], sizes = [16, 8], strides = [1, 1]} : vector<32x32xf32> to vector<16x8xf32>
    %cst_192 = arith.constant dense<0.000000e+00> : vector<16x16xf32>
    %590 = tpu.matmul %587, %588, %cst_192 {dimension_numbers = #tpu.dot_dimension_numbers<[1], [1], [0], [0], [0, 0, 1, 0], [], []>} : vector<16x8xf32>, vector<16x8xf32>, vector<16x16xf32> -> vector<16x16xf32>
    %cst_193 = arith.constant 0.353553385 : f32
    %591 = vector.broadcast %cst_193 : f32 to vector<16x16xf32>
    %592 = arith.mulf %590, %591 : vector<16x16xf32>
    %593 = arith.subf %592, %545 : vector<16x16xf32>
    %cst_194 = arith.constant dense<0xFF800000> : vector<16xf32>
    %594 = vector.multi_reduction <maximumf>, %593, %cst_194 [1] : vector<16x16xf32> to vector<16xf32>
    %595 = vector.shape_cast %594 : vector<16xf32> to vector<16x1xf32>
    %596 = vector.broadcast %595 : vector<16x1xf32> to vector<16x16xf32>
    %597 = arith.subf %593, %596 : vector<16x16xf32>
    %598 = math.exp %597 : vector<16x16xf32>
    %cst_195 = arith.constant dense<0.000000e+00> : vector<16xf32>
    %599 = vector.multi_reduction <add>, %598, %cst_195 [1] : vector<16x16xf32> to vector<16xf32>
    %600 = vector.shape_cast %599 : vector<16xf32> to vector<16x1xf32>
    %601 = tpu.reciprocal %600 {approx = true} : vector<16x1xf32> -> vector<16x1xf32>
    %602 = vector.broadcast %601 : vector<16x1xf32> to vector<16x16xf32>
    %603 = arith.mulf %598, %602 : vector<16x16xf32>
    %cst_196 = arith.constant dense<0.000000e+00> : vector<16x8xf32>
    %604 = tpu.matmul %603, %589, %cst_196 {dimension_numbers = #tpu.dot_dimension_numbers<[1], [0], [0], [1], [0, 0, 1, 1], [], []>} : vector<16x16xf32>, vector<16x8xf32>, vector<16x8xf32> -> vector<16x8xf32>
    %605 = vector.extract_strided_slice %520 {offsets = [16, 0], sizes = [8, 32], strides = [1, 1]} : vector<32x32xf32> to vector<8x32xf32>
    %cst_197 = arith.constant dense<0.000000e+00> : vector<16x32xf32>
    %606 = tpu.matmul %604, %605, %cst_197 {dimension_numbers = #tpu.dot_dimension_numbers<[1], [0], [0], [1], [0, 0, 1, 1], [], []>} : vector<16x8xf32>, vector<8x32xf32>, vector<16x32xf32> -> vector<16x32xf32>
    %607 = arith.addf %586, %606 : vector<16x32xf32>
    %608 = vector.extract_strided_slice %543 {offsets = [0, 24], sizes = [16, 8], strides = [1, 1]} : vector<32x32xf32> to vector<16x8xf32>
    %609 = vector.extract_strided_slice %535 {offsets = [0, 24], sizes = [16, 8], strides = [1, 1]} : vector<32x32xf32> to vector<16x8xf32>
    %610 = vector.extract_strided_slice %536 {offsets = [0, 24], sizes = [16, 8], strides = [1, 1]} : vector<32x32xf32> to vector<16x8xf32>
    %cst_198 = arith.constant dense<0.000000e+00> : vector<16x16xf32>
    %611 = tpu.matmul %608, %609, %cst_198 {dimension_numbers = #tpu.dot_dimension_numbers<[1], [1], [0], [0], [0, 0, 1, 0], [], []>} : vector<16x8xf32>, vector<16x8xf32>, vector<16x16xf32> -> vector<16x16xf32>
    %cst_199 = arith.constant 0.353553385 : f32
    %612 = vector.broadcast %cst_199 : f32 to vector<16x16xf32>
    %613 = arith.mulf %611, %612 : vector<16x16xf32>
    %614 = arith.subf %613, %545 : vector<16x16xf32>
    %cst_200 = arith.constant dense<0xFF800000> : vector<16xf32>
    %615 = vector.multi_reduction <maximumf>, %614, %cst_200 [1] : vector<16x16xf32> to vector<16xf32>
    %616 = vector.shape_cast %615 : vector<16xf32> to vector<16x1xf32>
    %617 = vector.broadcast %616 : vector<16x1xf32> to vector<16x16xf32>
    %618 = arith.subf %614, %617 : vector<16x16xf32>
    %619 = math.exp %618 : vector<16x16xf32>
    %cst_201 = arith.constant dense<0.000000e+00> : vector<16xf32>
    %620 = vector.multi_reduction <add>, %619, %cst_201 [1] : vector<16x16xf32> to vector<16xf32>
    %621 = vector.shape_cast %620 : vector<16xf32> to vector<16x1xf32>
    %622 = tpu.reciprocal %621 {approx = true} : vector<16x1xf32> -> vector<16x1xf32>
    %623 = vector.broadcast %622 : vector<16x1xf32> to vector<16x16xf32>
    %624 = arith.mulf %619, %623 : vector<16x16xf32>
    %cst_202 = arith.constant dense<0.000000e+00> : vector<16x8xf32>
    %625 = tpu.matmul %624, %610, %cst_202 {dimension_numbers = #tpu.dot_dimension_numbers<[1], [0], [0], [1], [0, 0, 1, 1], [], []>} : vector<16x16xf32>, vector<16x8xf32>, vector<16x8xf32> -> vector<16x8xf32>
    %626 = vector.extract_strided_slice %520 {offsets = [24, 0], sizes = [8, 32], strides = [1, 1]} : vector<32x32xf32> to vector<8x32xf32>
    %cst_203 = arith.constant dense<0.000000e+00> : vector<16x32xf32>
    %627 = tpu.matmul %625, %626, %cst_203 {dimension_numbers = #tpu.dot_dimension_numbers<[1], [0], [0], [1], [0, 0, 1, 1], [], []>} : vector<16x8xf32>, vector<8x32xf32>, vector<16x32xf32> -> vector<16x32xf32>
    %628 = arith.addf %607, %627 : vector<16x32xf32>
    %629 = vector.extract_strided_slice %3 {offsets = [1, 0, 0], sizes = [1, 16, 16], strides = [1, 1, 1]} : vector<2x16x16xf32> to vector<1x16x16xf32>
    %630 = vector.shape_cast %629 : vector<1x16x16xf32> to vector<16x16xf32>
    %631 = vector.extract_strided_slice %543 {offsets = [16, 0], sizes = [16, 8], strides = [1, 1]} : vector<32x32xf32> to vector<16x8xf32>
    %632 = vector.extract_strided_slice %535 {offsets = [16, 0], sizes = [16, 8], strides = [1, 1]} : vector<32x32xf32> to vector<16x8xf32>
    %633 = vector.extract_strided_slice %536 {offsets = [16, 0], sizes = [16, 8], strides = [1, 1]} : vector<32x32xf32> to vector<16x8xf32>
    %cst_204 = arith.constant dense<0.000000e+00> : vector<16x16xf32>
    %634 = tpu.matmul %631, %632, %cst_204 {dimension_numbers = #tpu.dot_dimension_numbers<[1], [1], [0], [0], [0, 0, 1, 0], [], []>} : vector<16x8xf32>, vector<16x8xf32>, vector<16x16xf32> -> vector<16x16xf32>
    %cst_205 = arith.constant 0.353553385 : f32
    %635 = vector.broadcast %cst_205 : f32 to vector<16x16xf32>
    %636 = arith.mulf %634, %635 : vector<16x16xf32>
    %637 = arith.subf %636, %630 : vector<16x16xf32>
    %cst_206 = arith.constant dense<0xFF800000> : vector<16xf32>
    %638 = vector.multi_reduction <maximumf>, %637, %cst_206 [1] : vector<16x16xf32> to vector<16xf32>
    %639 = vector.shape_cast %638 : vector<16xf32> to vector<16x1xf32>
    %640 = vector.broadcast %639 : vector<16x1xf32> to vector<16x16xf32>
    %641 = arith.subf %637, %640 : vector<16x16xf32>
    %642 = math.exp %641 : vector<16x16xf32>
    %cst_207 = arith.constant dense<0.000000e+00> : vector<16xf32>
    %643 = vector.multi_reduction <add>, %642, %cst_207 [1] : vector<16x16xf32> to vector<16xf32>
    %644 = vector.shape_cast %643 : vector<16xf32> to vector<16x1xf32>
    %645 = tpu.reciprocal %644 {approx = true} : vector<16x1xf32> -> vector<16x1xf32>
    %646 = vector.broadcast %645 : vector<16x1xf32> to vector<16x16xf32>
    %647 = arith.mulf %642, %646 : vector<16x16xf32>
    %cst_208 = arith.constant dense<0.000000e+00> : vector<16x8xf32>
    %648 = tpu.matmul %647, %633, %cst_208 {dimension_numbers = #tpu.dot_dimension_numbers<[1], [0], [0], [1], [0, 0, 1, 1], [], []>} : vector<16x16xf32>, vector<16x8xf32>, vector<16x8xf32> -> vector<16x8xf32>
    %649 = vector.extract_strided_slice %520 {offsets = [0, 0], sizes = [8, 32], strides = [1, 1]} : vector<32x32xf32> to vector<8x32xf32>
    %cst_209 = arith.constant dense<0.000000e+00> : vector<16x32xf32>
    %650 = tpu.matmul %648, %649, %cst_209 {dimension_numbers = #tpu.dot_dimension_numbers<[1], [0], [0], [1], [0, 0, 1, 1], [], []>} : vector<16x8xf32>, vector<8x32xf32>, vector<16x32xf32> -> vector<16x32xf32>
    %651 = vector.extract_strided_slice %543 {offsets = [16, 8], sizes = [16, 8], strides = [1, 1]} : vector<32x32xf32> to vector<16x8xf32>
    %652 = vector.extract_strided_slice %535 {offsets = [16, 8], sizes = [16, 8], strides = [1, 1]} : vector<32x32xf32> to vector<16x8xf32>
    %653 = vector.extract_strided_slice %536 {offsets = [16, 8], sizes = [16, 8], strides = [1, 1]} : vector<32x32xf32> to vector<16x8xf32>
    %cst_210 = arith.constant dense<0.000000e+00> : vector<16x16xf32>
    %654 = tpu.matmul %651, %652, %cst_210 {dimension_numbers = #tpu.dot_dimension_numbers<[1], [1], [0], [0], [0, 0, 1, 0], [], []>} : vector<16x8xf32>, vector<16x8xf32>, vector<16x16xf32> -> vector<16x16xf32>
    %cst_211 = arith.constant 0.353553385 : f32
    %655 = vector.broadcast %cst_211 : f32 to vector<16x16xf32>
    %656 = arith.mulf %654, %655 : vector<16x16xf32>
    %657 = arith.subf %656, %630 : vector<16x16xf32>
    %cst_212 = arith.constant dense<0xFF800000> : vector<16xf32>
    %658 = vector.multi_reduction <maximumf>, %657, %cst_212 [1] : vector<16x16xf32> to vector<16xf32>
    %659 = vector.shape_cast %658 : vector<16xf32> to vector<16x1xf32>
    %660 = vector.broadcast %659 : vector<16x1xf32> to vector<16x16xf32>
    %661 = arith.subf %657, %660 : vector<16x16xf32>
    %662 = math.exp %661 : vector<16x16xf32>
    %cst_213 = arith.constant dense<0.000000e+00> : vector<16xf32>
    %663 = vector.multi_reduction <add>, %662, %cst_213 [1] : vector<16x16xf32> to vector<16xf32>
    %664 = vector.shape_cast %663 : vector<16xf32> to vector<16x1xf32>
    %665 = tpu.reciprocal %664 {approx = true} : vector<16x1xf32> -> vector<16x1xf32>
    %666 = vector.broadcast %665 : vector<16x1xf32> to vector<16x16xf32>
    %667 = arith.mulf %662, %666 : vector<16x16xf32>
    %cst_214 = arith.constant dense<0.000000e+00> : vector<16x8xf32>
    %668 = tpu.matmul %667, %653, %cst_214 {dimension_numbers = #tpu.dot_dimension_numbers<[1], [0], [0], [1], [0, 0, 1, 1], [], []>} : vector<16x16xf32>, vector<16x8xf32>, vector<16x8xf32> -> vector<16x8xf32>
    %669 = vector.extract_strided_slice %520 {offsets = [8, 0], sizes = [8, 32], strides = [1, 1]} : vector<32x32xf32> to vector<8x32xf32>
    %cst_215 = arith.constant dense<0.000000e+00> : vector<16x32xf32>
    %670 = tpu.matmul %668, %669, %cst_215 {dimension_numbers = #tpu.dot_dimension_numbers<[1], [0], [0], [1], [0, 0, 1, 1], [], []>} : vector<16x8xf32>, vector<8x32xf32>, vector<16x32xf32> -> vector<16x32xf32>
    %671 = arith.addf %650, %670 : vector<16x32xf32>
    %672 = vector.extract_strided_slice %543 {offsets = [16, 16], sizes = [16, 8], strides = [1, 1]} : vector<32x32xf32> to vector<16x8xf32>
    %673 = vector.extract_strided_slice %535 {offsets = [16, 16], sizes = [16, 8], strides = [1, 1]} : vector<32x32xf32> to vector<16x8xf32>
    %674 = vector.extract_strided_slice %536 {offsets = [16, 16], sizes = [16, 8], strides = [1, 1]} : vector<32x32xf32> to vector<16x8xf32>
    %cst_216 = arith.constant dense<0.000000e+00> : vector<16x16xf32>
    %675 = tpu.matmul %672, %673, %cst_216 {dimension_numbers = #tpu.dot_dimension_numbers<[1], [1], [0], [0], [0, 0, 1, 0], [], []>} : vector<16x8xf32>, vector<16x8xf32>, vector<16x16xf32> -> vector<16x16xf32>
    %cst_217 = arith.constant 0.353553385 : f32
    %676 = vector.broadcast %cst_217 : f32 to vector<16x16xf32>
    %677 = arith.mulf %675, %676 : vector<16x16xf32>
    %678 = arith.subf %677, %630 : vector<16x16xf32>
    %cst_218 = arith.constant dense<0xFF800000> : vector<16xf32>
    %679 = vector.multi_reduction <maximumf>, %678, %cst_218 [1] : vector<16x16xf32> to vector<16xf32>
    %680 = vector.shape_cast %679 : vector<16xf32> to vector<16x1xf32>
    %681 = vector.broadcast %680 : vector<16x1xf32> to vector<16x16xf32>
    %682 = arith.subf %678, %681 : vector<16x16xf32>
    %683 = math.exp %682 : vector<16x16xf32>
    %cst_219 = arith.constant dense<0.000000e+00> : vector<16xf32>
    %684 = vector.multi_reduction <add>, %683, %cst_219 [1] : vector<16x16xf32> to vector<16xf32>
    %685 = vector.shape_cast %684 : vector<16xf32> to vector<16x1xf32>
    %686 = tpu.reciprocal %685 {approx = true} : vector<16x1xf32> -> vector<16x1xf32>
    %687 = vector.broadcast %686 : vector<16x1xf32> to vector<16x16xf32>
    %688 = arith.mulf %683, %687 : vector<16x16xf32>
    %cst_220 = arith.constant dense<0.000000e+00> : vector<16x8xf32>
    %689 = tpu.matmul %688, %674, %cst_220 {dimension_numbers = #tpu.dot_dimension_numbers<[1], [0], [0], [1], [0, 0, 1, 1], [], []>} : vector<16x16xf32>, vector<16x8xf32>, vector<16x8xf32> -> vector<16x8xf32>
    %690 = vector.extract_strided_slice %520 {offsets = [16, 0], sizes = [8, 32], strides = [1, 1]} : vector<32x32xf32> to vector<8x32xf32>
    %cst_221 = arith.constant dense<0.000000e+00> : vector<16x32xf32>
    %691 = tpu.matmul %689, %690, %cst_221 {dimension_numbers = #tpu.dot_dimension_numbers<[1], [0], [0], [1], [0, 0, 1, 1], [], []>} : vector<16x8xf32>, vector<8x32xf32>, vector<16x32xf32> -> vector<16x32xf32>
    %692 = arith.addf %671, %691 : vector<16x32xf32>
    %693 = vector.extract_strided_slice %543 {offsets = [16, 24], sizes = [16, 8], strides = [1, 1]} : vector<32x32xf32> to vector<16x8xf32>
    %694 = vector.extract_strided_slice %535 {offsets = [16, 24], sizes = [16, 8], strides = [1, 1]} : vector<32x32xf32> to vector<16x8xf32>
    %695 = vector.extract_strided_slice %536 {offsets = [16, 24], sizes = [16, 8], strides = [1, 1]} : vector<32x32xf32> to vector<16x8xf32>
    %cst_222 = arith.constant dense<0.000000e+00> : vector<16x16xf32>
    %696 = tpu.matmul %693, %694, %cst_222 {dimension_numbers = #tpu.dot_dimension_numbers<[1], [1], [0], [0], [0, 0, 1, 0], [], []>} : vector<16x8xf32>, vector<16x8xf32>, vector<16x16xf32> -> vector<16x16xf32>
    %cst_223 = arith.constant 0.353553385 : f32
    %697 = vector.broadcast %cst_223 : f32 to vector<16x16xf32>
    %698 = arith.mulf %696, %697 : vector<16x16xf32>
    %699 = arith.subf %698, %630 : vector<16x16xf32>
    %cst_224 = arith.constant dense<0xFF800000> : vector<16xf32>
    %700 = vector.multi_reduction <maximumf>, %699, %cst_224 [1] : vector<16x16xf32> to vector<16xf32>
    %701 = vector.shape_cast %700 : vector<16xf32> to vector<16x1xf32>
    %702 = vector.broadcast %701 : vector<16x1xf32> to vector<16x16xf32>
    %703 = arith.subf %699, %702 : vector<16x16xf32>
    %704 = math.exp %703 : vector<16x16xf32>
    %cst_225 = arith.constant dense<0.000000e+00> : vector<16xf32>
    %705 = vector.multi_reduction <add>, %704, %cst_225 [1] : vector<16x16xf32> to vector<16xf32>
    %706 = vector.shape_cast %705 : vector<16xf32> to vector<16x1xf32>
    %707 = tpu.reciprocal %706 {approx = true} : vector<16x1xf32> -> vector<16x1xf32>
    %708 = vector.broadcast %707 : vector<16x1xf32> to vector<16x16xf32>
    %709 = arith.mulf %704, %708 : vector<16x16xf32>
    %cst_226 = arith.constant dense<0.000000e+00> : vector<16x8xf32>
    %710 = tpu.matmul %709, %695, %cst_226 {dimension_numbers = #tpu.dot_dimension_numbers<[1], [0], [0], [1], [0, 0, 1, 1], [], []>} : vector<16x16xf32>, vector<16x8xf32>, vector<16x8xf32> -> vector<16x8xf32>
    %711 = vector.extract_strided_slice %520 {offsets = [24, 0], sizes = [8, 32], strides = [1, 1]} : vector<32x32xf32> to vector<8x32xf32>
    %cst_227 = arith.constant dense<0.000000e+00> : vector<16x32xf32>
    %712 = tpu.matmul %710, %711, %cst_227 {dimension_numbers = #tpu.dot_dimension_numbers<[1], [0], [0], [1], [0, 0, 1, 1], [], []>} : vector<16x8xf32>, vector<8x32xf32>, vector<16x32xf32> -> vector<16x32xf32>
    %713 = arith.addf %692, %712 : vector<16x32xf32>
    %714 = tpu.concatenate %628, %713 in 0 : vector<16x32xf32>, vector<16x32xf32> -> vector<32x32xf32>
    %715 = vector.broadcast %521 : vector<1x32xf32> to vector<32x32xf32>
    %716 = arith.addf %714, %715 : vector<32x32xf32>
    %717 = vector.broadcast %1 : vector<32x1xf32> to vector<32x32xf32>
    %718 = arith.mulf %716, %717 : vector<32x32xf32>
    %719 = arith.addf %718, %0 : vector<32x32xf32>
    %cst_228 = arith.constant dense<0.000000e+00> : vector<32xf32>
    %720 = vector.multi_reduction <add>, %719, %cst_228 [1] : vector<32x32xf32> to vector<32xf32>
    %721 = vector.shape_cast %720 : vector<32xf32> to vector<32x1xf32>
    %cst_229 = arith.constant 3.200000e+01 : f32
    %722 = vector.broadcast %cst_229 : f32 to vector<32x1xf32>
    %723 = arith.divf %721, %722 : vector<32x1xf32>
    %724 = vector.broadcast %723 : vector<32x1xf32> to vector<32x32xf32>
    %725 = arith.subf %719, %724 : vector<32x32xf32>
    %726 = vector.broadcast %723 : vector<32x1xf32> to vector<32x32xf32>
    %727 = arith.subf %719, %726 : vector<32x32xf32>
    %728 = arith.mulf %725, %727 : vector<32x32xf32>
    %cst_230 = arith.constant dense<0.000000e+00> : vector<32xf32>
    %729 = vector.multi_reduction <add>, %728, %cst_230 [1] : vector<32x32xf32> to vector<32xf32>
    %730 = vector.shape_cast %729 : vector<32xf32> to vector<32x1xf32>
    %cst_231 = arith.constant 3.200000e+01 : f32
    %731 = vector.broadcast %cst_231 : f32 to vector<32x1xf32>
    %732 = arith.divf %730, %731 : vector<32x1xf32>
    %733 = vector.broadcast %723 : vector<32x1xf32> to vector<32x32xf32>
    %734 = arith.subf %719, %733 : vector<32x32xf32>
    %cst_232 = arith.constant 9.99999974E-6 : f32
    %735 = vector.broadcast %cst_232 : f32 to vector<32x1xf32>
    %736 = arith.addf %732, %735 : vector<32x1xf32>
    %737 = math.rsqrt %736 : vector<32x1xf32>
    %738 = vector.broadcast %737 : vector<32x1xf32> to vector<32x32xf32>
    %739 = arith.mulf %734, %738 : vector<32x32xf32>
    %740 = vector.broadcast %522 : vector<1x32xf32> to vector<32x32xf32>
    %741 = arith.mulf %739, %740 : vector<32x32xf32>
    %742 = vector.broadcast %523 : vector<1x32xf32> to vector<32x32xf32>
    %743 = arith.addf %741, %742 : vector<32x32xf32>
    %cst_233 = arith.constant dense<0.000000e+00> : vector<32x64xf32>
    %744 = tpu.matmul %743, %524, %cst_233 {dimension_numbers = #tpu.dot_dimension_numbers<[1], [0], [0], [1], [0, 0, 1, 1], [], []>} : vector<32x32xf32>, vector<32x64xf32>, vector<32x64xf32> -> vector<32x64xf32>
    %745 = vector.broadcast %525 : vector<1x64xf32> to vector<32x64xf32>
    %746 = arith.addf %744, %745 : vector<32x64xf32>
    %cst_234 = arith.constant 5.000000e-01 : f32
    %747 = vector.broadcast %cst_234 : f32 to vector<32x64xf32>
    %748 = arith.mulf %747, %746 : vector<32x64xf32>
    %cst_235 = arith.constant 4.471500e-02 : f32
    %749 = vector.broadcast %cst_235 : f32 to vector<32x64xf32>
    %750 = arith.mulf %749, %746 : vector<32x64xf32>
    %751 = arith.mulf %750, %746 : vector<32x64xf32>
    %752 = arith.mulf %751, %746 : vector<32x64xf32>
    %753 = arith.addf %746, %752 : vector<32x64xf32>
    %cst_236 = arith.constant 0.797884583 : f32
    %754 = vector.broadcast %cst_236 : f32 to vector<32x64xf32>
    %755 = arith.mulf %754, %753 : vector<32x64xf32>
    %756 = math.tanh %755 : vector<32x64xf32>
    %cst_237 = arith.constant 1.000000e+00 : f32
    %757 = vector.broadcast %cst_237 : f32 to vector<32x64xf32>
    %758 = arith.addf %757, %756 : vector<32x64xf32>
    %759 = arith.mulf %748, %758 : vector<32x64xf32>
    %cst_238 = arith.constant dense<0.000000e+00> : vector<32x32xf32>
    %760 = tpu.matmul %759, %526, %cst_238 {dimension_numbers = #tpu.dot_dimension_numbers<[1], [0], [0], [1], [0, 0, 1, 1], [], []>} : vector<32x64xf32>, vector<64x32xf32>, vector<32x32xf32> -> vector<32x32xf32>
    %761 = vector.broadcast %527 : vector<1x32xf32> to vector<32x32xf32>
    %762 = arith.addf %760, %761 : vector<32x32xf32>
    %763 = arith.addf %762, %743 : vector<32x32xf32>
    %cst_239 = arith.constant dense<0.000000e+00> : vector<32xf32>
    %764 = vector.multi_reduction <add>, %763, %cst_239 [1] : vector<32x32xf32> to vector<32xf32>
    %765 = vector.shape_cast %764 : vector<32xf32> to vector<32x1xf32>
    %cst_240 = arith.constant 3.200000e+01 : f32
    %766 = vector.broadcast %cst_240 : f32 to vector<32x1xf32>
    %767 = arith.divf %765, %766 : vector<32x1xf32>
    %768 = vector.broadcast %767 : vector<32x1xf32> to vector<32x32xf32>
    %769 = arith.subf %763, %768 : vector<32x32xf32>
    %770 = vector.broadcast %767 : vector<32x1xf32> to vector<32x32xf32>
    %771 = arith.subf %763, %770 : vector<32x32xf32>
    %772 = arith.mulf %769, %771 : vector<32x32xf32>
    %cst_241 = arith.constant dense<0.000000e+00> : vector<32xf32>
    %773 = vector.multi_reduction <add>, %772, %cst_241 [1] : vector<32x32xf32> to vector<32xf32>
    %774 = vector.shape_cast %773 : vector<32xf32> to vector<32x1xf32>
    %cst_242 = arith.constant 3.200000e+01 : f32
    %775 = vector.broadcast %cst_242 : f32 to vector<32x1xf32>
    %776 = arith.divf %774, %775 : vector<32x1xf32>
    %777 = vector.broadcast %767 : vector<32x1xf32> to vector<32x32xf32>
    %778 = arith.subf %763, %777 : vector<32x32xf32>
    %cst_243 = arith.constant 9.99999974E-6 : f32
    %779 = vector.broadcast %cst_243 : f32 to vector<32x1xf32>
    %780 = arith.addf %776, %779 : vector<32x1xf32>
    %781 = math.rsqrt %780 : vector<32x1xf32>
    %782 = vector.broadcast %781 : vector<32x1xf32> to vector<32x32xf32>
    %783 = arith.mulf %778, %782 : vector<32x32xf32>
    %784 = vector.broadcast %522 : vector<1x32xf32> to vector<32x32xf32>
    %785 = arith.mulf %783, %784 : vector<32x32xf32>
    %786 = vector.broadcast %523 : vector<1x32xf32> to vector<32x32xf32>
    %787 = arith.addf %785, %786 : vector<32x32xf32>
    %788 = vector.extract_strided_slice %518 {offsets = [0, 0], sizes = [32, 32], strides = [1, 1]} : vector<32x96xf32> to vector<32x32xf32>
    %cst_244 = arith.constant dense<0.000000e+00> : vector<32x32xf32>
    %789 = tpu.matmul %787, %788, %cst_244 {dimension_numbers = #tpu.dot_dimension_numbers<[1], [0], [0], [1], [0, 0, 1, 1], [], []>} : vector<32x32xf32>, vector<32x32xf32>, vector<32x32xf32> -> vector<32x32xf32>
    %790 = vector.extract_strided_slice %519 {offsets = [0, 0], sizes = [1, 32], strides = [1, 1]} : vector<1x96xf32> to vector<1x32xf32>
    %791 = vector.broadcast %790 : vector<1x32xf32> to vector<32x32xf32>
    %792 = arith.addf %789, %791 : vector<32x32xf32>
    %793 = vector.broadcast %1 : vector<32x1xf32> to vector<32x32xf32>
    %794 = arith.mulf %792, %793 : vector<32x32xf32>
    %795 = vector.extract_strided_slice %3 {offsets = [0, 0, 0], sizes = [1, 16, 16], strides = [1, 1, 1]} : vector<2x16x16xf32> to vector<1x16x16xf32>
    %796 = vector.shape_cast %795 : vector<1x16x16xf32> to vector<16x16xf32>
    %797 = vector.extract_strided_slice %794 {offsets = [0, 0], sizes = [16, 8], strides = [1, 1]} : vector<32x32xf32> to vector<16x8xf32>
    %798 = vector.extract_strided_slice %535 {offsets = [0, 0], sizes = [16, 8], strides = [1, 1]} : vector<32x32xf32> to vector<16x8xf32>
    %799 = vector.extract_strided_slice %536 {offsets = [0, 0], sizes = [16, 8], strides = [1, 1]} : vector<32x32xf32> to vector<16x8xf32>
    %cst_245 = arith.constant dense<0.000000e+00> : vector<16x16xf32>
    %800 = tpu.matmul %797, %798, %cst_245 {dimension_numbers = #tpu.dot_dimension_numbers<[1], [1], [0], [0], [0, 0, 1, 0], [], []>} : vector<16x8xf32>, vector<16x8xf32>, vector<16x16xf32> -> vector<16x16xf32>
    %cst_246 = arith.constant 0.353553385 : f32
    %801 = vector.broadcast %cst_246 : f32 to vector<16x16xf32>
    %802 = arith.mulf %800, %801 : vector<16x16xf32>
    %803 = arith.subf %802, %796 : vector<16x16xf32>
    %cst_247 = arith.constant dense<0xFF800000> : vector<16xf32>
    %804 = vector.multi_reduction <maximumf>, %803, %cst_247 [1] : vector<16x16xf32> to vector<16xf32>
    %805 = vector.shape_cast %804 : vector<16xf32> to vector<16x1xf32>
    %806 = vector.broadcast %805 : vector<16x1xf32> to vector<16x16xf32>
    %807 = arith.subf %803, %806 : vector<16x16xf32>
    %808 = math.exp %807 : vector<16x16xf32>
    %cst_248 = arith.constant dense<0.000000e+00> : vector<16xf32>
    %809 = vector.multi_reduction <add>, %808, %cst_248 [1] : vector<16x16xf32> to vector<16xf32>
    %810 = vector.shape_cast %809 : vector<16xf32> to vector<16x1xf32>
    %811 = tpu.reciprocal %810 {approx = true} : vector<16x1xf32> -> vector<16x1xf32>
    %812 = vector.broadcast %811 : vector<16x1xf32> to vector<16x16xf32>
    %813 = arith.mulf %808, %812 : vector<16x16xf32>
    %cst_249 = arith.constant dense<0.000000e+00> : vector<16x8xf32>
    %814 = tpu.matmul %813, %799, %cst_249 {dimension_numbers = #tpu.dot_dimension_numbers<[1], [0], [0], [1], [0, 0, 1, 1], [], []>} : vector<16x16xf32>, vector<16x8xf32>, vector<16x8xf32> -> vector<16x8xf32>
    %815 = vector.extract_strided_slice %520 {offsets = [0, 0], sizes = [8, 32], strides = [1, 1]} : vector<32x32xf32> to vector<8x32xf32>
    %cst_250 = arith.constant dense<0.000000e+00> : vector<16x32xf32>
    %816 = tpu.matmul %814, %815, %cst_250 {dimension_numbers = #tpu.dot_dimension_numbers<[1], [0], [0], [1], [0, 0, 1, 1], [], []>} : vector<16x8xf32>, vector<8x32xf32>, vector<16x32xf32> -> vector<16x32xf32>
    %817 = vector.extract_strided_slice %794 {offsets = [0, 8], sizes = [16, 8], strides = [1, 1]} : vector<32x32xf32> to vector<16x8xf32>
    %818 = vector.extract_strided_slice %535 {offsets = [0, 8], sizes = [16, 8], strides = [1, 1]} : vector<32x32xf32> to vector<16x8xf32>
    %819 = vector.extract_strided_slice %536 {offsets = [0, 8], sizes = [16, 8], strides = [1, 1]} : vector<32x32xf32> to vector<16x8xf32>
    %cst_251 = arith.constant dense<0.000000e+00> : vector<16x16xf32>
    %820 = tpu.matmul %817, %818, %cst_251 {dimension_numbers = #tpu.dot_dimension_numbers<[1], [1], [0], [0], [0, 0, 1, 0], [], []>} : vector<16x8xf32>, vector<16x8xf32>, vector<16x16xf32> -> vector<16x16xf32>
    %cst_252 = arith.constant 0.353553385 : f32
    %821 = vector.broadcast %cst_252 : f32 to vector<16x16xf32>
    %822 = arith.mulf %820, %821 : vector<16x16xf32>
    %823 = arith.subf %822, %796 : vector<16x16xf32>
    %cst_253 = arith.constant dense<0xFF800000> : vector<16xf32>
    %824 = vector.multi_reduction <maximumf>, %823, %cst_253 [1] : vector<16x16xf32> to vector<16xf32>
    %825 = vector.shape_cast %824 : vector<16xf32> to vector<16x1xf32>
    %826 = vector.broadcast %825 : vector<16x1xf32> to vector<16x16xf32>
    %827 = arith.subf %823, %826 : vector<16x16xf32>
    %828 = math.exp %827 : vector<16x16xf32>
    %cst_254 = arith.constant dense<0.000000e+00> : vector<16xf32>
    %829 = vector.multi_reduction <add>, %828, %cst_254 [1] : vector<16x16xf32> to vector<16xf32>
    %830 = vector.shape_cast %829 : vector<16xf32> to vector<16x1xf32>
    %831 = tpu.reciprocal %830 {approx = true} : vector<16x1xf32> -> vector<16x1xf32>
    %832 = vector.broadcast %831 : vector<16x1xf32> to vector<16x16xf32>
    %833 = arith.mulf %828, %832 : vector<16x16xf32>
    %cst_255 = arith.constant dense<0.000000e+00> : vector<16x8xf32>
    %834 = tpu.matmul %833, %819, %cst_255 {dimension_numbers = #tpu.dot_dimension_numbers<[1], [0], [0], [1], [0, 0, 1, 1], [], []>} : vector<16x16xf32>, vector<16x8xf32>, vector<16x8xf32> -> vector<16x8xf32>
    %835 = vector.extract_strided_slice %520 {offsets = [8, 0], sizes = [8, 32], strides = [1, 1]} : vector<32x32xf32> to vector<8x32xf32>
    %cst_256 = arith.constant dense<0.000000e+00> : vector<16x32xf32>
    %836 = tpu.matmul %834, %835, %cst_256 {dimension_numbers = #tpu.dot_dimension_numbers<[1], [0], [0], [1], [0, 0, 1, 1], [], []>} : vector<16x8xf32>, vector<8x32xf32>, vector<16x32xf32> -> vector<16x32xf32>
    %837 = arith.addf %816, %836 : vector<16x32xf32>
    %838 = vector.extract_strided_slice %794 {offsets = [0, 16], sizes = [16, 8], strides = [1, 1]} : vector<32x32xf32> to vector<16x8xf32>
    %839 = vector.extract_strided_slice %535 {offsets = [0, 16], sizes = [16, 8], strides = [1, 1]} : vector<32x32xf32> to vector<16x8xf32>
    %840 = vector.extract_strided_slice %536 {offsets = [0, 16], sizes = [16, 8], strides = [1, 1]} : vector<32x32xf32> to vector<16x8xf32>
    %cst_257 = arith.constant dense<0.000000e+00> : vector<16x16xf32>
    %841 = tpu.matmul %838, %839, %cst_257 {dimension_numbers = #tpu.dot_dimension_numbers<[1], [1], [0], [0], [0, 0, 1, 0], [], []>} : vector<16x8xf32>, vector<16x8xf32>, vector<16x16xf32> -> vector<16x16xf32>
    %cst_258 = arith.constant 0.353553385 : f32
    %842 = vector.broadcast %cst_258 : f32 to vector<16x16xf32>
    %843 = arith.mulf %841, %842 : vector<16x16xf32>
    %844 = arith.subf %843, %796 : vector<16x16xf32>
    %cst_259 = arith.constant dense<0xFF800000> : vector<16xf32>
    %845 = vector.multi_reduction <maximumf>, %844, %cst_259 [1] : vector<16x16xf32> to vector<16xf32>
    %846 = vector.shape_cast %845 : vector<16xf32> to vector<16x1xf32>
    %847 = vector.broadcast %846 : vector<16x1xf32> to vector<16x16xf32>
    %848 = arith.subf %844, %847 : vector<16x16xf32>
    %849 = math.exp %848 : vector<16x16xf32>
    %cst_260 = arith.constant dense<0.000000e+00> : vector<16xf32>
    %850 = vector.multi_reduction <add>, %849, %cst_260 [1] : vector<16x16xf32> to vector<16xf32>
    %851 = vector.shape_cast %850 : vector<16xf32> to vector<16x1xf32>
    %852 = tpu.reciprocal %851 {approx = true} : vector<16x1xf32> -> vector<16x1xf32>
    %853 = vector.broadcast %852 : vector<16x1xf32> to vector<16x16xf32>
    %854 = arith.mulf %849, %853 : vector<16x16xf32>
    %cst_261 = arith.constant dense<0.000000e+00> : vector<16x8xf32>
    %855 = tpu.matmul %854, %840, %cst_261 {dimension_numbers = #tpu.dot_dimension_numbers<[1], [0], [0], [1], [0, 0, 1, 1], [], []>} : vector<16x16xf32>, vector<16x8xf32>, vector<16x8xf32> -> vector<16x8xf32>
    %856 = vector.extract_strided_slice %520 {offsets = [16, 0], sizes = [8, 32], strides = [1, 1]} : vector<32x32xf32> to vector<8x32xf32>
    %cst_262 = arith.constant dense<0.000000e+00> : vector<16x32xf32>
    %857 = tpu.matmul %855, %856, %cst_262 {dimension_numbers = #tpu.dot_dimension_numbers<[1], [0], [0], [1], [0, 0, 1, 1], [], []>} : vector<16x8xf32>, vector<8x32xf32>, vector<16x32xf32> -> vector<16x32xf32>
    %858 = arith.addf %837, %857 : vector<16x32xf32>
    %859 = vector.extract_strided_slice %794 {offsets = [0, 24], sizes = [16, 8], strides = [1, 1]} : vector<32x32xf32> to vector<16x8xf32>
    %860 = vector.extract_strided_slice %535 {offsets = [0, 24], sizes = [16, 8], strides = [1, 1]} : vector<32x32xf32> to vector<16x8xf32>
    %861 = vector.extract_strided_slice %536 {offsets = [0, 24], sizes = [16, 8], strides = [1, 1]} : vector<32x32xf32> to vector<16x8xf32>
    %cst_263 = arith.constant dense<0.000000e+00> : vector<16x16xf32>
    %862 = tpu.matmul %859, %860, %cst_263 {dimension_numbers = #tpu.dot_dimension_numbers<[1], [1], [0], [0], [0, 0, 1, 0], [], []>} : vector<16x8xf32>, vector<16x8xf32>, vector<16x16xf32> -> vector<16x16xf32>
    %cst_264 = arith.constant 0.353553385 : f32
    %863 = vector.broadcast %cst_264 : f32 to vector<16x16xf32>
    %864 = arith.mulf %862, %863 : vector<16x16xf32>
    %865 = arith.subf %864, %796 : vector<16x16xf32>
    %cst_265 = arith.constant dense<0xFF800000> : vector<16xf32>
    %866 = vector.multi_reduction <maximumf>, %865, %cst_265 [1] : vector<16x16xf32> to vector<16xf32>
    %867 = vector.shape_cast %866 : vector<16xf32> to vector<16x1xf32>
    %868 = vector.broadcast %867 : vector<16x1xf32> to vector<16x16xf32>
    %869 = arith.subf %865, %868 : vector<16x16xf32>
    %870 = math.exp %869 : vector<16x16xf32>
    %cst_266 = arith.constant dense<0.000000e+00> : vector<16xf32>
    %871 = vector.multi_reduction <add>, %870, %cst_266 [1] : vector<16x16xf32> to vector<16xf32>
    %872 = vector.shape_cast %871 : vector<16xf32> to vector<16x1xf32>
    %873 = tpu.reciprocal %872 {approx = true} : vector<16x1xf32> -> vector<16x1xf32>
    %874 = vector.broadcast %873 : vector<16x1xf32> to vector<16x16xf32>
    %875 = arith.mulf %870, %874 : vector<16x16xf32>
    %cst_267 = arith.constant dense<0.000000e+00> : vector<16x8xf32>
    %876 = tpu.matmul %875, %861, %cst_267 {dimension_numbers = #tpu.dot_dimension_numbers<[1], [0], [0], [1], [0, 0, 1, 1], [], []>} : vector<16x16xf32>, vector<16x8xf32>, vector<16x8xf32> -> vector<16x8xf32>
    %877 = vector.extract_strided_slice %520 {offsets = [24, 0], sizes = [8, 32], strides = [1, 1]} : vector<32x32xf32> to vector<8x32xf32>
    %cst_268 = arith.constant dense<0.000000e+00> : vector<16x32xf32>
    %878 = tpu.matmul %876, %877, %cst_268 {dimension_numbers = #tpu.dot_dimension_numbers<[1], [0], [0], [1], [0, 0, 1, 1], [], []>} : vector<16x8xf32>, vector<8x32xf32>, vector<16x32xf32> -> vector<16x32xf32>
    %879 = arith.addf %858, %878 : vector<16x32xf32>
    %880 = vector.extract_strided_slice %3 {offsets = [1, 0, 0], sizes = [1, 16, 16], strides = [1, 1, 1]} : vector<2x16x16xf32> to vector<1x16x16xf32>
    %881 = vector.shape_cast %880 : vector<1x16x16xf32> to vector<16x16xf32>
    %882 = vector.extract_strided_slice %794 {offsets = [16, 0], sizes = [16, 8], strides = [1, 1]} : vector<32x32xf32> to vector<16x8xf32>
    %883 = vector.extract_strided_slice %535 {offsets = [16, 0], sizes = [16, 8], strides = [1, 1]} : vector<32x32xf32> to vector<16x8xf32>
    %884 = vector.extract_strided_slice %536 {offsets = [16, 0], sizes = [16, 8], strides = [1, 1]} : vector<32x32xf32> to vector<16x8xf32>
    %cst_269 = arith.constant dense<0.000000e+00> : vector<16x16xf32>
    %885 = tpu.matmul %882, %883, %cst_269 {dimension_numbers = #tpu.dot_dimension_numbers<[1], [1], [0], [0], [0, 0, 1, 0], [], []>} : vector<16x8xf32>, vector<16x8xf32>, vector<16x16xf32> -> vector<16x16xf32>
    %cst_270 = arith.constant 0.353553385 : f32
    %886 = vector.broadcast %cst_270 : f32 to vector<16x16xf32>
    %887 = arith.mulf %885, %886 : vector<16x16xf32>
    %888 = arith.subf %887, %881 : vector<16x16xf32>
    %cst_271 = arith.constant dense<0xFF800000> : vector<16xf32>
    %889 = vector.multi_reduction <maximumf>, %888, %cst_271 [1] : vector<16x16xf32> to vector<16xf32>
    %890 = vector.shape_cast %889 : vector<16xf32> to vector<16x1xf32>
    %891 = vector.broadcast %890 : vector<16x1xf32> to vector<16x16xf32>
    %892 = arith.subf %888, %891 : vector<16x16xf32>
    %893 = math.exp %892 : vector<16x16xf32>
    %cst_272 = arith.constant dense<0.000000e+00> : vector<16xf32>
    %894 = vector.multi_reduction <add>, %893, %cst_272 [1] : vector<16x16xf32> to vector<16xf32>
    %895 = vector.shape_cast %894 : vector<16xf32> to vector<16x1xf32>
    %896 = tpu.reciprocal %895 {approx = true} : vector<16x1xf32> -> vector<16x1xf32>
    %897 = vector.broadcast %896 : vector<16x1xf32> to vector<16x16xf32>
    %898 = arith.mulf %893, %897 : vector<16x16xf32>
    %cst_273 = arith.constant dense<0.000000e+00> : vector<16x8xf32>
    %899 = tpu.matmul %898, %884, %cst_273 {dimension_numbers = #tpu.dot_dimension_numbers<[1], [0], [0], [1], [0, 0, 1, 1], [], []>} : vector<16x16xf32>, vector<16x8xf32>, vector<16x8xf32> -> vector<16x8xf32>
    %900 = vector.extract_strided_slice %520 {offsets = [0, 0], sizes = [8, 32], strides = [1, 1]} : vector<32x32xf32> to vector<8x32xf32>
    %cst_274 = arith.constant dense<0.000000e+00> : vector<16x32xf32>
    %901 = tpu.matmul %899, %900, %cst_274 {dimension_numbers = #tpu.dot_dimension_numbers<[1], [0], [0], [1], [0, 0, 1, 1], [], []>} : vector<16x8xf32>, vector<8x32xf32>, vector<16x32xf32> -> vector<16x32xf32>
    %902 = vector.extract_strided_slice %794 {offsets = [16, 8], sizes = [16, 8], strides = [1, 1]} : vector<32x32xf32> to vector<16x8xf32>
    %903 = vector.extract_strided_slice %535 {offsets = [16, 8], sizes = [16, 8], strides = [1, 1]} : vector<32x32xf32> to vector<16x8xf32>
    %904 = vector.extract_strided_slice %536 {offsets = [16, 8], sizes = [16, 8], strides = [1, 1]} : vector<32x32xf32> to vector<16x8xf32>
    %cst_275 = arith.constant dense<0.000000e+00> : vector<16x16xf32>
    %905 = tpu.matmul %902, %903, %cst_275 {dimension_numbers = #tpu.dot_dimension_numbers<[1], [1], [0], [0], [0, 0, 1, 0], [], []>} : vector<16x8xf32>, vector<16x8xf32>, vector<16x16xf32> -> vector<16x16xf32>
    %cst_276 = arith.constant 0.353553385 : f32
    %906 = vector.broadcast %cst_276 : f32 to vector<16x16xf32>
    %907 = arith.mulf %905, %906 : vector<16x16xf32>
    %908 = arith.subf %907, %881 : vector<16x16xf32>
    %cst_277 = arith.constant dense<0xFF800000> : vector<16xf32>
    %909 = vector.multi_reduction <maximumf>, %908, %cst_277 [1] : vector<16x16xf32> to vector<16xf32>
    %910 = vector.shape_cast %909 : vector<16xf32> to vector<16x1xf32>
    %911 = vector.broadcast %910 : vector<16x1xf32> to vector<16x16xf32>
    %912 = arith.subf %908, %911 : vector<16x16xf32>
    %913 = math.exp %912 : vector<16x16xf32>
    %cst_278 = arith.constant dense<0.000000e+00> : vector<16xf32>
    %914 = vector.multi_reduction <add>, %913, %cst_278 [1] : vector<16x16xf32> to vector<16xf32>
    %915 = vector.shape_cast %914 : vector<16xf32> to vector<16x1xf32>
    %916 = tpu.reciprocal %915 {approx = true} : vector<16x1xf32> -> vector<16x1xf32>
    %917 = vector.broadcast %916 : vector<16x1xf32> to vector<16x16xf32>
    %918 = arith.mulf %913, %917 : vector<16x16xf32>
    %cst_279 = arith.constant dense<0.000000e+00> : vector<16x8xf32>
    %919 = tpu.matmul %918, %904, %cst_279 {dimension_numbers = #tpu.dot_dimension_numbers<[1], [0], [0], [1], [0, 0, 1, 1], [], []>} : vector<16x16xf32>, vector<16x8xf32>, vector<16x8xf32> -> vector<16x8xf32>
    %920 = vector.extract_strided_slice %520 {offsets = [8, 0], sizes = [8, 32], strides = [1, 1]} : vector<32x32xf32> to vector<8x32xf32>
    %cst_280 = arith.constant dense<0.000000e+00> : vector<16x32xf32>
    %921 = tpu.matmul %919, %920, %cst_280 {dimension_numbers = #tpu.dot_dimension_numbers<[1], [0], [0], [1], [0, 0, 1, 1], [], []>} : vector<16x8xf32>, vector<8x32xf32>, vector<16x32xf32> -> vector<16x32xf32>
    %922 = arith.addf %901, %921 : vector<16x32xf32>
    %923 = vector.extract_strided_slice %794 {offsets = [16, 16], sizes = [16, 8], strides = [1, 1]} : vector<32x32xf32> to vector<16x8xf32>
    %924 = vector.extract_strided_slice %535 {offsets = [16, 16], sizes = [16, 8], strides = [1, 1]} : vector<32x32xf32> to vector<16x8xf32>
    %925 = vector.extract_strided_slice %536 {offsets = [16, 16], sizes = [16, 8], strides = [1, 1]} : vector<32x32xf32> to vector<16x8xf32>
    %cst_281 = arith.constant dense<0.000000e+00> : vector<16x16xf32>
    %926 = tpu.matmul %923, %924, %cst_281 {dimension_numbers = #tpu.dot_dimension_numbers<[1], [1], [0], [0], [0, 0, 1, 0], [], []>} : vector<16x8xf32>, vector<16x8xf32>, vector<16x16xf32> -> vector<16x16xf32>
    %cst_282 = arith.constant 0.353553385 : f32
    %927 = vector.broadcast %cst_282 : f32 to vector<16x16xf32>
    %928 = arith.mulf %926, %927 : vector<16x16xf32>
    %929 = arith.subf %928, %881 : vector<16x16xf32>
    %cst_283 = arith.constant dense<0xFF800000> : vector<16xf32>
    %930 = vector.multi_reduction <maximumf>, %929, %cst_283 [1] : vector<16x16xf32> to vector<16xf32>
    %931 = vector.shape_cast %930 : vector<16xf32> to vector<16x1xf32>
    %932 = vector.broadcast %931 : vector<16x1xf32> to vector<16x16xf32>
    %933 = arith.subf %929, %932 : vector<16x16xf32>
    %934 = math.exp %933 : vector<16x16xf32>
    %cst_284 = arith.constant dense<0.000000e+00> : vector<16xf32>
    %935 = vector.multi_reduction <add>, %934, %cst_284 [1] : vector<16x16xf32> to vector<16xf32>
    %936 = vector.shape_cast %935 : vector<16xf32> to vector<16x1xf32>
    %937 = tpu.reciprocal %936 {approx = true} : vector<16x1xf32> -> vector<16x1xf32>
    %938 = vector.broadcast %937 : vector<16x1xf32> to vector<16x16xf32>
    %939 = arith.mulf %934, %938 : vector<16x16xf32>
    %cst_285 = arith.constant dense<0.000000e+00> : vector<16x8xf32>
    %940 = tpu.matmul %939, %925, %cst_285 {dimension_numbers = #tpu.dot_dimension_numbers<[1], [0], [0], [1], [0, 0, 1, 1], [], []>} : vector<16x16xf32>, vector<16x8xf32>, vector<16x8xf32> -> vector<16x8xf32>
    %941 = vector.extract_strided_slice %520 {offsets = [16, 0], sizes = [8, 32], strides = [1, 1]} : vector<32x32xf32> to vector<8x32xf32>
    %cst_286 = arith.constant dense<0.000000e+00> : vector<16x32xf32>
    %942 = tpu.matmul %940, %941, %cst_286 {dimension_numbers = #tpu.dot_dimension_numbers<[1], [0], [0], [1], [0, 0, 1, 1], [], []>} : vector<16x8xf32>, vector<8x32xf32>, vector<16x32xf32> -> vector<16x32xf32>
    %943 = arith.addf %922, %942 : vector<16x32xf32>
    %944 = vector.extract_strided_slice %794 {offsets = [16, 24], sizes = [16, 8], strides = [1, 1]} : vector<32x32xf32> to vector<16x8xf32>
    %945 = vector.extract_strided_slice %535 {offsets = [16, 24], sizes = [16, 8], strides = [1, 1]} : vector<32x32xf32> to vector<16x8xf32>
    %946 = vector.extract_strided_slice %536 {offsets = [16, 24], sizes = [16, 8], strides = [1, 1]} : vector<32x32xf32> to vector<16x8xf32>
    %cst_287 = arith.constant dense<0.000000e+00> : vector<16x16xf32>
    %947 = tpu.matmul %944, %945, %cst_287 {dimension_numbers = #tpu.dot_dimension_numbers<[1], [1], [0], [0], [0, 0, 1, 0], [], []>} : vector<16x8xf32>, vector<16x8xf32>, vector<16x16xf32> -> vector<16x16xf32>
    %cst_288 = arith.constant 0.353553385 : f32
    %948 = vector.broadcast %cst_288 : f32 to vector<16x16xf32>
    %949 = arith.mulf %947, %948 : vector<16x16xf32>
    %950 = arith.subf %949, %881 : vector<16x16xf32>
    %cst_289 = arith.constant dense<0xFF800000> : vector<16xf32>
    %951 = vector.multi_reduction <maximumf>, %950, %cst_289 [1] : vector<16x16xf32> to vector<16xf32>
    %952 = vector.shape_cast %951 : vector<16xf32> to vector<16x1xf32>
    %953 = vector.broadcast %952 : vector<16x1xf32> to vector<16x16xf32>
    %954 = arith.subf %950, %953 : vector<16x16xf32>
    %955 = math.exp %954 : vector<16x16xf32>
    %cst_290 = arith.constant dense<0.000000e+00> : vector<16xf32>
    %956 = vector.multi_reduction <add>, %955, %cst_290 [1] : vector<16x16xf32> to vector<16xf32>
    %957 = vector.shape_cast %956 : vector<16xf32> to vector<16x1xf32>
    %958 = tpu.reciprocal %957 {approx = true} : vector<16x1xf32> -> vector<16x1xf32>
    %959 = vector.broadcast %958 : vector<16x1xf32> to vector<16x16xf32>
    %960 = arith.mulf %955, %959 : vector<16x16xf32>
    %cst_291 = arith.constant dense<0.000000e+00> : vector<16x8xf32>
    %961 = tpu.matmul %960, %946, %cst_291 {dimension_numbers = #tpu.dot_dimension_numbers<[1], [0], [0], [1], [0, 0, 1, 1], [], []>} : vector<16x16xf32>, vector<16x8xf32>, vector<16x8xf32> -> vector<16x8xf32>
    %962 = vector.extract_strided_slice %520 {offsets = [24, 0], sizes = [8, 32], strides = [1, 1]} : vector<32x32xf32> to vector<8x32xf32>
    %cst_292 = arith.constant dense<0.000000e+00> : vector<16x32xf32>
    %963 = tpu.matmul %961, %962, %cst_292 {dimension_numbers = #tpu.dot_dimension_numbers<[1], [0], [0], [1], [0, 0, 1, 1], [], []>} : vector<16x8xf32>, vector<8x32xf32>, vector<16x32xf32> -> vector<16x32xf32>
    %964 = arith.addf %943, %963 : vector<16x32xf32>
    %965 = tpu.concatenate %879, %964 in 0 : vector<16x32xf32>, vector<16x32xf32> -> vector<32x32xf32>
    %966 = vector.broadcast %521 : vector<1x32xf32> to vector<32x32xf32>
    %967 = arith.addf %965, %966 : vector<32x32xf32>
    %968 = vector.broadcast %1 : vector<32x1xf32> to vector<32x32xf32>
    %969 = arith.mulf %967, %968 : vector<32x32xf32>
    %970 = arith.addf %969, %787 : vector<32x32xf32>
    %cst_293 = arith.constant dense<0.000000e+00> : vector<32xf32>
    %971 = vector.multi_reduction <add>, %970, %cst_293 [1] : vector<32x32xf32> to vector<32xf32>
    %972 = vector.shape_cast %971 : vector<32xf32> to vector<32x1xf32>
    %cst_294 = arith.constant 3.200000e+01 : f32
    %973 = vector.broadcast %cst_294 : f32 to vector<32x1xf32>
    %974 = arith.divf %972, %973 : vector<32x1xf32>
    %975 = vector.broadcast %974 : vector<32x1xf32> to vector<32x32xf32>
    %976 = arith.subf %970, %975 : vector<32x32xf32>
    %977 = vector.broadcast %974 : vector<32x1xf32> to vector<32x32xf32>
    %978 = arith.subf %970, %977 : vector<32x32xf32>
    %979 = arith.mulf %976, %978 : vector<32x32xf32>
    %cst_295 = arith.constant dense<0.000000e+00> : vector<32xf32>
    %980 = vector.multi_reduction <add>, %979, %cst_295 [1] : vector<32x32xf32> to vector<32xf32>
    %981 = vector.shape_cast %980 : vector<32xf32> to vector<32x1xf32>
    %cst_296 = arith.constant 3.200000e+01 : f32
    %982 = vector.broadcast %cst_296 : f32 to vector<32x1xf32>
    %983 = arith.divf %981, %982 : vector<32x1xf32>
    %984 = vector.broadcast %974 : vector<32x1xf32> to vector<32x32xf32>
    %985 = arith.subf %970, %984 : vector<32x32xf32>
    %cst_297 = arith.constant 9.99999974E-6 : f32
    %986 = vector.broadcast %cst_297 : f32 to vector<32x1xf32>
    %987 = arith.addf %983, %986 : vector<32x1xf32>
    %988 = math.rsqrt %987 : vector<32x1xf32>
    %989 = vector.broadcast %988 : vector<32x1xf32> to vector<32x32xf32>
    %990 = arith.mulf %985, %989 : vector<32x32xf32>
    %991 = vector.broadcast %522 : vector<1x32xf32> to vector<32x32xf32>
    %992 = arith.mulf %990, %991 : vector<32x32xf32>
    %993 = vector.broadcast %523 : vector<1x32xf32> to vector<32x32xf32>
    %994 = arith.addf %992, %993 : vector<32x32xf32>
    %cst_298 = arith.constant dense<0.000000e+00> : vector<32x64xf32>
    %995 = tpu.matmul %994, %524, %cst_298 {dimension_numbers = #tpu.dot_dimension_numbers<[1], [0], [0], [1], [0, 0, 1, 1], [], []>} : vector<32x32xf32>, vector<32x64xf32>, vector<32x64xf32> -> vector<32x64xf32>
    %996 = vector.broadcast %525 : vector<1x64xf32> to vector<32x64xf32>
    %997 = arith.addf %995, %996 : vector<32x64xf32>
    %cst_299 = arith.constant 5.000000e-01 : f32
    %998 = vector.broadcast %cst_299 : f32 to vector<32x64xf32>
    %999 = arith.mulf %998, %997 : vector<32x64xf32>
    %cst_300 = arith.constant 4.471500e-02 : f32
    %1000 = vector.broadcast %cst_300 : f32 to vector<32x64xf32>
    %1001 = arith.mulf %1000, %997 : vector<32x64xf32>
    %1002 = arith.mulf %1001, %997 : vector<32x64xf32>
    %1003 = arith.mulf %1002, %997 : vector<32x64xf32>
    %1004 = arith.addf %997, %1003 : vector<32x64xf32>
    %cst_301 = arith.constant 0.797884583 : f32
    %1005 = vector.broadcast %cst_301 : f32 to vector<32x64xf32>
    %1006 = arith.mulf %1005, %1004 : vector<32x64xf32>
    %1007 = math.tanh %1006 : vector<32x64xf32>
    %cst_302 = arith.constant 1.000000e+00 : f32
    %1008 = vector.broadcast %cst_302 : f32 to vector<32x64xf32>
    %1009 = arith.addf %1008, %1007 : vector<32x64xf32>
    %1010 = arith.mulf %999, %1009 : vector<32x64xf32>
    %cst_303 = arith.constant dense<0.000000e+00> : vector<32x32xf32>
    %1011 = tpu.matmul %1010, %526, %cst_303 {dimension_numbers = #tpu.dot_dimension_numbers<[1], [0], [0], [1], [0, 0, 1, 1], [], []>} : vector<32x64xf32>, vector<64x32xf32>, vector<32x32xf32> -> vector<32x32xf32>
    %1012 = vector.broadcast %527 : vector<1x32xf32> to vector<32x32xf32>
    %1013 = arith.addf %1011, %1012 : vector<32x32xf32>
    %1014 = arith.addf %1013, %994 : vector<32x32xf32>
    %cst_304 = arith.constant dense<0.000000e+00> : vector<32xf32>
    %1015 = vector.multi_reduction <add>, %1014, %cst_304 [1] : vector<32x32xf32> to vector<32xf32>
    %1016 = vector.shape_cast %1015 : vector<32xf32> to vector<32x1xf32>
    %cst_305 = arith.constant 3.200000e+01 : f32
    %1017 = vector.broadcast %cst_305 : f32 to vector<32x1xf32>
    %1018 = arith.divf %1016, %1017 : vector<32x1xf32>
    %1019 = vector.broadcast %1018 : vector<32x1xf32> to vector<32x32xf32>
    %1020 = arith.subf %1014, %1019 : vector<32x32xf32>
    %1021 = vector.broadcast %1018 : vector<32x1xf32> to vector<32x32xf32>
    %1022 = arith.subf %1014, %1021 : vector<32x32xf32>
    %1023 = arith.mulf %1020, %1022 : vector<32x32xf32>
    %cst_306 = arith.constant dense<0.000000e+00> : vector<32xf32>
    %1024 = vector.multi_reduction <add>, %1023, %cst_306 [1] : vector<32x32xf32> to vector<32xf32>
    %1025 = vector.shape_cast %1024 : vector<32xf32> to vector<32x1xf32>
    %cst_307 = arith.constant 3.200000e+01 : f32
    %1026 = vector.broadcast %cst_307 : f32 to vector<32x1xf32>
    %1027 = arith.divf %1025, %1026 : vector<32x1xf32>
    %1028 = vector.broadcast %1018 : vector<32x1xf32> to vector<32x32xf32>
    %1029 = arith.subf %1014, %1028 : vector<32x32xf32>
    %cst_308 = arith.constant 9.99999974E-6 : f32
    %1030 = vector.broadcast %cst_308 : f32 to vector<32x1xf32>
    %1031 = arith.addf %1027, %1030 : vector<32x1xf32>
    %1032 = math.rsqrt %1031 : vector<32x1xf32>
    %1033 = vector.broadcast %1032 : vector<32x1xf32> to vector<32x32xf32>
    %1034 = arith.mulf %1029, %1033 : vector<32x32xf32>
    %1035 = vector.broadcast %522 : vector<1x32xf32> to vector<32x32xf32>
    %1036 = arith.mulf %1034, %1035 : vector<32x32xf32>
    %1037 = vector.broadcast %523 : vector<1x32xf32> to vector<32x32xf32>
    %1038 = arith.addf %1036, %1037 : vector<32x32xf32>
    %c0_309 = arith.constant 0 : index
    %c0_310 = arith.constant 0 : index
    %1039 = vector.load %arg24[%c0_309, %c0_310] : memref<32x128xf32, #tpu.memory_space<vmem>>, vector<32x128xf32>
    %cst_311 = arith.constant dense<0.000000e+00> : vector<32x128xf32>
    %1040 = tpu.matmul %1038, %1039, %cst_311 {dimension_numbers = #tpu.dot_dimension_numbers<[1], [0], [0], [1], [0, 0, 1, 1], [], []>} : vector<32x32xf32>, vector<32x128xf32>, vector<32x128xf32> -> vector<32x128xf32>
    %c0_312 = arith.constant 0 : index
    %c0_313 = arith.constant 0 : index
    %1041 = vector.load %arg25[%c0_312, %c0_313] : memref<1x128xf32, #tpu.memory_space<vmem>>, vector<1x128xf32>
    %1042 = vector.broadcast %1041 : vector<1x128xf32> to vector<32x128xf32>
    %1043 = arith.addf %1040, %1042 : vector<32x128xf32>
    %c0_314 = arith.constant 0 : index
    %c0_315 = arith.constant 0 : index
    %1044 = vector.load %arg26[%c0_314, %c0_315] : memref<32x128xf32, #tpu.memory_space<vmem>>, vector<32x128xf32>
    tpu.vector_store %arg26[%c0_314, %c0_315], %1043 {strides = array<i32>} : memref<32x128xf32, #tpu.memory_space<vmem>>, vector<32x128xf32>,
    return
  }
}

</mosaic_0001>

<bundles_post_ra>
// kernel: botnet_forward.1
= control target key start
LH: loop header
LB: loop body
LE: loop exit
PB: predicated region body
PF: predicated region fallthrough
CT: control target
= control target key end

     0   :  { %s16252_s0 = inlined_call_operand.vmem [shape: f32[32,32], index: 0, kind: input, shape index: {}]   ;;  %s16253_s1 = inlined_call_operand.vmem [shape: f32[32,1], index: 1, kind: input, shape index: {}]   ;;  %s16254_s2 = inlined_call_operand.vmem [shape: f32[2,16,16], index: 2, kind: input, shape index: {}]   ;;  %s16255_s3 = inlined_call_operand.vmem [shape: f32[2,16,16], index: 3, kind: input, shape index: {}]   ;;  %s16256_s4 = inlined_call_operand.vmem [shape: f32[32,96], index: 4, kind: input, shape index: {}]   ;;  %s16257_s5 = inlined_call_operand.vmem [shape: f32[1,96], index: 5, kind: input, shape index: {}]   ;;  %s16258_s6 = inlined_call_operand.vmem [shape: f32[32,32], index: 6, kind: input, shape index: {}]   ;;  %s16259_s7 = inlined_call_operand.vmem [shape: f32[1,32], index: 7, kind: input, shape index: {}]   ;;  %s16260_s8 = inlined_call_operand.vmem [shape: f32[1,32], index: 8, kind: input, shape index: {}]   ;;  %s16261_s9 = inlined_call_operand.vmem [shape: f32[1,32], index: 9, kind: input, shape index: {}]   ;;  %s16262_s10 = inlined_call_operand.vmem [shape: f32[32,64], index: 10, kind: input, shape index: {}]   ;;  %s16263_s11 = inlined_call_operand.vmem [shape: f32[1,64], index: 11, kind: input, shape index: {}]   ;;  %s16264_s12 = inlined_call_operand.vmem [shape: f32[64,32], index: 12, kind: input, shape index: {}]   ;;  %s16265_s13 = inlined_call_operand.vmem [shape: f32[1,32], index: 13, kind: input, shape index: {}]   ;;  %s16266_s14 = inlined_call_operand.vmem [shape: f32[32,96], index: 14, kind: input, shape index: {}]   ;;  %s16267_s15 = inlined_call_operand.vmem [shape: f32[1,96], index: 15, kind: input, shape index: {}]   ;;  %s16268_s16 = inlined_call_operand.vmem [shape: f32[32,32], index: 16, kind: input, shape index: {}]   ;;  %s16269_s17 = inlined_call_operand.vmem [shape: f32[1,32], index: 17, kind: input, shape index: {}]   ;;  %s16270_s18 = inlined_call_operand.vmem [shape: f32[1,32], index: 18, kind: input, shape index: {}]   ;;  %s16271_s19 = inlined_call_operand.vmem [shape: f32[1,32], index: 19, kind: input, shape index: {}]   ;;  %s16272_s20 = inlined_call_operand.vmem [shape: f32[32,64], index: 20, kind: input, shape index: {}]   ;;  %s16273_s21 = inlined_call_operand.vmem [shape: f32[1,64], index: 21, kind: input, shape index: {}]   ;;  %s16274_s22 = inlined_call_operand.vmem [shape: f32[64,32], index: 22, kind: input, shape index: {}]   ;;  %s16275_s23 = inlined_call_operand.vmem [shape: f32[1,32], index: 23, kind: input, shape index: {}]   ;;  %s16276_s24 = inlined_call_operand.vmem [shape: f32[32,128], index: 24, kind: input, shape index: {}]   ;;  %s16277_s25 = inlined_call_operand.vmem [shape: f32[1,128], index: 25, kind: input, shape index: {}]   ;;  %s16278_s26 = inlined_call_operand.hbm [shape: f32[32,128], index: 26, kind: output, shape index: {}]  }
   0x1   :  { %16318 = sst [smem:[#allocation5_spill]] %s16252_s0 }
   0x2   :  { %16319 = sst [smem:[#allocation6_spill]] %s16253_s1 }
   0x3   :  { %16320 = sst [smem:[#allocation7_spill]] %s16254_s2 }
   0x4   :  { %16321 = sst [smem:[#allocation8_spill]] %s16255_s3 }
   0x5   :  { %16322 = sst [smem:[#allocation9_spill]] %s16256_s4 }
   0x6   :  { %16323 = sst [smem:[#allocation10_spill]] %s16257_s5 }
   0x7   :  { %16324 = sst [smem:[#allocation11_spill]] %s16258_s6 }
   0x8   :  { %16325 = sst [smem:[#allocation12_spill]] %s16259_s7 }
   0x9   :  { %16326 = sst [smem:[#allocation13_spill]] %s16260_s8 }
   0xa   :  { %16327 = sst [smem:[#allocation14_spill]] %s16261_s9 }
   0xb   :  { %16328 = sst [smem:[#allocation15_spill]] %s16262_s10 }
   0xc   :  { %16329 = sst [smem:[#allocation16_spill]] %s16270_s18 }
   0xd   :  { %16330 = sst [smem:[#allocation17_spill]] %s16271_s19 }
   0xe   :  { %16331 = sst [smem:[#allocation18_spill]] %s16273_s21 }
   0xf   :  { %16332 = sst [smem:[#allocation19_spill]] %s16275_s23 }
  0x10   :  { %16333 = sst [smem:[#allocation20_spill]] %s16276_s24 }
  0x11   :  { %16334 = sst [smem:[#allocation21_spill]] %s16277_s25 }
  0x12   :  { %16335 = sst [smem:[#allocation22_spill]] %s16278_s26 }
  0x13   :  { %s16336_s7 = sld [smem:[#allocation9_spill]]  ;;  %vm132_vm0 = vcmask 261120   ;;  %s16337_s5 = sld [smem:[#allocation5_spill]]  ;;  %v14196_v6 = vmov 0  }
  0x14   :  { %13541 = vset.pattern.permute.xlu0 %v14196_v6  ;;  %13572 = vset.pattern.permute.xlu1 %v14196_v6  ;;  %s16338_s1 = sld [smem:[#allocation6_spill]] }
  0x19   :  { %v100_v0 = vld [vmem:[%s16336_s7] sm:$0xff]  ;;  %v101_v1 = vld [vmem:[%s16336_s7 + $0x8] sm:$0xff]  ;;  %v102_v2 = vld [vmem:[%s16336_s7 + $0x10] sm:$0xff] }
  0x1a   :  { %v14355_v3 = vpack.c.bf16 %v101_v1, %v100_v0  ;;  %v103_v4 = vld [vmem:[%s16336_s7 + $0x18] sm:$0xff]  ;;  %v84_v5 = vld [vmem:[%s16337_s5] sm:$0xff] }
  0x1b   :  { %v14363_v7 = vpack.c.bf16 %v103_v4, %v102_v2  ;;  %12186 = vmatprep.mubr.msk.f32.mxu0 %vm132_vm0, %v84_v5  ;;  %v88_v8 = vld [vmem:[%s16338_s1] sm:$0xff] }
  0x1c   :  { %31 = vsyncpa [#allocation3], 0  ;;  %13015 = vmatprep.subr.bf16.mxu0 %v14355_v3  ;;  %232 = vperm.xlu0 %13541, %v88_v8   ;;  %v89_v9 = vld [vmem:[%s16338_s1 + $0x8] sm:$0xff]  ;;  %v86_v11 = vld [vmem:[%s16337_s5 + $0x10] sm:$0xff]  ;;  %s16339_s2 = sld [smem:[#allocation10_spill]]  ;;  %vm260_vm1 = vcmask 64512  }
  0x1d   :  { %13017 = vmatpush3.bf16.msra.mxu0 %v14355_v3  ;;  %v14379_v10 = vld [vmem:[%s16337_s5 + $0x8] sm:$0xff]  ;;  %v87_v12 = vld [vmem:[%s16337_s5 + $0x18] sm:$0xff]  ;;  %s16308_s10 = smov 120   ;;  %s16306_s6 = smov 96   ;;  %vm14425_vm2 = vmpackc.low %vm260_vm1, %vm260_vm1  ;;  %vm348_vm3 = vcmask 130048   ;;  %vm2776_vm4 = vcmask 523264  }
  0x1e   :  { %13019 = vmatprep.subr.bf16.mxu0 %v14363_v7  ;;  %s16310_s27 = smov 88   ;;  %s16342_s28 = sld [smem:[#allocation7_spill]] }
  0x1f   :  { %s16292_s29 = smov 64   ;;  %s16302_s0 = smov 80  }
  0x20   :  { %237 = vperm.xlu0 %13541, %v89_v9   ;;  %s16304_s9 = smov 56   ;;  %s16296_s30 = smov 112  }
  0x21   :  { %13021 = vmatpush3.bf16.msra.mxu0 %v14363_v7  ;;  %s16290_s3 = smov 104   ;;  %s16294_s7 = smov 72  }
  0x22   :  { %v14396_v14 = vld [vmem:[%s16339_s2] ss:$0 sm:$0xff]  ;;  %s16298_s8 = smov 40   ;;  %s16351_s26 = smov 88  }
  0x23   :  { %s16352_s21 = smov 120   ;;  %s16354_s25 = smov 56  }
  0x24   :  { %12187 = vmatmul.mubr.msk.f32.vlgmr.msra.gmra.mrb[0].mxu0 %vm132_vm0, %v14379_v10  ;;  %v14447_v37 = vld [vmem:[%s16342_s28 + $0x8] sm:$0xff]  ;;  %v14452_v40 = vld [vmem:[%s16342_s28] sm:$0xff]  ;;  %s16355_s23 = smov 80   ;;  %s16362_s19 = sld [smem:[#allocation18_spill]] }
  0x25   :  { %12189 = vmatprep.mubr.msk.f32.mxu0 %vm132_vm0, %v86_v11 }
  0x28   :  { %12190 = vmatmul.mubr.msk.f32.gmra.mrb[2].mxu0 %vm132_vm0, %v87_v12 }
  0x9b   :  { %v14391_v13 = vpop.permute.xlu0 %232 }
  0x9f   :  { %v14399_v18 = vpop.permute.xlu0 %237 }
  0xf7   :  { %v12188_v15 = vpop.f32.mrb[0].mxu0 }
  0xf8   :  { %v217_v16 = vadd.f32 %v12188_v15, %v14396_v14  ;;  %v211_v17 = vpop.f32.mrb[1].mxu0 }
  0xf9   :  { %v212_v19 = vadd.f32 %v14396_v14, %v211_v17 }
  0xfa   :  { %v14403_v20 = vmul.f32 %v14399_v18, %v217_v16 }
  0xfb   :  { %v14406_v21 = vmul.f32 %v14391_v13, %v212_v19  ;;  %v14440_v34 = vpop.f32.mrb[2].mxu0 }
  0xfc   :  { %v14442_v35 = vpop.f32.mrb[3].mxu0 }
  0xfd   :  { %458 = vrot.lane.b32.xlu0 %v14406_v21, %s16308_s10  ;;  %12196 = vmatprep.mubr.msk.f32.mxu1 %vm260_vm1, %v14406_v21  ;;  %v14414_v22 = vpack.i.bf16 %v14403_v20, %v14406_v21 }
  0xff   :  { %13543 = vrot.lane.b32.xlu1 %v14414_v22, %s16306_s6 }
 0x103   :  { %13548 = vrot.lane.b32.xlu1 %v14414_v22, %s16310_s27 }
 0x107   :  { %460 = vrot.lane.b32.xlu1 %v14403_v20, %s16308_s10 }
 0x16f   :  { %v459_v23 = vpop.permute.xlu0 %458 }
 0x170   :  { %12210 = vmatprep.mubr.msk.f32.mxu0 %vm260_vm1, %v459_v23 }
 0x171   :  { %v13544_v24 = vpop.permute.xlu1 %13543 }
 0x172   :  { %v13546_v25 = vunpack.i.h.bf16 %v13544_v24  ;;  %v13545_v26 = vunpack.i.l.bf16 %v13544_v24 }
 0x174   :  { %v13022_v28 = vpack.c.bf16 %v13546_v25, %v13545_v26 }
 0x175   :  { %v13549_v29 = vpop.permute.xlu1 %13548 }
 0x176   :  { %v13551_v30 = vunpack.i.h.bf16 %v13549_v29  ;;  %v13550_v31 = vunpack.i.l.bf16 %v13549_v29  ;;  %13024 = vmatprep.subr.msk.bf16.mxu1 %vm14425_vm2, %v13022_v28 }
 0x177   :  { %13027 = vmatpush3.bf16.xpose.msk.msra.mxu1 %vm14425_vm2, %v13022_v28 }
 0x178   :  { %v13032_v32 = vpack.c.bf16 %v13551_v30, %v13550_v31 }
 0x179   :  { %v461_v33 = vpop.permute.xlu1 %460 }
 0x17a   :  { %13034 = vmatprep.subr.msk.bf16.mxu0 %vm14425_vm2, %v13032_v32 }
 0x17b   :  { %13037 = vmatpush3.bf16.xpose.msk.msra.mxu0 %vm14425_vm2, %v13032_v32 }
 0x17e   :  { %12197 = vmatmul.mubr.msk.f32.vlgmr.msra.gmra.mrb[0].mxu1 %vm260_vm1, %v14403_v20 }
 0x182   :  { %12211 = vmatmul.mubr.msk.f32.vlgmr.msra.gmra.mrb[4].mxu0 %vm260_vm1, %v461_v33 }
 0x251   :  { %v12198_v36 = vpop.f32.mrb[0].mxu1 }
 0x252   :  { %v345_v38 = vmul.f32 0.35355338, %v12198_v36  ;;  %v335_v39 = vpop.f32.mrb[1].mxu1 }
 0x253   :  { %v344_v41 = vmul.f32 0.35355338, %v335_v39 }
 0x254   :  { %v347_v42 = vsub.f32 %v345_v38, %v14447_v37 }
 0x255   :  { %v12212_v43 = vpop.f32.mrb[4].mxu0  ;;  %v346_v44 = vsub.f32 %v344_v41, %v14452_v40 }
 0x256   :  { %v540_v45 = vpop.f32.mrb[5].mxu0  ;;  %v352_v46 = vsel %vm348_vm3, %v347_v42, -inf  ;;  %v550_v47 = vmul.f32 0.35355338, %v12212_v43 }
 0x257   :  { %v549_v48 = vmul.f32 0.35355338, %v540_v45  ;;  %353 = vmax.xlane.f32.xlu1 %v352_v46  ;;  %v349_v49 = vsel %vm348_vm3, %v346_v44, -inf }
 0x258   :  { %350 = vmax.xlane.f32.xlu0 %v349_v49  ;;  %v552_v52 = vsub.f32 %v550_v47, %v14447_v37 }
 0x259   :  { %v551_v50 = vsub.f32 %v549_v48, %v14452_v40 }
 0x25a   :  { %v556_v53 = vsel %vm348_vm3, %v552_v52, -inf }
 0x25b   :  { %v553_v51 = vsel %vm348_vm3, %v551_v50, -inf }
 0x25c   :  { %554 = vmax.xlane.f32.xlu0 %v553_v51 }
 0x260   :  { %557 = vmax.xlane.f32.xlu0 %v556_v53 }
 0x268   :  { %13553 = vrot.lane.b32.xlu1 %v14414_v22, %s16292_s29  ;;  %s16344_s29 = smov 72  }
 0x2e4   :  { %v354_v54 = vpop.xlane.xlu1 %353 }
 0x2e5   :  { %v356_v55 = vsub.f32 %v347_v42, %v354_v54  ;;  %v351_v56 = vpop.xlane.xlu0 %350 }
 0x2e6   :  { %v355_v57 = vsub.f32 %v346_v44, %v351_v56 }
 0x2e7   :  { %v359_v58 = vmul.f32 1.442695, %v356_v55 }
 0x2e8   :  { %v357_v59 = vmul.f32 1.442695, %v355_v57  ;;  %v13554_v60 = vpop.permute.xlu1 %13553 }
 0x2e9   :  { %13783 = vpow2.f32 %v359_v58  ;;  %v13556_v61 = vunpack.i.h.bf16 %v13554_v60  ;;  %v13555_v62 = vunpack.i.l.bf16 %v13554_v60  ;;  %v555_v63 = vpop.xlane.xlu0 %554 }
 0x2ea   :  { %13785 = vpow2.f32 %v357_v59  ;;  %v559_v15 = vsub.f32 %v551_v50, %v555_v63 }
 0x2eb   :  { %v13028_v0 = vpack.c.bf16 %v13556_v61, %v13555_v62 }
 0x2ec   :  { %v561_v16 = vmul.f32 1.442695, %v559_v15 }
 0x2ed   :  { %13029 = vmatprep.subr.bf16.mxu1 %v13028_v0  ;;  %v558_v1 = vpop.xlane.xlu0 %557 }
 0x2ee   :  { %v560_v2 = vsub.f32 %v552_v52, %v558_v1  ;;  %13031 = vmatpush3.bf16.msra.mxu1 %v13028_v0 }
 0x2f0   :  { %v563_v4 = vmul.f32 1.442695, %v560_v2 }
 0x2f2   :  { %13787 = vpow2.f32 %v563_v4 }
 0x2f3   :  { %v13784_v5 = vpop.eup %13783  ;;  %13789 = vpow2.f32 %v561_v16 }
 0x2f4   :  { %v13786_v6 = vpop.eup %13785  ;;  %v364_v8 = vsel %vm348_vm3, %v13784_v5, 0.0 }
 0x2f5   :  { %365 = vadd.xlane.f32.xlu0 %v364_v8  ;;  %v361_v9 = vsel %vm348_vm3, %v13786_v6, 0.0  ;;  %v91_v8 = vld [vmem:[%s16338_s1 + $0x18] sm:$0xff] }
 0x2f6   :  { %362 = vadd.xlane.f32.xlu1 %v361_v9  ;;  %v90_v9 = vld [vmem:[%s16338_s1 + $0x10] sm:$0xff]  ;;  %s16300_s1 = smov 48  }
 0x2fc   :  { %v13788_v11 = vpop.eup %13787 }
 0x2fd   :  { %v568_v12 = vsel %vm348_vm3, %v13788_v11, 0.0  ;;  %v13790_v17 = vpop.eup %13789 }
 0x2fe   :  { %569 = vadd.xlane.f32.xlu0 %v568_v12  ;;  %v565_v19 = vsel %vm348_vm3, %v13790_v17, 0.0 }
 0x307   :  { %13563 = vrot.lane.b32.xlu1 %v14414_v22, %s16302_s0 }
 0x314   :  { %13558 = vrot.lane.b32.xlu0 %v14414_v22, %s16304_s9 }
 0x318   :  { %826 = vrot.lane.b32.xlu0 %v14403_v20, %s16296_s30 }
 0x31c   :  { %1111 = vrot.lane.b32.xlu0 %v14406_v21, %s16290_s3 }
 0x32b   :  { %566 = vadd.xlane.f32.xlu1 %v565_v19 }
 0x33c   :  { %824 = vrot.lane.b32.xlu1 %v14406_v21, %s16296_s30 }
 0x340   :  { %13568 = vrot.lane.b32.xlu1 %v14414_v22, %s16294_s7  ;;  %s16345_s7 = smov 64  }
 0x344   :  { %1113 = vrot.lane.b32.xlu1 %v14403_v20, %s16290_s3  ;;  %s16343_s3 = sld [smem:[#allocation11_spill]] }
 0x34a   :  { %v14501_v54 = vld [vmem:[%s16343_s3 + $0x8] sm:$0xff]  ;;  %v14508_v55 = vld [vmem:[%s16343_s3] sm:$0xff] }
 0x34b   :  { %12220 = vmatprep.subr.mxu0 %v14501_v54 }
 0x34c   :  { %12221 = vmatpush3.msra.mxu0 %v14501_v54 }
 0x34d   :  { %12225 = vmatprep.subr.mxu0 %v14508_v55 }
 0x382   :  { %v366_v23 = vpop.xlane.xlu0 %365 }
 0x383   :  { %13791 = vrcp.f32 %v366_v23  ;;  %v363_v24 = vpop.xlane.xlu1 %362  ;;  %v222_v23 = vadd.f32 %v14396_v14, %v14442_v35  ;;  %v227_v35 = vadd.f32 %v14440_v34, %v14396_v14 }
 0x384   :  { %13793 = vrcp.f32 %v363_v24 }
 0x387   :  { %v13564_v26 = vpop.permute.xlu1 %13563 }
 0x388   :  { %v13566_v30 = vunpack.i.h.bf16 %v13564_v26  ;;  %v13565_v33 = vunpack.i.l.bf16 %v13564_v26 }
 0x38a   :  { %v13042_v39 = vpack.c.bf16 %v13566_v30, %v13565_v33 }
 0x38b   :  { %v570_v25 = vpop.xlane.xlu0 %569 }
 0x38c   :  { %13795 = vrcp.f32 %v570_v25 }
 0x38d   :  { %v13792_v28 = vpop.eup %13791 }
 0x38e   :  { %v13794_v29 = vpop.eup %13793  ;;  %v370_v38 = vmul.f32 %v13792_v28, %v13784_v5 }
 0x38f   :  { %v13559_v31 = vpop.permute.xlu0 %13558  ;;  %v369_v32 = vmul.f32 %v13794_v29, %v13786_v6 }
 0x390   :  { %v13561_v21 = vunpack.i.h.bf16 %v13559_v31  ;;  %v13560_v36 = vunpack.i.l.bf16 %v13559_v31 }
 0x391   :  { %12203 = vmatprep.mubr.msk.f32.mxu1 %vm348_vm3, %v369_v32 }
 0x392   :  { %12204 = vmatmul.mubr.msk.f32.vlgmr.msra.gmra.mrb[2].mxu1 %vm348_vm3, %v370_v38  ;;  %v13038_v20 = vpack.c.bf16 %v13561_v21, %v13560_v36 }
 0x393   :  { %v827_v51 = vpop.permute.xlu0 %826 }
 0x394   :  { %13039 = vmatprep.subr.bf16.mxu1 %v13038_v20 }
 0x395   :  { %13041 = vmatpush3.bf16.msra.mxu1 %v13038_v20 }
 0x396   :  { %13044 = vmatprep.subr.msk.bf16.mxu1 %vm14425_vm2, %v13042_v39  ;;  %v13796_v44 = vpop.eup %13795 }
 0x397   :  { %v574_v49 = vmul.f32 %v13796_v44, %v13788_v11  ;;  %v1112_v52 = vpop.permute.xlu0 %1111 }
 0x3b8   :  { %v567_v41 = vpop.xlane.xlu1 %566 }
 0x3b9   :  { %13797 = vrcp.f32 %v567_v41 }
 0x3bc   :  { %v825_v42 = vpop.permute.xlu1 %824 }
 0x3c0   :  { %v13569_v43 = vpop.permute.xlu1 %13568 }
 0x3c1   :  { %v13571_v46 = vunpack.i.h.bf16 %v13569_v43  ;;  %v13570_v47 = vunpack.i.l.bf16 %v13569_v43 }
 0x3c3   :  { %v13798_v45 = vpop.eup %13797  ;;  %v13052_v50 = vpack.c.bf16 %v13571_v46, %v13570_v47 }
 0x3c4   :  { %v573_v48 = vmul.f32 %v13798_v45, %v13790_v17  ;;  %v1114_v53 = vpop.permute.xlu1 %1113 }
 0x3c6   :  { %12217 = vmatprep.mubr.msk.f32.mxu1 %vm348_vm3, %v573_v48 }
 0x3c7   :  { %12218 = vmatmul.mubr.msk.f32.vlgmr.msra.gmra.mrb[4].mxu1 %vm348_vm3, %v574_v49 }
 0x3c8   :  { %13047 = vmatpush3.bf16.xpose.msk.msra.mxu1 %vm14425_vm2, %v13042_v39  ;;  %12234 = vmatprep.mubr.msk.f32.mxu1 %vm260_vm1, %v825_v42 }
 0x3c9   :  { %13054 = vmatprep.subr.msk.bf16.mxu1 %vm14425_vm2, %v13052_v50 }
 0x3cf   :  { %12235 = vmatmul.mubr.msk.f32.vlgmr.msra.gmra.mrb[6].mxu1 %vm260_vm1, %v827_v51 }
 0x3d0   :  { %13057 = vmatpush3.bf16.xpose.msk.msra.mxu1 %vm14425_vm2, %v13052_v50  ;;  %12253 = vmatprep.mubr.msk.f32.mxu1 %vm260_vm1, %v1112_v52 }
 0x3d7   :  { %12254 = vmatmul.mubr.msk.f32.vlgmr.msra.gmra.mrb[8].mxu1 %vm260_vm1, %v1114_v53 }
 0x465   :  { %v12205_v56 = vpop.f32.mrb[2].mxu1 }
 0x466   :  { %v449_v57 = vpop.f32.mrb[3].mxu1 }
 0x49a   :  { %v12219_v58 = vpop.f32.mrb[4].mxu1 }
 0x49b   :  { %v653_v59 = vpop.f32.mrb[5].mxu1 }
 0x49c   :  { %12222 = vmatprep.mubr.msk.f32.mxu0 %vm260_vm1, %v653_v59 }
 0x49d   :  { %12223 = vmatmul.mubr.msk.f32.vlgmr.msra.gmra.mrb[6].mxu0 %vm260_vm1, %v12219_v58 }
 0x49e   :  { %12227 = vmatprep.mubr.msk.f32.mxu0 %vm260_vm1, %v449_v57  ;;  %12226 = vmatpush3.msra.mxu0 %v14508_v55 }
 0x4a2   :  { %v12236_v60 = vpop.f32.mrb[6].mxu1 }
 0x4a3   :  { %v916_v61 = vmul.f32 0.35355338, %v12236_v60  ;;  %v906_v62 = vpop.f32.mrb[7].mxu1 }
 0x4a4   :  { %v915_v63 = vmul.f32 0.35355338, %v906_v62 }
 0x4a5   :  { %12228 = vmatmul.mubr.msk.f32.vlgmr.msra.gmra.mrb[6].mxu0 %vm260_vm1, %v12205_v56  ;;  %v918_v0 = vsub.f32 %v916_v61, %v14447_v37 }
 0x4a6   :  { %v917_v1 = vsub.f32 %v915_v63, %v14452_v40 }
 0x4a7   :  { %v922_v2 = vsel %vm348_vm3, %v918_v0, -inf }
 0x4a8   :  { %923 = vmax.xlane.f32.xlu1 %v922_v2  ;;  %v919_v4 = vsel %vm348_vm3, %v917_v1, -inf }
 0x4a9   :  { %920 = vmax.xlane.f32.xlu0 %v919_v4 }
 0x4aa   :  { %v12255_v5 = vpop.f32.mrb[8].mxu1 }
 0x4ab   :  { %v1193_v6 = vpop.f32.mrb[9].mxu1  ;;  %v1203_v21 = vmul.f32 0.35355338, %v12255_v5 }
 0x4ac   :  { %v1202_v14 = vmul.f32 0.35355338, %v1193_v6 }
 0x4ad   :  { %v1205_v38 = vsub.f32 %v1203_v21, %v14447_v37 }
 0x4ae   :  { %v1204_v34 = vsub.f32 %v1202_v14, %v14452_v40  ;;  %v14596_v14 = vld [vmem:[%s16342_s28 + $0x18] sm:$0xff] }
 0x4af   :  { %v1209_v20 = vsel %vm348_vm3, %v1205_v38, -inf }
 0x4b0   :  { %v1206_v36 = vsel %vm348_vm3, %v1204_v34, -inf }
 0x4b9   :  { %247 = vperm.xlu1 %13572, %v91_v8   ;;  %v14581_v8 = vld [vmem:[%s16343_s3 + $0x10] sm:$0xff] }
 0x4bf   :  { %242 = vperm.xlu0 %13541, %v90_v9  }
 0x535   :  { %v924_v11 = vpop.xlane.xlu1 %923 }
 0x536   :  { %v926_v12 = vsub.f32 %v918_v0, %v924_v11  ;;  %v921_v15 = vpop.xlane.xlu0 %920 }
 0x537   :  { %v925_v16 = vsub.f32 %v917_v1, %v921_v15 }
 0x538   :  { %v929_v17 = vmul.f32 1.442695, %v926_v12 }
 0x539   :  { %v927_v19 = vmul.f32 1.442695, %v925_v16  ;;  %v14537_v31 = vpop.permute.xlu1 %247 }
 0x53a   :  { %13799 = vpow2.f32 %v929_v17  ;;  %v14542_v32 = vmul.f32 %v14537_v31, %v227_v35 }
 0x53b   :  { %13801 = vpow2.f32 %v927_v19 }
 0x53e   :  { %v14528_v24 = vpop.permute.xlu0 %242 }
 0x53f   :  { %v14531_v25 = vmul.f32 %v14528_v24, %v222_v23 }
 0x541   :  { %12272 = vmatprep.mubr.msk.f32.mxu1 %vm260_vm1, %v14531_v25  ;;  %v14546_v33 = vpack.i.bf16 %v14542_v32, %v14531_v25 }
 0x544   :  { %v13800_v26 = vpop.eup %13799 }
 0x545   :  { %v13802_v28 = vpop.eup %13801  ;;  %v934_v29 = vsel %vm348_vm3, %v13800_v26, 0.0 }
 0x546   :  { %935 = vadd.xlane.f32.xlu1 %v934_v29  ;;  %v931_v30 = vsel %vm348_vm3, %v13802_v28, 0.0 }
 0x547   :  { %932 = vadd.xlane.f32.xlu0 %v931_v30 }
 0x557   :  { %13579 = vrot.lane.b32.xlu1 %v14546_v33, %s16306_s6  ;;  %s16357_s6 = smov 48  }
 0x55b   :  { %1600 = vrot.lane.b32.xlu1 %v14531_v25, %s16308_s10 }
 0x55d   :  { %13574 = vrot.lane.b32.xlu0 %v14414_v22, %s16300_s1 }
 0x561   :  { %13584 = vrot.lane.b32.xlu0 %v14546_v33, %s16310_s27  ;;  %s16358_s27 = smov 40  }
 0x565   :  { %1602 = vrot.lane.b32.xlu0 %v14542_v32, %s16308_s10  ;;  %s16349_s10 = sld [smem:[#allocation13_spill]] }
 0x57f   :  { %1207 = vmax.xlane.f32.xlu1 %v1206_v36 }
 0x584   :  { %1210 = vmax.xlane.f32.xlu0 %v1209_v20 }
 0x5d3   :  { %v936_v39 = vpop.xlane.xlu1 %935 }
 0x5d4   :  { %13803 = vrcp.f32 %v936_v39  ;;  %v933_v41 = vpop.xlane.xlu0 %932 }
 0x5d5   :  { %13805 = vrcp.f32 %v933_v41 }
 0x5d7   :  { %v13580_v42 = vpop.permute.xlu1 %13579 }
 0x5d8   :  { %v13582_v43 = vunpack.i.h.bf16 %v13580_v42  ;;  %v13581_v44 = vunpack.i.l.bf16 %v13580_v42  ;;  %v13575_v45 = vpop.permute.xlu0 %13574 }
 0x5d9   :  { %v13577_v46 = vunpack.i.h.bf16 %v13575_v45  ;;  %v13576_v47 = vunpack.i.l.bf16 %v13575_v45 }
 0x5da   :  { %v13062_v40 = vpack.c.bf16 %v13582_v43, %v13581_v44 }
 0x5db   :  { %v13048_v48 = vpack.c.bf16 %v13577_v46, %v13576_v47  ;;  %v1601_v58 = vpop.permute.xlu1 %1600 }
 0x5dc   :  { %13064 = vmatprep.subr.msk.bf16.mxu1 %vm14425_vm2, %v13062_v40  ;;  %v13585_v49 = vpop.permute.xlu0 %13584 }
 0x5dd   :  { %v13587_v37 = vunpack.i.h.bf16 %v13585_v49  ;;  %v13586_v50 = vunpack.i.l.bf16 %v13585_v49  ;;  %13049 = vmatprep.subr.bf16.mxu0 %v13048_v48  ;;  %13067 = vmatpush3.bf16.xpose.msk.msra.mxu1 %vm14425_vm2, %v13062_v40 }
 0x5de   :  { %v13804_v51 = vpop.eup %13803  ;;  %13051 = vmatpush3.bf16.msra.mxu0 %v13048_v48 }
 0x5df   :  { %v13806_v52 = vpop.eup %13805  ;;  %v13072_v53 = vpack.c.bf16 %v13587_v37, %v13586_v50  ;;  %v940_v57 = vmul.f32 %v13804_v51, %v13800_v26  ;;  %12244 = vmatprep.subr.mxu0 %v14581_v8 }
 0x5e0   :  { %v939_v56 = vmul.f32 %v13806_v52, %v13802_v28  ;;  %v1603_v59 = vpop.permute.xlu0 %1602 }
 0x5e1   :  { %13074 = vmatprep.subr.msk.bf16.mxu1 %vm14425_vm2, %v13072_v53 }
 0x5e2   :  { %12241 = vmatprep.mubr.msk.f32.mxu0 %vm348_vm3, %v939_v56  ;;  %v14624_v56 = vld [vmem:[%s16343_s3 + $0x18] sm:$0xff] }
 0x5e3   :  { %12242 = vmatmul.mubr.msk.f32.vlgmr.msra.gmra.mrb[8].mxu0 %vm348_vm3, %v940_v57 }
 0x5e4   :  { %12273 = vmatmul.mubr.msk.f32.vlgmr.msra.gmra.mrb[10].mxu1 %vm260_vm1, %v14542_v32  ;;  %12245 = vmatpush3.msra.mxu0 %v14581_v8 }
 0x5e5   :  { %13077 = vmatpush3.bf16.xpose.msk.msra.mxu1 %vm14425_vm2, %v13072_v53  ;;  %12286 = vmatprep.mubr.msk.f32.mxu1 %vm260_vm1, %v1601_v58 }
 0x5ec   :  { %12287 = vmatmul.mubr.msk.f32.vlgmr.msra.gmra.mrb[12].mxu1 %vm260_vm1, %v1603_v59 }
 0x60c   :  { %v1208_v60 = vpop.xlane.xlu1 %1207 }
 0x60d   :  { %v1212_v61 = vsub.f32 %v1204_v34, %v1208_v60 }
 0x60f   :  { %v1214_v62 = vmul.f32 1.442695, %v1212_v61 }
 0x611   :  { %13807 = vpow2.f32 %v1214_v62  ;;  %v1211_v63 = vpop.xlane.xlu0 %1210 }
 0x612   :  { %v1213_v0 = vsub.f32 %v1205_v38, %v1211_v63  ;;  %v14604_v38 = vld [vmem:[%s16342_s28 + $0x10] sm:$0xff] }
 0x614   :  { %v1216_v1 = vmul.f32 1.442695, %v1213_v0 }
 0x616   :  { %13809 = vpow2.f32 %v1216_v1 }
 0x61b   :  { %v13808_v2 = vpop.eup %13807 }
 0x61c   :  { %v1218_v4 = vsel %vm348_vm3, %v13808_v2, 0.0 }
 0x61d   :  { %1219 = vadd.xlane.f32.xlu0 %v1218_v4 }
 0x620   :  { %v13810_v5 = vpop.eup %13809 }
 0x621   :  { %v1221_v6 = vsel %vm348_vm3, %v13810_v5, 0.0 }
 0x622   :  { %1222 = vadd.xlane.f32.xlu1 %v1221_v6 }
 0x633   :  { %13589 = vrot.lane.b32.xlu0 %v14414_v22, %s16298_s8  ;;  %13594 = vrot.lane.b32.xlu1 %v14546_v33, %s16302_s0  ;;  %s16348_s0 = sld [smem:[#allocation15_spill]] }
 0x637   :  { %1968 = vrot.lane.b32.xlu0 %v14542_v32, %s16296_s30  ;;  %1966 = vrot.lane.b32.xlu1 %v14531_v25, %s16296_s30  ;;  %s16346_s30 = smov 104  }
 0x6aa   :  { %v1220_v9 = vpop.xlane.xlu0 %1219 }
 0x6ab   :  { %13811 = vrcp.f32 %v1220_v9 }
 0x6ae   :  { %v13590_v11 = vpop.permute.xlu0 %13589 }
 0x6af   :  { %v13592_v12 = vunpack.i.h.bf16 %v13590_v11  ;;  %v13591_v15 = vunpack.i.l.bf16 %v13590_v11  ;;  %v1223_v16 = vpop.xlane.xlu1 %1222 }
 0x6b0   :  { %13813 = vrcp.f32 %v1223_v16 }
 0x6b1   :  { %v13058_v17 = vpack.c.bf16 %v13592_v12, %v13591_v15 }
 0x6b2   :  { %v1969_v47 = vpop.permute.xlu0 %1968 }
 0x6b3   :  { %v13595_v19 = vpop.permute.xlu1 %13594  ;;  %13059 = vmatprep.subr.bf16.mxu0 %v13058_v17 }
 0x6b4   :  { %v13597_v22 = vunpack.i.h.bf16 %v13595_v19  ;;  %v13596_v23 = vunpack.i.l.bf16 %v13595_v19 }
 0x6b5   :  { %v13812_v26 = vpop.eup %13811 }
 0x6b6   :  { %v13082_v28 = vpack.c.bf16 %v13597_v22, %v13596_v23  ;;  %v12243_v29 = vpop.f32.mrb[8].mxu0  ;;  %v1226_v39 = vmul.f32 %v13812_v26, %v13808_v2 }
 0x6b7   :  { %v12274_v30 = vpop.f32.mrb[10].mxu1  ;;  %v1967_v35 = vpop.permute.xlu1 %1966 }
 0x6b8   :  { %v1488_v34 = vmul.f32 0.35355338, %v12274_v30  ;;  %v1019_v21 = vpop.f32.mrb[9].mxu0  ;;  %v1478_v36 = vpop.f32.mrb[11].mxu1  ;;  %13084 = vmatprep.subr.msk.bf16.mxu1 %vm14425_vm2, %v13082_v28  ;;  %12310 = vmatprep.mubr.msk.f32.mxu1 %vm260_vm1, %v1967_v35 }
 0x6b9   :  { %12246 = vmatprep.mubr.msk.f32.mxu0 %vm260_vm1, %v1019_v21  ;;  %v1487_v20 = vmul.f32 0.35355338, %v1478_v36  ;;  %13087 = vmatpush3.bf16.xpose.msk.msra.mxu1 %vm14425_vm2, %v13082_v28 }
 0x6ba   :  { %v13814_v41 = vpop.eup %13813  ;;  %12247 = vmatmul.mubr.msk.f32.vlgmr.msra.gmra.mrb[6].mxu0 %vm260_vm1, %v12243_v29  ;;  %v1490_v42 = vsub.f32 %v1488_v34, %v14596_v14 }
 0x6bb   :  { %13061 = vmatpush3.bf16.msra.mxu0 %v13058_v17  ;;  %12260 = vmatprep.mubr.msk.f32.mxu0 %vm348_vm3, %v1226_v39  ;;  %v1227_v43 = vmul.f32 %v13814_v41, %v13810_v5  ;;  %v1489_v44 = vsub.f32 %v1487_v20, %v14604_v38 }
 0x6bc   :  { %v1494_v45 = vsel %vm348_vm3, %v1490_v42, -inf  ;;  %12263 = vmatprep.subr.mxu0 %v14624_v56 }
 0x6bd   :  { %1495 = vmax.xlane.f32.xlu0 %v1494_v45  ;;  %v1491_v46 = vsel %vm348_vm3, %v1489_v44, -inf }
 0x6be   :  { %12261 = vmatmul.mubr.msk.f32.vlgmr.msra.gmra.mrb[10].mxu0 %vm348_vm3, %v1227_v43  ;;  %1492 = vmax.xlane.f32.xlu1 %v1491_v46 }
 0x6bf   :  { %v12288_v40 = vpop.f32.mrb[12].mxu1  ;;  %12264 = vmatpush3.msra.mxu0 %v14624_v56 }
 0x6c0   :  { %v1692_v48 = vmul.f32 0.35355338, %v12288_v40  ;;  %v1682_v49 = vpop.f32.mrb[13].mxu1  ;;  %12311 = vmatmul.mubr.msk.f32.vlgmr.msra.gmra.mrb[14].mxu1 %vm260_vm1, %v1969_v47 }
 0x6c1   :  { %v1691_v37 = vmul.f32 0.35355338, %v1682_v49 }
 0x6c2   :  { %v1694_v50 = vsub.f32 %v1692_v48, %v14596_v14 }
 0x6c3   :  { %v1693_v51 = vsub.f32 %v1691_v37, %v14604_v38 }
 0x6c4   :  { %v1698_v52 = vsel %vm348_vm3, %v1694_v50, -inf }
 0x6c5   :  { %1699 = vmax.xlane.f32.xlu1 %v1698_v52  ;;  %v1695_v53 = vsel %vm348_vm3, %v1693_v51, -inf }
 0x6c6   :  { %1696 = vmax.xlane.f32.xlu0 %v1695_v53 }
 0x74a   :  { %v1496_v57 = vpop.xlane.xlu0 %1495 }
 0x74b   :  { %v1498_v58 = vsub.f32 %v1490_v42, %v1496_v57  ;;  %v1493_v59 = vpop.xlane.xlu1 %1492 }
 0x74c   :  { %v1497_v60 = vsub.f32 %v1489_v44, %v1493_v59 }
 0x74d   :  { %v1501_v61 = vmul.f32 1.442695, %v1498_v58 }
 0x74e   :  { %v1499_v62 = vmul.f32 1.442695, %v1497_v60 }
 0x74f   :  { %13815 = vpow2.f32 %v1501_v61 }
 0x750   :  { %13817 = vpow2.f32 %v1499_v62 }
 0x752   :  { %v1700_v63 = vpop.xlane.xlu1 %1699 }
 0x753   :  { %v1702_v0 = vsub.f32 %v1694_v50, %v1700_v63  ;;  %v1697_v1 = vpop.xlane.xlu0 %1696 }
 0x754   :  { %v1701_v2 = vsub.f32 %v1693_v51, %v1697_v1 }
 0x755   :  { %v1705_v4 = vmul.f32 1.442695, %v1702_v0 }
 0x756   :  { %v1703_v5 = vmul.f32 1.442695, %v1701_v2 }
 0x757   :  { %13819 = vpow2.f32 %v1705_v4 }
 0x758   :  { %13821 = vpow2.f32 %v1703_v5 }
 0x759   :  { %v14628_v6 = vpop.eup %13815 }
 0x75a   :  { %v13818_v9 = vpop.eup %13817  ;;  %v1506_v11 = vsel %vm348_vm3, %v14628_v6, 0.0 }
 0x75b   :  { %1507 = vadd.xlane.f32.xlu1 %v1506_v11  ;;  %v1503_v12 = vsel %vm348_vm3, %v13818_v9, 0.0 }
 0x75c   :  { %1504 = vadd.xlane.f32.xlu0 %v1503_v12 }
 0x761   :  { %v14633_v15 = vpop.eup %13819 }
 0x762   :  { %v13822_v16 = vpop.eup %13821  ;;  %v1710_v17 = vsel %vm348_vm3, %v14633_v15, 0.0 }
 0x763   :  { %1711 = vadd.xlane.f32.xlu1 %v1710_v17  ;;  %v1707_v19 = vsel %vm348_vm3, %v13822_v16, 0.0 }
 0x764   :  { %1708 = vadd.xlane.f32.xlu0 %v1707_v19 }
 0x774   :  { %13604 = vrot.lane.b32.xlu1 %v14546_v33, %s16304_s9 }
 0x778   :  { %13609 = vrot.lane.b32.xlu1 %v14546_v33, %s16344_s29 }
 0x77a   :  { %13599 = vrot.lane.b32.xlu0 %v14546_v33, %s16345_s7 }
 0x77c   :  { %2255 = vrot.lane.b32.xlu1 %v14542_v32, %s16346_s30 }
 0x77e   :  { %2253 = vrot.lane.b32.xlu0 %v14531_v25, %s16346_s30 }
 0x791   :  { %v12262_v22 = vpop.f32.mrb[10].mxu0 }
 0x792   :  { %v1306_v23 = vpop.f32.mrb[11].mxu0 }
 0x793   :  { %12265 = vmatprep.mubr.msk.f32.mxu0 %vm260_vm1, %v1306_v23  ;;  %v12312_v26 = vpop.f32.mrb[14].mxu1 }
 0x794   :  { %12266 = vmatmul.mubr.msk.f32.vlgmr.msra.gmra.mrb[6].mxu0 %vm260_vm1, %v12262_v22  ;;  %v2048_v28 = vpop.f32.mrb[15].mxu1  ;;  %v2058_v30 = vmul.f32 0.35355338, %v12312_v26 }
 0x795   :  { %v2057_v29 = vmul.f32 0.35355338, %v2048_v28 }
 0x796   :  { %v2060_v34 = vsub.f32 %v2058_v30, %v14596_v14 }
 0x797   :  { %v2059_v35 = vsub.f32 %v2057_v29, %v14604_v38 }
 0x798   :  { %v2064_v32 = vsel %vm348_vm3, %v2060_v34, -inf }
 0x799   :  { %v2061_v21 = vsel %vm348_vm3, %v2059_v35, -inf }
 0x79d   :  { %2062 = vmax.xlane.f32.xlu0 %v2061_v21 }
 0x7a0   :  { %2065 = vmax.xlane.f32.xlu1 %v2064_v32 }
 0x7b1   :  { %13614 = vrot.lane.b32.xlu1 %v14546_v33, %s16300_s1  ;;  %s16347_s1 = sld [smem:[#allocation12_spill]] }
 0x7b5   :  { %13619 = vrot.lane.b32.xlu1 %v14546_v33, %s16298_s8 }
 0x7b7   :  { %v14678_v12 = vld [vmem:[%s16347_s1] ss:$0 sm:$0xff] }
 0x7e8   :  { %v1508_v36 = vpop.xlane.xlu1 %1507 }
 0x7e9   :  { %v1505_v25 = vpop.xlane.xlu0 %1504 }
 0x7ea   :  { %13823 = vrcp.f32 %v1505_v25 }
 0x7eb   :  { %13825 = vrcp.f32 %v1508_v36 }
 0x7f0   :  { %v1712_v20 = vpop.xlane.xlu1 %1711 }
 0x7f1   :  { %v1709_v39 = vpop.xlane.xlu0 %1708 }
 0x7f2   :  { %13827 = vrcp.f32 %v1709_v39 }
 0x7f3   :  { %13829 = vrcp.f32 %v1712_v20 }
 0x7f4   :  { %v13824_v41 = vpop.eup %13823  ;;  %v13605_v42 = vpop.permute.xlu1 %13604 }
 0x7f5   :  { %v13600_v43 = vpop.permute.xlu0 %13599  ;;  %v1511_v44 = vmul.f32 %v13824_v41, %v13818_v9  ;;  %v13607_v45 = vunpack.i.h.bf16 %v13605_v42  ;;  %v13606_v46 = vunpack.i.l.bf16 %v13605_v42  ;;  %v13826_v49 = vpop.eup %13825 }
 0x7f6   :  { %v13602_v47 = vunpack.i.h.bf16 %v13600_v43  ;;  %v13601_v40 = vunpack.i.l.bf16 %v13600_v43  ;;  %v1512_v58 = vmul.f32 %v13826_v49, %v14628_v6 }
 0x7f7   :  { %12279 = vmatprep.mubr.msk.f32.mxu0 %vm348_vm3, %v1511_v44  ;;  %v13078_v52 = vpack.c.bf16 %v13607_v45, %v13606_v46 }
 0x7f8   :  { %v13610_v48 = vpop.permute.xlu1 %13609  ;;  %v13068_v33 = vpack.c.bf16 %v13602_v47, %v13601_v40 }
 0x7f9   :  { %v13612_v37 = vunpack.i.h.bf16 %v13610_v48  ;;  %v13611_v50 = vunpack.i.l.bf16 %v13610_v48  ;;  %v2254_v51 = vpop.permute.xlu0 %2253 }
 0x7fa   :  { %13069 = vmatprep.subr.bf16.mxu0 %v13068_v33  ;;  %12329 = vmatprep.mubr.msk.f32.mxu1 %vm260_vm1, %v2254_v51 }
 0x7fb   :  { %v13092_v53 = vpack.c.bf16 %v13612_v37, %v13611_v50  ;;  %13071 = vmatpush3.bf16.msra.mxu0 %v13068_v33 }
 0x7fc   :  { %v13828_v57 = vpop.eup %13827  ;;  %13079 = vmatprep.subr.bf16.mxu0 %v13078_v52  ;;  %v2256_v62 = vpop.permute.xlu1 %2255 }
 0x7fd   :  { %v13830_v59 = vpop.eup %13829  ;;  %13094 = vmatprep.subr.msk.bf16.mxu1 %vm14425_vm2, %v13092_v53  ;;  %v1715_v60 = vmul.f32 %v13828_v57, %v13822_v16 }
 0x7fe   :  { %12280 = vmatmul.mubr.msk.f32.vlgmr.msra.gmra.mrb[12].mxu0 %vm348_vm3, %v1512_v58  ;;  %13097 = vmatpush3.bf16.xpose.msk.msra.mxu1 %vm14425_vm2, %v13092_v53  ;;  %v1716_v61 = vmul.f32 %v13830_v59, %v14633_v15 }
 0x7ff   :  { %13081 = vmatpush3.bf16.msra.mxu0 %v13078_v52  ;;  %12293 = vmatprep.mubr.msk.f32.mxu0 %vm348_vm3, %v1715_v60 }
 0x800   :  { %12296 = vmatprep.subr.mxu0 %v14501_v54 }
 0x802   :  { %12294 = vmatmul.mubr.msk.f32.vlgmr.msra.gmra.mrb[14].mxu0 %vm348_vm3, %v1716_v61 }
 0x803   :  { %12297 = vmatpush3.msra.mxu0 %v14501_v54 }
 0x804   :  { %12301 = vmatprep.subr.mxu0 %v14508_v55 }
 0x805   :  { %12330 = vmatmul.mubr.msk.f32.vlgmr.msra.gmra.mrb[16].mxu1 %vm260_vm1, %v2256_v62  ;;  %v14135_v62 = vld [vmem:[%s16337_s5] sm:$0xff] }
 0x82a   :  { %v2063_v63 = vpop.xlane.xlu0 %2062 }
 0x82b   :  { %v2067_v0 = vsub.f32 %v2059_v35, %v2063_v63 }
 0x82d   :  { %v2069_v1 = vmul.f32 1.442695, %v2067_v0  ;;  %v2066_v2 = vpop.xlane.xlu1 %2065 }
 0x82e   :  { %v2068_v4 = vsub.f32 %v2060_v34, %v2066_v2 }
 0x82f   :  { %13831 = vpow2.f32 %v2069_v1 }
 0x830   :  { %v2071_v5 = vmul.f32 1.442695, %v2068_v4 }
 0x831   :  { %v13615_v28 = vpop.permute.xlu1 %13614 }
 0x832   :  { %13833 = vpow2.f32 %v2071_v5  ;;  %v13617_v34 = vunpack.i.h.bf16 %v13615_v28  ;;  %v13616_v21 = vunpack.i.l.bf16 %v13615_v28 }
 0x834   :  { %v13088_v36 = vpack.c.bf16 %v13617_v34, %v13616_v21  ;;  %v113_v34 = vld [vmem:[%s16348_s0 + $0x8] sm:$0xff] }
 0x835   :  { %v13620_v44 = vpop.permute.xlu1 %13619 }
 0x836   :  { %v13622_v48 = vunpack.i.h.bf16 %v13620_v44  ;;  %v13621_v33 = vunpack.i.l.bf16 %v13620_v44  ;;  %v14741_v44 = vld [vmem:[%s16349_s10] ss:$0 sm:$0xff] }
 0x838   :  { %v13098_v49 = vpack.c.bf16 %v13622_v48, %v13621_v33 }
 0x839   :  { %v13832_v6 = vpop.eup %13831 }
 0x83a   :  { %v2073_v9 = vsel %vm348_vm3, %v13832_v6, 0.0 }
 0x83b   :  { %2074 = vadd.xlane.f32.xlu0 %v2073_v9 }
 0x83c   :  { %v13834_v11 = vpop.eup %13833 }
 0x83d   :  { %v2076_v54 = vsel %vm348_vm3, %v13834_v11, 0.0 }
 0x83f   :  { %2077 = vadd.xlane.f32.xlu0 %v2076_v54 }
 0x867   :  { %v12267_v15 = vpop.f32.mrb[6].mxu0 }
 0x868   :  { %v2547_v16 = vadd.f32 %v12267_v15, %v14678_v12  ;;  %v1387_v17 = vpop.f32.mrb[7].mxu0 }
 0x869   :  { %v2546_v57 = vadd.f32 %v14678_v12, %v1387_v17 }
 0x86a   :  { %v2551_v19 = vmul.f32 %v2547_v16, %v14399_v18 }
 0x86b   :  { %v2550_v59 = vmul.f32 %v2546_v57, %v14391_v13  ;;  %v122_v57 = vld [vmem:[%s16264_s12 + $0x28] sm:$0xff] }
 0x86c   :  { %v14683_v22 = vadd.f32 %v2551_v19, %v14379_v10 }
 0x86d   :  { %v2554_v63 = vadd.f32 %v14135_v62, %v2550_v59  ;;  %v123_v59 = vld [vmem:[%s16264_s12 + $0x30] sm:$0xff] }
 0x86e   :  { %v2561_v23 = vsel %vm132_vm0, %v14683_v22, 0.0 }
 0x86f   :  { %2562 = vadd.xlane.f32.xlu1 %v2561_v23  ;;  %v2558_v0 = vsel %vm132_vm0, %v2554_v63, 0.0 }
 0x8c8   :  { %v2075_v26 = vpop.xlane.xlu0 %2074 }
 0x8c9   :  { %13835 = vrcp.f32 %v2075_v26 }
 0x8cc   :  { %v2078_v30 = vpop.xlane.xlu0 %2077 }
 0x8cd   :  { %13837 = vrcp.f32 %v2078_v30 }
 0x8d1   :  { %v12281_v29 = vpop.f32.mrb[12].mxu0 }
 0x8d2   :  { %v1591_v35 = vpop.f32.mrb[13].mxu0 }
 0x8d3   :  { %v13836_v42 = vpop.eup %13835 }
 0x8d4   :  { %v2081_v40 = vmul.f32 %v13836_v42, %v13832_v6 }
 0x8d5   :  { %v12295_v32 = vpop.f32.mrb[14].mxu0 }
 0x8d6   :  { %v1795_v25 = vpop.f32.mrb[15].mxu0 }
 0x8d7   :  { %12298 = vmatprep.mubr.msk.f32.mxu0 %vm260_vm1, %v1795_v25  ;;  %v13838_v47 = vpop.eup %13837 }
 0x8d8   :  { %12299 = vmatmul.mubr.msk.f32.vlgmr.msra.gmra.mrb[16].mxu0 %vm260_vm1, %v12295_v32  ;;  %v12331_v10 = vpop.f32.mrb[16].mxu1  ;;  %v114_v32 = vld [vmem:[%s16348_s0 + $0x10] sm:$0xff] }
 0x8d9   :  { %12302 = vmatpush3.msra.mxu0 %v14508_v55  ;;  %12303 = vmatprep.mubr.msk.f32.mxu0 %vm260_vm1, %v1591_v35  ;;  %v2335_v20 = vpop.f32.mrb[17].mxu1  ;;  %v2345_v39 = vmul.f32 0.35355338, %v12331_v10 }
 0x8da   :  { %13089 = vmatprep.subr.bf16.mxu0 %v13088_v36  ;;  %v2344_v41 = vmul.f32 0.35355338, %v2335_v20 }
 0x8db   :  { %v2347_v46 = vsub.f32 %v2345_v39, %v14596_v14 }
 0x8dc   :  { %v2346_v43 = vsub.f32 %v2344_v41, %v14604_v38  ;;  %v2082_v38 = vmul.f32 %v13838_v47, %v13834_v11 }
 0x8dd   :  { %v2351_v55 = vsel %vm348_vm3, %v2347_v46, -inf }
 0x8de   :  { %v2348_v45 = vsel %vm348_vm3, %v2346_v43, -inf }
 0x8df   :  { %2349 = vmax.xlane.f32.xlu0 %v2348_v45 }
 0x8e0   :  { %12304 = vmatmul.mubr.msk.f32.vlgmr.msra.gmra.mrb[16].mxu0 %vm260_vm1, %v12281_v29 }
 0x8e1   :  { %13091 = vmatpush3.bf16.msra.mxu0 %v13088_v36  ;;  %12317 = vmatprep.mubr.msk.f32.mxu0 %vm348_vm3, %v2081_v40 }
 0x8e2   :  { %12320 = vmatprep.subr.mxu0 %v14581_v8 }
 0x8e3   :  { %2352 = vmax.xlane.f32.xlu0 %v2351_v55 }
 0x8e4   :  { %12318 = vmatmul.mubr.msk.f32.vlgmr.msra.gmra.mrb[18].mxu0 %vm348_vm3, %v2082_v38 }
 0x8e5   :  { %12321 = vmatpush3.msra.mxu0 %v14581_v8 }
 0x8e6   :  { %13099 = vmatprep.subr.bf16.mxu0 %v13098_v49 }
 0x8fc   :  { %v2563_v5 = vpop.xlane.xlu1 %2562 }
 0x8fd   :  { %v2572_v9 = vmul.f32 0.03125, %v2563_v5 }
 0x8ff   :  { %v2576_v16 = vsub.f32 %v14683_v22, %v2572_v9  ;;  %v112_v22 = vld [vmem:[%s16348_s0] sm:$0xff] }
 0x900   :  { %v14723_v21 = vpack.c.bf16 %v113_v34, %v112_v22 }
 0x901   :  { %v2580_v29 = vmul.f32 %v2576_v16, %v2576_v16 }
 0x902   :  { %13103 = vmatprep.subr.bf16.mxu1 %v14723_v21 }
 0x903   :  { %v2586_v35 = vsel %vm132_vm0, %v2580_v29, 0.0  ;;  %13105 = vmatpush3.bf16.msra.mxu1 %v14723_v21 }
 0x96c   :  { %v2350_v14 = vpop.xlane.xlu0 %2349 }
 0x96d   :  { %v2354_v37 = vsub.f32 %v2346_v43, %v2350_v14 }
 0x96f   :  { %v2356_v50 = vmul.f32 1.442695, %v2354_v37  ;;  %v117_v37 = vld [vmem:[%s16264_s12] sm:$0xff] }
 0x970   :  { %v2353_v51 = vpop.xlane.xlu0 %2352 }
 0x971   :  { %13839 = vpow2.f32 %v2356_v50  ;;  %v2355_v52 = vsub.f32 %v2347_v46, %v2353_v51  ;;  %v118_v50 = vld [vmem:[%s16264_s12 + $0x8] sm:$0xff] }
 0x972   :  { %v14774_v51 = vpack.c.bf16 %v118_v50, %v117_v37 }
 0x973   :  { %v2358_v53 = vmul.f32 1.442695, %v2355_v52 }
 0x975   :  { %13841 = vpow2.f32 %v2358_v53  ;;  %v121_v53 = vld [vmem:[%s16264_s12 + $0x20] sm:$0xff] }
 0x97b   :  { %v13840_v58 = vpop.eup %13839 }
 0x97c   :  { %v2360_v60 = vsel %vm348_vm3, %v13840_v58, 0.0 }
 0x97d   :  { %2361 = vadd.xlane.f32.xlu0 %v2360_v60  ;;  %v124_v60 = vld [vmem:[%s16264_s12 + $0x38] sm:$0xff] }
 0x97f   :  { %v13842_v61 = vpop.eup %13841 }
 0x980   :  { %v2363_v8 = vsel %vm348_vm3, %v13842_v61, 0.0 }
 0x981   :  { %2364 = vadd.xlane.f32.xlu0 %v2363_v8  ;;  %v14808_v8 = vld [vmem:[%s16263_s11] ss:$0 sm:$0xff] }
 0x985   :  { %2559 = vadd.xlane.f32.xlu0 %v2558_v0 }
 0x9b7   :  { %v12319_v1 = vpop.f32.mrb[18].mxu0 }
 0x9b8   :  { %v2161_v2 = vpop.f32.mrb[19].mxu0 }
 0x9b9   :  { %12322 = vmatprep.mubr.msk.f32.mxu0 %vm260_vm1, %v2161_v2 }
 0x9ba   :  { %12323 = vmatmul.mubr.msk.f32.vlgmr.msra.gmra.mrb[16].mxu0 %vm260_vm1, %v12319_v1 }
 0x9bb   :  { %13101 = vmatpush3.bf16.msra.mxu0 %v13098_v49 }
 0x9bc   :  { %12339 = vmatprep.subr.mxu0 %v14624_v56 }
 0xa0a   :  { %v2362_v4 = vpop.xlane.xlu0 %2361 }
 0xa0b   :  { %13843 = vrcp.f32 %v2362_v4 }
 0xa0e   :  { %v2365_v6 = vpop.xlane.xlu0 %2364 }
 0xa0f   :  { %13845 = vrcp.f32 %v2365_v6 }
 0xa12   :  { %v2560_v11 = vpop.xlane.xlu0 %2559 }
 0xa13   :  { %v2571_v54 = vmul.f32 0.03125, %v2560_v11 }
 0xa15   :  { %v13844_v15 = vpop.eup %13843  ;;  %v2575_v17 = vsub.f32 %v2554_v63, %v2571_v54 }
 0xa16   :  { %v2368_v19 = vmul.f32 %v13844_v15, %v13840_v58  ;;  %v14790_v58 = vpack.c.bf16 %v122_v57, %v121_v53  ;;  %v14831_v53 = vld [vmem:[%s16265_s13] ss:$0 sm:$0xff] }
 0xa17   :  { %v2579_v23 = vmul.f32 %v2575_v17, %v2575_v17 }
 0xa18   :  { %12336 = vmatprep.mubr.msk.f32.mxu0 %vm348_vm3, %v2368_v19 }
 0xa19   :  { %v13846_v26 = vpop.eup %13845  ;;  %v2583_v28 = vsel %vm132_vm0, %v2579_v23, 0.0 }
 0xa1a   :  { %2584 = vadd.xlane.f32.xlu0 %v2583_v28  ;;  %v2369_v30 = vmul.f32 %v13846_v26, %v13842_v61  ;;  %v14800_v61 = vpack.c.bf16 %v124_v60, %v123_v59 }
 0xa1c   :  { %12337 = vmatmul.mubr.msk.f32.vlgmr.msra.gmra.mrb[20].mxu0 %vm348_vm3, %v2369_v30 }
 0xa1d   :  { %12340 = vmatpush3.msra.mxu0 %v14624_v56  ;;  %v115_v56 = vld [vmem:[%s16348_s0 + $0x18] sm:$0xff]  ;;  %s16350_s0 = sld [smem:[#allocation14_spill]] }
 0xa1e   :  { %2587 = vadd.xlane.f32.xlu0 %v2586_v35  ;;  %v14733_v25 = vpack.c.bf16 %v115_v56, %v114_v32  ;;  %13111 = vmatprep.subr.bf16.mxu0 %v14774_v51 }
 0xa20   :  { %13107 = vmatprep.subr.bf16.mxu1 %v14733_v25 }
 0xa21   :  { %13109 = vmatpush3.bf16.msra.mxu1 %v14733_v25 }
 0xa22   :  { %13127 = vmatprep.subr.bf16.mxu1 %v14355_v3 }
 0xa23   :  { %v14746_v46 = vld [vmem:[%s16350_s0] ss:$0 sm:$0xff] }
 0xaa7   :  { %v2585_v10 = vpop.xlane.xlu0 %2584 }
 0xaa8   :  { %v2595_v36 = vmul.f32 0.03125, %v2585_v10 }
 0xaaa   :  { %v2599_v20 = vadd.f32 1e-05, %v2595_v36 }
 0xaab   :  { %v2588_v39 = vpop.xlane.xlu0 %2587 }
 0xaac   :  { %13847 = vrsqrt.f32 %v2599_v20  ;;  %v2596_v41 = vmul.f32 0.03125, %v2588_v39  ;;  %v14136_v39 = vld [vmem:[%s16337_s5 + $0x10] sm:$0xff] }
 0xaae   :  { %v2600_v42 = vadd.f32 1e-05, %v2596_v41 }
 0xab0   :  { %13849 = vrsqrt.f32 %v2600_v42 }
 0xab6   :  { %v13848_v43 = vpop.eup %13847 }
 0xab7   :  { %v2607_v45 = vmul.f32 %v13848_v43, %v2575_v17  ;;  %v14137_v43 = vld [vmem:[%s16337_s5 + $0x18] sm:$0xff] }
 0xab9   :  { %v2617_v47 = vmul.f32 %v14741_v44, %v2607_v45 }
 0xaba   :  { %v13850_v40 = vpop.eup %13849 }
 0xabb   :  { %v2608_v48 = vmul.f32 %v13850_v40, %v2576_v16  ;;  %v14750_v33 = vadd.f32 %v14746_v46, %v2617_v47 }
 0xabd   :  { %12352 = vmatprep.mubr.msk.f32.mxu1 %vm132_vm0, %v14750_v33  ;;  %v2618_v55 = vmul.f32 %v14741_v44, %v2608_v48 }
 0xabf   :  { %v14756_v38 = vadd.f32 %v14746_v46, %v2618_v55 }
 0xac1   :  { %12353 = vmatmul.mubr.msk.f32.vlgmr.msra.gmra.mrb[18].mxu1 %vm132_vm0, %v14756_v38 }
 0xac2   :  { %13129 = vmatpush3.bf16.msra.mxu1 %v14355_v3  ;;  %v119_v3 = vld [vmem:[%s16264_s12 + $0x10] sm:$0xff] }
 0xac3   :  { %13131 = vmatprep.subr.bf16.mxu1 %v14363_v7 }
 0xac6   :  { %13133 = vmatpush3.bf16.msra.mxu1 %v14363_v7  ;;  %v120_v7 = vld [vmem:[%s16264_s12 + $0x18] sm:$0xff]  ;;  %s16356_s12 = smov 112  }
 0xac7   :  { %v14779_v52 = vpack.c.bf16 %v120_v7, %v119_v3 }
 0xaef   :  { %v12338_v49 = vpop.f32.mrb[20].mxu0 }
 0xaf0   :  { %v2448_v14 = vpop.f32.mrb[21].mxu0 }
 0xaf1   :  { %12341 = vmatprep.mubr.msk.f32.mxu0 %vm260_vm1, %v2448_v14 }
 0xaf2   :  { %12342 = vmatmul.mubr.msk.f32.vlgmr.msra.gmra.mrb[16].mxu0 %vm260_vm1, %v12338_v49 }
 0xaf3   :  { %13113 = vmatpush3.bf16.msra.mxu0 %v14774_v51 }
 0xaf4   :  { %13115 = vmatprep.subr.bf16.mxu0 %v14779_v52 }
 0xaf7   :  { %13117 = vmatpush3.bf16.msra.mxu0 %v14779_v52 }
 0xaf8   :  { %13119 = vmatprep.subr.bf16.mxu0 %v14790_v58 }
 0xafb   :  { %13121 = vmatpush3.bf16.msra.mxu0 %v14790_v58 }
 0xafc   :  { %13123 = vmatprep.subr.bf16.mxu0 %v14800_v61 }
 0xaff   :  { %13125 = vmatpush3.bf16.msra.mxu0 %v14800_v61 }
 0xb94   :  { %v12354_v62 = vpop.f32.mrb[18].mxu1 }
 0xb95   :  { %v2721_v63 = vadd.f32 %v12354_v62, %v14808_v8  ;;  %v2715_v0 = vpop.f32.mrb[19].mxu1 }
 0xb96   :  { %v2716_v1 = vadd.f32 %v14808_v8, %v2715_v0 }
 0xb97   :  { %v2739_v2 = vmul.f32 0.044715, %v2721_v63  ;;  %v2735_v30 = vmul.f32 0.5, %v2721_v63 }
 0xb98   :  { %v2738_v4 = vmul.f32 0.044715, %v2716_v1  ;;  %v2734_v28 = vmul.f32 0.5, %v2716_v1 }
 0xb99   :  { %v2743_v5 = vmul.f32 %v2739_v2, %v2721_v63 }
 0xb9a   :  { %v2742_v6 = vmul.f32 %v2738_v4, %v2716_v1 }
 0xb9b   :  { %v2747_v9 = vmul.f32 %v2743_v5, %v2721_v63 }
 0xb9c   :  { %v2746_v11 = vmul.f32 %v2742_v6, %v2716_v1 }
 0xb9d   :  { %v2751_v54 = vadd.f32 %v2747_v9, %v2721_v63 }
 0xb9e   :  { %v2750_v15 = vadd.f32 %v2746_v11, %v2716_v1 }
 0xb9f   :  { %v2755_v16 = vmul.f32 0.7978846, %v2751_v54 }
 0xba0   :  { %v2754_v17 = vmul.f32 0.7978846, %v2750_v15 }
 0xba1   :  { %13851 = vtanh.f32 %v2755_v16 }
 0xba2   :  { %13853 = vtanh.f32 %v2754_v17 }
 0xbab   :  { %v13852_v19 = vpop.eup %13851 }
 0xbac   :  { %v13854_v23 = vpop.eup %13853  ;;  %v2763_v26 = vadd.f32 1.0, %v13852_v19 }
 0xbad   :  { %v2762_v29 = vadd.f32 1.0, %v13854_v23 }
 0xbae   :  { %v2767_v22 = vmul.f32 %v2763_v26, %v2735_v30 }
 0xbaf   :  { %v2766_v35 = vmul.f32 %v2762_v29, %v2734_v28 }
 0xbb1   :  { %12374 = vmatprep.mubr.msk.f32.mxu0 %vm2776_vm4, %v2766_v35 }
 0xbb2   :  { %12375 = vmatmul.mubr.msk.f32.vlgmr.msra.gmra.mrb[22].mxu0 %vm2776_vm4, %v2767_v22 }
 0xbc5   :  { %v12343_v34 = vpop.f32.mrb[16].mxu0 }
 0xbc6   :  { %v2549_v32 = vadd.f32 %v12343_v34, %v14678_v12  ;;  %v2529_v56 = vpop.f32.mrb[17].mxu0 }
 0xbc7   :  { %v2548_v10 = vadd.f32 %v14678_v12, %v2529_v56 }
 0xbc8   :  { %v2553_v36 = vmul.f32 %v2549_v32, %v14537_v31 }
 0xbc9   :  { %v2552_v20 = vmul.f32 %v2548_v10, %v14528_v24 }
 0xbca   :  { %v2557_v45 = vadd.f32 %v14137_v43, %v2553_v36 }
 0xbcb   :  { %v2556_v41 = vadd.f32 %v14136_v39, %v2552_v20 }
 0xbcc   :  { %v2567_v47 = vsel %vm132_vm0, %v2557_v45, 0.0 }
 0xbcd   :  { %v2564_v42 = vsel %vm132_vm0, %v2556_v41, 0.0 }
 0xbce   :  { %2565 = vadd.xlane.f32.xlu0 %v2564_v42 }
 0xbd2   :  { %2568 = vadd.xlane.f32.xlu0 %v2567_v47 }
 0xc5b   :  { %v2566_v12 = vpop.xlane.xlu0 %2565 }
 0xc5c   :  { %v2573_v40 = vmul.f32 0.03125, %v2566_v12 }
 0xc5e   :  { %v2577_v48 = vsub.f32 %v2556_v41, %v2573_v40 }
 0xc5f   :  { %v2569_v55 = vpop.xlane.xlu0 %2568 }
 0xc60   :  { %v2574_v49 = vmul.f32 0.03125, %v2569_v55  ;;  %v2581_v14 = vmul.f32 %v2577_v48, %v2577_v48 }
 0xc62   :  { %v2578_v37 = vsub.f32 %v2557_v45, %v2574_v49  ;;  %v2589_v50 = vsel %vm132_vm0, %v2581_v14, 0.0 }
 0xc63   :  { %2590 = vadd.xlane.f32.xlu0 %v2589_v50 }
 0xc64   :  { %v2582_v3 = vmul.f32 %v2578_v37, %v2578_v37 }
 0xc66   :  { %v2592_v7 = vsel %vm132_vm0, %v2582_v3, 0.0 }
 0xc67   :  { %2593 = vadd.xlane.f32.xlu0 %v2592_v7 }
 0xc85   :  { %v12376_v57 = vpop.f32.mrb[22].mxu0 }
 0xc86   :  { %v2855_v59 = vpop.f32.mrb[23].mxu0  ;;  %v2861_v60 = vadd.f32 %v12376_v57, %v14831_v53 }
 0xc87   :  { %v2856_v62 = vadd.f32 %v14831_v53, %v2855_v59 }
 0xc88   :  { %v2875_v1 = vadd.f32 %v2861_v60, %v14756_v38 }
 0xc89   :  { %v2874_v63 = vadd.f32 %v2856_v62, %v14750_v33 }
 0xc8a   :  { %v2881_v2 = vsel %vm132_vm0, %v2875_v1, 0.0 }
 0xc8b   :  { %v2878_v0 = vsel %vm132_vm0, %v2874_v63, 0.0 }
 0xc8c   :  { %2879 = vadd.xlane.f32.xlu0 %v2878_v0 }
 0xc90   :  { %2882 = vadd.xlane.f32.xlu0 %v2881_v2 }
 0xcf0   :  { %v2591_v4 = vpop.xlane.xlu0 %2590 }
 0xcf1   :  { %v2597_v5 = vmul.f32 0.03125, %v2591_v4 }
 0xcf3   :  { %v2601_v6 = vadd.f32 1e-05, %v2597_v5 }
 0xcf4   :  { %v2594_v9 = vpop.xlane.xlu0 %2593 }
 0xcf5   :  { %13855 = vrsqrt.f32 %v2601_v6  ;;  %v2598_v11 = vmul.f32 0.03125, %v2594_v9 }
 0xcf7   :  { %v2602_v54 = vadd.f32 1e-05, %v2598_v11 }
 0xcf9   :  { %13857 = vrsqrt.f32 %v2602_v54 }
 0xcff   :  { %v13856_v15 = vpop.eup %13855 }
 0xd00   :  { %v2609_v16 = vmul.f32 %v13856_v15, %v2577_v48 }
 0xd02   :  { %v2619_v33 = vmul.f32 %v14741_v44, %v2609_v16 }
 0xd03   :  { %v13858_v17 = vpop.eup %13857 }
 0xd04   :  { %v14841_v19 = vadd.f32 %v14746_v46, %v2619_v33  ;;  %v2610_v38 = vmul.f32 %v13858_v17, %v2578_v37 }
 0xd06   :  { %12355 = vmatprep.mubr.msk.f32.mxu1 %vm132_vm0, %v14841_v19  ;;  %v2620_v23 = vmul.f32 %v14741_v44, %v2610_v38 }
 0xd08   :  { %v14847_v26 = vadd.f32 %v14746_v46, %v2620_v23 }
 0xd0a   :  { %12356 = vmatmul.mubr.msk.f32.gmra.mrb[20].mxu1 %vm132_vm0, %v14847_v26 }
 0xd19   :  { %v2880_v28 = vpop.xlane.xlu0 %2879 }
 0xd1a   :  { %v2890_v29 = vmul.f32 0.03125, %v2880_v28 }
 0xd1c   :  { %v2894_v30 = vsub.f32 %v2874_v63, %v2890_v29 }
 0xd1d   :  { %v2883_v35 = vpop.xlane.xlu0 %2882 }
 0xd1e   :  { %v2891_v22 = vmul.f32 0.03125, %v2883_v35  ;;  %v2898_v34 = vmul.f32 %v2894_v30, %v2894_v30 }
 0xd20   :  { %v2895_v32 = vsub.f32 %v2875_v1, %v2891_v22  ;;  %v2902_v56 = vsel %vm132_vm0, %v2898_v34, 0.0 }
 0xd21   :  { %2903 = vadd.xlane.f32.xlu0 %v2902_v56 }
 0xd22   :  { %v2899_v10 = vmul.f32 %v2895_v32, %v2895_v32 }
 0xd24   :  { %v2905_v36 = vsel %vm132_vm0, %v2899_v10, 0.0 }
 0xd25   :  { %2906 = vadd.xlane.f32.xlu1 %v2905_v36 }
 0xdae   :  { %v2904_v20 = vpop.xlane.xlu0 %2903 }
 0xdaf   :  { %v2914_v39 = vmul.f32 0.03125, %v2904_v20 }
 0xdb1   :  { %v2918_v41 = vadd.f32 1e-05, %v2914_v39 }
 0xdb2   :  { %v2907_v42 = vpop.xlane.xlu1 %2906 }
 0xdb3   :  { %13859 = vrsqrt.f32 %v2918_v41  ;;  %v2915_v43 = vmul.f32 0.03125, %v2907_v42 }
 0xdb5   :  { %v2919_v45 = vadd.f32 1e-05, %v2915_v43 }
 0xdb7   :  { %13861 = vrsqrt.f32 %v2919_v45 }
 0xdbd   :  { %v13860_v47 = vpop.eup %13859 }
 0xdbe   :  { %v2926_v12 = vmul.f32 %v13860_v47, %v2894_v30 }
 0xdc0   :  { %v2930_v40 = vmul.f32 %v14741_v44, %v2926_v12 }
 0xdc1   :  { %v13862_v48 = vpop.eup %13861 }
 0xdc2   :  { %v2927_v55 = vmul.f32 %v13862_v48, %v2895_v32  ;;  %v14855_v49 = vadd.f32 %v14746_v46, %v2930_v40 }
 0xdc4   :  { %v2931_v14 = vmul.f32 %v14741_v44, %v2927_v55  ;;  %12388 = vmatprep.mubr.msk.f32.mxu1 %vm132_vm0, %v14855_v49 }
 0xdc6   :  { %v14861_v37 = vadd.f32 %v14746_v46, %v2931_v14 }
 0xdc8   :  { %12389 = vmatmul.mubr.msk.f32.vlgmr.msra.gmra.mrb[22].mxu1 %vm132_vm0, %v14861_v37 }
 0xddd   :  { %v12357_v50 = vpop.f32.mrb[20].mxu1 }
 0xdde   :  { %v2731_v3 = vadd.f32 %v12357_v50, %v14808_v8  ;;  %v2725_v7 = vpop.f32.mrb[21].mxu1 }
 0xddf   :  { %v2726_v57 = vadd.f32 %v14808_v8, %v2725_v7 }
 0xde0   :  { %v2741_v59 = vmul.f32 0.044715, %v2731_v3  ;;  %v2737_v33 = vmul.f32 0.5, %v2731_v3 }
 0xde1   :  { %v2740_v60 = vmul.f32 0.044715, %v2726_v57  ;;  %v2736_v15 = vmul.f32 0.5, %v2726_v57 }
 0xde2   :  { %v2745_v62 = vmul.f32 %v2741_v59, %v2731_v3 }
 0xde3   :  { %v2744_v63 = vmul.f32 %v2740_v60, %v2726_v57 }
 0xde4   :  { %v2749_v0 = vmul.f32 %v2745_v62, %v2731_v3 }
 0xde5   :  { %v2748_v1 = vmul.f32 %v2744_v63, %v2726_v57 }
 0xde6   :  { %v2753_v2 = vadd.f32 %v2749_v0, %v2731_v3 }
 0xde7   :  { %v2752_v4 = vadd.f32 %v2748_v1, %v2726_v57 }
 0xde8   :  { %v2757_v5 = vmul.f32 0.7978846, %v2753_v2 }
 0xde9   :  { %v2756_v6 = vmul.f32 0.7978846, %v2752_v4 }
 0xdea   :  { %13863 = vtanh.f32 %v2757_v5 }
 0xdeb   :  { %13865 = vtanh.f32 %v2756_v6 }
 0xdf4   :  { %v13864_v9 = vpop.eup %13863 }
 0xdf5   :  { %v13866_v11 = vpop.eup %13865  ;;  %v2765_v54 = vadd.f32 1.0, %v13864_v9  ;;  %v14914_v9 = vld [vmem:[%s16343_s3 + $0x8] sm:$0xff] }
 0xdf6   :  { %v2764_v16 = vadd.f32 1.0, %v13866_v11 }
 0xdf7   :  { %v2769_v8 = vmul.f32 %v2765_v54, %v2737_v33 }
 0xdf8   :  { %v2768_v17 = vmul.f32 %v2764_v16, %v2736_v15 }
 0xdfa   :  { %12377 = vmatprep.mubr.msk.f32.mxu0 %vm2776_vm4, %v2768_v17 }
 0xdfb   :  { %12378 = vmatmul.mubr.msk.f32.gmra.mrb[24].mxu0 %vm2776_vm4, %v2769_v8 }
 0xe9b   :  { %v12390_v38 = vpop.f32.mrb[22].mxu1 }
 0xe9c   :  { %v3016_v23 = vpop.f32.mrb[23].mxu1 }
 0xece   :  { %v12379_v28 = vpop.f32.mrb[24].mxu0 }
 0xecf   :  { %v2871_v29 = vadd.f32 %v12379_v28, %v14831_v53  ;;  %v2865_v30 = vpop.f32.mrb[25].mxu0 }
 0xed0   :  { %v2866_v35 = vadd.f32 %v14831_v53, %v2865_v30 }
 0xed1   :  { %v2877_v22 = vadd.f32 %v2871_v29, %v14847_v26 }
 0xed2   :  { %v2876_v34 = vadd.f32 %v2866_v35, %v14841_v19  ;;  %v14880_v19 = vld [vmem:[%s16339_s2] ss:$0 sm:$0xff]  ;;  %s16353_s2 = smov 96  }
 0xed3   :  { %v2887_v32 = vsel %vm132_vm0, %v2877_v22, 0.0  ;;  %v3022_v47 = vadd.f32 %v14880_v19, %v12390_v38  ;;  %v3017_v12 = vadd.f32 %v14880_v19, %v3016_v23  ;;  %v14924_v38 = vld [vmem:[%s16343_s3] sm:$0xff] }
 0xed4   :  { %2888 = vadd.xlane.f32.xlu1 %v2887_v32  ;;  %v2884_v56 = vsel %vm132_vm0, %v2876_v34, 0.0 }
 0xed5   :  { %2885 = vadd.xlane.f32.xlu0 %v2884_v56  ;;  %v14885_v40 = vmul.f32 %v3022_v47, %v14399_v18  ;;  %v14888_v48 = vmul.f32 %v3017_v12, %v14391_v13 }
 0xed7   :  { %v14892_v55 = vpack.i.bf16 %v14885_v40, %v14888_v48 }
 0xf61   :  { %v2889_v10 = vpop.xlane.xlu1 %2888 }
 0xf62   :  { %v2893_v36 = vmul.f32 0.03125, %v2889_v10  ;;  %v2886_v20 = vpop.xlane.xlu0 %2885 }
 0xf63   :  { %v2892_v39 = vmul.f32 0.03125, %v2886_v20 }
 0xf64   :  { %v2897_v41 = vsub.f32 %v2877_v22, %v2893_v36  ;;  %v14948_v36 = vld [vmem:[%s16342_s28 + $0x8] sm:$0xff] }
 0xf65   :  { %v2896_v42 = vsub.f32 %v2876_v34, %v2892_v39  ;;  %v14954_v39 = vld [vmem:[%s16342_s28] sm:$0xff] }
 0xf66   :  { %v2901_v43 = vmul.f32 %v2897_v41, %v2897_v41 }
 0xf67   :  { %v2900_v45 = vmul.f32 %v2896_v42, %v2896_v42 }
 0xf68   :  { %v2911_v53 = vsel %vm132_vm0, %v2901_v43, 0.0 }
 0xf69   :  { %2912 = vadd.xlane.f32.xlu1 %v2911_v53  ;;  %v2908_v26 = vsel %vm132_vm0, %v2900_v45, 0.0 }
 0xf6a   :  { %2909 = vadd.xlane.f32.xlu0 %v2908_v26 }
 0xf7a   :  { %13629 = vrot.lane.b32.xlu1 %v14892_v55, %s16351_s26 }
 0xf7e   :  { %3241 = vrot.lane.b32.xlu1 %v14888_v48, %s16352_s21 }
 0xf80   :  { %13624 = vrot.lane.b32.xlu0 %v14892_v55, %s16353_s2 }
 0xf84   :  { %3243 = vrot.lane.b32.xlu0 %v14885_v40, %s16352_s21 }
 0xff6   :  { %v2913_v14 = vpop.xlane.xlu1 %2912 }
 0xff7   :  { %v2917_v50 = vmul.f32 0.03125, %v2913_v14  ;;  %v2910_v3 = vpop.xlane.xlu0 %2909 }
 0xff8   :  { %v2916_v7 = vmul.f32 0.03125, %v2910_v3 }
 0xff9   :  { %v2921_v57 = vadd.f32 1e-05, %v2917_v50 }
 0xffa   :  { %v2920_v59 = vadd.f32 1e-05, %v2916_v7  ;;  %v13630_v60 = vpop.permute.xlu1 %13629 }
 0xffb   :  { %13867 = vrsqrt.f32 %v2921_v57  ;;  %v13632_v62 = vunpack.i.h.bf16 %v13630_v60  ;;  %v13631_v63 = vunpack.i.l.bf16 %v13630_v60  ;;  %v13625_v0 = vpop.permute.xlu0 %13624 }
 0xffc   :  { %13869 = vrsqrt.f32 %v2920_v59  ;;  %v13627_v1 = vunpack.i.h.bf16 %v13625_v0  ;;  %v13626_v2 = vunpack.i.l.bf16 %v13625_v0 }
 0xffd   :  { %v13144_v4 = vpack.c.bf16 %v13632_v62, %v13631_v63 }
 0xffe   :  { %v13134_v5 = vpack.c.bf16 %v13627_v1, %v13626_v2  ;;  %v3242_v6 = vpop.permute.xlu1 %3241 }
 0xfff   :  { %13146 = vmatprep.subr.msk.bf16.mxu0 %vm14425_vm2, %v13144_v4  ;;  %12412 = vmatprep.mubr.msk.f32.mxu0 %vm260_vm1, %v3242_v6  ;;  %v3244_v15 = vpop.permute.xlu0 %3243 }
0x1000   :  { %13136 = vmatprep.subr.msk.bf16.mxu1 %vm14425_vm2, %v13134_v5  ;;  %13149 = vmatpush3.bf16.xpose.msk.msra.mxu0 %vm14425_vm2, %v13144_v4 }
0x1001   :  { %13139 = vmatpush3.bf16.xpose.msk.msra.mxu1 %vm14425_vm2, %v13134_v5  ;;  %12422 = vmatprep.subr.mxu0 %v14914_v9 }
0x1005   :  { %v13868_v11 = vpop.eup %13867 }
0x1006   :  { %v13870_v54 = vpop.eup %13869  ;;  %v2929_v16 = vmul.f32 %v13868_v11, %v2897_v41 }
0x1007   :  { %12413 = vmatmul.mubr.msk.f32.vlgmr.msra.gmra.mrb[26].mxu0 %vm260_vm1, %v3244_v15  ;;  %v2928_v33 = vmul.f32 %v13870_v54, %v2896_v42 }
0x1008   :  { %v2933_v17 = vmul.f32 %v14741_v44, %v2929_v16  ;;  %12423 = vmatpush3.msra.mxu0 %v14914_v9 }
0x1009   :  { %v2932_v8 = vmul.f32 %v14741_v44, %v2928_v33  ;;  %12427 = vmatprep.subr.mxu0 %v14924_v38 }
0x100a   :  { %v14931_v28 = vadd.f32 %v14746_v46, %v2933_v17 }
0x100b   :  { %v14928_v23 = vadd.f32 %v14746_v46, %v2932_v8 }
0x100d   :  { %12391 = vmatprep.mubr.msk.f32.mxu1 %vm132_vm0, %v14928_v23 }
0x100e   :  { %12392 = vmatmul.mubr.msk.f32.gmra.mrb[24].mxu1 %vm132_vm0, %v14931_v28 }
0x100f   :  { %12398 = vmatprep.mubr.msk.f32.mxu1 %vm260_vm1, %v14888_v48 }
0x1012   :  { %12399 = vmatmul.mubr.msk.f32.vlgmr.msra.gmra.mrb[26].mxu1 %vm260_vm1, %v14885_v40 }
0x10da   :  { %v12414_v44 = vpop.f32.mrb[26].mxu0 }
0x10db   :  { %v3323_v29 = vpop.f32.mrb[27].mxu0  ;;  %v3333_v56 = vmul.f32 0.35355338, %v12414_v44 }
0x10dc   :  { %v3332_v22 = vmul.f32 0.35355338, %v3323_v29 }
0x10dd   :  { %v3335_v53 = vsub.f32 %v3333_v56, %v14948_v36 }
0x10de   :  { %v3334_v42 = vsub.f32 %v3332_v22, %v14954_v39 }
0x10df   :  { %v3339_v47 = vsel %vm348_vm3, %v3335_v53, -inf }
0x10e0   :  { %v3336_v26 = vsel %vm348_vm3, %v3334_v42, -inf }
0x10e1   :  { %v14941_v30 = vpop.f32.mrb[24].mxu1 }
0x10e2   :  { %v14943_v35 = vpop.f32.mrb[25].mxu1 }
0x10e5   :  { %v12400_v46 = vpop.f32.mrb[26].mxu1 }
0x10e6   :  { %v3129_v34 = vmul.f32 0.35355338, %v12400_v46  ;;  %v3119_v32 = vpop.f32.mrb[27].mxu1 }
0x10e7   :  { %v3128_v10 = vmul.f32 0.35355338, %v3119_v32 }
0x10e8   :  { %v3131_v20 = vsub.f32 %v3129_v34, %v14948_v36 }
0x10e9   :  { %v3130_v41 = vsub.f32 %v3128_v10, %v14954_v39 }
0x10ea   :  { %v3135_v43 = vsel %vm348_vm3, %v3131_v20, -inf }
0x10eb   :  { %3136 = vmax.xlane.f32.xlu0 %v3135_v43  ;;  %v3132_v45 = vsel %vm348_vm3, %v3130_v41, -inf }
0x10ec   :  { %3133 = vmax.xlane.f32.xlu1 %v3132_v45 }
0x10ef   :  { %3337 = vmax.xlane.f32.xlu0 %v3336_v26 }
0x10f0   :  { %3340 = vmax.xlane.f32.xlu1 %v3339_v47 }
0x1178   :  { %v3137_v12 = vpop.xlane.xlu0 %3136 }
0x1179   :  { %v3134_v14 = vpop.xlane.xlu1 %3133  ;;  %v3139_v3 = vsub.f32 %v3131_v20, %v3137_v12 }
0x117a   :  { %v3138_v50 = vsub.f32 %v3130_v41, %v3134_v14 }
0x117b   :  { %v3142_v0 = vmul.f32 1.442695, %v3139_v3 }
0x117c   :  { %v3338_v7 = vpop.xlane.xlu0 %3337  ;;  %v3140_v62 = vmul.f32 1.442695, %v3138_v50 }
0x117d   :  { %v3342_v57 = vsub.f32 %v3334_v42, %v3338_v7  ;;  %v3341_v59 = vpop.xlane.xlu1 %3340 }
0x117e   :  { %v3343_v60 = vsub.f32 %v3335_v53, %v3341_v59 }
0x117f   :  { %v3344_v63 = vmul.f32 1.442695, %v3342_v57 }
0x1180   :  { %v3346_v1 = vmul.f32 1.442695, %v3343_v60 }
0x1181   :  { %13871 = vpow2.f32 %v3344_v63 }
0x1182   :  { %13873 = vpow2.f32 %v3346_v1 }
0x1183   :  { %13875 = vpow2.f32 %v3140_v62 }
0x1184   :  { %13877 = vpow2.f32 %v3142_v0  ;;  %v3027_v0 = vadd.f32 %v14880_v19, %v14943_v35 }
0x1186   :  { %v15001_v1 = vmul.f32 %v3027_v0, %v14528_v24 }
0x118b   :  { %v13872_v2 = vpop.eup %13871 }
0x118c   :  { %v13874_v4 = vpop.eup %13873  ;;  %v3348_v5 = vsel %vm348_vm3, %v13872_v2, 0.0 }
0x118d   :  { %v13876_v6 = vpop.eup %13875  ;;  %3349 = vadd.xlane.f32.xlu0 %v3348_v5  ;;  %v3351_v11 = vsel %vm348_vm3, %v13874_v4, 0.0 }
0x118e   :  { %v13878_v54 = vpop.eup %13877  ;;  %3352 = vadd.xlane.f32.xlu1 %v3351_v11  ;;  %v3144_v15 = vsel %vm348_vm3, %v13876_v6, 0.0 }
0x118f   :  { %v3147_v16 = vsel %vm348_vm3, %v13878_v54, 0.0 }
0x1191   :  { %3145 = vadd.xlane.f32.xlu0 %v3144_v15 }
0x1192   :  { %3148 = vadd.xlane.f32.xlu1 %v3147_v16 }
0x11a3   :  { %13639 = vrot.lane.b32.xlu1 %v14892_v55, %s16354_s25 }
0x11a7   :  { %13634 = vrot.lane.b32.xlu0 %v14892_v55, %s16345_s7  ;;  %13644 = vrot.lane.b32.xlu1 %v14892_v55, %s16355_s23 }
0x11ab   :  { %3607 = vrot.lane.b32.xlu0 %v14888_v48, %s16356_s12  ;;  %3609 = vrot.lane.b32.xlu1 %v14885_v40, %s16356_s12 }
0x11af   :  { %13649 = vrot.lane.b32.xlu0 %v14892_v55, %s16344_s29  ;;  %3894 = vrot.lane.b32.xlu1 %v14888_v48, %s16346_s30 }
0x11b3   :  { %3896 = vrot.lane.b32.xlu0 %v14885_v40, %s16346_s30 }
0x121a   :  { %v3350_v33 = vpop.xlane.xlu0 %3349 }
0x121b   :  { %v3353_v17 = vpop.xlane.xlu1 %3352  ;;  %13879 = vrcp.f32 %v3350_v33 }
0x121e   :  { %v3146_v8 = vpop.xlane.xlu0 %3145 }
0x121f   :  { %13881 = vrcp.f32 %v3146_v8  ;;  %v3149_v44 = vpop.xlane.xlu1 %3148 }
0x1220   :  { %13883 = vrcp.f32 %v3149_v44 }
0x1221   :  { %13885 = vrcp.f32 %v3353_v17 }
0x1222   :  { %v13635_v29 = vpop.permute.xlu0 %13634 }
0x1223   :  { %v13637_v46 = vunpack.i.h.bf16 %v13635_v29  ;;  %v13636_v22 = vunpack.i.l.bf16 %v13635_v29  ;;  %v13640_v34 = vpop.permute.xlu1 %13639 }
0x1224   :  { %v13642_v32 = vunpack.i.h.bf16 %v13640_v34  ;;  %v13641_v56 = vunpack.i.l.bf16 %v13640_v34 }
0x1225   :  { %v13140_v10 = vpack.c.bf16 %v13637_v46, %v13636_v22  ;;  %v13880_v41 = vpop.eup %13879 }
0x1226   :  { %v13150_v20 = vpack.c.bf16 %v13642_v32, %v13641_v56  ;;  %v3608_v42 = vpop.permute.xlu0 %3607  ;;  %v3356_v14 = vmul.f32 %v13880_v41, %v13872_v2 }
0x1227   :  { %13141 = vmatprep.subr.bf16.mxu1 %v13140_v10  ;;  %v13645_v48 = vpop.permute.xlu1 %13644 }
0x1228   :  { %13143 = vmatpush3.bf16.msra.mxu1 %v13140_v10  ;;  %v13647_v43 = vunpack.i.h.bf16 %v13645_v48  ;;  %v13646_v45 = vunpack.i.l.bf16 %v13645_v48 }
0x1229   :  { %v13882_v40 = vpop.eup %13881  ;;  %13151 = vmatprep.subr.bf16.mxu1 %v13150_v20 }
0x122a   :  { %v13884_v53 = vpop.eup %13883  ;;  %v3152_v26 = vmul.f32 %v13882_v40, %v13876_v6  ;;  %v13154_v50 = vpack.c.bf16 %v13647_v43, %v13646_v45  ;;  %v13650_v3 = vpop.permute.xlu0 %13649  ;;  %v3032_v43 = vadd.f32 %v14880_v19, %v14941_v30 }
0x122b   :  { %v3153_v47 = vmul.f32 %v13884_v53, %v13878_v54  ;;  %v13886_v12 = vpop.eup %13885  ;;  %v13652_v57 = vunpack.i.h.bf16 %v13650_v3  ;;  %v13651_v59 = vunpack.i.l.bf16 %v13650_v3  ;;  %v3610_v62 = vpop.permute.xlu1 %3609 }
0x122c   :  { %12405 = vmatprep.mubr.msk.f32.mxu1 %vm348_vm3, %v3152_v26  ;;  %v3357_v7 = vmul.f32 %v13886_v12, %v13874_v4  ;;  %v15020_v45 = vmul.f32 %v3032_v43, %v14537_v31 }
0x122d   :  { %12406 = vmatmul.mubr.msk.f32.vlgmr.msra.gmra.mrb[28].mxu1 %vm348_vm3, %v3153_v47  ;;  %v13164_v60 = vpack.c.bf16 %v13652_v57, %v13651_v59 }
0x122e   :  { %13153 = vmatpush3.bf16.msra.mxu1 %v13150_v20  ;;  %12419 = vmatprep.mubr.msk.f32.mxu1 %vm348_vm3, %v3356_v14  ;;  %v3897_v2 = vpop.permute.xlu0 %3896  ;;  %v15024_v53 = vpack.i.bf16 %v15020_v45, %v15001_v1 }
0x122f   :  { %13156 = vmatprep.subr.msk.bf16.mxu1 %vm14425_vm2, %v13154_v50  ;;  %v3895_v63 = vpop.permute.xlu1 %3894 }
0x1231   :  { %12420 = vmatmul.mubr.msk.f32.vlgmr.msra.gmra.mrb[30].mxu1 %vm348_vm3, %v3357_v7 }
0x1232   :  { %12436 = vmatprep.mubr.msk.f32.mxu1 %vm260_vm1, %v3608_v42 }
0x1237   :  { %13159 = vmatpush3.bf16.xpose.msk.msra.mxu1 %vm14425_vm2, %v13154_v50 }
0x1238   :  { %13166 = vmatprep.subr.msk.bf16.mxu1 %vm14425_vm2, %v13164_v60 }
0x123e   :  { %12437 = vmatmul.mubr.msk.f32.vlgmr.msra.gmra.mrb[32].mxu1 %vm260_vm1, %v3610_v62 }
0x123f   :  { %13169 = vmatpush3.bf16.xpose.msk.msra.mxu1 %vm14425_vm2, %v13164_v60  ;;  %12455 = vmatprep.mubr.msk.f32.mxu1 %vm260_vm1, %v3895_v63 }
0x1246   :  { %12456 = vmatmul.mubr.msk.f32.vlgmr.msra.gmra.mrb[34].mxu1 %vm260_vm1, %v3897_v2 }
0x1247   :  { %12474 = vmatprep.mubr.msk.f32.mxu1 %vm260_vm1, %v15001_v1 }
0x1300   :  { %v12407_v4 = vpop.f32.mrb[28].mxu1 }
0x1301   :  { %v3232_v5 = vpop.f32.mrb[29].mxu1 }
0x1304   :  { %v12421_v6 = vpop.f32.mrb[30].mxu1 }
0x1305   :  { %v3436_v11 = vpop.f32.mrb[31].mxu1 }
0x1306   :  { %12424 = vmatprep.mubr.msk.f32.mxu0 %vm260_vm1, %v3436_v11  ;;  %v15053_v11 = vld [vmem:[%s16343_s3 + $0x10] sm:$0xff] }
0x1307   :  { %12425 = vmatmul.mubr.msk.f32.vlgmr.msra.gmra.mrb[28].mxu0 %vm260_vm1, %v12421_v6 }
0x1308   :  { %12429 = vmatprep.mubr.msk.f32.mxu0 %vm260_vm1, %v3232_v5  ;;  %12428 = vmatpush3.msra.mxu0 %v14924_v38 }
0x130f   :  { %12430 = vmatmul.mubr.msk.f32.vlgmr.msra.gmra.mrb[28].mxu0 %vm260_vm1, %v12407_v4 }
0x1311   :  { %v12438_v35 = vpop.f32.mrb[32].mxu1 }
0x1312   :  { %v3699_v54 = vmul.f32 0.35355338, %v12438_v35  ;;  %v3689_v15 = vpop.f32.mrb[33].mxu1 }
0x1313   :  { %v3698_v16 = vmul.f32 0.35355338, %v3689_v15 }
0x1314   :  { %v3701_v33 = vsub.f32 %v3699_v54, %v14948_v36 }
0x1315   :  { %v3700_v17 = vsub.f32 %v3698_v16, %v14954_v39 }
0x1316   :  { %v3705_v8 = vsel %vm348_vm3, %v3701_v33, -inf }
0x1317   :  { %3706 = vmax.xlane.f32.xlu0 %v3705_v8  ;;  %v3702_v44 = vsel %vm348_vm3, %v3700_v17, -inf }
0x1318   :  { %3703 = vmax.xlane.f32.xlu1 %v3702_v44 }
0x1319   :  { %v12457_v29 = vpop.f32.mrb[34].mxu1 }
0x131a   :  { %v3976_v46 = vpop.f32.mrb[35].mxu1  ;;  %v3986_v30 = vmul.f32 0.35355338, %v12457_v29 }
0x131b   :  { %v3985_v19 = vmul.f32 0.35355338, %v3976_v46 }
0x131c   :  { %v3988_v47 = vsub.f32 %v3986_v30, %v14948_v36 }
0x131d   :  { %v3987_v26 = vsub.f32 %v3985_v19, %v14954_v39 }
0x131e   :  { %v3992_v14 = vsel %vm348_vm3, %v3988_v47, -inf }
0x131f   :  { %v3989_v12 = vsel %vm348_vm3, %v3987_v26, -inf }
0x13a4   :  { %v3707_v22 = vpop.xlane.xlu0 %3706 }
0x13a5   :  { %v3709_v34 = vsub.f32 %v3701_v33, %v3707_v22  ;;  %v3704_v32 = vpop.xlane.xlu1 %3703 }
0x13a6   :  { %v3708_v56 = vsub.f32 %v3700_v17, %v3704_v32 }
0x13a7   :  { %v3712_v10 = vmul.f32 1.442695, %v3709_v34 }
0x13a8   :  { %v3710_v20 = vmul.f32 1.442695, %v3708_v56 }
0x13a9   :  { %13887 = vpow2.f32 %v3712_v10 }
0x13aa   :  { %13889 = vpow2.f32 %v3710_v20 }
0x13b3   :  { %v13888_v48 = vpop.eup %13887 }
0x13b4   :  { %v13890_v41 = vpop.eup %13889  ;;  %v3717_v40 = vsel %vm348_vm3, %v13888_v48, 0.0 }
0x13b5   :  { %3718 = vadd.xlane.f32.xlu1 %v3717_v40  ;;  %v3714_v42 = vsel %vm348_vm3, %v13890_v41, 0.0 }
0x13b6   :  { %3715 = vadd.xlane.f32.xlu0 %v3714_v42 }
0x13c6   :  { %13659 = vrot.lane.b32.xlu1 %v15024_v53, %s16353_s2 }
0x13ca   :  { %13664 = vrot.lane.b32.xlu1 %v15024_v53, %s16351_s26 }
0x13cc   :  { %13654 = vrot.lane.b32.xlu0 %v14892_v55, %s16357_s6 }
0x13ce   :  { %4385 = vrot.lane.b32.xlu1 %v15020_v45, %s16352_s21 }
0x13d0   :  { %4383 = vrot.lane.b32.xlu0 %v15001_v1, %s16352_s21 }
0x13ef   :  { %3990 = vmax.xlane.f32.xlu0 %v3989_v12 }
0x13f2   :  { %3993 = vmax.xlane.f32.xlu1 %v3992_v14 }
0x1403   :  { %13669 = vrot.lane.b32.xlu1 %v14892_v55, %s16358_s27 }
0x1407   :  { %4749 = vrot.lane.b32.xlu1 %v15001_v1, %s16356_s12 }
0x140b   :  { %4751 = vrot.lane.b32.xlu1 %v15020_v45, %s16356_s12 }
0x1442   :  { %v3719_v50 = vpop.xlane.xlu1 %3718 }
0x1443   :  { %13891 = vrcp.f32 %v3719_v50  ;;  %v3716_v39 = vpop.xlane.xlu0 %3715 }
0x1444   :  { %13893 = vrcp.f32 %v3716_v39 }
0x1446   :  { %v13660_v36 = vpop.permute.xlu1 %13659 }
0x1447   :  { %v13662_v3 = vunpack.i.h.bf16 %v13660_v36  ;;  %v13661_v7 = vunpack.i.l.bf16 %v13660_v36  ;;  %v13655_v57 = vpop.permute.xlu0 %13654 }
0x1448   :  { %v13657_v59 = vunpack.i.h.bf16 %v13655_v57  ;;  %v13656_v60 = vunpack.i.l.bf16 %v13655_v57 }
0x1449   :  { %v13174_v62 = vpack.c.bf16 %v13662_v3, %v13661_v7 }
0x144a   :  { %v13665_v63 = vpop.permute.xlu1 %13664  ;;  %v13160_v0 = vpack.c.bf16 %v13657_v59, %v13656_v60  ;;  %v15081_v60 = vld [vmem:[%s16342_s28 + $0x18] sm:$0xff] }
0x144b   :  { %v13667_v55 = vunpack.i.h.bf16 %v13665_v63  ;;  %v13666_v2 = vunpack.i.l.bf16 %v13665_v63  ;;  %13176 = vmatprep.subr.msk.bf16.mxu1 %vm14425_vm2, %v13174_v62  ;;  %v4384_v15 = vpop.permute.xlu0 %4383  ;;  %v15088_v63 = vld [vmem:[%s16342_s28 + $0x10] sm:$0xff] }
0x144c   :  { %13161 = vmatprep.subr.bf16.mxu0 %v13160_v0  ;;  %13179 = vmatpush3.bf16.xpose.msk.msra.mxu1 %vm14425_vm2, %v13174_v62 }
0x144d   :  { %v13892_v4 = vpop.eup %13891  ;;  %v13184_v5 = vpack.c.bf16 %v13667_v55, %v13666_v2  ;;  %13163 = vmatpush3.bf16.msra.mxu0 %v13160_v0  ;;  %v15094_v2 = vld [vmem:[%s16343_s3 + $0x18] sm:$0xff]  ;;  %s16360_s3 = sld [smem:[#allocation16_spill]] }
0x144e   :  { %v13894_v6 = vpop.eup %13893  ;;  %12446 = vmatprep.subr.mxu0 %v15053_v11  ;;  %v3723_v54 = vmul.f32 %v13892_v4, %v13888_v48  ;;  %v4386_v16 = vpop.permute.xlu1 %4385 }
0x144f   :  { %13186 = vmatprep.subr.msk.bf16.mxu1 %vm14425_vm2, %v13184_v5  ;;  %v3722_v35 = vmul.f32 %v13894_v6, %v13890_v41 }
0x1451   :  { %12443 = vmatprep.mubr.msk.f32.mxu0 %vm348_vm3, %v3722_v35 }
0x1452   :  { %12444 = vmatmul.mubr.msk.f32.vlgmr.msra.gmra.mrb[30].mxu0 %vm348_vm3, %v3723_v54 }
0x1453   :  { %12475 = vmatmul.mubr.msk.f32.vlgmr.msra.gmra.mrb[36].mxu1 %vm260_vm1, %v15020_v45  ;;  %12447 = vmatpush3.msra.mxu0 %v15053_v11 }
0x1454   :  { %13189 = vmatpush3.bf16.xpose.msk.msra.mxu1 %vm14425_vm2, %v13184_v5  ;;  %12488 = vmatprep.mubr.msk.f32.mxu1 %vm260_vm1, %v4384_v15 }
0x145b   :  { %12489 = vmatmul.mubr.msk.f32.vlgmr.msra.gmra.mrb[38].mxu1 %vm260_vm1, %v4386_v16 }
0x147c   :  { %v3991_v33 = vpop.xlane.xlu0 %3990 }
0x147d   :  { %v3995_v17 = vsub.f32 %v3987_v26, %v3991_v33 }
0x147f   :  { %v3997_v8 = vmul.f32 1.442695, %v3995_v17  ;;  %v3994_v44 = vpop.xlane.xlu1 %3993 }
0x1480   :  { %v3996_v29 = vsub.f32 %v3988_v47, %v3994_v44 }
0x1481   :  { %13895 = vpow2.f32 %v3997_v8 }
0x1482   :  { %v3999_v46 = vmul.f32 1.442695, %v3996_v29 }
0x1483   :  { %v13670_v22 = vpop.permute.xlu1 %13669 }
0x1484   :  { %13897 = vpow2.f32 %v3999_v46  ;;  %v13672_v34 = vunpack.i.h.bf16 %v13670_v22  ;;  %v13671_v32 = vunpack.i.l.bf16 %v13670_v22 }
0x1486   :  { %v13170_v56 = vpack.c.bf16 %v13672_v34, %v13671_v32 }
0x1487   :  { %v4750_v10 = vpop.permute.xlu1 %4749 }
0x1488   :  { %13171 = vmatprep.subr.bf16.mxu0 %v13170_v56  ;;  %12512 = vmatprep.mubr.msk.f32.mxu1 %vm260_vm1, %v4750_v10 }
0x148b   :  { %v13896_v20 = vpop.eup %13895  ;;  %v4752_v6 = vpop.permute.xlu1 %4751 }
0x148c   :  { %v4001_v48 = vsel %vm348_vm3, %v13896_v20, 0.0 }
0x148d   :  { %4002 = vadd.xlane.f32.xlu0 %v4001_v48 }
0x148e   :  { %v13898_v41 = vpop.eup %13897 }
0x148f   :  { %v4004_v40 = vsel %vm348_vm3, %v13898_v41, 0.0 }
0x1491   :  { %4005 = vadd.xlane.f32.xlu0 %v4004_v40 }
0x14a7   :  { %13674 = vrot.lane.b32.xlu0 %v15024_v53, %s16355_s23 }
0x151a   :  { %v4003_v42 = vpop.xlane.xlu0 %4002 }
0x151b   :  { %13899 = vrcp.f32 %v4003_v42 }
0x151e   :  { %v4006_v43 = vpop.xlane.xlu0 %4005 }
0x151f   :  { %13901 = vrcp.f32 %v4006_v43 }
0x1522   :  { %v13675_v19 = vpop.permute.xlu0 %13674 }
0x1523   :  { %v13677_v30 = vunpack.i.h.bf16 %v13675_v19  ;;  %v13676_v26 = vunpack.i.l.bf16 %v13675_v19 }
0x1525   :  { %v13900_v47 = vpop.eup %13899  ;;  %v13194_v12 = vpack.c.bf16 %v13677_v30, %v13676_v26  ;;  %v12445_v14 = vpop.f32.mrb[30].mxu0 }
0x1526   :  { %v3802_v50 = vpop.f32.mrb[31].mxu0  ;;  %v12476_v39 = vpop.f32.mrb[36].mxu1  ;;  %v4009_v36 = vmul.f32 %v13900_v47, %v13896_v20 }
0x1527   :  { %v4271_v3 = vmul.f32 0.35355338, %v12476_v39  ;;  %12448 = vmatprep.mubr.msk.f32.mxu0 %vm260_vm1, %v3802_v50  ;;  %v4261_v7 = vpop.f32.mrb[37].mxu1  ;;  %13196 = vmatprep.subr.msk.bf16.mxu1 %vm14425_vm2, %v13194_v12 }
0x1528   :  { %v4270_v57 = vmul.f32 0.35355338, %v4261_v7  ;;  %12449 = vmatmul.mubr.msk.f32.vlgmr.msra.gmra.mrb[28].mxu0 %vm260_vm1, %v12445_v14  ;;  %13199 = vmatpush3.bf16.xpose.msk.msra.mxu1 %vm14425_vm2, %v13194_v12 }
0x1529   :  { %v13902_v59 = vpop.eup %13901  ;;  %v4273_v62 = vsub.f32 %v4271_v3, %v15081_v60  ;;  %13173 = vmatpush3.bf16.msra.mxu0 %v13170_v56  ;;  %12462 = vmatprep.mubr.msk.f32.mxu0 %vm348_vm3, %v4009_v36 }
0x152a   :  { %v4272_v0 = vsub.f32 %v4270_v57, %v15088_v63  ;;  %v4010_v55 = vmul.f32 %v13902_v59, %v13898_v41  ;;  %12465 = vmatprep.subr.mxu0 %v15094_v2 }
0x152b   :  { %v4277_v4 = vsel %vm348_vm3, %v4273_v62, -inf }
0x152c   :  { %4278 = vmax.xlane.f32.xlu1 %v4277_v4  ;;  %12463 = vmatmul.mubr.msk.f32.vlgmr.msra.gmra.mrb[32].mxu0 %vm348_vm3, %v4010_v55  ;;  %v4274_v5 = vsel %vm348_vm3, %v4272_v0, -inf }
0x152d   :  { %4275 = vmax.xlane.f32.xlu0 %v4274_v5  ;;  %12466 = vmatpush3.msra.mxu0 %v15094_v2 }
0x152e   :  { %v12490_v35 = vpop.f32.mrb[38].mxu1 }
0x152f   :  { %v4465_v54 = vpop.f32.mrb[39].mxu1  ;;  %12513 = vmatmul.mubr.msk.f32.vlgmr.msra.gmra.mrb[40].mxu1 %vm260_vm1, %v4752_v6  ;;  %v4475_v15 = vmul.f32 0.35355338, %v12490_v35 }
0x1530   :  { %v4474_v16 = vmul.f32 0.35355338, %v4465_v54 }
0x1531   :  { %v4477_v17 = vsub.f32 %v4475_v15, %v15081_v60 }
0x1532   :  { %v4476_v33 = vsub.f32 %v4474_v16, %v15088_v63 }
0x1533   :  { %v4481_v44 = vsel %vm348_vm3, %v4477_v17, -inf }
0x1534   :  { %v4478_v8 = vsel %vm348_vm3, %v4476_v33, -inf }
0x1535   :  { %4479 = vmax.xlane.f32.xlu0 %v4478_v8 }
0x1539   :  { %4482 = vmax.xlane.f32.xlu0 %v4481_v44 }
0x15b9   :  { %v4279_v29 = vpop.xlane.xlu1 %4278 }
0x15ba   :  { %v4281_v46 = vsub.f32 %v4273_v62, %v4279_v29  ;;  %v4276_v22 = vpop.xlane.xlu0 %4275 }
0x15bb   :  { %v4280_v34 = vsub.f32 %v4272_v0, %v4276_v22 }
0x15bc   :  { %v4284_v32 = vmul.f32 1.442695, %v4281_v46 }
0x15bd   :  { %v4282_v56 = vmul.f32 1.442695, %v4280_v34 }
0x15be   :  { %13903 = vpow2.f32 %v4284_v32 }
0x15bf   :  { %13905 = vpow2.f32 %v4282_v56 }
0x15c2   :  { %v4480_v10 = vpop.xlane.xlu0 %4479 }
0x15c3   :  { %v4484_v20 = vsub.f32 %v4476_v33, %v4480_v10 }
0x15c5   :  { %v4486_v48 = vmul.f32 1.442695, %v4484_v20 }
0x15c6   :  { %v4483_v41 = vpop.xlane.xlu0 %4482 }
0x15c7   :  { %13907 = vpow2.f32 %v4486_v48  ;;  %v4485_v40 = vsub.f32 %v4477_v17, %v4483_v41 }
0x15c8   :  { %v13904_v42 = vpop.eup %13903 }
0x15c9   :  { %v13906_v43 = vpop.eup %13905  ;;  %v4488_v19 = vmul.f32 1.442695, %v4485_v40  ;;  %v4289_v30 = vsel %vm348_vm3, %v13904_v42, 0.0 }
0x15ca   :  { %4290 = vadd.xlane.f32.xlu0 %v4289_v30  ;;  %v4286_v26 = vsel %vm348_vm3, %v13906_v43, 0.0 }
0x15cb   :  { %13909 = vpow2.f32 %v4488_v19  ;;  %4287 = vadd.xlane.f32.xlu1 %v4286_v26 }
0x15d1   :  { %v13908_v47 = vpop.eup %13907 }
0x15d2   :  { %v4490_v12 = vsel %vm348_vm3, %v13908_v47, 0.0 }
0x15d3   :  { %4491 = vadd.xlane.f32.xlu1 %v4490_v12 }
0x15d5   :  { %v13910_v14 = vpop.eup %13909 }
0x15d6   :  { %v4493_v50 = vsel %vm348_vm3, %v13910_v14, 0.0 }
0x15d7   :  { %4494 = vadd.xlane.f32.xlu0 %v4493_v50 }
0x15e4   :  { %13679 = vrot.lane.b32.xlu1 %v15024_v53, %s16345_s7  ;;  %s16363_s7 = sld [smem:[#allocation19_spill]] }
0x15e8   :  { %13689 = vrot.lane.b32.xlu1 %v15024_v53, %s16344_s29 }
0x15ec   :  { %5036 = vrot.lane.b32.xlu1 %v15001_v1, %s16346_s30 }
0x15ed   :  { %13684 = vrot.lane.b32.xlu0 %v15024_v53, %s16354_s25 }
0x15f1   :  { %5038 = vrot.lane.b32.xlu0 %v15020_v45, %s16346_s30 }
0x15ff   :  { %v12464_v39 = vpop.f32.mrb[32].mxu0 }
0x1600   :  { %v4089_v36 = vpop.f32.mrb[33].mxu0 }
0x1601   :  { %12467 = vmatprep.mubr.msk.f32.mxu0 %vm260_vm1, %v4089_v36 }
0x1602   :  { %12468 = vmatmul.mubr.msk.f32.vlgmr.msra.gmra.mrb[28].mxu0 %vm260_vm1, %v12464_v39  ;;  %v12514_v3 = vpop.f32.mrb[40].mxu1 }
0x1603   :  { %v4831_v7 = vpop.f32.mrb[41].mxu1  ;;  %v4841_v57 = vmul.f32 0.35355338, %v12514_v3 }
0x1604   :  { %v4840_v59 = vmul.f32 0.35355338, %v4831_v7  ;;  %v15150_v7 = vld [vmem:[%s16347_s1] ss:$0 sm:$0xff] }
0x1605   :  { %v4843_v62 = vsub.f32 %v4841_v57, %v15081_v60 }
0x1606   :  { %v4842_v1 = vsub.f32 %v4840_v59, %v15088_v63 }
0x1607   :  { %v4847_v55 = vsel %vm348_vm3, %v4843_v62, -inf }
0x1608   :  { %v4844_v0 = vsel %vm348_vm3, %v4842_v1, -inf }
0x1610   :  { %4845 = vmax.xlane.f32.xlu1 %v4844_v0  ;;  %4848 = vmax.xlane.f32.xlu0 %v4847_v55 }
0x1657   :  { %v4291_v4 = vpop.xlane.xlu0 %4290 }
0x1658   :  { %v4288_v45 = vpop.xlane.xlu1 %4287 }
0x1659   :  { %13911 = vrcp.f32 %v4288_v45 }
0x165a   :  { %13913 = vrcp.f32 %v4291_v4 }
0x1660   :  { %v4492_v5 = vpop.xlane.xlu1 %4491 }
0x1661   :  { %13915 = vrcp.f32 %v4492_v5 }
0x1663   :  { %v13912_v6 = vpop.eup %13911 }
0x1664   :  { %v13680_v35 = vpop.permute.xlu1 %13679  ;;  %v4495_v54 = vpop.xlane.xlu0 %4494  ;;  %v4294_v15 = vmul.f32 %v13912_v6, %v13906_v43 }
0x1665   :  { %v13682_v16 = vunpack.i.h.bf16 %v13680_v35  ;;  %v13681_v33 = vunpack.i.l.bf16 %v13680_v35  ;;  %13917 = vrcp.f32 %v4495_v54  ;;  %v13914_v8 = vpop.eup %13913 }
0x1666   :  { %12481 = vmatprep.mubr.msk.f32.mxu0 %vm348_vm3, %v4294_v15  ;;  %v4295_v20 = vmul.f32 %v13914_v8, %v13904_v42 }
0x1667   :  { %v13180_v17 = vpack.c.bf16 %v13682_v16, %v13681_v33 }
0x1668   :  { %v13690_v44 = vpop.permute.xlu1 %13689  ;;  %v13685_v29 = vpop.permute.xlu0 %13684 }
0x1669   :  { %v13692_v46 = vunpack.i.h.bf16 %v13690_v44  ;;  %v13691_v22 = vunpack.i.l.bf16 %v13690_v44  ;;  %v13687_v34 = vunpack.i.h.bf16 %v13685_v29  ;;  %v13686_v32 = vunpack.i.l.bf16 %v13685_v29  ;;  %13181 = vmatprep.subr.bf16.mxu0 %v13180_v17 }
0x166a   :  { %13183 = vmatpush3.bf16.msra.mxu0 %v13180_v17 }
0x166b   :  { %v13916_v56 = vpop.eup %13915  ;;  %v13204_v10 = vpack.c.bf16 %v13692_v46, %v13691_v22  ;;  %v13190_v48 = vpack.c.bf16 %v13687_v34, %v13686_v32 }
0x166c   :  { %v5037_v41 = vpop.permute.xlu1 %5036  ;;  %v4498_v40 = vmul.f32 %v13916_v56, %v13908_v47  ;;  %v5039_v42 = vpop.permute.xlu0 %5038 }
0x166d   :  { %12482 = vmatmul.mubr.msk.f32.vlgmr.msra.gmra.mrb[34].mxu0 %vm348_vm3, %v4295_v20  ;;  %13191 = vmatprep.subr.bf16.mxu0 %v13190_v48 }
0x166e   :  { %13206 = vmatprep.subr.msk.bf16.mxu1 %vm14425_vm2, %v13204_v10  ;;  %12531 = vmatprep.mubr.msk.f32.mxu1 %vm260_vm1, %v5037_v41 }
0x166f   :  { %v13918_v43 = vpop.eup %13917  ;;  %13193 = vmatpush3.bf16.msra.mxu0 %v13190_v48  ;;  %12495 = vmatprep.mubr.msk.f32.mxu0 %vm348_vm3, %v4498_v40 }
0x1670   :  { %13209 = vmatpush3.bf16.xpose.msk.msra.mxu1 %vm14425_vm2, %v13204_v10  ;;  %v4499_v19 = vmul.f32 %v13918_v43, %v13910_v14  ;;  %12498 = vmatprep.subr.mxu0 %v14914_v9 }
0x1671   :  { %13215 = vmatprep.subr.bf16.mxu1 %v14723_v21 }
0x1672   :  { %12496 = vmatmul.mubr.msk.f32.vlgmr.msra.gmra.mrb[36].mxu0 %vm348_vm3, %v4499_v19 }
0x1673   :  { %12499 = vmatpush3.msra.mxu0 %v14914_v9 }
0x1674   :  { %12503 = vmatprep.subr.mxu0 %v14924_v38 }
0x1677   :  { %12532 = vmatmul.mubr.msk.f32.vlgmr.msra.gmra.mrb[42].mxu1 %vm260_vm1, %v5039_v42 }
0x1678   :  { %13217 = vmatpush3.bf16.msra.mxu1 %v14723_v21 }
0x1679   :  { %13219 = vmatprep.subr.bf16.mxu1 %v14733_v25 }
0x167c   :  { %13221 = vmatpush3.bf16.msra.mxu1 %v14733_v25 }
0x169d   :  { %v4846_v30 = vpop.xlane.xlu1 %4845  ;;  %v4849_v26 = vpop.xlane.xlu0 %4848 }
0x169e   :  { %v4850_v47 = vsub.f32 %v4842_v1, %v4846_v30  ;;  %v4851_v12 = vsub.f32 %v4843_v62, %v4849_v26 }
0x16a0   :  { %v4852_v14 = vmul.f32 1.442695, %v4850_v47  ;;  %v4854_v50 = vmul.f32 1.442695, %v4851_v12 }
0x16a2   :  { %13919 = vpow2.f32 %v4852_v14 }
0x16a3   :  { %13921 = vpow2.f32 %v4854_v50 }
0x16ac   :  { %v13920_v9 = vpop.eup %13919 }
0x16ad   :  { %v13922_v39 = vpop.eup %13921  ;;  %v4856_v36 = vsel %vm348_vm3, %v13920_v9, 0.0 }
0x16ae   :  { %4857 = vadd.xlane.f32.xlu0 %v4856_v36  ;;  %v4859_v3 = vsel %vm348_vm3, %v13922_v39, 0.0 }
0x16af   :  { %4860 = vadd.xlane.f32.xlu1 %v4859_v3 }
0x16c4   :  { %13694 = vrot.lane.b32.xlu0 %v15024_v53, %s16357_s6  ;;  %s14208_s6 = smov [#allocation2]  }
0x16c5   :  { %s11362_s24 = sshll.u32 %s14208_s6, 4  ;;  %s11363_s24 = int_to_ptr.vmem [resolvable:$true] %s11362_s24 }
0x16c6   :  { %s14172_s4 = scalar_lea.vmem %s11363_s24, 512  ;;  %p14177_p1 = scmp.lt.s32.totalorder %s11363_s24, %s11363_s24 }
0x16c7   :  { %p14173_p0 = scmp.ne.s32.totalorder %s11363_s24, %s14172_s4  ;;  %p14178_p2 = scmp.lt.s32.totalorder %s14172_s4, %s14172_s4 }
0x16c9   :  { %p14179_p3 = por %p14178_p2, %p14177_p1 }
0x16cb   :  { %p14180_p4 = pnand %p14179_p3, %p14173_p0 }
0x16d5   :  { %v12469_v21 = vpop.f32.mrb[28].mxu0 }
0x16d6   :  { %v4170_v25 = vpop.f32.mrb[29].mxu0 }
0x16d7   :  { %v5323_v57 = vadd.f32 %v15150_v7, %v4170_v25 }
0x16d9   :  { %v5327_v59 = vmul.f32 %v5323_v57, %v14391_v13 }
0x16db   :  { %v15155_v62 = vadd.f32 %v5327_v59, %v14855_v49 }
0x16dd   :  { %v5335_v1 = vsel %vm132_vm0, %v15155_v62, 0.0 }
0x16e3   :  { %5336 = vadd.xlane.f32.xlu0 %v5335_v1 }
0x173b   :  { %v4858_v0 = vpop.xlane.xlu0 %4857 }
0x173c   :  { %v4861_v5 = vpop.xlane.xlu1 %4860  ;;  %13923 = vrcp.f32 %v4858_v0 }
0x173d   :  { %13925 = vrcp.f32 %v4861_v5 }
0x173f   :  { %v13695_v45 = vpop.permute.xlu0 %13694 }
0x1740   :  { %v12483_v55 = vpop.f32.mrb[34].mxu0  ;;  %v13697_v6 = vunpack.i.h.bf16 %v13695_v45  ;;  %v13696_v35 = vunpack.i.l.bf16 %v13695_v45 }
0x1741   :  { %v4374_v4 = vpop.f32.mrb[35].mxu0 }
0x1742   :  { %v13200_v49 = vpack.c.bf16 %v13697_v6, %v13696_v35 }
0x1745   :  { %v12497_v54 = vpop.f32.mrb[36].mxu0 }
0x1746   :  { %v4578_v15 = vpop.f32.mrb[37].mxu0  ;;  %v13924_v44 = vpop.eup %13923 }
0x1747   :  { %12500 = vmatprep.mubr.msk.f32.mxu0 %vm260_vm1, %v4578_v15  ;;  %v13926_v46 = vpop.eup %13925  ;;  %v4864_v32 = vmul.f32 %v13924_v44, %v13920_v9 }
0x1748   :  { %12501 = vmatmul.mubr.msk.f32.vlgmr.msra.gmra.mrb[38].mxu0 %vm260_vm1, %v12497_v54 }
0x1749   :  { %12504 = vmatpush3.msra.mxu0 %v14924_v38  ;;  %12505 = vmatprep.mubr.msk.f32.mxu0 %vm260_vm1, %v4374_v4  ;;  %v4865_v38 = vmul.f32 %v13926_v46, %v13922_v39 }
0x174a   :  { %v12533_v16 = vpop.f32.mrb[42].mxu1  ;;  %13201 = vmatprep.subr.bf16.mxu0 %v13200_v49 }
0x174b   :  { %v5118_v33 = vpop.f32.mrb[43].mxu1  ;;  %v5128_v17 = vmul.f32 0.35355338, %v12533_v16 }
0x174c   :  { %v5127_v8 = vmul.f32 0.35355338, %v5118_v33 }
0x174d   :  { %v5130_v22 = vsub.f32 %v5128_v17, %v15081_v60 }
0x174e   :  { %v5129_v29 = vsub.f32 %v5127_v8, %v15088_v63 }
0x174f   :  { %v5134_v56 = vsel %vm348_vm3, %v5130_v22, -inf }
0x1750   :  { %v5131_v34 = vsel %vm348_vm3, %v5129_v29, -inf  ;;  %12506 = vmatmul.mubr.msk.f32.vlgmr.msra.gmra.mrb[38].mxu0 %vm260_vm1, %v12483_v55 }
0x1751   :  { %5132 = vmax.xlane.f32.xlu1 %v5131_v34  ;;  %13203 = vmatpush3.bf16.msra.mxu0 %v13200_v49 }
0x1752   :  { %12519 = vmatprep.mubr.msk.f32.mxu0 %vm348_vm3, %v4864_v32  ;;  %12522 = vmatprep.subr.mxu0 %v15053_v11 }
0x1754   :  { %12520 = vmatmul.mubr.msk.f32.vlgmr.msra.gmra.mrb[40].mxu0 %vm348_vm3, %v4865_v38 }
0x1755   :  { %5135 = vmax.xlane.f32.xlu1 %v5134_v56  ;;  %12523 = vmatpush3.msra.mxu0 %v15053_v11  ;;  %v5324_v11 = vadd.f32 %v15150_v7, %v12469_v21 }
0x1757   :  { %v5328_v30 = vmul.f32 %v5324_v11, %v14399_v18 }
0x1759   :  { %v5332_v47 = vadd.f32 %v5328_v30, %v14861_v37  ;;  %v15218_v30 = vld [vmem:[%s16350_s0] ss:$0 sm:$0xff] }
0x175b   :  { %v5338_v14 = vsel %vm132_vm0, %v5332_v47, 0.0 }
0x1770   :  { %v5337_v0 = vpop.xlane.xlu0 %5336 }
0x17de   :  { %v5133_v60 = vpop.xlane.xlu1 %5132 }
0x17df   :  { %v5137_v63 = vsub.f32 %v5129_v29, %v5133_v60 }
0x17e1   :  { %v5139_v48 = vmul.f32 1.442695, %v5137_v63 }
0x17e2   :  { %v5136_v10 = vpop.xlane.xlu1 %5135 }
0x17e3   :  { %v5138_v20 = vsub.f32 %v5130_v22, %v5136_v10 }
0x17e5   :  { %v5141_v41 = vmul.f32 1.442695, %v5138_v20 }
0x17e7   :  { %13927 = vpow2.f32 %v5141_v41 }
0x17e8   :  { %13929 = vpow2.f32 %v5139_v48 }
0x17f1   :  { %v13928_v40 = vpop.eup %13927 }
0x17f2   :  { %v5146_v43 = vsel %vm348_vm3, %v13928_v40, 0.0  ;;  %v13930_v19 = vpop.eup %13929 }
0x17f3   :  { %5147 = vadd.xlane.f32.xlu1 %v5146_v43  ;;  %v5143_v42 = vsel %vm348_vm3, %v13930_v19, 0.0  ;;  %v15212_v43 = vld [vmem:[%s16349_s10] ss:$0 sm:$0xff]  ;;  %s16361_s10 = sld [smem:[#allocation17_spill]] }
0x17f7   :  { %5144 = vadd.xlane.f32.xlu1 %v5143_v42 }
0x1808   :  { %13699 = vrot.lane.b32.xlu1 %v15024_v53, %s16358_s27  ;;  %s16359_s27 = sld [smem:[#allocation8_spill]] }
0x1827   :  { %v12521_v26 = vpop.f32.mrb[40].mxu0 }
0x1828   :  { %v4944_v12 = vpop.f32.mrb[41].mxu0 }
0x1829   :  { %12524 = vmatprep.mubr.msk.f32.mxu0 %vm260_vm1, %v4944_v12 }
0x182a   :  { %12525 = vmatmul.mubr.msk.f32.vlgmr.msra.gmra.mrb[38].mxu0 %vm260_vm1, %v12521_v26 }
0x182c   :  { %5339 = vadd.xlane.f32.xlu1 %v5338_v14 }
0x1880   :  { %v5148_v50 = vpop.xlane.xlu1 %5147 }
0x1881   :  { %13931 = vrcp.f32 %v5148_v50 }
0x1884   :  { %v5145_v9 = vpop.xlane.xlu1 %5144 }
0x1885   :  { %13933 = vrcp.f32 %v5145_v9 }
0x1888   :  { %v13700_v53 = vpop.permute.xlu1 %13699 }
0x1889   :  { %v13702_v39 = vunpack.i.h.bf16 %v13700_v53  ;;  %v13701_v36 = vunpack.i.l.bf16 %v13700_v53 }
0x188b   :  { %v13210_v3 = vpack.c.bf16 %v13702_v39, %v13701_v36  ;;  %v13932_v21 = vpop.eup %13931 }
0x188c   :  { %v5152_v57 = vmul.f32 %v13932_v21, %v13928_v40 }
0x188d   :  { %13211 = vmatprep.subr.bf16.mxu0 %v13210_v3 }
0x188e   :  { %13213 = vmatpush3.bf16.msra.mxu0 %v13210_v3 }
0x188f   :  { %v13934_v37 = vpop.eup %13933  ;;  %12541 = vmatprep.subr.mxu0 %v15094_v2 }
0x1890   :  { %v5151_v25 = vmul.f32 %v13934_v37, %v13930_v19 }
0x1892   :  { %12538 = vmatprep.mubr.msk.f32.mxu0 %vm348_vm3, %v5151_v25 }
0x1893   :  { %12539 = vmatmul.mubr.msk.f32.vlgmr.msra.gmra.mrb[42].mxu0 %vm348_vm3, %v5152_v57 }
0x1894   :  { %12542 = vmatpush3.msra.mxu0 %v15094_v2 }
0x1895   :  { %13223 = vmatprep.subr.bf16.mxu0 %v14774_v51 }
0x18b9   :  { %v5340_v6 = vpop.xlane.xlu1 %5339 }
0x18ba   :  { %v5348_v54 = vmul.f32 0.03125, %v5340_v6 }
0x18bc   :  { %v5352_v49 = vsub.f32 %v5332_v47, %v5348_v54 }
0x18be   :  { %v5356_v17 = vmul.f32 %v5352_v49, %v5352_v49 }
0x18c0   :  { %v5362_v8 = vsel %vm132_vm0, %v5356_v17, 0.0 }
0x1966   :  { %v12540_v59 = vpop.f32.mrb[42].mxu0 }
0x1967   :  { %v5231_v1 = vpop.f32.mrb[43].mxu0 }
0x1968   :  { %12543 = vmatprep.mubr.msk.f32.mxu0 %vm260_vm1, %v5231_v1 }
0x1969   :  { %12544 = vmatmul.mubr.msk.f32.vlgmr.msra.gmra.mrb[38].mxu0 %vm260_vm1, %v12540_v59 }
0x196a   :  { %13225 = vmatpush3.bf16.msra.mxu0 %v14774_v51  ;;  %v5347_v51 = vmul.f32 0.03125, %v5337_v0 }
0x196b   :  { %13227 = vmatprep.subr.bf16.mxu0 %v14779_v52 }
0x196e   :  { %13229 = vmatpush3.bf16.msra.mxu0 %v14779_v52 }
0x196f   :  { %13231 = vmatprep.subr.bf16.mxu0 %v14790_v58 }
0x1972   :  { %13233 = vmatpush3.bf16.msra.mxu0 %v14790_v58  ;;  %v5351_v58 = vsub.f32 %v15155_v62, %v5347_v51 }
0x1973   :  { %13235 = vmatprep.subr.bf16.mxu0 %v14800_v61 }
0x1976   :  { %13237 = vmatpush3.bf16.msra.mxu0 %v14800_v61 }
0x1a3c   :  { %v12545_v2 = vpop.f32.mrb[38].mxu0 }
0x1a3d   :  { %v5326_v55 = vadd.f32 %v15150_v7, %v12545_v2  ;;  %v5312_v45 = vpop.f32.mrb[39].mxu0 }
0x1a3e   :  { %v5325_v4 = vadd.f32 %v15150_v7, %v5312_v45  ;;  %v5355_v7 = vmul.f32 %v5351_v58, %v5351_v58 }
0x1a3f   :  { %v5330_v5 = vmul.f32 %v5326_v55, %v14537_v31  ;;  %v14150_v55 = vld [vmem:[%s16263_s11] ss:$0 sm:$0xff] }
0x1a40   :  { %v5329_v52 = vmul.f32 %v5325_v4, %v14528_v24  ;;  %v5359_v33 = vsel %vm132_vm0, %v5355_v7, 0.0 }
0x1a41   :  { %v5334_v15 = vadd.f32 %v5330_v5, %v14931_v28 }
0x1a42   :  { %v5333_v35 = vadd.f32 %v5329_v52, %v14928_v23 }
0x1a43   :  { %v5344_v16 = vsel %vm132_vm0, %v5334_v15, 0.0 }
0x1a44   :  { %v5341_v61 = vsel %vm132_vm0, %v5333_v35, 0.0 }
0x1a45   :  { %5342 = vadd.xlane.f32.xlu0 %v5341_v61 }
0x1a49   :  { %5345 = vadd.xlane.f32.xlu0 %v5344_v16 }
0x1a4d   :  { %5360 = vadd.xlane.f32.xlu0 %v5359_v33 }
0x1a51   :  { %5363 = vadd.xlane.f32.xlu0 %v5362_v8 }
0x1ad2   :  { %v5343_v23 = vpop.xlane.xlu0 %5342 }
0x1ad3   :  { %v5349_v62 = vmul.f32 0.03125, %v5343_v23 }
0x1ad5   :  { %v5353_v44 = vsub.f32 %v5333_v35, %v5349_v62 }
0x1ad6   :  { %v5346_v29 = vpop.xlane.xlu0 %5345 }
0x1ad7   :  { %v5350_v46 = vmul.f32 0.03125, %v5346_v29  ;;  %v5357_v22 = vmul.f32 %v5353_v44, %v5353_v44 }
0x1ad9   :  { %v5354_v28 = vsub.f32 %v5334_v15, %v5350_v46  ;;  %v5365_v34 = vsel %vm132_vm0, %v5357_v22, 0.0 }
0x1ada   :  { %5366 = vadd.xlane.f32.xlu0 %v5365_v34  ;;  %v5361_v32 = vpop.xlane.xlu0 %5360 }
0x1adb   :  { %v5371_v38 = vmul.f32 0.03125, %v5361_v32  ;;  %v5358_v56 = vmul.f32 %v5354_v28, %v5354_v28 }
0x1add   :  { %v5375_v60 = vadd.f32 1e-05, %v5371_v38  ;;  %v5368_v63 = vsel %vm132_vm0, %v5358_v56, 0.0 }
0x1ade   :  { %5369 = vadd.xlane.f32.xlu1 %v5368_v63  ;;  %v5364_v10 = vpop.xlane.xlu0 %5363 }
0x1adf   :  { %13935 = vrsqrt.f32 %v5375_v60  ;;  %v5372_v20 = vmul.f32 0.03125, %v5364_v10 }
0x1ae1   :  { %v5376_v48 = vadd.f32 1e-05, %v5372_v20 }
0x1ae3   :  { %13937 = vrsqrt.f32 %v5376_v48 }
0x1ae9   :  { %v13936_v41 = vpop.eup %13935 }
0x1aea   :  { %v5383_v40 = vmul.f32 %v13936_v41, %v5351_v58 }
0x1aec   :  { %v5387_v19 = vmul.f32 %v15212_v43, %v5383_v40 }
0x1aed   :  { %v13938_v42 = vpop.eup %13937 }
0x1aee   :  { %v5384_v11 = vmul.f32 %v13938_v42, %v5352_v49  ;;  %v15221_v26 = vadd.f32 %v15218_v30, %v5387_v19 }
0x1af0   :  { %12554 = vmatprep.mubr.msk.f32.mxu1 %vm132_vm0, %v15221_v26  ;;  %v5388_v47 = vmul.f32 %v15212_v43, %v5384_v11 }
0x1af2   :  { %v15227_v12 = vadd.f32 %v15218_v30, %v5388_v47 }
0x1af4   :  { %12555 = vmatmul.mubr.msk.f32.vlgmr.msra.gmra.mrb[44].mxu1 %vm132_vm0, %v15227_v12 }
0x1b67   :  { %v5367_v14 = vpop.xlane.xlu0 %5366 }
0x1b68   :  { %v5373_v50 = vmul.f32 0.03125, %v5367_v14 }
0x1b6a   :  { %v5377_v9 = vadd.f32 1e-05, %v5373_v50 }
0x1b6b   :  { %v5370_v53 = vpop.xlane.xlu1 %5369 }
0x1b6c   :  { %13939 = vrsqrt.f32 %v5377_v9  ;;  %v5374_v39 = vmul.f32 0.03125, %v5370_v53 }
0x1b6e   :  { %v5378_v36 = vadd.f32 1e-05, %v5374_v39 }
0x1b70   :  { %13941 = vrsqrt.f32 %v5378_v36  ;;  %v14151_v36 = vld [vmem:[%s16265_s13] ss:$0 sm:$0xff]  ;;  %s16365_s13 = sld [smem:[#allocation21_spill]] }
0x1b76   :  { %v13940_v3 = vpop.eup %13939 }
0x1b77   :  { %v5385_v21 = vmul.f32 %v13940_v3, %v5353_v44 }
0x1b79   :  { %v5389_v37 = vmul.f32 %v15212_v43, %v5385_v21 }
0x1b7a   :  { %v13942_v25 = vpop.eup %13941 }
0x1b7b   :  { %v15233_v57 = vadd.f32 %v15218_v30, %v5389_v37  ;;  %v5386_v59 = vmul.f32 %v13942_v25, %v5354_v28 }
0x1b7d   :  { %12557 = vmatprep.mubr.msk.f32.mxu1 %vm132_vm0, %v15233_v57  ;;  %v5390_v1 = vmul.f32 %v15212_v43, %v5386_v59 }
0x1b7f   :  { %v15239_v2 = vadd.f32 %v15218_v30, %v5390_v1 }
0x1b81   :  { %12558 = vmatmul.mubr.msk.f32.gmra.mrb[46].mxu1 %vm132_vm0, %v15239_v2 }
0x1bc7   :  { %v12556_v0 = vpop.f32.mrb[44].mxu1 }
0x1bc8   :  { %v5479_v45 = vadd.f32 %v14150_v55, %v12556_v0  ;;  %v5473_v4 = vpop.f32.mrb[45].mxu1 }
0x1bc9   :  { %v5474_v51 = vadd.f32 %v14150_v55, %v5473_v4 }
0x1bca   :  { %v5497_v5 = vmul.f32 0.044715, %v5479_v45  ;;  %v5493_v62 = vmul.f32 0.5, %v5479_v45 }
0x1bcb   :  { %v5496_v52 = vmul.f32 0.044715, %v5474_v51  ;;  %v5492_v8 = vmul.f32 0.5, %v5474_v51 }
0x1bcc   :  { %v5501_v6 = vmul.f32 %v5497_v5, %v5479_v45 }
0x1bcd   :  { %v5500_v35 = vmul.f32 %v5496_v52, %v5474_v51 }
0x1bce   :  { %v5505_v58 = vmul.f32 %v5501_v6, %v5479_v45 }
0x1bcf   :  { %v5504_v54 = vmul.f32 %v5500_v35, %v5474_v51 }
0x1bd0   :  { %v5509_v61 = vadd.f32 %v5505_v58, %v5479_v45 }
0x1bd1   :  { %v5508_v15 = vadd.f32 %v5504_v54, %v5474_v51 }
0x1bd2   :  { %v5513_v49 = vmul.f32 0.7978846, %v5509_v61 }
0x1bd3   :  { %v5512_v16 = vmul.f32 0.7978846, %v5508_v15 }
0x1bd4   :  { %13943 = vtanh.f32 %v5513_v49 }
0x1bd5   :  { %13945 = vtanh.f32 %v5512_v16 }
0x1bde   :  { %v13944_v7 = vpop.eup %13943 }
0x1bdf   :  { %v13946_v33 = vpop.eup %13945  ;;  %v5521_v17 = vadd.f32 1.0, %v13944_v7 }
0x1be0   :  { %v5520_v23 = vadd.f32 1.0, %v13946_v33 }
0x1be1   :  { %v5525_v29 = vmul.f32 %v5521_v17, %v5493_v62 }
0x1be2   :  { %v5524_v44 = vmul.f32 %v5520_v23, %v5492_v8 }
0x1be4   :  { %12576 = vmatprep.mubr.msk.f32.mxu0 %vm2776_vm4, %v5524_v44 }
0x1be5   :  { %12577 = vmatmul.mubr.msk.f32.vlgmr.msra.gmra.mrb[44].mxu0 %vm2776_vm4, %v5525_v29 }
0x1c54   :  { %v12559_v46 = vpop.f32.mrb[46].mxu1 }
0x1c55   :  { %v5489_v22 = vadd.f32 %v14150_v55, %v12559_v46  ;;  %v5483_v28 = vpop.f32.mrb[47].mxu1 }
0x1c56   :  { %v5484_v34 = vadd.f32 %v14150_v55, %v5483_v28 }
0x1c57   :  { %v5499_v32 = vmul.f32 0.044715, %v5489_v22  ;;  %v5495_v50 = vmul.f32 0.5, %v5489_v22 }
0x1c58   :  { %v5498_v38 = vmul.f32 0.044715, %v5484_v34  ;;  %v5494_v47 = vmul.f32 0.5, %v5484_v34 }
0x1c59   :  { %v5503_v56 = vmul.f32 %v5499_v32, %v5489_v22 }
0x1c5a   :  { %v5502_v60 = vmul.f32 %v5498_v38, %v5484_v34  ;;  %v5691_v38 = vld [vmem:[%s16266_s14 + $0x10] sm:$0xff] }
0x1c5b   :  { %v5507_v63 = vmul.f32 %v5503_v56, %v5489_v22  ;;  %v5692_v56 = vld [vmem:[%s16266_s14 + $0x18] sm:$0xff] }
0x1c5c   :  { %v5506_v10 = vmul.f32 %v5502_v60, %v5484_v34  ;;  %v13708_v60 = vpack.i.bf16 %v5692_v56, %v5691_v38 }
0x1c5d   :  { %v5511_v20 = vadd.f32 %v5507_v63, %v5489_v22 }
0x1c5e   :  { %v5510_v48 = vadd.f32 %v5506_v10, %v5484_v34  ;;  %v5689_v10 = vld [vmem:[%s16266_s14] sm:$0xff] }
0x1c5f   :  { %v5515_v41 = vmul.f32 0.7978846, %v5511_v20  ;;  %v5690_v20 = vld [vmem:[%s16266_s14 + $0x8] sm:$0xff] }
0x1c60   :  { %v5514_v40 = vmul.f32 0.7978846, %v5510_v48 }
0x1c61   :  { %13947 = vtanh.f32 %v5515_v41 }
0x1c62   :  { %13949 = vtanh.f32 %v5514_v40  ;;  %v13703_v40 = vpack.i.bf16 %v5690_v20, %v5689_v10 }
0x1c6b   :  { %v13948_v19 = vpop.eup %13947 }
0x1c6c   :  { %v13950_v42 = vpop.eup %13949  ;;  %v5523_v11 = vadd.f32 1.0, %v13948_v19 }
0x1c6d   :  { %v5522_v14 = vadd.f32 1.0, %v13950_v42  ;;  %v15285_v42 = vld [vmem:[%s16267_s15] ss:$0 sm:$0xff] }
0x1c6e   :  { %v5527_v53 = vmul.f32 %v5523_v11, %v5495_v50 }
0x1c6f   :  { %v5526_v9 = vmul.f32 %v5522_v14, %v5494_v47 }
0x1c71   :  { %12579 = vmatprep.mubr.msk.f32.mxu0 %vm2776_vm4, %v5526_v9 }
0x1c72   :  { %12580 = vmatmul.mubr.msk.f32.gmra.mrb[46].mxu0 %vm2776_vm4, %v5527_v53 }
0x1cb8   :  { %v12578_v39 = vpop.f32.mrb[44].mxu0 }
0x1cb9   :  { %v5612_v3 = vadd.f32 %v14151_v36, %v12578_v39  ;;  %v5606_v21 = vpop.f32.mrb[45].mxu0 }
0x1cba   :  { %v5607_v37 = vadd.f32 %v14151_v36, %v5606_v21 }
0x1cbb   :  { %v5626_v25 = vadd.f32 %v5612_v3, %v15227_v12 }
0x1cbc   :  { %v5625_v59 = vadd.f32 %v5607_v37, %v15221_v26 }
0x1cbd   :  { %v5632_v1 = vsel %vm132_vm0, %v5626_v25, 0.0 }
0x1cbe   :  { %5633 = vadd.xlane.f32.xlu1 %v5632_v1  ;;  %v5629_v0 = vsel %vm132_vm0, %v5625_v59, 0.0 }
0x1cbf   :  { %5630 = vadd.xlane.f32.xlu0 %v5629_v0 }
0x1d45   :  { %v12581_v55 = vpop.f32.mrb[46].mxu0 }
0x1d46   :  { %v5622_v45 = vadd.f32 %v14151_v36, %v12581_v55  ;;  %v5616_v4 = vpop.f32.mrb[47].mxu0 }
0x1d47   :  { %v5617_v51 = vadd.f32 %v14151_v36, %v5616_v4 }
0x1d48   :  { %v5628_v5 = vadd.f32 %v5622_v45, %v15239_v2 }
0x1d49   :  { %v5627_v52 = vadd.f32 %v5617_v51, %v15233_v57 }
0x1d4a   :  { %v5638_v6 = vsel %vm132_vm0, %v5628_v5, 0.0 }
0x1d4b   :  { %v5634_v35 = vpop.xlane.xlu1 %5633  ;;  %5639 = vadd.xlane.f32.xlu1 %v5638_v6  ;;  %v5635_v26 = vsel %vm132_vm0, %v5627_v52, 0.0 }
0x1d4c   :  { %v5642_v12 = vmul.f32 0.03125, %v5634_v35  ;;  %5636 = vadd.xlane.f32.xlu0 %v5635_v26  ;;  %v5631_v58 = vpop.xlane.xlu0 %5630 }
0x1d4d   :  { %v5641_v54 = vmul.f32 0.03125, %v5631_v58  ;;  %v15294_v58 = vpack.c.bf16 %v5692_v56, %v5691_v38 }
0x1d4e   :  { %v5646_v61 = vsub.f32 %v5626_v25, %v5642_v12 }
0x1d4f   :  { %v5645_v15 = vsub.f32 %v5625_v59, %v5641_v54 }
0x1d50   :  { %v5650_v49 = vmul.f32 %v5646_v61, %v5646_v61 }
0x1d51   :  { %v5649_v16 = vmul.f32 %v5645_v15, %v5645_v15 }
0x1d52   :  { %v5656_v7 = vsel %vm132_vm0, %v5650_v49, 0.0 }
0x1d53   :  { %5657 = vadd.xlane.f32.xlu1 %v5656_v7  ;;  %v5653_v2 = vsel %vm132_vm0, %v5649_v16, 0.0  ;;  %v15309_v7 = vld [vmem:[%s16337_s5] sm:$0xff] }
0x1d54   :  { %5654 = vadd.xlane.f32.xlu0 %v5653_v2  ;;  %v14155_v2 = vld [vmem:[%s16337_s5 + $0x18] sm:$0xff] }
0x1dd8   :  { %v5640_v57 = vpop.xlane.xlu1 %5639 }
0x1dd9   :  { %v5644_v33 = vmul.f32 0.03125, %v5640_v57  ;;  %v5637_v17 = vpop.xlane.xlu0 %5636 }
0x1dda   :  { %v5643_v8 = vmul.f32 0.03125, %v5637_v17 }
0x1ddb   :  { %v5648_v23 = vsub.f32 %v5628_v5, %v5644_v33 }
0x1ddc   :  { %v5647_v62 = vsub.f32 %v5627_v52, %v5643_v8  ;;  %v15290_v52 = vpack.c.bf16 %v5690_v20, %v5689_v10 }
0x1ddd   :  { %v5652_v44 = vmul.f32 %v5648_v23, %v5648_v23 }
0x1dde   :  { %v5651_v29 = vmul.f32 %v5647_v62, %v5647_v62 }
0x1ddf   :  { %v5662_v46 = vsel %vm132_vm0, %v5652_v44, 0.0 }
0x1de0   :  { %5663 = vadd.xlane.f32.xlu1 %v5662_v46  ;;  %v5659_v22 = vsel %vm132_vm0, %v5651_v29, 0.0  ;;  %v5658_v11 = vpop.xlane.xlu1 %5657 }
0x1de1   :  { %5660 = vadd.xlane.f32.xlu0 %v5659_v22  ;;  %v5655_v28 = vpop.xlane.xlu0 %5654  ;;  %v5666_v47 = vmul.f32 0.03125, %v5658_v11 }
0x1de2   :  { %v5665_v34 = vmul.f32 0.03125, %v5655_v28 }
0x1de3   :  { %v5670_v14 = vadd.f32 1e-05, %v5666_v47 }
0x1de4   :  { %v5669_v32 = vadd.f32 1e-05, %v5665_v34 }
0x1de6   :  { %13951 = vrsqrt.f32 %v5669_v32 }
0x1de7   :  { %13953 = vrsqrt.f32 %v5670_v14 }
0x1df0   :  { %v13952_v63 = vpop.eup %13951 }
0x1df1   :  { %v5677_v48 = vmul.f32 %v13952_v63, %v5645_v15  ;;  %13709 = vrot.lane.b32.xlu1 %v13708_v60, %s16353_s2  ;;  %v13954_v37 = vpop.eup %13953 }
0x1df2   :  { %v5678_v45 = vmul.f32 %v13954_v37, %v5646_v61 }
0x1df3   :  { %v5681_v41 = vmul.f32 %v15212_v43, %v5677_v48 }
0x1df4   :  { %v5682_v5 = vmul.f32 %v15212_v43, %v5678_v45 }
0x1df5   :  { %v5685_v19 = vadd.f32 %v15218_v30, %v5681_v41  ;;  %5736 = vrot.lane.b32.xlu1 %v15285_v42, %s16353_s2 }
0x1df6   :  { %v5686_v26 = vadd.f32 %v15218_v30, %v5682_v5 }
0x1df7   :  { %12590 = vmatprep.mubr.msk.f32.mxu1 %vm132_vm0, %v5685_v19  ;;  %13704 = vrot.lane.b32.xlu0 %v13703_v40, %s16353_s2 }
0x1e6d   :  { %v5664_v50 = vpop.xlane.xlu1 %5663 }
0x1e6e   :  { %v5668_v9 = vmul.f32 0.03125, %v5664_v50  ;;  %v5661_v53 = vpop.xlane.xlu0 %5660 }
0x1e6f   :  { %v5667_v39 = vmul.f32 0.03125, %v5661_v53 }
0x1e70   :  { %v5672_v36 = vadd.f32 1e-05, %v5668_v9 }
0x1e71   :  { %v5671_v3 = vadd.f32 1e-05, %v5667_v39  ;;  %v13710_v21 = vpop.permute.xlu1 %13709 }
0x1e72   :  { %13955 = vrsqrt.f32 %v5672_v36  ;;  %v13705_v25 = vpop.permute.xlu0 %13704  ;;  %v13712_v59 = vunpack.i.h.bf16 %v13710_v21  ;;  %v13711_v1 = vunpack.i.l.bf16 %v13710_v21 }
0x1e73   :  { %13957 = vrsqrt.f32 %v5671_v3  ;;  %v13707_v0 = vunpack.i.h.bf16 %v13705_v25  ;;  %v13706_v55 = vunpack.i.l.bf16 %v13705_v25 }
0x1e74   :  { %v13242_v51 = vpack.c.bf16 %v13712_v59, %v13711_v1 }
0x1e75   :  { %v13238_v4 = vpack.c.bf16 %v13707_v0, %v13706_v55  ;;  %v5737_v57 = vpop.permute.xlu1 %5736  ;;  %v15397_v0 = vld [vmem:[%s16359_s27 + $0x8] sm:$0xff] }
0x1e77   :  { %13239 = vmatprep.subr.bf16.mxu1 %v13238_v4 }
0x1e78   :  { %13241 = vmatpush3.bf16.msra.mxu1 %v13238_v4  ;;  %v15402_v4 = vld [vmem:[%s16359_s27] sm:$0xff] }
0x1e79   :  { %13243 = vmatprep.subr.bf16.mxu1 %v13242_v51 }
0x1e7c   :  { %v13956_v6 = vpop.eup %13955  ;;  %13245 = vmatpush3.bf16.msra.mxu1 %v13242_v51 }
0x1e7d   :  { %v13958_v35 = vpop.eup %13957  ;;  %13247 = vmatprep.subr.bf16.mxu1 %v15290_v52  ;;  %v5680_v12 = vmul.f32 %v13956_v6, %v5648_v23 }
0x1e7e   :  { %v5679_v54 = vmul.f32 %v13958_v35, %v5647_v62 }
0x1e7f   :  { %12591 = vmatmul.mubr.msk.f32.vlgmr.msra.gmra.mrb[48].mxu1 %vm132_vm0, %v5686_v26  ;;  %v5684_v61 = vmul.f32 %v15212_v43, %v5680_v12 }
0x1e80   :  { %13249 = vmatpush3.bf16.msra.mxu1 %v15290_v52  ;;  %v5683_v15 = vmul.f32 %v15212_v43, %v5679_v54  ;;  %v15316_v43 = vld [vmem:[%s16337_s5 + $0x8] sm:$0xff] }
0x1e81   :  { %13251 = vmatprep.subr.bf16.mxu1 %v15294_v58  ;;  %v5688_v16 = vadd.f32 %v15218_v30, %v5684_v61 }
0x1e82   :  { %v5687_v49 = vadd.f32 %v15218_v30, %v5683_v15  ;;  %v14154_v30 = vld [vmem:[%s16337_s5 + $0x10] sm:$0xff] }
0x1e84   :  { %12593 = vmatprep.mubr.msk.f32.mxu1 %vm132_vm0, %v5687_v49  ;;  %13253 = vmatpush3.bf16.msra.mxu1 %v15294_v58 }
0x1e85   :  { %12594 = vmatmul.mubr.msk.f32.gmra.mrb[50].mxu1 %vm132_vm0, %v5688_v16 }
0x1e86   :  { %12604 = vmatprep.mubr.msk.f32.mxu1 %vm132_vm0, %v15309_v7 }
0x1e89   :  { %12605 = vmatmul.mubr.msk.f32.vlgmr.msra.gmra.mrb[52].mxu1 %vm132_vm0, %v15316_v43 }
0x1e8a   :  { %12607 = vmatprep.mubr.msk.f32.mxu1 %vm132_vm0, %v14154_v30 }
0x1e8d   :  { %12608 = vmatmul.mubr.msk.f32.gmra.mrb[54].mxu1 %vm132_vm0, %v14155_v2 }
0x1f52   :  { %v12592_v33 = vpop.f32.mrb[48].mxu1 }
0x1f53   :  { %v5823_v17 = vadd.f32 %v12592_v33, %v5737_v57  ;;  %v5817_v8 = vpop.f32.mrb[49].mxu1 }
0x1f54   :  { %v5818_v23 = vadd.f32 %v5817_v8, %v5737_v57 }
0x1f55   :  { %v5837_v62 = vmul.f32 %v5823_v17, %v14399_v18 }
0x1f56   :  { %v5836_v44 = vmul.f32 %v5818_v23, %v14391_v13 }
0x1f58   :  { %v12595_v29 = vpop.f32.mrb[50].mxu1  ;;  %v15330_v46 = vpack.i.bf16 %v5837_v62, %v5836_v44  ;;  %v15332_v22 = vpack.c.bf16 %v5837_v62, %v5836_v44 }
0x1f59   :  { %v5833_v28 = vadd.f32 %v12595_v29, %v5737_v57  ;;  %v5827_v34 = vpop.f32.mrb[51].mxu1 }
0x1f5a   :  { %v5828_v32 = vadd.f32 %v5827_v34, %v5737_v57  ;;  %13714 = vrot.lane.b32.xlu0 %v15330_v46, %s16352_s21  ;;  %13256 = vmatprep.subr.msk.bf16.mxu0 %vm14425_vm2, %v15332_v22 }
0x1f5b   :  { %v5839_v38 = vmul.f32 %v5833_v28, %v14537_v31  ;;  %13259 = vmatpush3.bf16.xpose.msk.msra.mxu0 %vm14425_vm2, %v15332_v22 }
0x1f5c   :  { %v5838_v56 = vmul.f32 %v5828_v32, %v14528_v24  ;;  %v12606_v60 = vpop.f32.mrb[52].mxu1 }
0x1f5d   :  { %v5913_v63 = vadd.f32 %v12606_v60, %v15285_v42  ;;  %v5907_v10 = vpop.f32.mrb[53].mxu1 }
0x1f5e   :  { %v5908_v20 = vadd.f32 %v15285_v42, %v5907_v10  ;;  %v15346_v48 = vpack.c.bf16 %v5839_v38, %v5838_v56  ;;  %v15348_v41 = vpack.i.bf16 %v5839_v38, %v5838_v56 }
0x1f5f   :  { %v15351_v40 = vmul.f32 %v5913_v63, %v14399_v18 }
0x1f60   :  { %v15354_v19 = vmul.f32 %v5908_v20, %v14391_v13  ;;  %v15356_v11 = vpop.f32.mrb[54].mxu1 }
0x1f61   :  { %6132 = vrot.lane.b32.xlu0 %v15351_v40, %s16352_s21  ;;  %v15360_v47 = vpop.f32.mrb[55].mxu1 }
0x1f62   :  { %6130 = vrot.lane.b32.xlu1 %v15354_v19, %s16352_s21  ;;  %12614 = vmatprep.mubr.msk.f32.mxu0 %vm260_vm1, %v15354_v19 }
0x1f63   :  { %12615 = vmatmul.mubr.msk.f32.vlgmr.msra.gmra.mrb[48].mxu0 %vm260_vm1, %v15351_v40 }
0x1f65   :  { %6496 = vrot.lane.b32.xlu0 %v15354_v19, %s16356_s12 }
0x1f66   :  { %13719 = vrot.lane.b32.xlu1 %v15330_v46, %s16356_s12 }
0x1f6a   :  { %6498 = vrot.lane.b32.xlu1 %v15351_v40, %s16356_s12 }
0x1fcc   :  { %v13715_v14 = vpop.permute.xlu0 %13714 }
0x1fcd   :  { %v13717_v50 = vunpack.i.h.bf16 %v13715_v14  ;;  %v13716_v9 = vunpack.i.l.bf16 %v13715_v14 }
0x1fcf   :  { %v15374_v53 = vpack.c.bf16 %v13717_v50, %v13716_v9 }
0x1fd1   :  { %13266 = vmatprep.subr.msk.bf16.mxu0 %vm14425_vm2, %v15374_v53 }
0x1fd2   :  { %13269 = vmatpush3.bf16.xpose.msk.msra.mxu0 %vm14425_vm2, %v15374_v53 }
0x1fd3   :  { %v6133_v39 = vpop.permute.xlu0 %6132 }
0x1fd4   :  { %v6131_v36 = vpop.permute.xlu1 %6130 }
0x1fd5   :  { %12628 = vmatprep.mubr.msk.f32.mxu0 %vm260_vm1, %v6131_v36 }
0x1fd7   :  { %v6497_v21 = vpop.permute.xlu0 %6496 }
0x1fd8   :  { %v13720_v3 = vpop.permute.xlu1 %13719 }
0x1fd9   :  { %v13722_v37 = vunpack.i.h.bf16 %v13720_v3  ;;  %v13721_v25 = vunpack.i.l.bf16 %v13720_v3  ;;  %12629 = vmatmul.mubr.msk.f32.vlgmr.msra.gmra.mrb[50].mxu0 %vm260_vm1, %v6133_v39 }
0x1fda   :  { %12652 = vmatprep.mubr.msk.f32.mxu0 %vm260_vm1, %v6497_v21 }
0x1fdb   :  { %v15385_v59 = vpack.c.bf16 %v13722_v37, %v13721_v25 }
0x1fdc   :  { %v6499_v1 = vpop.permute.xlu1 %6498 }
0x1fdd   :  { %13276 = vmatprep.subr.msk.bf16.mxu0 %vm14425_vm2, %v15385_v59 }
0x1fde   :  { %13279 = vmatpush3.bf16.xpose.msk.msra.mxu0 %vm14425_vm2, %v15385_v59 }
0x1fe5   :  { %12653 = vmatmul.mubr.msk.f32.vlgmr.msra.gmra.mrb[52].mxu0 %vm260_vm1, %v6499_v1 }
0x2036   :  { %v12616_v55 = vpop.f32.mrb[48].mxu0 }
0x2037   :  { %v6018_v45 = vmul.f32 0.35355338, %v12616_v55  ;;  %v6008_v51 = vpop.f32.mrb[49].mxu0 }
0x2038   :  { %v6017_v5 = vmul.f32 0.35355338, %v6008_v51 }
0x2039   :  { %v6020_v6 = vsub.f32 %v6018_v45, %v15397_v0 }
0x203a   :  { %v6019_v35 = vsub.f32 %v6017_v5, %v15402_v4 }
0x203b   :  { %v6024_v26 = vsel %vm348_vm3, %v6020_v6, -inf }
0x203c   :  { %6025 = vmax.xlane.f32.xlu1 %v6024_v26  ;;  %v6021_v12 = vsel %vm348_vm3, %v6019_v35, -inf }
0x203d   :  { %6022 = vmax.xlane.f32.xlu0 %v6021_v12 }
0x20ac   :  { %v12630_v54 = vpop.f32.mrb[50].mxu0 }
0x20ad   :  { %v6212_v61 = vpop.f32.mrb[51].mxu0  ;;  %v6222_v15 = vmul.f32 0.35355338, %v12630_v54 }
0x20ae   :  { %v6221_v49 = vmul.f32 0.35355338, %v6212_v61 }
0x20af   :  { %v6224_v30 = vsub.f32 %v6222_v15, %v15397_v0 }
0x20b0   :  { %v6223_v16 = vsub.f32 %v6221_v49, %v15402_v4 }
0x20b1   :  { %v6228_v57 = vsel %vm348_vm3, %v6224_v30, -inf }
0x20b2   :  { %v6225_v2 = vsel %vm348_vm3, %v6223_v16, -inf }
0x20b3   :  { %6226 = vmax.xlane.f32.xlu0 %v6225_v2 }
0x20b7   :  { %6229 = vmax.xlane.f32.xlu0 %v6228_v57 }
0x20b8   :  { %v12654_v33 = vpop.f32.mrb[52].mxu0 }
0x20b9   :  { %v6578_v17 = vpop.f32.mrb[53].mxu0  ;;  %v6588_v1 = vmul.f32 0.35355338, %v12654_v33 }
0x20ba   :  { %v6587_v55 = vmul.f32 0.35355338, %v6578_v17 }
0x20bb   :  { %v6590_v45 = vsub.f32 %v6588_v1, %v15397_v0 }
0x20bc   :  { %v6589_v51 = vsub.f32 %v6587_v55, %v15402_v4 }
0x20be   :  { %v6591_v5 = vsel %vm348_vm3, %v6589_v51, -inf }
0x20c9   :  { %v6026_v8 = vpop.xlane.xlu1 %6025 }
0x20ca   :  { %v6028_v23 = vsub.f32 %v6020_v6, %v6026_v8  ;;  %v6023_v62 = vpop.xlane.xlu0 %6022 }
0x20cb   :  { %v6027_v44 = vsub.f32 %v6019_v35, %v6023_v62 }
0x20cc   :  { %v6031_v29 = vmul.f32 1.442695, %v6028_v23 }
0x20cd   :  { %v6029_v28 = vmul.f32 1.442695, %v6027_v44 }
0x20ce   :  { %13959 = vpow2.f32 %v6031_v29 }
0x20cf   :  { %13961 = vpow2.f32 %v6029_v28 }
0x20d8   :  { %v13960_v34 = vpop.eup %13959 }
0x20d9   :  { %v13962_v32 = vpop.eup %13961  ;;  %v6036_v38 = vsel %vm348_vm3, %v13960_v34, 0.0 }
0x20da   :  { %6037 = vadd.xlane.f32.xlu0 %v6036_v38  ;;  %v6033_v56 = vsel %vm348_vm3, %v13962_v32, 0.0 }
0x20db   :  { %6034 = vadd.xlane.f32.xlu1 %v6033_v56 }
0x2140   :  { %v6227_v60 = vpop.xlane.xlu0 %6226 }
0x2141   :  { %v6231_v63 = vsub.f32 %v6223_v16, %v6227_v60  ;;  %v5923_v60 = vadd.f32 %v15356_v11, %v15285_v42  ;;  %v15483_v11 = vld [vmem:[%s16268_s16 + $0x8] sm:$0xff] }
0x2143   :  { %v6233_v10 = vmul.f32 1.442695, %v6231_v63 }
0x2144   :  { %v6230_v20 = vpop.xlane.xlu0 %6229 }
0x2145   :  { %13963 = vpow2.f32 %v6233_v10  ;;  %v6232_v14 = vsub.f32 %v6224_v30, %v6230_v20 }
0x2147   :  { %v6235_v50 = vmul.f32 1.442695, %v6232_v14 }
0x2149   :  { %13965 = vpow2.f32 %v6235_v50 }
0x214f   :  { %v13964_v9 = vpop.eup %13963 }
0x2150   :  { %v6237_v39 = vsel %vm348_vm3, %v13964_v9, 0.0 }
0x2151   :  { %6238 = vadd.xlane.f32.xlu1 %v6237_v39 }
0x2153   :  { %v13966_v36 = vpop.eup %13965 }
0x2154   :  { %v6240_v3 = vsel %vm348_vm3, %v13966_v36, 0.0 }
0x2155   :  { %6241 = vadd.xlane.f32.xlu0 %v6240_v3 }
0x2162   :  { %13724 = vrot.lane.b32.xlu1 %v15330_v46, %s16353_s2 }
0x2166   :  { %13734 = vrot.lane.b32.xlu1 %v15330_v46, %s16346_s30 }
0x2167   :  { %v6038_v6 = vpop.xlane.xlu0 %6037 }
0x2168   :  { %v6035_v21 = vpop.xlane.xlu1 %6034 }
0x2169   :  { %13967 = vrcp.f32 %v6035_v21  ;;  %v15490_v21 = vld [vmem:[%s16268_s16] sm:$0xff] }
0x216a   :  { %6783 = vrot.lane.b32.xlu1 %v15354_v19, %s16346_s30  ;;  %v6594_v19 = vsel %vm348_vm3, %v6590_v45, -inf  ;;  %13969 = vrcp.f32 %v6038_v6 }
0x216b   :  { %13729 = vrot.lane.b32.xlu0 %v15330_v46, %s16351_s26 }
0x216f   :  { %6785 = vrot.lane.b32.xlu0 %v15351_v40, %s16346_s30 }
0x2173   :  { %v13968_v37 = vpop.eup %13967 }
0x2174   :  { %v6041_v25 = vmul.f32 %v13968_v37, %v13962_v32  ;;  %v13970_v15 = vpop.eup %13969  ;;  %v5918_v32 = vadd.f32 %v15285_v42, %v15360_v47  ;;  %v15468_v47 = vmul.f32 %v5923_v60, %v14537_v31 }
0x2175   :  { %v6042_v8 = vmul.f32 %v13970_v15, %v13960_v34 }
0x2176   :  { %12621 = vmatprep.mubr.msk.f32.mxu1 %vm348_vm3, %v6041_v25  ;;  %v15457_v38 = vmul.f32 %v5918_v32, %v14528_v24 }
0x218e   :  { %6592 = vmax.xlane.f32.xlu1 %v6591_v5  ;;  %6595 = vmax.xlane.f32.xlu0 %v6594_v19 }
0x21de   :  { %v6239_v35 = vpop.xlane.xlu1 %6238 }
0x21df   :  { %13971 = vrcp.f32 %v6239_v35 }
0x21e2   :  { %v13725_v40 = vpop.permute.xlu1 %13724  ;;  %v6242_v26 = vpop.xlane.xlu0 %6241 }
0x21e3   :  { %v13727_v12 = vunpack.i.h.bf16 %v13725_v40  ;;  %v13726_v54 = vunpack.i.l.bf16 %v13725_v40  ;;  %13973 = vrcp.f32 %v6242_v26 }
0x21e5   :  { %v15431_v61 = vpack.c.bf16 %v13727_v12, %v13726_v54 }
0x21e6   :  { %v13735_v49 = vpop.permute.xlu1 %13734  ;;  %v13730_v16 = vpop.permute.xlu0 %13729 }
0x21e7   :  { %v13737_v30 = vunpack.i.h.bf16 %v13735_v49  ;;  %v13736_v2 = vunpack.i.l.bf16 %v13735_v49  ;;  %v13732_v57 = vunpack.i.h.bf16 %v13730_v16  ;;  %v13731_v33 = vunpack.i.l.bf16 %v13730_v16  ;;  %13261 = vmatprep.subr.bf16.mxu1 %v15431_v61 }
0x21e8   :  { %13263 = vmatpush3.bf16.msra.mxu1 %v15431_v61 }
0x21e9   :  { %v13972_v17 = vpop.eup %13971  ;;  %v15435_v23 = vpack.c.bf16 %v13737_v30, %v13736_v2  ;;  %v15437_v62 = vpack.c.bf16 %v13732_v57, %v13731_v33 }
0x21ea   :  { %v6784_v44 = vpop.permute.xlu1 %6783  ;;  %v6245_v29 = vmul.f32 %v13972_v17, %v13964_v9  ;;  %v6786_v56 = vpop.permute.xlu0 %6785 }
0x21eb   :  { %12622 = vmatmul.mubr.msk.f32.vlgmr.msra.gmra.mrb[56].mxu1 %vm348_vm3, %v6042_v8  ;;  %13271 = vmatprep.subr.bf16.mxu1 %v15437_v62 }
0x21ec   :  { %13286 = vmatprep.subr.msk.bf16.mxu0 %vm14425_vm2, %v15435_v23  ;;  %12671 = vmatprep.mubr.msk.f32.mxu0 %vm260_vm1, %v6784_v44 }
0x21ed   :  { %v13974_v28 = vpop.eup %13973  ;;  %13273 = vmatpush3.bf16.msra.mxu1 %v15437_v62  ;;  %12635 = vmatprep.mubr.msk.f32.mxu1 %vm348_vm3, %v6245_v29 }
0x21ee   :  { %13289 = vmatpush3.bf16.xpose.msk.msra.mxu0 %vm14425_vm2, %v15435_v23  ;;  %v6246_v34 = vmul.f32 %v13974_v28, %v13966_v36  ;;  %12638 = vmatprep.subr.mxu1 %v15483_v11 }
0x21ef   :  { %13296 = vmatprep.subr.msk.bf16.mxu0 %vm14425_vm2, %v15346_v48 }
0x21f0   :  { %12636 = vmatmul.mubr.msk.f32.vlgmr.msra.gmra.mrb[58].mxu1 %vm348_vm3, %v6246_v34 }
0x21f1   :  { %12639 = vmatpush3.msra.mxu1 %v15483_v11 }
0x21f2   :  { %12643 = vmatprep.subr.mxu1 %v15490_v21 }
0x21f5   :  { %12672 = vmatmul.mubr.msk.f32.vlgmr.msra.gmra.mrb[54].mxu0 %vm260_vm1, %v6786_v56 }
0x21f6   :  { %13299 = vmatpush3.bf16.xpose.msk.msra.mxu0 %vm14425_vm2, %v15346_v48  ;;  %12690 = vmatprep.mubr.msk.f32.mxu0 %vm260_vm1, %v15457_v38 }
0x21fd   :  { %12691 = vmatmul.mubr.msk.f32.vlgmr.msra.gmra.mrb[56].mxu0 %vm260_vm1, %v15468_v47 }
0x221b   :  { %v6593_v63 = vpop.xlane.xlu1 %6592  ;;  %v6596_v10 = vpop.xlane.xlu0 %6595 }
0x221c   :  { %v6597_v20 = vsub.f32 %v6589_v51, %v6593_v63  ;;  %v6598_v14 = vsub.f32 %v6590_v45, %v6596_v10 }
0x221e   :  { %v6599_v50 = vmul.f32 1.442695, %v6597_v20  ;;  %v6601_v9 = vmul.f32 1.442695, %v6598_v14 }
0x2220   :  { %13975 = vpow2.f32 %v6599_v50 }
0x2221   :  { %13977 = vpow2.f32 %v6601_v9 }
0x222a   :  { %v13976_v39 = vpop.eup %13975 }
0x222b   :  { %v13978_v36 = vpop.eup %13977  ;;  %v6603_v3 = vsel %vm348_vm3, %v13976_v39, 0.0 }
0x222c   :  { %6604 = vadd.xlane.f32.xlu0 %v6603_v3  ;;  %v6606_v42 = vsel %vm348_vm3, %v13978_v36, 0.0 }
0x222d   :  { %6607 = vadd.xlane.f32.xlu1 %v6606_v42 }
0x223e   :  { %13744 = vrot.lane.b32.xlu1 %v15348_v41, %s16352_s21 }
0x2242   :  { %7270 = vrot.lane.b32.xlu1 %v15457_v38, %s16352_s21  ;;  %13739 = vrot.lane.b32.xlu0 %v15330_v46, %s16355_s23 }
0x2246   :  { %7272 = vrot.lane.b32.xlu0 %v15468_v47, %s16352_s21 }
0x22b9   :  { %v6605_v37 = vpop.xlane.xlu0 %6604 }
0x22ba   :  { %v6608_v25 = vpop.xlane.xlu1 %6607  ;;  %13979 = vrcp.f32 %v6605_v37 }
0x22bb   :  { %13981 = vrcp.f32 %v6608_v25  ;;  %v15540_v25 = vld [vmem:[%s16359_s27 + $0x10] sm:$0xff] }
0x22bd   :  { %v13740_v5 = vpop.permute.xlu0 %13739 }
0x22be   :  { %v13745_v1 = vpop.permute.xlu1 %13744  ;;  %v12623_v55 = vpop.f32.mrb[56].mxu1  ;;  %v13742_v35 = vunpack.i.h.bf16 %v13740_v5  ;;  %v13741_v40 = vunpack.i.l.bf16 %v13740_v5 }
0x22bf   :  { %v13747_v45 = vunpack.i.h.bf16 %v13745_v1  ;;  %v13746_v51 = vunpack.i.l.bf16 %v13745_v1  ;;  %v6121_v19 = vpop.f32.mrb[57].mxu1  ;;  %v15545_v1 = vld [vmem:[%s16359_s27 + $0x18] sm:$0xff] }
0x22c0   :  { %v15505_v15 = vpack.c.bf16 %v13742_v35, %v13741_v40 }
0x22c1   :  { %v15495_v6 = vpack.c.bf16 %v13747_v45, %v13746_v51  ;;  %v7273_v2 = vpop.permute.xlu0 %7272 }
0x22c2   :  { %v7271_v26 = vpop.permute.xlu1 %7270 }
0x22c3   :  { %13306 = vmatprep.subr.msk.bf16.mxu0 %vm14425_vm2, %v15495_v6  ;;  %12704 = vmatprep.mubr.msk.f32.mxu0 %vm260_vm1, %v7271_v26  ;;  %v12637_v12 = vpop.f32.mrb[58].mxu1 }
0x22c4   :  { %13309 = vmatpush3.bf16.xpose.msk.msra.mxu0 %vm14425_vm2, %v15495_v6  ;;  %v6325_v54 = vpop.f32.mrb[59].mxu1  ;;  %v13980_v33 = vpop.eup %13979 }
0x22c5   :  { %12640 = vmatprep.mubr.msk.f32.mxu1 %vm260_vm1, %v6325_v54  ;;  %v13982_v44 = vpop.eup %13981  ;;  %v6611_v34 = vmul.f32 %v13980_v33, %v13976_v39 }
0x22c6   :  { %12641 = vmatmul.mubr.msk.f32.vlgmr.msra.gmra.mrb[60].mxu1 %vm260_vm1, %v12637_v12 }
0x22c7   :  { %12644 = vmatpush3.msra.mxu1 %v15490_v21  ;;  %12645 = vmatprep.mubr.msk.f32.mxu1 %vm260_vm1, %v6121_v19 }
0x22c8   :  { %v12673_v49 = vpop.f32.mrb[54].mxu0  ;;  %13281 = vmatprep.subr.bf16.mxu1 %v15505_v15 }
0x22c9   :  { %v6875_v16 = vmul.f32 0.35355338, %v12673_v49  ;;  %v6865_v30 = vpop.f32.mrb[55].mxu0 }
0x22ca   :  { %v6874_v57 = vmul.f32 0.35355338, %v6865_v30 }
0x22cb   :  { %v6877_v17 = vsub.f32 %v6875_v16, %v15397_v0  ;;  %12705 = vmatmul.mubr.msk.f32.vlgmr.msra.gmra.mrb[58].mxu0 %vm260_vm1, %v7273_v2  ;;  %v6612_v0 = vmul.f32 %v13982_v44, %v13978_v36 }
0x22cc   :  { %v6876_v8 = vsub.f32 %v6874_v57, %v15402_v4  ;;  %v15523_v4 = vld [vmem:[%s16268_s16 + $0x10] sm:$0xff] }
0x22cd   :  { %v6881_v29 = vsel %vm348_vm3, %v6877_v17, -inf }
0x22ce   :  { %6882 = vmax.xlane.f32.xlu0 %v6881_v29  ;;  %v6878_v28 = vsel %vm348_vm3, %v6876_v8, -inf  ;;  %12646 = vmatmul.mubr.msk.f32.vlgmr.msra.gmra.mrb[60].mxu1 %vm260_vm1, %v12623_v55 }
0x22cf   :  { %6879 = vmax.xlane.f32.xlu1 %v6878_v28  ;;  %13283 = vmatpush3.bf16.msra.mxu1 %v15505_v15 }
0x22d0   :  { %v12692_v32 = vpop.f32.mrb[56].mxu0  ;;  %12659 = vmatprep.mubr.msk.f32.mxu1 %vm348_vm3, %v6611_v34  ;;  %12662 = vmatprep.subr.mxu1 %v15523_v4 }
0x22d1   :  { %v7148_v56 = vpop.f32.mrb[57].mxu0  ;;  %v7158_v37 = vmul.f32 0.35355338, %v12692_v32 }
0x22d2   :  { %12660 = vmatmul.mubr.msk.f32.vlgmr.msra.gmra.mrb[62].mxu1 %vm348_vm3, %v6612_v0  ;;  %v7157_v42 = vmul.f32 0.35355338, %v7148_v56 }
0x22d3   :  { %12663 = vmatpush3.msra.mxu1 %v15523_v4  ;;  %v7160_v5 = vsub.f32 %v7158_v37, %v15545_v1 }
0x22d4   :  { %v7159_v51 = vsub.f32 %v7157_v42, %v15540_v25 }
0x22d5   :  { %v7164_v12 = vsel %vm348_vm3, %v7160_v5, -inf }
0x22d6   :  { %v7161_v40 = vsel %vm348_vm3, %v7159_v51, -inf }
0x235b   :  { %v6883_v60 = vpop.xlane.xlu0 %6882 }
0x235c   :  { %v6885_v63 = vsub.f32 %v6877_v17, %v6883_v60  ;;  %v6880_v10 = vpop.xlane.xlu1 %6879 }
0x235d   :  { %v6884_v20 = vsub.f32 %v6876_v8, %v6880_v10 }
0x235e   :  { %v6888_v14 = vmul.f32 1.442695, %v6885_v63 }
0x235f   :  { %v6886_v50 = vmul.f32 1.442695, %v6884_v20 }
0x2360   :  { %13983 = vpow2.f32 %v6888_v14 }
0x2361   :  { %13985 = vpow2.f32 %v6886_v50 }
0x236a   :  { %v13984_v9 = vpop.eup %13983 }
0x236b   :  { %v13986_v39 = vpop.eup %13985  ;;  %v6893_v36 = vsel %vm348_vm3, %v13984_v9, 0.0 }
0x236c   :  { %6894 = vadd.xlane.f32.xlu1 %v6893_v36  ;;  %v6890_v3 = vsel %vm348_vm3, %v13986_v39, 0.0 }
0x236d   :  { %6891 = vadd.xlane.f32.xlu0 %v6890_v3 }
0x237d   :  { %13754 = vrot.lane.b32.xlu1 %v15348_v41, %s16356_s12 }
0x2381   :  { %7636 = vrot.lane.b32.xlu1 %v15457_v38, %s16356_s12 }
0x2383   :  { %13749 = vrot.lane.b32.xlu0 %v15330_v46, %s16344_s29 }
0x2387   :  { %7638 = vrot.lane.b32.xlu0 %v15468_v47, %s16356_s12 }
0x239e   :  { %v12706_v55 = vpop.f32.mrb[58].mxu0 }
0x239f   :  { %v7352_v45 = vpop.f32.mrb[59].mxu0  ;;  %v7362_v46 = vmul.f32 0.35355338, %v12706_v55 }
0x23a0   :  { %v7361_v19 = vmul.f32 0.35355338, %v7352_v45 }
0x23a1   :  { %v7364_v35 = vsub.f32 %v7362_v46, %v15545_v1 }
0x23a2   :  { %v7363_v26 = vsub.f32 %v7361_v19, %v15540_v25 }
0x23a3   :  { %v7368_v16 = vsel %vm348_vm3, %v7364_v35, -inf }
0x23a4   :  { %v7365_v30 = vsel %vm348_vm3, %v7363_v26, -inf }
0x23a5   :  { %7162 = vmax.xlane.f32.xlu1 %v7161_v40  ;;  %v12661_v54 = vpop.f32.mrb[62].mxu1 }
0x23a6   :  { %7165 = vmax.xlane.f32.xlu0 %v7164_v12  ;;  %v6691_v49 = vpop.f32.mrb[63].mxu1 }
0x23a7   :  { %12664 = vmatprep.mubr.msk.f32.mxu1 %vm260_vm1, %v6691_v49 }
0x23a8   :  { %12665 = vmatmul.mubr.msk.f32.vlgmr.msra.gmra.mrb[60].mxu1 %vm260_vm1, %v12661_v54 }
0x23a9   :  { %7369 = vmax.xlane.f32.xlu1 %v7368_v16  ;;  %v15585_v16 = vld [vmem:[%s16268_s16 + $0x18] sm:$0xff] }
0x23aa   :  { %7366 = vmax.xlane.f32.xlu0 %v7365_v30 }
0x23f9   :  { %v6895_v2 = vpop.xlane.xlu1 %6894 }
0x23fa   :  { %13987 = vrcp.f32 %v6895_v2  ;;  %v6892_v57 = vpop.xlane.xlu0 %6891 }
0x23fb   :  { %13989 = vrcp.f32 %v6892_v57 }
0x23fd   :  { %v13755_v33 = vpop.permute.xlu1 %13754 }
0x23fe   :  { %v13757_v17 = vunpack.i.h.bf16 %v13755_v33  ;;  %v13756_v8 = vunpack.i.l.bf16 %v13755_v33  ;;  %v13750_v44 = vpop.permute.xlu0 %13749 }
0x23ff   :  { %v13752_v29 = vunpack.i.h.bf16 %v13750_v44  ;;  %v13751_v28 = vunpack.i.l.bf16 %v13750_v44 }
0x2400   :  { %v15557_v34 = vpack.c.bf16 %v13757_v17, %v13756_v8 }
0x2401   :  { %v15559_v32 = vpack.c.bf16 %v13752_v29, %v13751_v28  ;;  %v7637_v0 = vpop.permute.xlu1 %7636 }
0x2402   :  { %13316 = vmatprep.subr.msk.bf16.mxu0 %vm14425_vm2, %v15557_v34  ;;  %12728 = vmatprep.mubr.msk.f32.mxu0 %vm260_vm1, %v7637_v0  ;;  %v7639_v20 = vpop.permute.xlu0 %7638 }
0x2403   :  { %13291 = vmatprep.subr.bf16.mxu1 %v15559_v32  ;;  %13319 = vmatpush3.bf16.xpose.msk.msra.mxu0 %vm14425_vm2, %v15557_v34 }
0x2404   :  { %v13988_v56 = vpop.eup %13987  ;;  %13293 = vmatpush3.bf16.msra.mxu1 %v15559_v32 }
0x2405   :  { %v13990_v60 = vpop.eup %13989  ;;  %v6899_v10 = vmul.f32 %v13988_v56, %v13984_v9  ;;  %12681 = vmatprep.subr.mxu1 %v15585_v16 }
0x2406   :  { %v6898_v63 = vmul.f32 %v13990_v60, %v13986_v39 }
0x2408   :  { %12678 = vmatprep.mubr.msk.f32.mxu1 %vm348_vm3, %v6898_v63 }
0x2409   :  { %12679 = vmatmul.mubr.msk.f32.vlgmr.msra.gmra.mrb[64].mxu1 %vm348_vm3, %v6899_v10 }
0x240a   :  { %12729 = vmatmul.mubr.msk.f32.vlgmr.msra.gmra.mrb[60].mxu0 %vm260_vm1, %v7639_v20  ;;  %12682 = vmatpush3.msra.mxu1 %v15585_v16 }
0x2432   :  { %v7163_v14 = vpop.xlane.xlu1 %7162 }
0x2433   :  { %v7167_v50 = vsub.f32 %v7159_v51, %v7163_v14  ;;  %v7166_v36 = vpop.xlane.xlu0 %7165 }
0x2434   :  { %v7168_v3 = vsub.f32 %v7160_v5, %v7166_v36 }
0x2435   :  { %v7169_v42 = vmul.f32 1.442695, %v7167_v50 }
0x2436   :  { %v7171_v37 = vmul.f32 1.442695, %v7168_v3  ;;  %v7370_v55 = vpop.xlane.xlu1 %7369 }
0x2437   :  { %13991 = vpow2.f32 %v7169_v42  ;;  %v7372_v45 = vsub.f32 %v7364_v35, %v7370_v55  ;;  %v7367_v46 = vpop.xlane.xlu0 %7366 }
0x2438   :  { %13993 = vpow2.f32 %v7171_v37  ;;  %v7371_v39 = vsub.f32 %v7363_v26, %v7367_v46 }
0x2439   :  { %v7375_v9 = vmul.f32 1.442695, %v7372_v45 }
0x243a   :  { %v7373_v19 = vmul.f32 1.442695, %v7371_v39 }
0x243b   :  { %13995 = vpow2.f32 %v7375_v9 }
0x243c   :  { %13997 = vpow2.f32 %v7373_v19 }
0x2441   :  { %v13992_v40 = vpop.eup %13991 }
0x2442   :  { %v13994_v12 = vpop.eup %13993  ;;  %v7173_v54 = vsel %vm348_vm3, %v13992_v40, 0.0 }
0x2443   :  { %7174 = vadd.xlane.f32.xlu0 %v7173_v54  ;;  %v7176_v51 = vsel %vm348_vm3, %v13994_v12, 0.0 }
0x2444   :  { %7177 = vadd.xlane.f32.xlu1 %v7176_v51 }
0x2445   :  { %v15575_v5 = vpop.eup %13995 }
0x2446   :  { %v13998_v49 = vpop.eup %13997  ;;  %v7380_v35 = vsel %vm348_vm3, %v15575_v5, 0.0 }
0x2447   :  { %v7377_v26 = vsel %vm348_vm3, %v13998_v49, 0.0 }
0x2448   :  { %7381 = vadd.xlane.f32.xlu1 %v7380_v35  ;;  %7378 = vadd.xlane.f32.xlu0 %v7377_v26 }
0x2459   :  { %13764 = vrot.lane.b32.xlu1 %v15348_v41, %s16351_s26 }
0x245d   :  { %13769 = vrot.lane.b32.xlu1 %v15348_v41, %s16346_s30 }
0x245e   :  { %13759 = vrot.lane.b32.xlu0 %v15348_v41, %s16353_s2 }
0x2461   :  { %7925 = vrot.lane.b32.xlu1 %v15468_v47, %s16346_s30 }
0x2462   :  { %7923 = vrot.lane.b32.xlu0 %v15457_v38, %s16346_s30 }
0x24d0   :  { %v7175_v30 = vpop.xlane.xlu0 %7174 }
0x24d1   :  { %v7178_v2 = vpop.xlane.xlu1 %7177  ;;  %13999 = vrcp.f32 %v7175_v30 }
0x24d2   :  { %14001 = vrcp.f32 %v7178_v2 }
0x24d5   :  { %v7382_v57 = vpop.xlane.xlu1 %7381  ;;  %v7379_v33 = vpop.xlane.xlu0 %7378 }
0x24d6   :  { %14003 = vrcp.f32 %v7379_v33 }
0x24d7   :  { %14005 = vrcp.f32 %v7382_v57 }
0x24d9   :  { %v13765_v17 = vpop.permute.xlu1 %13764  ;;  %v13760_v8 = vpop.permute.xlu0 %13759 }
0x24da   :  { %v13762_v44 = vunpack.i.h.bf16 %v13760_v8  ;;  %v13761_v29 = vunpack.i.l.bf16 %v13760_v8  ;;  %v13767_v0 = vunpack.i.h.bf16 %v13765_v17  ;;  %v13766_v56 = vunpack.i.l.bf16 %v13765_v17 }
0x24db   :  { %v14000_v28 = vpop.eup %13999 }
0x24dc   :  { %v15597_v60 = vpack.c.bf16 %v13762_v44, %v13761_v29  ;;  %v12680_v47 = vpop.f32.mrb[64].mxu1  ;;  %v14002_v3 = vpop.eup %14001  ;;  %v7181_v37 = vmul.f32 %v14000_v28, %v13992_v40  ;;  %v15602_v55 = vpack.c.bf16 %v13767_v0, %v13766_v56 }
0x24dd   :  { %v12730_v63 = vpop.f32.mrb[60].mxu0  ;;  %v13770_v38 = vpop.permute.xlu1 %13769  ;;  %v7182_v19 = vmul.f32 %v14002_v3, %v13994_v12 }
0x24de   :  { %v7728_v10 = vmul.f32 0.35355338, %v12730_v63  ;;  %v13772_v20 = vunpack.i.h.bf16 %v13770_v38  ;;  %v13771_v14 = vunpack.i.l.bf16 %v13770_v38  ;;  %v7924_v50 = vpop.permute.xlu0 %7923  ;;  %v6978_v36 = vpop.f32.mrb[65].mxu1  ;;  %13301 = vmatprep.subr.bf16.mxu1 %v15597_v60 }
0x24df   :  { %12683 = vmatprep.mubr.msk.f32.mxu1 %vm260_vm1, %v6978_v36  ;;  %v7718_v42 = vpop.f32.mrb[61].mxu0  ;;  %12747 = vmatprep.mubr.msk.f32.mxu0 %vm260_vm1, %v7924_v50 }
0x24e0   :  { %v7730_v45 = vsub.f32 %v7728_v10, %v15545_v1  ;;  %v15605_v46 = vpack.c.bf16 %v13772_v20, %v13771_v14  ;;  %v7727_v39 = vmul.f32 0.35355338, %v7718_v42  ;;  %12684 = vmatmul.mubr.msk.f32.vlgmr.msra.gmra.mrb[60].mxu1 %vm260_vm1, %v12680_v47  ;;  %v14004_v9 = vpop.eup %14003 }
0x24e1   :  { %13303 = vmatpush3.bf16.msra.mxu1 %v15597_v60  ;;  %12697 = vmatprep.mubr.msk.f32.mxu1 %vm348_vm3, %v7181_v37  ;;  %v7385_v51 = vmul.f32 %v14004_v9, %v13998_v49  ;;  %v14006_v35 = vpop.eup %14005  ;;  %v7926_v49 = vpop.permute.xlu1 %7925 }
0x24e2   :  { %v7729_v54 = vsub.f32 %v7727_v39, %v15540_v25  ;;  %13311 = vmatprep.subr.bf16.mxu1 %v15602_v55  ;;  %13326 = vmatprep.subr.msk.bf16.mxu0 %vm14425_vm2, %v15605_v46  ;;  %v7734_v40 = vsel %vm348_vm3, %v7730_v45, -inf  ;;  %v7386_v26 = vmul.f32 %v14006_v35, %v15575_v5 }
0x24e3   :  { %7735 = vmax.xlane.f32.xlu1 %v7734_v40  ;;  %13329 = vmatpush3.bf16.xpose.msk.msra.mxu0 %vm14425_vm2, %v15605_v46 }
0x24e4   :  { %12698 = vmatmul.mubr.msk.f32.vlgmr.msra.gmra.mrb[66].mxu1 %vm348_vm3, %v7182_v19  ;;  %v7731_v12 = vsel %vm348_vm3, %v7729_v54, -inf }
0x24e5   :  { %13313 = vmatpush3.bf16.msra.mxu1 %v15602_v55  ;;  %7732 = vmax.xlane.f32.xlu0 %v7731_v12 }
0x24e6   :  { %12711 = vmatprep.mubr.msk.f32.mxu1 %vm348_vm3, %v7385_v51  ;;  %12714 = vmatprep.subr.mxu1 %v15483_v11 }
0x24e8   :  { %12712 = vmatmul.mubr.msk.f32.vlgmr.msra.gmra.mrb[68].mxu1 %vm348_vm3, %v7386_v26 }
0x24e9   :  { %12715 = vmatpush3.msra.mxu1 %v15483_v11 }
0x24ea   :  { %12748 = vmatmul.mubr.msk.f32.vlgmr.msra.gmra.mrb[62].mxu0 %vm260_vm1, %v7926_v49  ;;  %12719 = vmatprep.subr.mxu1 %v15490_v21 }
0x24f4   :  { %13774 = vrot.lane.b32.xlu1 %v15348_v41, %s16355_s23 }
0x24f8   :  { %13779 = vrot.lane.b32.xlu1 %v15348_v41, %s16344_s29  ;;  %v15638_v41 = vld [vmem:[%s16269_s17] ss:$0 sm:$0xff] }
0x2570   :  { %v7736_v5 = vpop.xlane.xlu1 %7735 }
0x2571   :  { %v7738_v30 = vsub.f32 %v7730_v45, %v7736_v5 }
0x2572   :  { %v7733_v2 = vpop.xlane.xlu0 %7732 }
0x2573   :  { %v7737_v57 = vsub.f32 %v7729_v54, %v7733_v2  ;;  %v7741_v33 = vmul.f32 1.442695, %v7738_v30 }
0x2574   :  { %v13775_v38 = vpop.permute.xlu1 %13774 }
0x2575   :  { %v7739_v17 = vmul.f32 1.442695, %v7737_v57  ;;  %v13777_v50 = vunpack.i.h.bf16 %v13775_v38  ;;  %v13776_v36 = vunpack.i.l.bf16 %v13775_v38 }
0x2577   :  { %14007 = vpow2.f32 %v7739_v17  ;;  %v15648_v39 = vpack.c.bf16 %v13777_v50, %v13776_v36 }
0x2578   :  { %14009 = vpow2.f32 %v7741_v33 }
0x2581   :  { %v14008_v8 = vpop.eup %14007 }
0x2582   :  { %v7743_v44 = vsel %vm348_vm3, %v14008_v8, 0.0  ;;  %v14010_v29 = vpop.eup %14009 }
0x2583   :  { %7744 = vadd.xlane.f32.xlu0 %v7743_v44  ;;  %v7746_v28 = vsel %vm348_vm3, %v14010_v29, 0.0 }
0x2587   :  { %7747 = vadd.xlane.f32.xlu0 %v7746_v28 }
0x25b3   :  { %v12685_v0 = vpop.f32.mrb[60].mxu1 }
0x25b4   :  { %v8217_v56 = vadd.f32 %v12685_v0, %v15638_v41  ;;  %v7059_v47 = vpop.f32.mrb[61].mxu1 }
0x25b6   :  { %v8221_v63 = vmul.f32 %v8217_v56, %v14399_v18  ;;  %v8216_v56 = vadd.f32 %v15638_v41, %v7059_v47 }
0x25b7   :  { %v12699_v10 = vpop.f32.mrb[66].mxu1 }
0x25b8   :  { %v7261_v20 = vpop.f32.mrb[67].mxu1  ;;  %v15643_v14 = vadd.f32 %v15316_v43, %v8221_v63 }
0x25ba   :  { %v8231_v3 = vsel %vm132_vm0, %v15643_v14, 0.0 }
0x25bb   :  { %8232 = vadd.xlane.f32.xlu1 %v8231_v3  ;;  %v12713_v42 = vpop.f32.mrb[68].mxu1 }
0x25bc   :  { %v7465_v37 = vpop.f32.mrb[69].mxu1 }
0x25bd   :  { %12716 = vmatprep.mubr.msk.f32.mxu1 %vm260_vm1, %v7465_v37  ;;  %v12749_v45 = vpop.f32.mrb[62].mxu0 }
0x25be   :  { %12717 = vmatmul.mubr.msk.f32.vlgmr.msra.gmra.mrb[70].mxu1 %vm260_vm1, %v12713_v42  ;;  %v8005_v9 = vpop.f32.mrb[63].mxu0  ;;  %v8015_v43 = vmul.f32 0.35355338, %v12749_v45 }
0x25bf   :  { %12720 = vmatpush3.msra.mxu1 %v15490_v21  ;;  %12721 = vmatprep.mubr.msk.f32.mxu1 %vm260_vm1, %v7261_v20  ;;  %v8014_v19 = vmul.f32 0.35355338, %v8005_v9 }
0x25c0   :  { %13321 = vmatprep.subr.bf16.mxu1 %v15648_v39  ;;  %v8017_v40 = vsub.f32 %v8015_v43, %v15545_v1 }
0x25c1   :  { %v8016_v54 = vsub.f32 %v8014_v19, %v15540_v25  ;;  %v13780_v25 = vpop.permute.xlu1 %13779 }
0x25c2   :  { %v8021_v35 = vsel %vm348_vm3, %v8017_v40, -inf  ;;  %v13782_v1 = vunpack.i.h.bf16 %v13780_v25  ;;  %v13781_v5 = vunpack.i.l.bf16 %v13780_v25 }
0x25c3   :  { %v8018_v51 = vsel %vm348_vm3, %v8016_v54, -inf }
0x25c4   :  { %8019 = vmax.xlane.f32.xlu0 %v8018_v51  ;;  %v15662_v57 = vpack.c.bf16 %v13782_v1, %v13781_v5  ;;  %v5703_v5 = vld [vmem:[%s16272_s20 + $0x10] sm:$0xff] }
0x25c6   :  { %12722 = vmatmul.mubr.msk.f32.vlgmr.msra.gmra.mrb[70].mxu1 %vm260_vm1, %v12699_v10 }
0x25c7   :  { %13323 = vmatpush3.bf16.msra.mxu1 %v15648_v39 }
0x25c8   :  { %8022 = vmax.xlane.f32.xlu0 %v8021_v35  ;;  %12738 = vmatprep.subr.mxu1 %v15523_v4 }
0x2610   :  { %v7745_v21 = vpop.xlane.xlu0 %7744 }
0x2611   :  { %14011 = vrcp.f32 %v7745_v21 }
0x2614   :  { %v7748_v12 = vpop.xlane.xlu0 %7747 }
0x2615   :  { %14013 = vrcp.f32 %v7748_v12 }
0x261b   :  { %v14012_v26 = vpop.eup %14011 }
0x261c   :  { %v7751_v49 = vmul.f32 %v14012_v26, %v14008_v8 }
0x261e   :  { %12735 = vmatprep.mubr.msk.f32.mxu1 %vm348_vm3, %v7751_v49  ;;  %v5702_v49 = vld [vmem:[%s16272_s20 + $0x8] sm:$0xff] }
0x261f   :  { %v14014_v30 = vpop.eup %14013 }
0x2620   :  { %v7752_v2 = vmul.f32 %v14014_v30, %v14010_v29  ;;  %v8220_v29 = vmul.f32 %v8216_v56, %v14391_v13 }
0x2622   :  { %12736 = vmatmul.mubr.msk.f32.vlgmr.msra.gmra.mrb[72].mxu1 %vm348_vm3, %v7752_v2  ;;  %v8224_v20 = vadd.f32 %v15309_v7, %v8220_v29  ;;  %v5706_v2 = vld [vmem:[%s16274_s22] sm:$0xff] }
0x2623   :  { %12739 = vmatpush3.msra.mxu1 %v15523_v4 }
0x2624   :  { %13331 = vmatprep.subr.bf16.mxu1 %v15662_v57  ;;  %v8228_v50 = vsel %vm132_vm0, %v8224_v20, 0.0 }
0x2648   :  { %v8233_v3 = vpop.xlane.xlu1 %8232 }
0x2649   :  { %v8241_v37 = vmul.f32 0.03125, %v8233_v3 }
0x264b   :  { %v8245_v19 = vsub.f32 %v15643_v14, %v8241_v37  ;;  %v5701_v14 = vld [vmem:[%s16272_s20] sm:$0xff]  ;;  %v5708_v37 = vld [vmem:[%s16274_s22 + $0x10] sm:$0xff] }
0x264c   :  { %v15689_v1 = vpack.c.bf16 %v5702_v49, %v5701_v14 }
0x264d   :  { %v8249_v12 = vmul.f32 %v8245_v19, %v8245_v19 }
0x264e   :  { %13335 = vmatprep.subr.bf16.mxu0 %v15689_v1 }
0x264f   :  { %v8255_v25 = vsel %vm132_vm0, %v8249_v12, 0.0  ;;  %13337 = vmatpush3.bf16.msra.mxu0 %v15689_v1 }
0x2651   :  { %v8020_v33 = vpop.xlane.xlu0 %8019 }
0x2652   :  { %v8024_v17 = vsub.f32 %v8016_v54, %v8020_v33  ;;  %v5707_v33 = vld [vmem:[%s16274_s22 + $0x8] sm:$0xff] }
0x2654   :  { %v8026_v44 = vmul.f32 1.442695, %v8024_v17  ;;  %v15710_v17 = vpack.c.bf16 %v5707_v33, %v5706_v2 }
0x2655   :  { %v8023_v28 = vpop.xlane.xlu0 %8022 }
0x2656   :  { %14015 = vpow2.f32 %v8026_v44  ;;  %v8025_v8 = vsub.f32 %v8017_v40, %v8023_v28 }
0x2658   :  { %v8028_v0 = vmul.f32 1.442695, %v8025_v8 }
0x265a   :  { %14017 = vpow2.f32 %v8028_v0 }
0x2660   :  { %v14016_v63 = vpop.eup %14015 }
0x2661   :  { %v8030_v38 = vsel %vm348_vm3, %v14016_v63, 0.0 }
0x2662   :  { %8031 = vadd.xlane.f32.xlu0 %v8030_v38  ;;  %v15716_v38 = vld [vmem:[%s16360_s3] ss:$0 sm:$0xff] }
0x2664   :  { %v14018_v10 = vpop.eup %14017 }
0x2665   :  { %v8033_v4 = vsel %vm348_vm3, %v14018_v10, 0.0 }
0x2666   :  { %8034 = vadd.xlane.f32.xlu0 %v8033_v4  ;;  %v15721_v4 = vld [vmem:[%s16361_s10] ss:$0 sm:$0xff] }
0x266a   :  { %8229 = vadd.xlane.f32.xlu0 %v8228_v50 }
0x26ef   :  { %v8032_v36 = vpop.xlane.xlu0 %8031 }
0x26f0   :  { %14019 = vrcp.f32 %v8032_v36 }
0x26f3   :  { %v8035_v42 = vpop.xlane.xlu0 %8034 }
0x26f4   :  { %14021 = vrcp.f32 %v8035_v42 }
0x26f5   :  { %v12737_v47 = vpop.f32.mrb[72].mxu1 }
0x26f6   :  { %v7831_v45 = vpop.f32.mrb[73].mxu1 }
0x26f7   :  { %12740 = vmatprep.mubr.msk.f32.mxu1 %vm260_vm1, %v7831_v45  ;;  %v8230_v9 = vpop.xlane.xlu0 %8229  ;;  %v5709_v45 = vld [vmem:[%s16274_s22 + $0x18] sm:$0xff] }
0x26f8   :  { %v8240_v43 = vmul.f32 0.03125, %v8230_v9  ;;  %12741 = vmatmul.mubr.msk.f32.vlgmr.msra.gmra.mrb[70].mxu1 %vm260_vm1, %v12737_v47 }
0x26f9   :  { %13333 = vmatpush3.bf16.msra.mxu1 %v15662_v57 }
0x26fa   :  { %v14020_v7 = vpop.eup %14019  ;;  %v8244_v54 = vsub.f32 %v8224_v20, %v8240_v43  ;;  %12757 = vmatprep.subr.mxu1 %v15585_v16 }
0x26fb   :  { %v8038_v40 = vmul.f32 %v14020_v7, %v14016_v63  ;;  %v15747_v7 = vpack.c.bf16 %v5709_v45, %v5708_v37 }
0x26fc   :  { %v8248_v51 = vmul.f32 %v8244_v54, %v8244_v54 }
0x26fd   :  { %12754 = vmatprep.mubr.msk.f32.mxu1 %vm348_vm3, %v8038_v40  ;;  %v5713_v40 = vld [vmem:[%s16274_s22 + $0x38] sm:$0xff] }
0x26fe   :  { %v14022_v35 = vpop.eup %14021  ;;  %v8252_v21 = vsel %vm132_vm0, %v8248_v51, 0.0 }
0x26ff   :  { %v8039_v26 = vmul.f32 %v14022_v35, %v14018_v10  ;;  %8253 = vadd.xlane.f32.xlu0 %v8252_v21  ;;  %v15780_v35 = vld [vmem:[%s16362_s19] ss:$0 sm:$0xff] }
0x2701   :  { %12755 = vmatmul.mubr.msk.f32.vlgmr.msra.gmra.mrb[74].mxu1 %vm348_vm3, %v8039_v26 }
0x2702   :  { %12758 = vmatpush3.msra.mxu1 %v15585_v16  ;;  %v5704_v16 = vld [vmem:[%s16272_s20 + $0x18] sm:$0xff] }
0x2703   :  { %8256 = vadd.xlane.f32.xlu0 %v8255_v25  ;;  %v15699_v30 = vpack.c.bf16 %v5704_v16, %v5703_v5  ;;  %13343 = vmatprep.subr.bf16.mxu1 %v15710_v17 }
0x2705   :  { %13339 = vmatprep.subr.bf16.mxu0 %v15699_v30 }
0x2706   :  { %13341 = vmatpush3.bf16.msra.mxu0 %v15699_v30 }
0x2707   :  { %13359 = vmatprep.subr.bf16.mxu0 %v15290_v52 }
0x278c   :  { %v8254_v44 = vpop.xlane.xlu0 %8253 }
0x278d   :  { %v8264_v28 = vmul.f32 0.03125, %v8254_v44 }
0x278f   :  { %v8268_v8 = vadd.f32 1e-05, %v8264_v28 }
0x2790   :  { %v8257_v0 = vpop.xlane.xlu0 %8256 }
0x2791   :  { %14023 = vrsqrt.f32 %v8268_v8  ;;  %v8265_v56 = vmul.f32 0.03125, %v8257_v0 }
0x2793   :  { %v8269_v63 = vadd.f32 1e-05, %v8265_v56 }
0x2795   :  { %14025 = vrsqrt.f32 %v8269_v63 }
0x279b   :  { %v14024_v29 = vpop.eup %14023 }
0x279c   :  { %v8276_v10 = vmul.f32 %v14024_v29, %v8244_v54  ;;  %v5712_v54 = vld [vmem:[%s16274_s22 + $0x30] sm:$0xff] }
0x279d   :  { %v15769_v51 = vpack.c.bf16 %v5713_v40, %v5712_v54  ;;  %v14156_v54 = vld [vmem:[%s16337_s5 + $0x10] sm:$0xff] }
0x279e   :  { %v8286_v20 = vmul.f32 %v15716_v38, %v8276_v10 }
0x279f   :  { %v14026_v50 = vpop.eup %14025 }
0x27a0   :  { %v8277_v36 = vmul.f32 %v14026_v50, %v8245_v19  ;;  %v15725_v3 = vadd.f32 %v15721_v4, %v8286_v20 }
0x27a2   :  { %12770 = vmatprep.mubr.msk.f32.mxu0 %vm132_vm0, %v15725_v3  ;;  %v8287_v42 = vmul.f32 %v15716_v38, %v8277_v36 }
0x27a4   :  { %v15731_v47 = vadd.f32 %v15721_v4, %v8287_v42 }
0x27a6   :  { %12771 = vmatmul.mubr.msk.f32.vlgmr.msra.gmra.mrb[64].mxu0 %vm132_vm0, %v15731_v47 }
0x27a7   :  { %13361 = vmatpush3.bf16.msra.mxu0 %v15290_v52  ;;  %v5710_v52 = vld [vmem:[%s16274_s22 + $0x20] sm:$0xff] }
0x27a8   :  { %13363 = vmatprep.subr.bf16.mxu0 %v15294_v58 }
0x27ab   :  { %13365 = vmatpush3.bf16.msra.mxu0 %v15294_v58  ;;  %v5711_v58 = vld [vmem:[%s16274_s22 + $0x28] sm:$0xff] }
0x27ac   :  { %13368 = vmatprep.subr.msk.bf16.mxu0 %vm14425_vm2, %v15332_v22  ;;  %v15759_v19 = vpack.c.bf16 %v5711_v58, %v5710_v52 }
0x27d4   :  { %v12756_v9 = vpop.f32.mrb[74].mxu1 }
0x27d5   :  { %v8118_v43 = vpop.f32.mrb[75].mxu1 }
0x27d6   :  { %12759 = vmatprep.mubr.msk.f32.mxu1 %vm260_vm1, %v8118_v43 }
0x27d7   :  { %12760 = vmatmul.mubr.msk.f32.vlgmr.msra.gmra.mrb[70].mxu1 %vm260_vm1, %v12756_v9 }
0x27d8   :  { %13345 = vmatpush3.bf16.msra.mxu1 %v15710_v17 }
0x27d9   :  { %13347 = vmatprep.subr.bf16.mxu1 %v15747_v7 }
0x27dc   :  { %13349 = vmatpush3.bf16.msra.mxu1 %v15747_v7 }
0x27dd   :  { %13351 = vmatprep.subr.bf16.mxu1 %v15759_v19 }
0x27e0   :  { %13353 = vmatpush3.bf16.msra.mxu1 %v15759_v19 }
0x27e1   :  { %13355 = vmatprep.subr.bf16.mxu1 %v15769_v51 }
0x27e4   :  { %13357 = vmatpush3.bf16.msra.mxu1 %v15769_v51 }
0x27e5   :  { %13378 = vmatprep.subr.msk.bf16.mxu1 %vm14425_vm2, %v15374_v53 }
0x2879   :  { %v12772_v21 = vpop.f32.mrb[64].mxu0 }
0x287a   :  { %v8390_v12 = vadd.f32 %v12772_v21, %v15780_v35  ;;  %v8384_v26 = vpop.f32.mrb[65].mxu0 }
0x287b   :  { %v8385_v25 = vadd.f32 %v15780_v35, %v8384_v26 }
0x287c   :  { %v8408_v14 = vmul.f32 0.044715, %v8390_v12  ;;  %v8404_v50 = vmul.f32 0.5, %v8390_v12 }
0x287d   :  { %v8407_v49 = vmul.f32 0.044715, %v8385_v25  ;;  %v8403_v10 = vmul.f32 0.5, %v8385_v25 }
0x287e   :  { %v8412_v5 = vmul.f32 %v8408_v14, %v8390_v12 }
0x287f   :  { %v8411_v16 = vmul.f32 %v8407_v49, %v8385_v25 }
0x2880   :  { %v8416_v2 = vmul.f32 %v8412_v5, %v8390_v12 }
0x2881   :  { %v8415_v33 = vmul.f32 %v8411_v16, %v8385_v25 }
0x2882   :  { %v8420_v44 = vadd.f32 %v8416_v2, %v8390_v12 }
0x2883   :  { %v8419_v28 = vadd.f32 %v8415_v33, %v8385_v25 }
0x2884   :  { %v8424_v8 = vmul.f32 0.7978846, %v8420_v44 }
0x2885   :  { %v8423_v0 = vmul.f32 0.7978846, %v8419_v28  ;;  %v15807_v28 = vld [vmem:[%s16363_s7] ss:$0 sm:$0xff] }
0x2886   :  { %14027 = vtanh.f32 %v8424_v8 }
0x2887   :  { %14029 = vtanh.f32 %v8423_v0 }
0x2890   :  { %v14028_v56 = vpop.eup %14027 }
0x2891   :  { %v14030_v63 = vpop.eup %14029  ;;  %v8432_v29 = vadd.f32 1.0, %v14028_v56 }
0x2892   :  { %v8431_v20 = vadd.f32 1.0, %v14030_v63 }
0x2893   :  { %v8436_v42 = vmul.f32 %v8432_v29, %v8404_v50 }
0x2894   :  { %v8435_v36 = vmul.f32 %v8431_v20, %v8403_v10 }
0x2896   :  { %12792 = vmatprep.mubr.msk.f32.mxu1 %vm2776_vm4, %v8435_v36 }
0x2897   :  { %12793 = vmatmul.mubr.msk.f32.vlgmr.msra.gmra.mrb[76].mxu1 %vm2776_vm4, %v8436_v42 }
0x2898   :  { %13381 = vmatpush3.bf16.xpose.msk.msra.mxu1 %vm14425_vm2, %v15374_v53  ;;  %v14157_v53 = vld [vmem:[%s16337_s5 + $0x18] sm:$0xff] }
0x2899   :  { %12840 = vmatprep.subr.mxu1 %v15483_v11 }
0x28aa   :  { %v12761_v37 = vpop.f32.mrb[70].mxu1 }
0x28ab   :  { %v8219_v45 = vadd.f32 %v12761_v37, %v15638_v41  ;;  %v8199_v9 = vpop.f32.mrb[71].mxu1 }
0x28ac   :  { %v8218_v43 = vadd.f32 %v15638_v41, %v8199_v9 }
0x28ad   :  { %v8223_v52 = vmul.f32 %v8219_v45, %v14537_v31 }
0x28ae   :  { %v8222_v58 = vmul.f32 %v8218_v43, %v14528_v24 }
0x28af   :  { %v8227_v11 = vadd.f32 %v14157_v53, %v8223_v52 }
0x28b0   :  { %v8226_v40 = vadd.f32 %v14156_v54, %v8222_v58 }
0x28b1   :  { %v8237_v12 = vsel %vm132_vm0, %v8227_v11, 0.0 }
0x28b2   :  { %v8234_v21 = vsel %vm132_vm0, %v8226_v40, 0.0 }
0x28b3   :  { %8235 = vadd.xlane.f32.xlu0 %v8234_v21 }
0x28b7   :  { %8238 = vadd.xlane.f32.xlu0 %v8237_v12 }
0x2940   :  { %v8236_v41 = vpop.xlane.xlu0 %8235 }
0x2941   :  { %v8242_v26 = vmul.f32 0.03125, %v8236_v41 }
0x2943   :  { %v8246_v25 = vsub.f32 %v8226_v40, %v8242_v26 }
0x2944   :  { %v8239_v14 = vpop.xlane.xlu0 %8238 }
0x2945   :  { %v8243_v49 = vmul.f32 0.03125, %v8239_v14  ;;  %v8250_v5 = vmul.f32 %v8246_v25, %v8246_v25 }
0x2947   :  { %v8247_v16 = vsub.f32 %v8227_v11, %v8243_v49  ;;  %v8258_v2 = vsel %vm132_vm0, %v8250_v5, 0.0 }
0x2948   :  { %8259 = vadd.xlane.f32.xlu0 %v8258_v2 }
0x2949   :  { %v8251_v33 = vmul.f32 %v8247_v16, %v8247_v16 }
0x294b   :  { %v8261_v44 = vsel %vm132_vm0, %v8251_v33, 0.0 }
0x294c   :  { %8262 = vadd.xlane.f32.xlu0 %v8261_v44 }
0x296a   :  { %v12794_v8 = vpop.f32.mrb[76].mxu1 }
0x296b   :  { %v8523_v0 = vpop.f32.mrb[77].mxu1  ;;  %v8529_v56 = vadd.f32 %v12794_v8, %v15807_v28 }
0x296c   :  { %v8524_v63 = vadd.f32 %v15807_v28, %v8523_v0 }
0x296d   :  { %v8543_v10 = vadd.f32 %v8529_v56, %v15731_v47 }
0x296e   :  { %v8542_v29 = vadd.f32 %v8524_v63, %v15725_v3 }
0x296f   :  { %v8549_v50 = vsel %vm132_vm0, %v8543_v10, 0.0 }
0x2970   :  { %v8546_v20 = vsel %vm132_vm0, %v8542_v29, 0.0 }
0x2971   :  { %8547 = vadd.xlane.f32.xlu0 %v8546_v20 }
0x2975   :  { %8550 = vadd.xlane.f32.xlu0 %v8549_v50 }
0x29d5   :  { %v8260_v36 = vpop.xlane.xlu0 %8259 }
0x29d6   :  { %v8266_v42 = vmul.f32 0.03125, %v8260_v36 }
0x29d8   :  { %v8270_v37 = vadd.f32 1e-05, %v8266_v42 }
0x29d9   :  { %v8263_v45 = vpop.xlane.xlu0 %8262 }
0x29da   :  { %14031 = vrsqrt.f32 %v8270_v37  ;;  %v8267_v9 = vmul.f32 0.03125, %v8263_v45 }
0x29dc   :  { %v8271_v43 = vadd.f32 1e-05, %v8267_v9 }
0x29de   :  { %14033 = vrsqrt.f32 %v8271_v43 }
0x29e4   :  { %v14032_v52 = vpop.eup %14031 }
0x29e5   :  { %v8278_v58 = vmul.f32 %v14032_v52, %v8246_v25 }
0x29e7   :  { %v8288_v3 = vmul.f32 %v15716_v38, %v8278_v58 }
0x29e8   :  { %v14034_v54 = vpop.eup %14033 }
0x29e9   :  { %v15817_v47 = vadd.f32 %v15721_v4, %v8288_v3  ;;  %v8279_v40 = vmul.f32 %v14034_v54, %v8247_v16 }
0x29eb   :  { %12773 = vmatprep.mubr.msk.f32.mxu0 %vm132_vm0, %v15817_v47  ;;  %v8289_v21 = vmul.f32 %v15716_v38, %v8279_v40 }
0x29ed   :  { %v15823_v53 = vadd.f32 %v15721_v4, %v8289_v21 }
0x29ef   :  { %12774 = vmatmul.mubr.msk.f32.gmra.mrb[66].mxu0 %vm132_vm0, %v15823_v53 }
0x29fe   :  { %v8548_v11 = vpop.xlane.xlu0 %8547 }
0x29ff   :  { %v8558_v12 = vmul.f32 0.03125, %v8548_v11 }
0x2a01   :  { %v8562_v41 = vsub.f32 %v8542_v29, %v8558_v12 }
0x2a02   :  { %v8551_v26 = vpop.xlane.xlu0 %8550 }
0x2a03   :  { %v8559_v25 = vmul.f32 0.03125, %v8551_v26  ;;  %v8566_v14 = vmul.f32 %v8562_v41, %v8562_v41 }
0x2a05   :  { %v8563_v49 = vsub.f32 %v8543_v10, %v8559_v25  ;;  %v8570_v5 = vsel %vm132_vm0, %v8566_v14, 0.0 }
0x2a06   :  { %8571 = vadd.xlane.f32.xlu0 %v8570_v5 }
0x2a07   :  { %v8567_v16 = vmul.f32 %v8563_v49, %v8563_v49 }
0x2a09   :  { %v8573_v2 = vsel %vm132_vm0, %v8567_v16, 0.0 }
0x2a0a   :  { %8574 = vadd.xlane.f32.xlu1 %v8573_v2 }
0x2a93   :  { %v8572_v33 = vpop.xlane.xlu0 %8571 }
0x2a94   :  { %v8582_v44 = vmul.f32 0.03125, %v8572_v33 }
0x2a96   :  { %v8586_v8 = vadd.f32 1e-05, %v8582_v44 }
0x2a97   :  { %v8575_v0 = vpop.xlane.xlu1 %8574 }
0x2a98   :  { %14035 = vrsqrt.f32 %v8586_v8  ;;  %v8583_v56 = vmul.f32 0.03125, %v8575_v0 }
0x2a9a   :  { %v8587_v63 = vadd.f32 1e-05, %v8583_v56 }
0x2a9c   :  { %14037 = vrsqrt.f32 %v8587_v63 }
0x2aa2   :  { %v14036_v29 = vpop.eup %14035 }
0x2aa3   :  { %v8594_v20 = vmul.f32 %v14036_v29, %v8562_v41 }
0x2aa5   :  { %v8598_v50 = vmul.f32 %v15716_v38, %v8594_v20 }
0x2aa6   :  { %v14038_v10 = vpop.eup %14037 }
0x2aa7   :  { %v8595_v36 = vmul.f32 %v14038_v10, %v8563_v49  ;;  %v15831_v42 = vadd.f32 %v15721_v4, %v8598_v50 }
0x2aa9   :  { %v8599_v37 = vmul.f32 %v15716_v38, %v8595_v36  ;;  %12806 = vmatprep.mubr.msk.f32.mxu0 %vm132_vm0, %v15831_v42 }
0x2aab   :  { %v15837_v45 = vadd.f32 %v15721_v4, %v8599_v37 }
0x2aad   :  { %12807 = vmatmul.mubr.msk.f32.vlgmr.msra.gmra.mrb[68].mxu0 %vm132_vm0, %v15837_v45 }
0x2aae   :  { %13371 = vmatpush3.bf16.xpose.msk.msra.mxu0 %vm14425_vm2, %v15332_v22 }
0x2aaf   :  { %13373 = vmatprep.subr.bf16.mxu0 %v15431_v61 }
0x2ac2   :  { %v12775_v9 = vpop.f32.mrb[66].mxu0 }
0x2ac3   :  { %v8400_v43 = vadd.f32 %v12775_v9, %v15780_v35  ;;  %v8394_v52 = vpop.f32.mrb[67].mxu0 }
0x2ac4   :  { %v8395_v58 = vadd.f32 %v15780_v35, %v8394_v52 }
0x2ac5   :  { %v8410_v3 = vmul.f32 0.044715, %v8400_v43  ;;  %v8406_v33 = vmul.f32 0.5, %v8400_v43 }
0x2ac6   :  { %v8409_v54 = vmul.f32 0.044715, %v8395_v58  ;;  %v8405_v16 = vmul.f32 0.5, %v8395_v58 }
0x2ac7   :  { %v8414_v40 = vmul.f32 %v8410_v3, %v8400_v43 }
0x2ac8   :  { %v8413_v21 = vmul.f32 %v8409_v54, %v8395_v58 }
0x2ac9   :  { %v8418_v11 = vmul.f32 %v8414_v40, %v8400_v43 }
0x2aca   :  { %v8417_v12 = vmul.f32 %v8413_v21, %v8395_v58 }
0x2acb   :  { %v8422_v41 = vadd.f32 %v8418_v11, %v8400_v43 }
0x2acc   :  { %v8421_v26 = vadd.f32 %v8417_v12, %v8395_v58 }
0x2acd   :  { %v8426_v25 = vmul.f32 0.7978846, %v8422_v41 }
0x2ace   :  { %v8425_v14 = vmul.f32 0.7978846, %v8421_v26 }
0x2acf   :  { %14039 = vtanh.f32 %v8426_v25 }
0x2ad0   :  { %14041 = vtanh.f32 %v8425_v14 }
0x2ad9   :  { %v14040_v22 = vpop.eup %14039 }
0x2ada   :  { %v14042_v49 = vpop.eup %14041  ;;  %v8434_v5 = vadd.f32 1.0, %v14040_v22 }
0x2adb   :  { %v8433_v2 = vadd.f32 1.0, %v14042_v49 }
0x2adc   :  { %v8438_v35 = vmul.f32 %v8434_v5, %v8406_v33 }
0x2add   :  { %v8437_v44 = vmul.f32 %v8433_v2, %v8405_v16 }
0x2adf   :  { %12795 = vmatprep.mubr.msk.f32.mxu1 %vm2776_vm4, %v8437_v44  ;;  %v15879_v44 = vld [vmem:[%s16268_s16 + $0x8] sm:$0xff] }
0x2ae0   :  { %12796 = vmatmul.mubr.msk.f32.gmra.mrb[78].mxu1 %vm2776_vm4, %v8438_v35  ;;  %v15885_v35 = vld [vmem:[%s16268_s16] sm:$0xff] }
0x2b80   :  { %v12808_v8 = vpop.f32.mrb[68].mxu0 }
0x2b81   :  { %v8684_v0 = vpop.f32.mrb[69].mxu0 }
0x2bb3   :  { %v12797_v56 = vpop.f32.mrb[78].mxu1 }
0x2bb4   :  { %v8539_v63 = vadd.f32 %v12797_v56, %v15807_v28  ;;  %v8533_v29 = vpop.f32.mrb[79].mxu1 }
0x2bb5   :  { %v8534_v20 = vadd.f32 %v15807_v28, %v8533_v29 }
0x2bb6   :  { %v8545_v50 = vadd.f32 %v8539_v63, %v15823_v53 }
0x2bb7   :  { %v8544_v10 = vadd.f32 %v8534_v20, %v15817_v47  ;;  %v15860_v47 = vld [vmem:[%s16267_s15] ss:$0 sm:$0xff] }
0x2bb8   :  { %v8555_v36 = vsel %vm132_vm0, %v8545_v50, 0.0  ;;  %v8690_v11 = vadd.f32 %v15860_v47, %v12808_v8  ;;  %v8685_v41 = vadd.f32 %v15860_v47, %v8684_v0 }
0x2bb9   :  { %8556 = vadd.xlane.f32.xlu1 %v8555_v36  ;;  %v8552_v37 = vsel %vm132_vm0, %v8544_v10, 0.0 }
0x2bba   :  { %8553 = vadd.xlane.f32.xlu0 %v8552_v37  ;;  %v15864_v12 = vmul.f32 %v8690_v11, %v14399_v18  ;;  %v15870_v26 = vmul.f32 %v8685_v41, %v14391_v13 }
0x2c46   :  { %v8557_v9 = vpop.xlane.xlu1 %8556 }
0x2c47   :  { %v8561_v43 = vmul.f32 0.03125, %v8557_v9  ;;  %v8554_v52 = vpop.xlane.xlu0 %8553 }
0x2c48   :  { %v8560_v58 = vmul.f32 0.03125, %v8554_v52 }
0x2c49   :  { %v8565_v3 = vsub.f32 %v8545_v50, %v8561_v43 }
0x2c4a   :  { %v8564_v54 = vsub.f32 %v8544_v10, %v8560_v58 }
0x2c4b   :  { %v8569_v40 = vmul.f32 %v8565_v3, %v8565_v3 }
0x2c4c   :  { %v8568_v21 = vmul.f32 %v8564_v54, %v8564_v54 }
0x2c4d   :  { %v8579_v28 = vsel %vm132_vm0, %v8569_v40, 0.0  ;;  %v15913_v40 = vld [vmem:[%s16359_s27 + $0x8] sm:$0xff] }
0x2c4e   :  { %8580 = vadd.xlane.f32.xlu1 %v8579_v28  ;;  %v8576_v53 = vsel %vm132_vm0, %v8568_v21, 0.0  ;;  %v15919_v21 = vld [vmem:[%s16359_s27] sm:$0xff] }
0x2c4f   :  { %8577 = vadd.xlane.f32.xlu0 %v8576_v53 }
0x2c5f   :  { %8897 = vrot.lane.b32.xlu1 %v15864_v12, %s16352_s21 }
0x2c65   :  { %8895 = vrot.lane.b32.xlu0 %v15870_v26, %s16352_s21 }
0x2cdb   :  { %v8581_v25 = vpop.xlane.xlu1 %8580 }
0x2cdc   :  { %v8585_v14 = vmul.f32 0.03125, %v8581_v25  ;;  %v8578_v22 = vpop.xlane.xlu0 %8577 }
0x2cdd   :  { %v8584_v49 = vmul.f32 0.03125, %v8578_v22 }
0x2cde   :  { %v8589_v5 = vadd.f32 1e-05, %v8585_v14 }
0x2cdf   :  { %v8588_v16 = vadd.f32 1e-05, %v8584_v49  ;;  %v8898_v33 = vpop.permute.xlu1 %8897 }
0x2ce0   :  { %14043 = vrsqrt.f32 %v8589_v5  ;;  %v8896_v2 = vpop.permute.xlu0 %8895 }
0x2ce1   :  { %14045 = vrsqrt.f32 %v8588_v16  ;;  %12830 = vmatprep.mubr.msk.f32.mxu1 %vm260_vm1, %v8896_v2 }
0x2ce2   :  { %12831 = vmatmul.mubr.msk.f32.vlgmr.msra.gmra.mrb[80].mxu1 %vm260_vm1, %v8898_v33 }
0x2ce3   :  { %12841 = vmatpush3.msra.mxu1 %v15879_v44 }
0x2ce4   :  { %12845 = vmatprep.subr.mxu1 %v15885_v35 }
0x2cea   :  { %v14044_v8 = vpop.eup %14043 }
0x2ceb   :  { %v14046_v0 = vpop.eup %14045  ;;  %v8597_v56 = vmul.f32 %v14044_v8, %v8565_v3 }
0x2cec   :  { %v8596_v63 = vmul.f32 %v14046_v0, %v8564_v54 }
0x2ced   :  { %v8601_v29 = vmul.f32 %v15716_v38, %v8597_v56 }
0x2cee   :  { %v8600_v20 = vmul.f32 %v15716_v38, %v8596_v63 }
0x2cef   :  { %v15894_v10 = vadd.f32 %v15721_v4, %v8601_v29 }
0x2cf0   :  { %v15891_v50 = vadd.f32 %v15721_v4, %v8600_v20 }
0x2cf2   :  { %12809 = vmatprep.mubr.msk.f32.mxu0 %vm132_vm0, %v15891_v50 }
0x2cf3   :  { %12810 = vmatmul.mubr.msk.f32.gmra.mrb[70].mxu0 %vm132_vm0, %v15894_v10 }
0x2cf4   :  { %12816 = vmatprep.mubr.msk.f32.mxu0 %vm260_vm1, %v15870_v26 }
0x2cf7   :  { %12817 = vmatmul.mubr.msk.f32.vlgmr.msra.gmra.mrb[72].mxu0 %vm260_vm1, %v15864_v12 }
0x2cf8   :  { %13375 = vmatpush3.bf16.msra.mxu0 %v15431_v61 }
0x2cf9   :  { %13383 = vmatprep.subr.bf16.mxu0 %v15437_v62 }
0x2db5   :  { %v12832_v38 = vpop.f32.mrb[80].mxu1 }
0x2db6   :  { %v8969_v36 = vpop.f32.mrb[81].mxu1  ;;  %v8979_v3 = vmul.f32 0.35355338, %v12832_v38 }
0x2db7   :  { %v8978_v43 = vmul.f32 0.35355338, %v8969_v36 }
0x2db8   :  { %v8981_v41 = vsub.f32 %v8979_v3, %v15913_v40 }
0x2db9   :  { %v8980_v53 = vsub.f32 %v8978_v43, %v15919_v21 }
0x2dba   :  { %v8985_v22 = vsel %vm348_vm3, %v8981_v41, -inf }
0x2dbb   :  { %v8982_v14 = vsel %vm348_vm3, %v8980_v53, -inf }
0x2dc6   :  { %v15906_v4 = vpop.f32.mrb[70].mxu0 }
0x2dc7   :  { %v15908_v37 = vpop.f32.mrb[71].mxu0 }
0x2dca   :  { %v12818_v9 = vpop.f32.mrb[72].mxu0 }
0x2dcb   :  { %v8789_v52 = vmul.f32 0.35355338, %v12818_v9  ;;  %v8779_v58 = vpop.f32.mrb[73].mxu0 }
0x2dcc   :  { %v8788_v54 = vmul.f32 0.35355338, %v8779_v58 }
0x2dcd   :  { %v8791_v61 = vsub.f32 %v8789_v52, %v15913_v40 }
0x2dce   :  { %v8790_v28 = vsub.f32 %v8788_v54, %v15919_v21 }
0x2dcf   :  { %v8795_v11 = vsel %vm348_vm3, %v8791_v61, -inf }
0x2dd0   :  { %8796 = vmax.xlane.f32.xlu0 %v8795_v11  ;;  %v8792_v25 = vsel %vm348_vm3, %v8790_v28, -inf }
0x2dd1   :  { %8793 = vmax.xlane.f32.xlu1 %v8792_v25 }
0x2dd4   :  { %8983 = vmax.xlane.f32.xlu0 %v8982_v14 }
0x2dd5   :  { %8986 = vmax.xlane.f32.xlu1 %v8985_v22 }
0x2e5d   :  { %v8797_v49 = vpop.xlane.xlu0 %8796 }
0x2e5e   :  { %v8799_v5 = vsub.f32 %v8791_v61, %v8797_v49  ;;  %v8794_v16 = vpop.xlane.xlu1 %8793 }
0x2e5f   :  { %v8798_v2 = vsub.f32 %v8790_v28, %v8794_v16 }
0x2e60   :  { %v8802_v33 = vmul.f32 1.442695, %v8799_v5 }
0x2e61   :  { %v8800_v8 = vmul.f32 1.442695, %v8798_v2  ;;  %v8984_v0 = vpop.xlane.xlu0 %8983 }
0x2e62   :  { %14047 = vpow2.f32 %v8802_v33  ;;  %v8988_v56 = vsub.f32 %v8980_v53, %v8984_v0  ;;  %v8987_v63 = vpop.xlane.xlu1 %8986 }
0x2e63   :  { %14049 = vpow2.f32 %v8800_v8  ;;  %v8989_v29 = vsub.f32 %v8981_v41, %v8987_v63 }
0x2e64   :  { %v8990_v20 = vmul.f32 1.442695, %v8988_v56 }
0x2e65   :  { %v8992_v38 = vmul.f32 1.442695, %v8989_v29 }
0x2e66   :  { %14051 = vpow2.f32 %v8990_v20  ;;  %v16000_v20 = vld [vmem:[%s16268_s16 + $0x10] sm:$0xff] }
0x2e67   :  { %14053 = vpow2.f32 %v8992_v38 }
0x2e6c   :  { %v14048_v36 = vpop.eup %14047 }
0x2e6d   :  { %v14050_v9 = vpop.eup %14049  ;;  %v8807_v43 = vsel %vm348_vm3, %v14048_v36, 0.0 }
0x2e6e   :  { %8808 = vadd.xlane.f32.xlu1 %v8807_v43  ;;  %v8804_v52 = vsel %vm348_vm3, %v14050_v9, 0.0 }
0x2e6f   :  { %8805 = vadd.xlane.f32.xlu0 %v8804_v52 }
0x2e70   :  { %v14052_v58 = vpop.eup %14051 }
0x2e71   :  { %v14054_v3 = vpop.eup %14053  ;;  %v8994_v54 = vsel %vm348_vm3, %v14052_v58, 0.0 }
0x2e72   :  { %v8997_v61 = vsel %vm348_vm3, %v14054_v3, 0.0 }
0x2e73   :  { %8998 = vadd.xlane.f32.xlu1 %v8997_v61  ;;  %8995 = vadd.xlane.f32.xlu0 %v8994_v54 }
0x2e84   :  { %9249 = vrot.lane.b32.xlu1 %v15864_v12, %s16356_s12 }
0x2e88   :  { %9520 = vrot.lane.b32.xlu1 %v15870_v26, %s16346_s30 }
0x2e89   :  { %9247 = vrot.lane.b32.xlu0 %v15870_v26, %s16356_s12 }
0x2e8d   :  { %9522 = vrot.lane.b32.xlu0 %v15864_v12, %s16346_s30 }
0x2efb   :  { %v8809_v28 = vpop.xlane.xlu1 %8808 }
0x2efc   :  { %14055 = vrcp.f32 %v8809_v28  ;;  %v8806_v53 = vpop.xlane.xlu0 %8805 }
0x2efd   :  { %14057 = vrcp.f32 %v8806_v53 }
0x2f00   :  { %v8999_v11 = vpop.xlane.xlu1 %8998  ;;  %v8996_v41 = vpop.xlane.xlu0 %8995 }
0x2f01   :  { %14059 = vrcp.f32 %v8999_v11 }
0x2f02   :  { %14061 = vrcp.f32 %v8996_v41 }
0x2f04   :  { %v9248_v2 = vpop.permute.xlu0 %9247  ;;  %v9250_v33 = vpop.permute.xlu1 %9249 }
0x2f06   :  { %v14056_v25 = vpop.eup %14055 }
0x2f07   :  { %v14058_v14 = vpop.eup %14057  ;;  %v8813_v49 = vmul.f32 %v14056_v25, %v14048_v36 }
0x2f08   :  { %v8812_v22 = vmul.f32 %v14058_v14, %v14050_v9  ;;  %v9523_v0 = vpop.permute.xlu0 %9522 }
0x2f0a   :  { %12823 = vmatprep.mubr.msk.f32.mxu0 %vm348_vm3, %v8812_v22 }
0x2f0b   :  { %v14060_v5 = vpop.eup %14059  ;;  %12824 = vmatmul.mubr.msk.f32.vlgmr.msra.gmra.mrb[74].mxu0 %vm348_vm3, %v8813_v49 }
0x2f0c   :  { %v14062_v26 = vpop.eup %14061  ;;  %v9003_v16 = vmul.f32 %v14060_v5, %v14054_v3  ;;  %13385 = vmatpush3.bf16.msra.mxu0 %v15437_v62  ;;  %v9521_v62 = vpop.permute.xlu1 %9520 }
0x2f0d   :  { %13388 = vmatprep.subr.msk.bf16.mxu0 %vm14425_vm2, %v15385_v59  ;;  %v9002_v12 = vmul.f32 %v14062_v26, %v14052_v58 }
0x2f0f   :  { %12837 = vmatprep.mubr.msk.f32.mxu0 %vm348_vm3, %v9002_v12 }
0x2f10   :  { %12838 = vmatmul.mubr.msk.f32.vlgmr.msra.gmra.mrb[76].mxu0 %vm348_vm3, %v9003_v16 }
0x2f11   :  { %12854 = vmatprep.mubr.msk.f32.mxu0 %vm260_vm1, %v9248_v2 }
0x2f15   :  { %13391 = vmatpush3.bf16.xpose.msk.msra.mxu0 %vm14425_vm2, %v15385_v59  ;;  %v8695_v59 = vadd.f32 %v15860_v47, %v15908_v37 }
0x2f16   :  { %13398 = vmatprep.subr.msk.bf16.mxu0 %vm14425_vm2, %v15435_v23 }
0x2f17   :  { %v15966_v8 = vmul.f32 %v8695_v59, %v14528_v24 }
0x2f1c   :  { %12855 = vmatmul.mubr.msk.f32.vlgmr.msra.gmra.mrb[78].mxu0 %vm260_vm1, %v9250_v33 }
0x2f1d   :  { %13401 = vmatpush3.bf16.xpose.msk.msra.mxu0 %vm14425_vm2, %v15435_v23  ;;  %12873 = vmatprep.mubr.msk.f32.mxu0 %vm260_vm1, %v9521_v62  ;;  %v8700_v23 = vadd.f32 %v15860_v47, %v15906_v4 }
0x2f1e   :  { %13408 = vmatprep.subr.msk.bf16.mxu0 %vm14425_vm2, %v15346_v48 }
0x2f1f   :  { %v15980_v37 = vmul.f32 %v8700_v23, %v14537_v31 }
0x2f24   :  { %12874 = vmatmul.mubr.msk.f32.vlgmr.msra.gmra.mrb[80].mxu0 %vm260_vm1, %v9523_v0 }
0x2f25   :  { %13411 = vmatpush3.bf16.xpose.msk.msra.mxu0 %vm14425_vm2, %v15346_v48  ;;  %12892 = vmatprep.mubr.msk.f32.mxu0 %vm260_vm1, %v15966_v8 }
0x2f26   :  { %13418 = vmatprep.subr.msk.bf16.mxu0 %vm14425_vm2, %v15495_v6 }
0x2f2c   :  { %12893 = vmatmul.mubr.msk.f32.vlgmr.msra.gmra.mrb[82].mxu0 %vm260_vm1, %v15980_v37 }
0x2f2d   :  { %13421 = vmatpush3.bf16.xpose.msk.msra.mxu0 %vm14425_vm2, %v15495_v6 }
0x2f2e   :  { %13428 = vmatprep.subr.msk.bf16.mxu0 %vm14425_vm2, %v15557_v34 }
0x2fde   :  { %v12825_v48 = vpop.f32.mrb[74].mxu0 }
0x2fdf   :  { %v8886_v47 = vpop.f32.mrb[75].mxu0 }
0x2fe3   :  { %v12839_v4 = vpop.f32.mrb[76].mxu0 }
0x2fe4   :  { %v9076_v56 = vpop.f32.mrb[77].mxu0 }
0x2fe5   :  { %12842 = vmatprep.mubr.msk.f32.mxu1 %vm260_vm1, %v9076_v56 }
0x2fe6   :  { %12843 = vmatmul.mubr.msk.f32.vlgmr.msra.gmra.mrb[82].mxu1 %vm260_vm1, %v12839_v4 }
0x2fe7   :  { %12846 = vmatpush3.msra.mxu1 %v15885_v35  ;;  %12847 = vmatprep.mubr.msk.f32.mxu1 %vm260_vm1, %v8886_v47 }
0x2fe8   :  { %13393 = vmatprep.subr.bf16.mxu1 %v15505_v15 }
0x2fee   :  { %12848 = vmatmul.mubr.msk.f32.vlgmr.msra.gmra.mrb[82].mxu1 %vm260_vm1, %v12825_v48 }
0x2fef   :  { %13395 = vmatpush3.bf16.msra.mxu1 %v15505_v15  ;;  %v12856_v6 = vpop.f32.mrb[78].mxu0 }
0x2ff0   :  { %v9331_v63 = vmul.f32 0.35355338, %v12856_v6  ;;  %v9321_v29 = vpop.f32.mrb[79].mxu0  ;;  %12864 = vmatprep.subr.mxu1 %v16000_v20 }
0x2ff1   :  { %v9330_v38 = vmul.f32 0.35355338, %v9321_v29 }
0x2ff2   :  { %v9333_v36 = vsub.f32 %v9331_v63, %v15913_v40 }
0x2ff3   :  { %v9332_v9 = vsub.f32 %v9330_v38, %v15919_v21 }
0x2ff4   :  { %v9337_v43 = vsel %vm348_vm3, %v9333_v36, -inf }
0x2ff5   :  { %9338 = vmax.xlane.f32.xlu0 %v9337_v43  ;;  %v9334_v15 = vsel %vm348_vm3, %v9332_v9, -inf }
0x2ff6   :  { %9335 = vmax.xlane.f32.xlu1 %v9334_v15 }
0x2ff7   :  { %v12875_v52 = vpop.f32.mrb[80].mxu0 }
0x2ff8   :  { %v9594_v58 = vpop.f32.mrb[81].mxu0  ;;  %v9604_v16 = vmul.f32 0.35355338, %v12875_v52 }
0x2ff9   :  { %v9603_v26 = vmul.f32 0.35355338, %v9594_v58 }
0x2ffa   :  { %v9606_v2 = vsub.f32 %v9604_v16, %v15913_v40 }
0x2ffb   :  { %v9605_v12 = vsub.f32 %v9603_v26, %v15919_v21 }
0x2ffc   :  { %v9610_v62 = vsel %vm348_vm3, %v9606_v2, -inf }
0x2ffd   :  { %v9607_v33 = vsel %vm348_vm3, %v9605_v12, -inf }
0x2fff   :  { %v12894_v3 = vpop.f32.mrb[82].mxu0 }
0x3000   :  { %v9865_v54 = vpop.f32.mrb[83].mxu0  ;;  %v9875_v52 = vmul.f32 0.35355338, %v12894_v3 }
0x3001   :  { %v9874_v58 = vmul.f32 0.35355338, %v9865_v54 }
0x3082   :  { %v9339_v61 = vpop.xlane.xlu0 %9338 }
0x3083   :  { %v9341_v28 = vsub.f32 %v9333_v36, %v9339_v61  ;;  %v9336_v53 = vpop.xlane.xlu1 %9335  ;;  %v16038_v61 = vld [vmem:[%s16359_s27 + $0x18] sm:$0xff] }
0x3084   :  { %v9340_v11 = vsub.f32 %v9332_v9, %v9336_v53  ;;  %v16044_v53 = vld [vmem:[%s16359_s27 + $0x10] sm:$0xff] }
0x3085   :  { %v9344_v41 = vmul.f32 1.442695, %v9341_v28  ;;  %v9877_v28 = vsub.f32 %v9875_v52, %v16038_v61 }
0x3086   :  { %v9342_v25 = vmul.f32 1.442695, %v9340_v11  ;;  %v9876_v11 = vsub.f32 %v9874_v58, %v16044_v53 }
0x3087   :  { %14063 = vpow2.f32 %v9344_v41  ;;  %v9881_v41 = vsel %vm348_vm3, %v9877_v28, -inf }
0x3088   :  { %14065 = vpow2.f32 %v9342_v25  ;;  %v9878_v3 = vsel %vm348_vm3, %v9876_v11, -inf }
0x3091   :  { %v14064_v14 = vpop.eup %14063 }
0x3092   :  { %v14066_v22 = vpop.eup %14065  ;;  %v9349_v49 = vsel %vm348_vm3, %v14064_v14, 0.0 }
0x3093   :  { %9350 = vadd.xlane.f32.xlu1 %v9349_v49  ;;  %v9346_v5 = vsel %vm348_vm3, %v14066_v22, 0.0 }
0x3094   :  { %9347 = vadd.xlane.f32.xlu0 %v9346_v5 }
0x30a4   :  { %9983 = vrot.lane.b32.xlu1 %v15980_v37, %s16352_s21 }
0x30aa   :  { %9981 = vrot.lane.b32.xlu0 %v15966_v8, %s16352_s21 }
0x30c8   :  { %9608 = vmax.xlane.f32.xlu1 %v9607_v33 }
0x30c9   :  { %9611 = vmax.xlane.f32.xlu0 %v9610_v62 }
0x3120   :  { %v9351_v59 = vpop.xlane.xlu1 %9350 }
0x3121   :  { %14067 = vrcp.f32 %v9351_v59  ;;  %v9348_v0 = vpop.xlane.xlu0 %9347 }
0x3122   :  { %14069 = vrcp.f32 %v9348_v0 }
0x3124   :  { %v9984_v48 = vpop.permute.xlu1 %9983 }
0x3125   :  { %v9982_v23 = vpop.permute.xlu0 %9981 }
0x3126   :  { %12906 = vmatprep.mubr.msk.f32.mxu0 %vm260_vm1, %v9982_v23 }
0x3127   :  { %12907 = vmatmul.mubr.msk.f32.vlgmr.msra.gmra.mrb[84].mxu0 %vm260_vm1, %v9984_v48 }
0x3128   :  { %13431 = vmatpush3.bf16.xpose.msk.msra.mxu0 %vm14425_vm2, %v15557_v34 }
0x3129   :  { %13438 = vmatprep.subr.msk.bf16.mxu0 %vm14425_vm2, %v15605_v46 }
0x312b   :  { %v14068_v40 = vpop.eup %14067 }
0x312c   :  { %v14070_v21 = vpop.eup %14069  ;;  %v9355_v4 = vmul.f32 %v14068_v40, %v14064_v14  ;;  %v16066_v40 = vld [vmem:[%s16268_s16 + $0x18] sm:$0xff] }
0x312d   :  { %v9354_v47 = vmul.f32 %v14070_v21, %v14066_v22 }
0x312f   :  { %12861 = vmatprep.mubr.msk.f32.mxu1 %vm348_vm3, %v9354_v47 }
0x3130   :  { %12862 = vmatmul.mubr.msk.f32.vlgmr.msra.gmra.mrb[84].mxu1 %vm348_vm3, %v9355_v4 }
0x3131   :  { %12865 = vmatpush3.msra.mxu1 %v16000_v20 }
0x3132   :  { %13403 = vmatprep.subr.bf16.mxu1 %v15559_v32 }
0x3155   :  { %v9609_v56 = vpop.xlane.xlu1 %9608 }
0x3156   :  { %v9613_v6 = vsub.f32 %v9605_v12, %v9609_v56  ;;  %v9612_v63 = vpop.xlane.xlu0 %9611 }
0x3157   :  { %v9614_v34 = vsub.f32 %v9606_v2, %v9612_v63 }
0x3158   :  { %v9615_v29 = vmul.f32 1.442695, %v9613_v6 }
0x3159   :  { %v9617_v38 = vmul.f32 1.442695, %v9614_v34 }
0x315a   :  { %14071 = vpow2.f32 %v9615_v29 }
0x315b   :  { %14073 = vpow2.f32 %v9617_v38 }
0x3164   :  { %v14072_v36 = vpop.eup %14071 }
0x3165   :  { %v14074_v9 = vpop.eup %14073  ;;  %v9619_v43 = vsel %vm348_vm3, %v14072_v36, 0.0 }
0x3166   :  { %9620 = vadd.xlane.f32.xlu0 %v9619_v43  ;;  %v9622_v15 = vsel %vm348_vm3, %v14074_v9, 0.0 }
0x3167   :  { %9623 = vadd.xlane.f32.xlu1 %v9622_v15 }
0x3178   :  { %10335 = vrot.lane.b32.xlu1 %v15980_v37, %s16356_s12 }
0x317c   :  { %10333 = vrot.lane.b32.xlu0 %v15966_v8, %s16356_s12 }
0x319b   :  { %9882 = vmax.xlane.f32.xlu0 %v9881_v41 }
0x319c   :  { %9879 = vmax.xlane.f32.xlu1 %v9878_v3 }
0x31f3   :  { %v9621_v54 = vpop.xlane.xlu0 %9620 }
0x31f4   :  { %v9624_v25 = vpop.xlane.xlu1 %9623  ;;  %14075 = vrcp.f32 %v9621_v54 }
0x31f5   :  { %14077 = vrcp.f32 %v9624_v25 }
0x31f7   :  { %v10334_v14 = vpop.permute.xlu0 %10333 }
0x31f8   :  { %v10336_v22 = vpop.permute.xlu1 %10335  ;;  %12930 = vmatprep.mubr.msk.f32.mxu0 %vm260_vm1, %v10334_v14 }
0x31f9   :  { %12931 = vmatmul.mubr.msk.f32.vlgmr.msra.gmra.mrb[86].mxu0 %vm260_vm1, %v10336_v22 }
0x31fa   :  { %13441 = vmatpush3.bf16.xpose.msk.msra.mxu0 %vm14425_vm2, %v15605_v46  ;;  %v12908_v49 = vpop.f32.mrb[84].mxu0 }
0x31fb   :  { %v10065_v5 = vmul.f32 0.35355338, %v12908_v49  ;;  %v10055_v26 = vpop.f32.mrb[85].mxu0  ;;  %13447 = vmatprep.subr.bf16.mxu0 %v15689_v1 }
0x31fc   :  { %v10064_v16 = vmul.f32 0.35355338, %v10055_v26 }
0x31fd   :  { %v10067_v12 = vsub.f32 %v10065_v5, %v16038_v61 }
0x31fe   :  { %v10066_v2 = vsub.f32 %v10064_v16, %v16044_v53  ;;  %v14076_v59 = vpop.eup %14075 }
0x31ff   :  { %v10071_v33 = vsel %vm348_vm3, %v10067_v12, -inf  ;;  %v14078_v0 = vpop.eup %14077  ;;  %v9627_v23 = vmul.f32 %v14076_v59, %v14072_v36 }
0x3200   :  { %10072 = vmax.xlane.f32.xlu1 %v10071_v33  ;;  %v10068_v62 = vsel %vm348_vm3, %v10066_v2, -inf  ;;  %v9628_v48 = vmul.f32 %v14078_v0, %v14074_v9 }
0x3201   :  { %10069 = vmax.xlane.f32.xlu0 %v10068_v62 }
0x3203   :  { %v12863_v27 = vpop.f32.mrb[84].mxu1 }
0x3204   :  { %v9428_v46 = vpop.f32.mrb[85].mxu1 }
0x3205   :  { %12866 = vmatprep.mubr.msk.f32.mxu1 %vm260_vm1, %v9428_v46 }
0x3206   :  { %12867 = vmatmul.mubr.msk.f32.vlgmr.msra.gmra.mrb[82].mxu1 %vm260_vm1, %v12863_v27 }
0x3207   :  { %13405 = vmatpush3.bf16.msra.mxu1 %v15559_v32  ;;  %12880 = vmatprep.mubr.msk.f32.mxu1 %vm348_vm3, %v9627_v23 }
0x3208   :  { %12883 = vmatprep.subr.mxu1 %v16066_v40 }
0x320a   :  { %12881 = vmatmul.mubr.msk.f32.vlgmr.msra.gmra.mrb[86].mxu1 %vm348_vm3, %v9628_v48 }
0x320b   :  { %12884 = vmatpush3.msra.mxu1 %v16066_v40 }
0x320c   :  { %13413 = vmatprep.subr.bf16.mxu1 %v15597_v60 }
0x3228   :  { %v9883_v21 = vpop.xlane.xlu0 %9882 }
0x3229   :  { %v9885_v47 = vsub.f32 %v9877_v28, %v9883_v21  ;;  %v9880_v4 = vpop.xlane.xlu1 %9879 }
0x322a   :  { %v9884_v32 = vsub.f32 %v9876_v11, %v9880_v4 }
0x322b   :  { %v9888_v56 = vmul.f32 1.442695, %v9885_v47 }
0x322c   :  { %v9886_v6 = vmul.f32 1.442695, %v9884_v32 }
0x322d   :  { %14079 = vpow2.f32 %v9888_v56 }
0x322e   :  { %14081 = vpow2.f32 %v9886_v6 }
0x3237   :  { %v14080_v63 = vpop.eup %14079 }
0x3238   :  { %v14082_v34 = vpop.eup %14081  ;;  %v9893_v29 = vsel %vm348_vm3, %v14080_v63, 0.0 }
0x3239   :  { %9894 = vadd.xlane.f32.xlu1 %v9893_v29  ;;  %v9890_v38 = vsel %vm348_vm3, %v14082_v34, 0.0 }
0x323a   :  { %9891 = vadd.xlane.f32.xlu0 %v9890_v38 }
0x328d   :  { %v10073_v36 = vpop.xlane.xlu1 %10072 }
0x328e   :  { %v10075_v9 = vsub.f32 %v10067_v12, %v10073_v36  ;;  %v10070_v43 = vpop.xlane.xlu0 %10069 }
0x328f   :  { %v10074_v15 = vsub.f32 %v10066_v2, %v10070_v43 }
0x3290   :  { %v10078_v52 = vmul.f32 1.442695, %v10075_v9 }
0x3291   :  { %v10076_v58 = vmul.f32 1.442695, %v10074_v15 }
0x3292   :  { %14083 = vpow2.f32 %v10078_v52 }
0x3293   :  { %14085 = vpow2.f32 %v10076_v58 }
0x329c   :  { %v14084_v28 = vpop.eup %14083 }
0x329d   :  { %v14086_v11 = vpop.eup %14085  ;;  %v10083_v41 = vsel %vm348_vm3, %v14084_v28, 0.0 }
0x329e   :  { %10084 = vadd.xlane.f32.xlu1 %v10083_v41  ;;  %v10080_v3 = vsel %vm348_vm3, %v14086_v11, 0.0 }
0x329f   :  { %10081 = vadd.xlane.f32.xlu0 %v10080_v3 }
0x32af   :  { %10608 = vrot.lane.b32.xlu1 %v15980_v37, %s16346_s30 }
0x32b5   :  { %10606 = vrot.lane.b32.xlu0 %v15966_v8, %s16346_s30 }
0x32c6   :  { %v9895_v16 = vpop.xlane.xlu1 %9894 }
0x32c7   :  { %v9892_v49 = vpop.xlane.xlu0 %9891 }
0x32c8   :  { %14087 = vrcp.f32 %v9892_v49 }
0x32c9   :  { %14089 = vrcp.f32 %v9895_v16 }
0x32cc   :  { %v12932_v54 = vpop.f32.mrb[86].mxu0 }
0x32cd   :  { %v10417_v25 = vmul.f32 0.35355338, %v12932_v54  ;;  %v10407_v14 = vpop.f32.mrb[87].mxu0 }
0x32ce   :  { %v10416_v22 = vmul.f32 0.35355338, %v10407_v14 }
0x32cf   :  { %v10419_v5 = vsub.f32 %v10417_v25, %v16038_v61 }
0x32d0   :  { %v10418_v26 = vsub.f32 %v10416_v22, %v16044_v53 }
0x32d1   :  { %v10423_v2 = vsel %vm348_vm3, %v10419_v5, -inf }
0x32d2   :  { %v10420_v12 = vsel %vm348_vm3, %v10418_v26, -inf  ;;  %v14088_v37 = vpop.eup %14087 }
0x32d3   :  { %10421 = vmax.xlane.f32.xlu1 %v10420_v12  ;;  %v14090_v62 = vpop.eup %14089  ;;  %v9898_v59 = vmul.f32 %v14088_v37, %v14082_v34 }
0x32d4   :  { %10424 = vmax.xlane.f32.xlu0 %v10423_v2  ;;  %v9899_v27 = vmul.f32 %v14090_v62, %v14080_v63 }
0x32dd   :  { %v12882_v8 = vpop.f32.mrb[86].mxu1 }
0x32de   :  { %v9701_v33 = vpop.f32.mrb[87].mxu1 }
0x32df   :  { %12885 = vmatprep.mubr.msk.f32.mxu1 %vm260_vm1, %v9701_v33 }
0x32e0   :  { %12886 = vmatmul.mubr.msk.f32.vlgmr.msra.gmra.mrb[82].mxu1 %vm260_vm1, %v12882_v8 }
0x32e1   :  { %13415 = vmatpush3.bf16.msra.mxu1 %v15597_v60  ;;  %12899 = vmatprep.mubr.msk.f32.mxu1 %vm348_vm3, %v9898_v59 }
0x32e2   :  { %13423 = vmatprep.subr.bf16.mxu1 %v15602_v55 }
0x32e4   :  { %12900 = vmatmul.mubr.msk.f32.vlgmr.msra.gmra.mrb[88].mxu1 %vm348_vm3, %v9899_v27 }
0x32e5   :  { %13425 = vmatpush3.bf16.msra.mxu1 %v15602_v55 }
0x32e6   :  { %12916 = vmatprep.subr.mxu1 %v15879_v44 }
0x332b   :  { %v10085_v46 = vpop.xlane.xlu1 %10084 }
0x332c   :  { %14091 = vrcp.f32 %v10085_v46  ;;  %v10082_v0 = vpop.xlane.xlu0 %10081 }
0x332d   :  { %14093 = vrcp.f32 %v10082_v0 }
0x332f   :  { %v10609_v48 = vpop.permute.xlu1 %10608 }
0x3330   :  { %v10607_v23 = vpop.permute.xlu0 %10606 }
0x3331   :  { %12949 = vmatprep.mubr.msk.f32.mxu0 %vm260_vm1, %v10607_v23 }
0x3332   :  { %12950 = vmatmul.mubr.msk.f32.vlgmr.msra.gmra.mrb[88].mxu0 %vm260_vm1, %v10609_v48 }
0x3333   :  { %13449 = vmatpush3.bf16.msra.mxu0 %v15689_v1 }
0x3334   :  { %13451 = vmatprep.subr.bf16.mxu0 %v15699_v30 }
0x3336   :  { %v14092_v60 = vpop.eup %14091 }
0x3337   :  { %v14094_v21 = vpop.eup %14093  ;;  %13453 = vmatpush3.bf16.msra.mxu0 %v15699_v30  ;;  %v10089_v47 = vmul.f32 %v14092_v60, %v14084_v28 }
0x3338   :  { %v10088_v55 = vmul.f32 %v14094_v21, %v14086_v11 }
0x333a   :  { %12913 = vmatprep.mubr.msk.f32.mxu1 %vm348_vm3, %v10088_v55 }
0x333b   :  { %12914 = vmatmul.mubr.msk.f32.vlgmr.msra.gmra.mrb[90].mxu1 %vm348_vm3, %v10089_v47 }
0x333c   :  { %12917 = vmatpush3.msra.mxu1 %v15879_v44 }
0x333d   :  { %12921 = vmatprep.subr.mxu1 %v15885_v35 }
0x3360   :  { %v10422_v4 = vpop.xlane.xlu1 %10421 }
0x3361   :  { %v10426_v32 = vsub.f32 %v10418_v26, %v10422_v4  ;;  %v10425_v56 = vpop.xlane.xlu0 %10424 }
0x3362   :  { %v10427_v1 = vsub.f32 %v10419_v5, %v10425_v56 }
0x3363   :  { %v10428_v6 = vmul.f32 1.442695, %v10426_v32 }
0x3364   :  { %v10430_v63 = vmul.f32 1.442695, %v10427_v1 }
0x3365   :  { %14095 = vpow2.f32 %v10428_v6 }
0x3366   :  { %14097 = vpow2.f32 %v10430_v63 }
0x336f   :  { %v14096_v34 = vpop.eup %14095 }
0x3370   :  { %v14098_v30 = vpop.eup %14097  ;;  %v10432_v29 = vsel %vm348_vm3, %v14096_v34, 0.0 }
0x3371   :  { %10433 = vadd.xlane.f32.xlu0 %v10432_v29  ;;  %v10435_v38 = vsel %vm348_vm3, %v14098_v30, 0.0 }
0x3372   :  { %10436 = vadd.xlane.f32.xlu1 %v10435_v38 }
0x33b3   :  { %v12887_v36 = vpop.f32.mrb[82].mxu1 }
0x33b4   :  { %v9782_v44 = vpop.f32.mrb[83].mxu1 }
0x33b7   :  { %v12901_v9 = vpop.f32.mrb[88].mxu1 }
0x33b8   :  { %v9972_v43 = vpop.f32.mrb[89].mxu1 }
0x33fe   :  { %v10434_v11 = vpop.xlane.xlu0 %10433 }
0x33ff   :  { %14099 = vrcp.f32 %v10434_v11  ;;  %v10437_v25 = vpop.xlane.xlu1 %10436 }
0x3400   :  { %14101 = vrcp.f32 %v10437_v25 }
0x3405   :  { %v12951_v15 = vpop.f32.mrb[88].mxu0 }
0x3406   :  { %v10690_v52 = vmul.f32 0.35355338, %v12951_v15  ;;  %v10680_v58 = vpop.f32.mrb[89].mxu0 }
0x3407   :  { %v10689_v28 = vmul.f32 0.35355338, %v10680_v58 }
0x3408   :  { %v10692_v41 = vsub.f32 %v10690_v52, %v16038_v61 }
0x3409   :  { %v10691_v3 = vsub.f32 %v10689_v28, %v16044_v53  ;;  %v14100_v61 = vpop.eup %14099 }
0x340a   :  { %v10696_v54 = vsel %vm348_vm3, %v10692_v41, -inf  ;;  %v14102_v53 = vpop.eup %14101  ;;  %v10440_v5 = vmul.f32 %v14100_v61, %v14096_v34 }
0x340b   :  { %10697 = vmax.xlane.f32.xlu1 %v10696_v54  ;;  %v10693_v14 = vsel %vm348_vm3, %v10691_v3, -inf  ;;  %v10441_v26 = vmul.f32 %v14102_v53, %v14098_v30 }
0x340c   :  { %10694 = vmax.xlane.f32.xlu0 %v10693_v14 }
0x340e   :  { %v12915_v22 = vpop.f32.mrb[90].mxu1 }
0x340f   :  { %v10162_v49 = vpop.f32.mrb[91].mxu1 }
0x3410   :  { %12918 = vmatprep.mubr.msk.f32.mxu1 %vm260_vm1, %v10162_v49 }
0x3411   :  { %12919 = vmatmul.mubr.msk.f32.vlgmr.msra.gmra.mrb[92].mxu1 %vm260_vm1, %v12915_v22 }
0x3412   :  { %12922 = vmatpush3.msra.mxu1 %v15885_v35  ;;  %12923 = vmatprep.mubr.msk.f32.mxu1 %vm260_vm1, %v9972_v43 }
0x3413   :  { %13433 = vmatprep.subr.bf16.mxu1 %v15648_v39 }
0x3419   :  { %12924 = vmatmul.mubr.msk.f32.vlgmr.msra.gmra.mrb[92].mxu1 %vm260_vm1, %v12901_v9 }
0x341a   :  { %13435 = vmatpush3.bf16.msra.mxu1 %v15648_v39  ;;  %12937 = vmatprep.mubr.msk.f32.mxu1 %vm348_vm3, %v10440_v5  ;;  %v14167_v39 = vld [vmem:[%s16269_s17] ss:$0 sm:$0xff] }
0x341b   :  { %12940 = vmatprep.subr.mxu1 %v16000_v20  ;;  %v10880_v33 = vadd.f32 %v14167_v39, %v12887_v36  ;;  %v10879_v62 = vadd.f32 %v14167_v39, %v9782_v44 }
0x341d   :  { %12938 = vmatmul.mubr.msk.f32.vlgmr.msra.gmra.mrb[94].mxu1 %vm348_vm3, %v10441_v26  ;;  %v10884_v59 = vmul.f32 %v10880_v33, %v14399_v18 }
0x341e   :  { %12941 = vmatpush3.msra.mxu1 %v16000_v20  ;;  %v10883_v20 = vmul.f32 %v10879_v62, %v14391_v13  ;;  %v16167_v62 = vld [vmem:[%s16361_s10] ss:$0 sm:$0xff] }
0x341f   :  { %13443 = vmatprep.subr.bf16.mxu1 %v15662_v57  ;;  %v10888_v23 = vadd.f32 %v10884_v59, %v15837_v45 }
0x3420   :  { %v10887_v60 = vadd.f32 %v10883_v20, %v15831_v42 }
0x3421   :  { %v10894_v21 = vsel %vm132_vm0, %v10888_v23, 0.0 }
0x3422   :  { %v10891_v55 = vsel %vm132_vm0, %v10887_v60, 0.0 }
0x3498   :  { %v10698_v35 = vpop.xlane.xlu1 %10697 }
0x3499   :  { %v10700_v16 = vsub.f32 %v10692_v41, %v10698_v35  ;;  %v10695_v12 = vpop.xlane.xlu0 %10694 }
0x349a   :  { %v10699_v2 = vsub.f32 %v10691_v3, %v10695_v12 }
0x349b   :  { %v10703_v37 = vmul.f32 1.442695, %v10700_v16 }
0x349c   :  { %v10701_v8 = vmul.f32 1.442695, %v10699_v2 }
0x349d   :  { %14103 = vpow2.f32 %v10703_v37 }
0x349e   :  { %14105 = vpow2.f32 %v10701_v8  ;;  %v16160_v8 = vld [vmem:[%s16360_s3] ss:$0 sm:$0xff] }
0x34a7   :  { %v14104_v27 = vpop.eup %14103 }
0x34a8   :  { %v14106_v46 = vpop.eup %14105  ;;  %v10708_v0 = vsel %vm348_vm3, %v14104_v27, 0.0 }
0x34a9   :  { %10709 = vadd.xlane.f32.xlu1 %v10708_v0  ;;  %v10705_v48 = vsel %vm348_vm3, %v14106_v46, 0.0 }
0x34aa   :  { %10706 = vadd.xlane.f32.xlu0 %v10705_v48 }
0x34ad   :  { %10895 = vadd.xlane.f32.xlu1 %v10894_v21 }
0x34ae   :  { %10892 = vadd.xlane.f32.xlu0 %v10891_v55 }
0x34f0   :  { %v12939_v18 = vpop.f32.mrb[94].mxu1 }
0x34f1   :  { %v10514_v13 = vpop.f32.mrb[95].mxu1 }
0x34f2   :  { %12942 = vmatprep.mubr.msk.f32.mxu1 %vm260_vm1, %v10514_v13 }
0x34f3   :  { %12943 = vmatmul.mubr.msk.f32.vlgmr.msra.gmra.mrb[92].mxu1 %vm260_vm1, %v12939_v18 }
0x34f4   :  { %13445 = vmatpush3.bf16.msra.mxu1 %v15662_v57 }
0x34f5   :  { %12959 = vmatprep.subr.mxu1 %v16066_v40 }
0x3536   :  { %v10710_v45 = vpop.xlane.xlu1 %10709 }
0x3537   :  { %14107 = vrcp.f32 %v10710_v45  ;;  %v10707_v42 = vpop.xlane.xlu0 %10706 }
0x3538   :  { %14109 = vrcp.f32 %v10707_v42 }
0x353b   :  { %v10893_v6 = vpop.xlane.xlu0 %10892 }
0x353c   :  { %v10903_v34 = vmul.f32 0.03125, %v10893_v6 }
0x3541   :  { %v14108_v47 = vpop.eup %14107 }
0x3542   :  { %v14110_v4 = vpop.eup %14109  ;;  %v10714_v56 = vmul.f32 %v14108_v47, %v14104_v27 }
0x3543   :  { %v10713_v32 = vmul.f32 %v14110_v4, %v14106_v46 }
0x3545   :  { %12956 = vmatprep.mubr.msk.f32.mxu1 %vm348_vm3, %v10713_v32 }
0x3546   :  { %12957 = vmatmul.mubr.msk.f32.vlgmr.msra.gmra.mrb[96].mxu1 %vm348_vm3, %v10714_v56  ;;  %v14170_v56 = vld [vmem:[%s16362_s19] ss:$0 sm:$0xff] }
0x3547   :  { %12960 = vmatpush3.msra.mxu1 %v16066_v40  ;;  %v10896_v40 = vpop.xlane.xlu1 %10895 }
0x3548   :  { %13455 = vmatprep.subr.bf16.mxu1 %v15710_v17  ;;  %v10904_v63 = vmul.f32 0.03125, %v10896_v40 }
0x354a   :  { %v10908_v36 = vsub.f32 %v10888_v23, %v10904_v63 }
0x354c   :  { %v10912_v15 = vmul.f32 %v10908_v36, %v10908_v36 }
0x354e   :  { %v10918_v28 = vsel %vm132_vm0, %v10912_v15, 0.0 }
0x3619   :  { %v12958_v1 = vpop.f32.mrb[96].mxu1 }
0x361a   :  { %v10787_v57 = vpop.f32.mrb[97].mxu1 }
0x361b   :  { %12961 = vmatprep.mubr.msk.f32.mxu1 %vm260_vm1, %v10787_v57 }
0x361c   :  { %12962 = vmatmul.mubr.msk.f32.vlgmr.msra.gmra.mrb[92].mxu1 %vm260_vm1, %v12958_v1 }
0x361d   :  { %13457 = vmatpush3.bf16.msra.mxu1 %v15710_v17 }
0x361e   :  { %13459 = vmatprep.subr.bf16.mxu1 %v15747_v7 }
0x3621   :  { %13461 = vmatpush3.bf16.msra.mxu1 %v15747_v7  ;;  %v10907_v7 = vsub.f32 %v10887_v60, %v10903_v34 }
0x3622   :  { %13463 = vmatprep.subr.bf16.mxu1 %v15759_v19 }
0x3623   :  { %v10911_v58 = vmul.f32 %v10907_v7, %v10907_v7 }
0x3625   :  { %13465 = vmatpush3.bf16.msra.mxu1 %v15759_v19 }
0x3626   :  { %13467 = vmatprep.subr.bf16.mxu1 %v15769_v51 }
0x3629   :  { %13469 = vmatpush3.bf16.msra.mxu1 %v15769_v51 }
0x36ef   :  { %v12963_v30 = vpop.f32.mrb[92].mxu1 }
0x36f0   :  { %v10882_v29 = vadd.f32 %v14167_v39, %v12963_v30  ;;  %v10868_v38 = vpop.f32.mrb[93].mxu1 }
0x36f1   :  { %v10881_v17 = vadd.f32 %v14167_v39, %v10868_v38 }
0x36f2   :  { %v10886_v44 = vmul.f32 %v10882_v29, %v14537_v31  ;;  %v10915_v31 = vsel %vm132_vm0, %v10911_v58, 0.0 }
0x36f3   :  { %v10885_v9 = vmul.f32 %v10881_v17, %v14528_v24 }
0x36f4   :  { %v10890_v19 = vadd.f32 %v10886_v44, %v15894_v10 }
0x36f5   :  { %v10889_v43 = vadd.f32 %v10885_v9, %v15891_v50 }
0x36f6   :  { %v10900_v51 = vsel %vm132_vm0, %v10890_v19, 0.0 }
0x36f7   :  { %10901 = vadd.xlane.f32.xlu1 %v10900_v51  ;;  %v10897_v52 = vsel %vm132_vm0, %v10889_v43, 0.0 }
0x36f8   :  { %10898 = vadd.xlane.f32.xlu0 %v10897_v52 }
0x36fb   :  { %10919 = vadd.xlane.f32.xlu1 %v10918_v28 }
0x36fc   :  { %10916 = vadd.xlane.f32.xlu0 %v10915_v31 }
0x3784   :  { %v10902_v11 = vpop.xlane.xlu1 %10901 }
0x3785   :  { %v10906_v24 = vmul.f32 0.03125, %v10902_v11  ;;  %v10899_v41 = vpop.xlane.xlu0 %10898 }
0x3786   :  { %v10905_v10 = vmul.f32 0.03125, %v10899_v41 }
0x3787   :  { %v10910_v3 = vsub.f32 %v10890_v19, %v10906_v24 }
0x3788   :  { %v10909_v50 = vsub.f32 %v10889_v43, %v10905_v10  ;;  %v10920_v54 = vpop.xlane.xlu1 %10919 }
0x3789   :  { %v10928_v25 = vmul.f32 0.03125, %v10920_v54  ;;  %v10917_v14 = vpop.xlane.xlu0 %10916  ;;  %v10914_v22 = vmul.f32 %v10910_v3, %v10910_v3 }
0x378a   :  { %v10927_v49 = vmul.f32 0.03125, %v10917_v14  ;;  %v10913_v61 = vmul.f32 %v10909_v50, %v10909_v50 }
0x378b   :  { %v10932_v53 = vadd.f32 1e-05, %v10928_v25  ;;  %v10924_v5 = vsel %vm132_vm0, %v10914_v22, 0.0 }
0x378c   :  { %v10931_v26 = vadd.f32 1e-05, %v10927_v49  ;;  %10925 = vadd.xlane.f32.xlu1 %v10924_v5  ;;  %v10921_v35 = vsel %vm132_vm0, %v10913_v61, 0.0 }
0x378d   :  { %14111 = vrsqrt.f32 %v10932_v53  ;;  %10922 = vadd.xlane.f32.xlu0 %v10921_v35 }
0x378e   :  { %14113 = vrsqrt.f32 %v10931_v26 }
0x3797   :  { %v14112_v16 = vpop.eup %14111 }
0x3798   :  { %v14114_v12 = vpop.eup %14113  ;;  %v10940_v2 = vmul.f32 %v14112_v16, %v10908_v36 }
0x3799   :  { %v10939_v37 = vmul.f32 %v14114_v12, %v10907_v7 }
0x379a   :  { %v10944_v39 = vmul.f32 %v16160_v8, %v10940_v2 }
0x379b   :  { %v10943_v33 = vmul.f32 %v16160_v8, %v10939_v37 }
0x379c   :  { %v16173_v20 = vadd.f32 %v16167_v62, %v10944_v39 }
0x379d   :  { %v16170_v59 = vadd.f32 %v16167_v62, %v10943_v33 }
0x379f   :  { %12972 = vmatprep.mubr.msk.f32.mxu0 %vm132_vm0, %v16170_v59 }
0x37a0   :  { %12973 = vmatmul.mubr.msk.f32.vlgmr.msra.gmra.mrb[90].mxu0 %vm132_vm0, %v16173_v20 }
0x3819   :  { %v10926_v27 = vpop.xlane.xlu1 %10925 }
0x381a   :  { %v10930_v46 = vmul.f32 0.03125, %v10926_v27  ;;  %v10923_v0 = vpop.xlane.xlu0 %10922  ;;  %v14171_v27 = vld [vmem:[%s16363_s7] ss:$0 sm:$0xff]  ;;  %s16364_s7 = sld [smem:[#allocation20_spill]] }
0x381b   :  { %v10929_v23 = vmul.f32 0.03125, %v10923_v0 }
0x381c   :  { %v10934_v48 = vadd.f32 1e-05, %v10930_v46 }
0x381d   :  { %v10933_v60 = vadd.f32 1e-05, %v10929_v23 }
0x381e   :  { %14115 = vrsqrt.f32 %v10934_v48 }
0x381f   :  { %14117 = vrsqrt.f32 %v10933_v60 }
0x3828   :  { %v14116_v21 = vpop.eup %14115 }
0x3829   :  { %v14118_v55 = vpop.eup %14117  ;;  %v10942_v18 = vmul.f32 %v14116_v21, %v10910_v3 }
0x382a   :  { %v10941_v13 = vmul.f32 %v14118_v55, %v10909_v50 }
0x382b   :  { %v10946_v45 = vmul.f32 %v16160_v8, %v10942_v18 }
0x382c   :  { %v10945_v42 = vmul.f32 %v16160_v8, %v10941_v13 }
0x382d   :  { %v16185_v4 = vadd.f32 %v16167_v62, %v10946_v45 }
0x382e   :  { %v16182_v47 = vadd.f32 %v16167_v62, %v10945_v42 }
0x3830   :  { %12975 = vmatprep.mubr.msk.f32.mxu0 %vm132_vm0, %v16182_v47 }
0x3831   :  { %12976 = vmatmul.mubr.msk.f32.gmra.mrb[92].mxu0 %vm132_vm0, %v16185_v4 }
0x3873   :  { %v12974_v32 = vpop.f32.mrb[90].mxu0 }
0x3874   :  { %v11035_v1 = vadd.f32 %v14170_v56, %v12974_v32  ;;  %v11029_v57 = vpop.f32.mrb[91].mxu0 }
0x3875   :  { %v11030_v40 = vadd.f32 %v14170_v56, %v11029_v57 }
0x3876   :  { %v11053_v6 = vmul.f32 0.044715, %v11035_v1  ;;  %v11049_v52 = vmul.f32 0.5, %v11035_v1 }
0x3877   :  { %v11052_v63 = vmul.f32 0.044715, %v11030_v40  ;;  %v11048_v51 = vmul.f32 0.5, %v11030_v40 }
0x3878   :  { %v11057_v34 = vmul.f32 %v11053_v6, %v11035_v1 }
0x3879   :  { %v11056_v30 = vmul.f32 %v11052_v63, %v11030_v40 }
0x387a   :  { %v11061_v29 = vmul.f32 %v11057_v34, %v11035_v1 }
0x387b   :  { %v11060_v38 = vmul.f32 %v11056_v30, %v11030_v40 }
0x387c   :  { %v11065_v17 = vadd.f32 %v11061_v29, %v11035_v1 }
0x387d   :  { %v11064_v36 = vadd.f32 %v11060_v38, %v11030_v40 }
0x387e   :  { %v11069_v44 = vmul.f32 0.7978846, %v11065_v17  ;;  %v11246_v17 = vld [vmem:[%s16364_s7 + $0x8] sm:$0xff] }
0x387f   :  { %v11068_v7 = vmul.f32 0.7978846, %v11064_v36 }
0x3880   :  { %14119 = vtanh.f32 %v11069_v44  ;;  %v11247_v44 = vld [vmem:[%s16364_s7 + $0x10] sm:$0xff] }
0x3881   :  { %14121 = vtanh.f32 %v11068_v7  ;;  %v11248_v7 = vld [vmem:[%s16364_s7 + $0x18] sm:$0xff] }
0x388a   :  { %v14120_v9 = vpop.eup %14119 }
0x388b   :  { %v14122_v19 = vpop.eup %14121  ;;  %v11077_v43 = vadd.f32 1.0, %v14120_v9  ;;  %v13474_v9 = vpack.c.bf16 %v11248_v7, %v11247_v44 }
0x388c   :  { %v11076_v15 = vadd.f32 1.0, %v14122_v19 }
0x388d   :  { %v11081_v28 = vmul.f32 %v11077_v43, %v11049_v52 }
0x388e   :  { %v11080_v58 = vmul.f32 %v11076_v15, %v11048_v51 }
0x3890   :  { %12994 = vmatprep.mubr.msk.f32.mxu1 %vm2776_vm4, %v11080_v58 }
0x3891   :  { %12995 = vmatmul.mubr.msk.f32.vlgmr.msra.gmra.mrb[98].mxu1 %vm2776_vm4, %v11081_v28 }
0x3904   :  { %v12977_v31 = vpop.f32.mrb[92].mxu0 }
0x3905   :  { %v11045_v11 = vadd.f32 %v14170_v56, %v12977_v31  ;;  %v11039_v24 = vpop.f32.mrb[93].mxu0 }
0x3906   :  { %v11040_v41 = vadd.f32 %v14170_v56, %v11039_v24 }
0x3907   :  { %v11055_v10 = vmul.f32 0.044715, %v11045_v11  ;;  %v11051_v2 = vmul.f32 0.5, %v11045_v11 }
0x3908   :  { %v11054_v3 = vmul.f32 0.044715, %v11040_v41  ;;  %v11050_v16 = vmul.f32 0.5, %v11040_v41 }
0x3909   :  { %v11059_v50 = vmul.f32 %v11055_v10, %v11045_v11 }
0x390a   :  { %v11058_v54 = vmul.f32 %v11054_v3, %v11040_v41 }
0x390b   :  { %v11063_v25 = vmul.f32 %v11059_v50, %v11045_v11 }
0x390c   :  { %v11062_v14 = vmul.f32 %v11058_v54, %v11040_v41 }
0x390d   :  { %v11067_v22 = vadd.f32 %v11063_v25, %v11045_v11 }
0x390e   :  { %v11066_v49 = vadd.f32 %v11062_v14, %v11040_v41 }
0x390f   :  { %v11071_v61 = vmul.f32 0.7978846, %v11067_v22 }
0x3910   :  { %v11070_v53 = vmul.f32 0.7978846, %v11066_v49 }
0x3911   :  { %14123 = vtanh.f32 %v11071_v61 }
0x3912   :  { %14125 = vtanh.f32 %v11070_v53 }
0x391b   :  { %v14124_v5 = vpop.eup %14123 }
0x391c   :  { %v14126_v26 = vpop.eup %14125  ;;  %v11079_v35 = vadd.f32 1.0, %v14124_v5 }
0x391d   :  { %v11078_v12 = vadd.f32 1.0, %v14126_v26 }
0x391e   :  { %v11083_v39 = vmul.f32 %v11079_v35, %v11051_v2 }
0x391f   :  { %v11082_v37 = vmul.f32 %v11078_v12, %v11050_v16 }
0x3921   :  { %12997 = vmatprep.mubr.msk.f32.mxu1 %vm2776_vm4, %v11082_v37 }
0x3922   :  { %12998 = vmatmul.mubr.msk.f32.gmra.mrb[100].mxu1 %vm2776_vm4, %v11083_v39 }
0x3964   :  { %v12996_v33 = vpop.f32.mrb[98].mxu1 }
0x3965   :  { %v11168_v46 = vadd.f32 %v14171_v27, %v12996_v33  ;;  %v11162_v0 = vpop.f32.mrb[99].mxu1 }
0x3966   :  { %v11163_v23 = vadd.f32 %v14171_v27, %v11162_v0 }
0x3967   :  { %v11182_v48 = vadd.f32 %v11168_v46, %v16173_v20 }
0x3968   :  { %v11181_v60 = vadd.f32 %v11163_v23, %v16170_v59 }
0x3969   :  { %v11188_v21 = vsel %vm132_vm0, %v11182_v48, 0.0 }
0x396a   :  { %11189 = vadd.xlane.f32.xlu1 %v11188_v21  ;;  %v11185_v55 = vsel %vm132_vm0, %v11181_v60, 0.0 }
0x396b   :  { %11186 = vadd.xlane.f32.xlu0 %v11185_v55 }
0x39f5   :  { %v12999_v18 = vpop.f32.mrb[100].mxu1 }
0x39f6   :  { %v11178_v13 = vadd.f32 %v14171_v27, %v12999_v18  ;;  %v11172_v45 = vpop.f32.mrb[101].mxu1  ;;  %v11693_v18 = vld [vmem:[%s16365_s13] ss:$0 sm:$0xff] }
0x39f7   :  { %v11173_v42 = vadd.f32 %v14171_v27, %v11172_v45  ;;  %v11190_v32 = vpop.xlane.xlu1 %11189 }
0x39f8   :  { %v11184_v56 = vadd.f32 %v11178_v13, %v16185_v4  ;;  %v11198_v1 = vmul.f32 0.03125, %v11190_v32  ;;  %v11187_v57 = vpop.xlane.xlu0 %11186 }
0x39f9   :  { %v11183_v40 = vadd.f32 %v11173_v42, %v16182_v47  ;;  %v11197_v20 = vmul.f32 0.03125, %v11187_v57  ;;  %v11245_v47 = vld [vmem:[%s16364_s7] sm:$0xff] }
0x39fa   :  { %v11202_v6 = vsub.f32 %v11182_v48, %v11198_v1  ;;  %v11194_v59 = vsel %vm132_vm0, %v11184_v56, 0.0  ;;  %v13470_v36 = vpack.c.bf16 %v11246_v17, %v11245_v47 }
0x39fb   :  { %v11201_v63 = vsub.f32 %v11181_v60, %v11197_v20  ;;  %11195 = vadd.xlane.f32.xlu1 %v11194_v59  ;;  %v11191_v34 = vsel %vm132_vm0, %v11183_v40, 0.0 }
0x39fc   :  { %11192 = vadd.xlane.f32.xlu0 %v11191_v34  ;;  %v11206_v30 = vmul.f32 %v11202_v6, %v11202_v6  ;;  %13471 = vmatprep.subr.bf16.mxu0 %v13470_v36 }
0x39fd   :  { %v11205_v29 = vmul.f32 %v11201_v63, %v11201_v63  ;;  %13473 = vmatpush3.bf16.msra.mxu0 %v13470_v36 }
0x39fe   :  { %v11212_v38 = vsel %vm132_vm0, %v11206_v30, 0.0  ;;  %13475 = vmatprep.subr.bf16.mxu0 %v13474_v9 }
0x39ff   :  { %11213 = vadd.xlane.f32.xlu1 %v11212_v38  ;;  %v11209_v4 = vsel %vm132_vm0, %v11205_v29, 0.0 }
0x3a00   :  { %11210 = vadd.xlane.f32.xlu0 %v11209_v4 }
0x3a01   :  { %13477 = vmatpush3.bf16.msra.mxu0 %v13474_v9 }
0x3a88   :  { %v11196_v19 = vpop.xlane.xlu1 %11195 }
0x3a89   :  { %v11200_v43 = vmul.f32 0.03125, %v11196_v19  ;;  %v11193_v51 = vpop.xlane.xlu0 %11192 }
0x3a8a   :  { %v11199_v15 = vmul.f32 0.03125, %v11193_v51 }
0x3a8b   :  { %v11204_v52 = vsub.f32 %v11184_v56, %v11200_v43 }
0x3a8c   :  { %v11203_v58 = vsub.f32 %v11183_v40, %v11199_v15  ;;  %v11214_v28 = vpop.xlane.xlu1 %11213 }
0x3a8d   :  { %v11222_v31 = vmul.f32 0.03125, %v11214_v28  ;;  %v11211_v11 = vpop.xlane.xlu0 %11210  ;;  %v11208_v24 = vmul.f32 %v11204_v52, %v11204_v52 }
0x3a8e   :  { %v11221_v41 = vmul.f32 0.03125, %v11211_v11  ;;  %v11207_v10 = vmul.f32 %v11203_v58, %v11203_v58 }
0x3a8f   :  { %v11226_v3 = vadd.f32 1e-05, %v11222_v31  ;;  %v11218_v50 = vsel %vm132_vm0, %v11208_v24, 0.0 }
0x3a90   :  { %v11225_v54 = vadd.f32 1e-05, %v11221_v41  ;;  %11219 = vadd.xlane.f32.xlu1 %v11218_v50  ;;  %v11215_v25 = vsel %vm132_vm0, %v11207_v10, 0.0 }
0x3a91   :  { %14127 = vrsqrt.f32 %v11226_v3  ;;  %11216 = vadd.xlane.f32.xlu0 %v11215_v25 }
0x3a92   :  { %14129 = vrsqrt.f32 %v11225_v54 }
0x3a9b   :  { %v14128_v14 = vpop.eup %14127 }
0x3a9c   :  { %v14130_v22 = vpop.eup %14129  ;;  %v11234_v49 = vmul.f32 %v14128_v14, %v11202_v6 }
0x3a9d   :  { %v11233_v61 = vmul.f32 %v14130_v22, %v11201_v63 }
0x3a9e   :  { %v11238_v53 = vmul.f32 %v16160_v8, %v11234_v49 }
0x3a9f   :  { %v11237_v5 = vmul.f32 %v16160_v8, %v11233_v61 }
0x3aa0   :  { %v11242_v35 = vadd.f32 %v16167_v62, %v11238_v53 }
0x3aa1   :  { %v11241_v26 = vadd.f32 %v16167_v62, %v11237_v5 }
0x3aa3   :  { %13008 = vmatprep.mubr.msk.f32.mxu0 %vm132_vm0, %v11241_v26 }
0x3aa4   :  { %13009 = vmatmul.mubr.msk.f32.vlgmr.msra.gmra.mrb[94].mxu0 %vm132_vm0, %v11242_v35 }
0x3b1d   :  { %v11220_v16 = vpop.xlane.xlu1 %11219 }
0x3b1e   :  { %v11224_v12 = vmul.f32 0.03125, %v11220_v16  ;;  %v11217_v2 = vpop.xlane.xlu0 %11216 }
0x3b1f   :  { %v11223_v37 = vmul.f32 0.03125, %v11217_v2 }
0x3b20   :  { %v11228_v39 = vadd.f32 1e-05, %v11224_v12 }
0x3b21   :  { %v11227_v33 = vadd.f32 1e-05, %v11223_v37 }
0x3b22   :  { %14131 = vrsqrt.f32 %v11228_v39 }
0x3b23   :  { %14133 = vrsqrt.f32 %v11227_v33 }
0x3b2c   :  { %v14132_v27 = vpop.eup %14131 }
0x3b2d   :  { %v14134_v46 = vpop.eup %14133  ;;  %v11236_v0 = vmul.f32 %v14132_v27, %v11204_v52 }
0x3b2e   :  { %v11235_v23 = vmul.f32 %v14134_v46, %v11203_v58 }
0x3b2f   :  { %v11240_v48 = vmul.f32 %v16160_v8, %v11236_v0 }
0x3b30   :  { %v11239_v60 = vmul.f32 %v16160_v8, %v11235_v23 }
0x3b31   :  { %v11244_v55 = vadd.f32 %v16167_v62, %v11240_v48 }
0x3b32   :  { %v11243_v21 = vadd.f32 %v16167_v62, %v11239_v60 }
0x3b34   :  { %13011 = vmatprep.mubr.msk.f32.mxu0 %vm132_vm0, %v11243_v21 }
0x3b35   :  { %13012 = vmatmul.mubr.msk.f32.gmra.mrb[96].mxu0 %vm132_vm0, %v11244_v55 }
0x3b77   :  { %v13010_v13 = vpop.f32.mrb[94].mxu0 }
0x3b78   :  { %v11340_v45 = vadd.f32 %v13010_v13, %v11693_v18  ;;  %v11334_v42 = vpop.f32.mrb[95].mxu0 }
0x3b79   :  { %v11335_v32 = vadd.f32 %v11693_v18, %v11334_v42 }
0x3b7a   :  { %11354 = vst [vmem:[#allocation2 + $0x8] sm:$0xff] %v11340_v45 }
0x3b7b   :  { %11353 = vst [vmem:[#allocation2] sm:$0xff] %v11335_v32 }
0x3c08   :  { %v13013_v8 = vpop.f32.mrb[96].mxu0 }
0x3c09   :  { %v11350_v56 = vadd.f32 %v13013_v8, %v11693_v18  ;;  %v11344_v1 = vpop.f32.mrb[97].mxu0 }
0x3c0a   :  { %v11345_v62 = vadd.f32 %v11693_v18, %v11344_v1 }
0x3c0b   :  { %11356 = vst [vmem:[#allocation2 + $0x18] sm:$0xff] %v11350_v56 }
0x3c0c   :  { %11355 = vst [vmem:[#allocation2 + $0x10] sm:$0xff] %v11345_v62 }
0x3c0d   :  { %14183 = shalt.err (!%p14180_p4)
}
0x3c0e   :  { %s16366_s8 = sld [smem:[#allocation22_spill]] }
0x3c14   :  { %s14184_s18 = scalar_lea.hbm %s16366_s8, 512 }
0x3c15   :  { %p14185_p5 = scmp.ne.s32.totalorder %s16366_s8, %s14184_s18  ;;  %p14188_p6 = scmp.lt.u32.totalorder %s14184_s18, %s16366_s8 }
0x3c17   :  { %p14190_p7 = pnand %p14188_p6, %p14185_p5 }
0x3c19   :  { %14193 = shalt.err (!%p14190_p7)
}
0x3c1a   :  { %s14209_s17 = smov 128   ;;  %s14210_s22 = smov 8  }
0x3c1b   :  { %11368 = dma.vmem_to_hbm [thread:$0]  %s11363_s24, 512, %s16366_s8, [#allocation3], %s14209_s17, %s14209_s17, %s14210_s22  }
0x3c1c   :  { %14194 = dma.done.wait [#allocation3], 512  }
0x3c1d   :  { %14195 = vsyncadd [#allocation3], 4294966784 }
0x3c1e   :  { %11372 = vsyncpa [#allocation3], 1 }

</bundles_post_ra>
